<compile_context>
chip_gen: v6e
topology: v6e:2x2x1
jax: 0.10.0
libtpu: 0.0.40
codegen_flags: <defaults>
</compile_context>

<pallas_src>
import functools

import jax
import jax.numpy as jnp
from jax.experimental import pallas as pl
from jax.experimental.pallas import tpu as pltpu


GROWTH_RATE = 32
BN_SIZE = 4
BLOCK_CONFIG = (6, 12, 24, 16)
NUM_INIT_FEATURES = 64
BN_EPS = 1e-5


def _round_up(x, m):
    return (x + m - 1) // m * m


def _pick_tm(m, cap=512):
    """Largest multiple-of-8 divisor of m (<= cap); pad m only if none exists."""
    if m % 8 == 0:
        best = 8
        for t in range(8, cap + 1, 8):
            if m % t == 0:
                best = t
        return best, m
    if m <= cap:
        mp = _round_up(m, 8)
        return mp, mp
    return 256, _round_up(m, 256)


# ---------------------- fused matmul (+BN+ReLU) kernel -----------------------

def _fused_matmul_kernel(a_ref, w_ref, ps_ref, pb_ref, qs_ref, qb_ref,
                         o_ref, acc_ref, *, pre, post):
    k = pl.program_id(1)

    @pl.when(k == 0)
    def _():
        acc_ref[...] = jnp.zeros_like(acc_ref)

    a = a_ref[...]
    if pre:  # per-input-channel folded BN + ReLU prologue (f32 math, bf16 MXU)
        a = jnp.maximum(a.astype(jnp.float32) * ps_ref[...] + pb_ref[...], 0.0)
        a = a.astype(w_ref.dtype)
    acc_ref[...] += jnp.dot(a, w_ref[...], preferred_element_type=jnp.float32)

    @pl.when(k == pl.num_programs(1) - 1)
    def _():
        y = acc_ref[...]
        if post:  # per-output-channel folded BN + ReLU epilogue
            y = jnp.maximum(y * qs_ref[...] + qb_ref[...], 0.0)
        o_ref[...] = y.astype(o_ref.dtype)


def fused_matmul(a, w, pre_sb=None, post_sb=None, *, out_dtype=jnp.bfloat16):
    """out = epilogue( prologue(a[:, :K]) @ w ); prologue/epilogue = BN+ReLU.

    `a` is (M, Ka) with Ka >= K = w.shape[0]; only the first K channels of `a`
    contribute (weight rows are zero-padded to the K-tile boundary), so a wider
    channel-prefix buffer can be passed without slicing/copying.
    """
    m, ka = a.shape
    k_real, n = w.shape

    if a.dtype != jnp.bfloat16:
        a = a.astype(jnp.bfloat16)
    w = w.astype(jnp.bfloat16)

    # K tiling (reduction axis, innermost grid dim).
    tk = 256 if (ka % 256 == 0 and _round_up(k_real, 256) <= ka) else 128
    kp = _round_up(k_real, tk)
    if ka < kp:
        a = jnp.pad(a, ((0, 0), (0, kp - ka)))
    if k_real < kp:
        w = jnp.pad(w, ((0, kp - k_real), (0, 0)))

    # M tiling.
    tm, mp = _pick_tm(m)
    if mp > m:
        a = jnp.pad(a, ((0, mp - m), (0, 0)))

    if pre_sb is not None:
        ps = jnp.pad(pre_sb[0].astype(jnp.float32), (0, kp - k_real)).reshape(1, kp)
        pb = jnp.pad(pre_sb[1].astype(jnp.float32), (0, kp - k_real)).reshape(1, kp)
    else:
        ps = jnp.zeros((1, kp), jnp.float32)
        pb = jnp.zeros((1, kp), jnp.float32)
    if post_sb is not None:
        qs = post_sb[0].astype(jnp.float32).reshape(1, n)
        qb = post_sb[1].astype(jnp.float32).reshape(1, n)
    else:
        qs = jnp.zeros((1, n), jnp.float32)
        qb = jnp.zeros((1, n), jnp.float32)

    out = pl.pallas_call(
        functools.partial(_fused_matmul_kernel,
                          pre=pre_sb is not None, post=post_sb is not None),
        out_shape=jax.ShapeDtypeStruct((mp, n), out_dtype),
        grid_spec=pltpu.PrefetchScalarGridSpec(
            num_scalar_prefetch=0,
            grid=(mp // tm, kp // tk),
            in_specs=[pl.BlockSpec((tm, tk), lambda i, k: (i, k)),
                      pl.BlockSpec((tk, n), lambda i, k: (k, 0)),
                      pl.BlockSpec((1, tk), lambda i, k: (0, k)),
                      pl.BlockSpec((1, tk), lambda i, k: (0, k)),
                      pl.BlockSpec((1, n), lambda i, k: (0, 0)),
                      pl.BlockSpec((1, n), lambda i, k: (0, 0))],
            out_specs=pl.BlockSpec((tm, n), lambda i, k: (i, 0)),
            scratch_shapes=[pltpu.VMEM((tm, n), jnp.float32)],
        ),
        compiler_params=pltpu.CompilerParams(
            dimension_semantics=("parallel", "arbitrary")),
    )(a, w, ps, pb, qs, qb)
    return out[:m] if mp > m else out


# ------------------------------ pooling kernels ------------------------------

def _pool_reduce_kernel(x_ref, o_ref, *, k, ho, op):
    # x_ref block: (1, k*ho, wo, c) -- k stacked shifted views along dim 1.
    x = x_ref[0]
    acc = x[0:ho]
    for i in range(1, k):                     # static python loop, k in {4, 9}
        v = x[i * ho:(i + 1) * ho]            # contiguous static value slice
        acc = jnp.maximum(acc, v) if op == "max" else acc + v
    if op == "mean":
        acc = acc * (1.0 / k)
    o_ref[0] = acc.astype(o_ref.dtype)


def pool2d(x, *, win, stride, pad, op):
    """Window pooling: XLA strided shift-gather (tiny) + Pallas reduce kernel.

    Avoids strided Ref reads inside the kernel (unsupported indexer); the
    stacked views are small relative to the conv work of the network.
    """
    nb, h, w, c = x.shape
    ho = (h + 2 * pad - win) // stride + 1
    wo = (w + 2 * pad - win) // stride + 1
    if pad:
        # Max-pool input is post-ReLU (>= 0), so zero padding == -inf padding.
        x = jnp.pad(x, ((0, 0), (pad, pad), (pad, pad), (0, 0)))
    k = win * win
    patches = [x[:, di:di + stride * (ho - 1) + 1:stride,
                 dj:dj + stride * (wo - 1) + 1:stride, :]
               for di in range(win) for dj in range(win)]
    xs = jnp.concatenate(patches, axis=1)               # (nb, k*ho, wo, c)
    return pl.pallas_call(
        functools.partial(_pool_reduce_kernel, k=k, ho=ho, op=op),
        out_shape=jax.ShapeDtypeStruct((nb, ho, wo, c), x.dtype),
        grid=(nb,),
        in_specs=[pl.BlockSpec((1, k * ho, wo, c), lambda n: (n, 0, 0, 0))],
        out_specs=pl.BlockSpec((1, ho, wo, c), lambda n: (n, 0, 0, 0)),
        compiler_params=pltpu.CompilerParams(dimension_semantics=("parallel",)),
    )(xs)


def _gap_kernel(x_ref, s_ref, b_ref, o_ref):
    x = x_ref[0].astype(jnp.float32)                    # (H*W, C)
    y = jnp.maximum(x * s_ref[0] + b_ref[0], 0.0)       # fused norm5 + ReLU
    o_ref[0, 0] = jnp.mean(y, axis=0)


def global_pool_bn_relu(x, scale_bias):
    """norm5 + ReLU + global average pool, fused in one kernel."""
    nb, h, w, c = x.shape
    scale, bias = scale_bias
    xr = x.reshape(nb, h * w, c)
    out = pl.pallas_call(
        _gap_kernel,
        out_shape=jax.ShapeDtypeStruct((nb, 1, c), jnp.float32),
        grid=(nb,),
        in_specs=[pl.BlockSpec((1, h * w, c), lambda n: (n, 0, 0)),
                  pl.BlockSpec((1, c), lambda n: (0, 0)),
                  pl.BlockSpec((1, c), lambda n: (0, 0))],
        out_specs=pl.BlockSpec((1, 1, c), lambda n: (n, 0, 0)),
        compiler_params=pltpu.CompilerParams(dimension_semantics=("parallel",)),
    )(xr, scale.astype(jnp.float32).reshape(1, c),
      bias.astype(jnp.float32).reshape(1, c))
    return out.reshape(nb, c)


# ------------------------------ classifier head ------------------------------

def _head_kernel(x_ref, w_ref, b_ref, o_ref):
    y = jnp.dot(x_ref[...], w_ref[...],
                preferred_element_type=jnp.float32) + b_ref[...]
    o_ref[...] = jax.nn.sigmoid(y)


def linear_sigmoid(x, w, b):
    m, k = x.shape
    n = w.shape[1]
    mp = _round_up(m, 8)
    xp = jnp.pad(x, ((0, mp - m), (0, 0))) if mp > m else x
    out = pl.pallas_call(
        _head_kernel,
        out_shape=jax.ShapeDtypeStruct((mp, n), jnp.float32),
        grid=(1,),
        in_specs=[pl.BlockSpec((mp, k), lambda i: (0, 0)),
                  pl.BlockSpec((k, n), lambda i: (0, 0)),
                  pl.BlockSpec((1, n), lambda i: (0, 0))],
        out_specs=pl.BlockSpec((mp, n), lambda i: (0, 0)),
    )(xp, w, b.reshape(1, n))
    return out[:m]


# ------------------------- conv layers (glue + kernels) ----------------------

def conv1x1_fused(x, w_hwio, pre_sb, post_sb, out_dtype=jnp.bfloat16):
    """norm+ReLU prologue -> 1x1 conv -> optional norm+ReLU epilogue (fused).

    `x` may be a channel-prefix buffer wider than the conv's input channels;
    only the first w_hwio.shape[2] channels are used.
    """
    nb, h, w, _ = x.shape
    cin, cout = w_hwio.shape[2], w_hwio.shape[3]
    a = x.reshape(nb * h * w, x.shape[3])
    out = fused_matmul(a, w_hwio.reshape(cin, cout), pre_sb, post_sb,
                       out_dtype=out_dtype)
    return out.reshape(nb, h, w, cout)


def conv3x3_kn2row(t, w_hwio):
    """3x3 stride-1 pad-1 conv via kn2row: one lane-dense matmul against the
    (Cin, 9*Cout) weight followed by a cheap shift-add (no im2col)."""
    nb, h, w, cin = t.shape
    kh, kw, _, cout = w_hwio.shape
    tp = jnp.pad(t, ((0, 0), (1, 1), (1, 1), (0, 0)))
    hp, wp = h + 2, w + 2
    a = tp.reshape(nb * hp * wp, cin)
    w2d = jnp.transpose(w_hwio, (2, 0, 1, 3)).reshape(cin, kh * kw * cout)
    y = fused_matmul(a, w2d, None, None, out_dtype=jnp.bfloat16)
    yr = y.reshape(nb, hp, wp, kh * kw, cout)
    out = None
    for di in range(kh):
        for dj in range(kw):
            v = yr[:, di:di + h, dj:dj + w, di * kw + dj, :].astype(jnp.float32)
            out = v if out is None else out + v
    return out.astype(jnp.bfloat16)


def conv_stem(x, w_hwio, norm_sb):
    """7x7 stride-2 pad-3 conv with fused BN+ReLU epilogue.
    TODO(synk): the stem still builds an explicit im2col (Cin=3, so the
    expanded tensor is small); the 58 dense-layer 3x3 convs avoid im2col."""
    nb, h, w, cin = x.shape
    kh = kw = 7
    stride, pad = 2, 3
    ho = (h + 2 * pad - kh) // stride + 1
    wo = (w + 2 * pad - kw) // stride + 1
    xp = jnp.pad(x, ((0, 0), (pad, pad), (pad, pad), (0, 0)))
    patches = [xp[:, i:i + stride * ho:stride, j:j + stride * wo:stride, :]
               for i in range(kh) for j in range(kw)]
    k = kh * kw * cin
    kp = _round_up(k, 256)
    patches.append(jnp.zeros((nb, ho, wo, kp - k), x.dtype))
    cols = jnp.concatenate(patches, axis=-1).reshape(nb * ho * wo, kp)
    cout = w_hwio.shape[3]
    out = fused_matmul(cols, w_hwio.reshape(k, cout), None, norm_sb,
                       out_dtype=jnp.float32)
    return out.reshape(nb, ho, wo, cout)


# --------------------------------- parameters --------------------------------

class ParamGen:
    def __init__(self, key):
        self.key = key
        self.i = 0

    def _next(self):
        self.i += 1
        return jax.random.fold_in(self.key, self.i)

    def conv(self, kh, kw, cin, cout):
        std = (1.0 / (kh * kw * cin)) ** 0.5
        return std * jax.random.normal(self._next(), (kh, kw, cin, cout),
                                       jnp.float32)

    def bn(self, c):
        gamma = 1.0 + 0.05 * jax.random.normal(self._next(), (c,), jnp.float32)
        beta = 0.05 * jax.random.normal(self._next(), (c,), jnp.float32)
        mean = 0.05 * jax.random.normal(self._next(), (c,), jnp.float32)
        var = jnp.abs(
            1.0 + 0.05 * jax.random.normal(self._next(), (c,), jnp.float32))
        scale = gamma / jnp.sqrt(var + BN_EPS)
        bias = beta - mean * scale
        return scale, bias

    def linear(self, cin, cout):
        std = (1.0 / cin) ** 0.5
        w = std * jax.random.normal(self._next(), (cin, cout), jnp.float32)
        b = 0.01 * jax.random.normal(self._next(), (cout,), jnp.float32)
        return w, b


def init_params(key, class_count):
    pg = ParamGen(key)
    p = {}
    p["conv0"] = pg.conv(7, 7, 3, NUM_INIT_FEATURES)
    p["norm0"] = pg.bn(NUM_INIT_FEATURES)
    num_features = NUM_INIT_FEATURES
    for bi, n_layers in enumerate(BLOCK_CONFIG):
        nf = num_features
        for li in range(n_layers):
            k = f"b{bi}_l{li}"
            p[k + "_norm1"] = pg.bn(nf)
            p[k + "_conv1"] = pg.conv(1, 1, nf, BN_SIZE * GROWTH_RATE)
            p[k + "_norm2"] = pg.bn(BN_SIZE * GROWTH_RATE)
            p[k + "_conv2"] = pg.conv(3, 3, BN_SIZE * GROWTH_RATE, GROWTH_RATE)
            nf += GROWTH_RATE
        num_features = nf
        if bi != len(BLOCK_CONFIG) - 1:
            p[f"t{bi}_norm"] = pg.bn(num_features)
            p[f"t{bi}_conv"] = pg.conv(1, 1, num_features, num_features // 2)
            num_features //= 2
    p["norm5"] = pg.bn(num_features)
    p["fc_w"], p["fc_b"] = pg.linear(num_features, class_count)  # 1024 -> C
    return p


# ----------------------------------- forward ---------------------------------

def densenet121_forward(params, x_nchw):
    p = params
    x = jnp.transpose(x_nchw, (0, 2, 3, 1)).astype(jnp.bfloat16)  # NCHW -> NHWC

    # Stem: 7x7/2 conv (+ fused BN+ReLU epilogue), then 3x3/2 max pool.
    x = conv_stem(x, p["conv0"], p["norm0"])          # f32 (pool input)
    x = pool2d(x, win=3, stride=2, pad=1, op="max")

    num_features = NUM_INIT_FEATURES
    for bi, n_layers in enumerate(BLOCK_CONFIG):
        nb, h, w, _ = x.shape
        c0 = num_features
        c_tot = c0 + n_layers * GROWTH_RATE
        # Pre-allocated concat buffer: every dense layer writes its 32-channel
        # output into its slice once; the following 1x1 convs read a channel
        # prefix directly (the per-layer jnp.concatenate is never materialized).
        buf = jnp.zeros((nb, h, w, c_tot), jnp.bfloat16)
        buf = buf.at[..., :c0].set(x.astype(jnp.bfloat16))
        c = c0
        for li in range(n_layers):
            k = f"b{bi}_l{li}"
            # norm1+ReLU (prologue) -> 1x1 conv -> norm2+ReLU (epilogue), fused.
            t = conv1x1_fused(buf, p[k + "_conv1"], p[k + "_norm1"],
                              p[k + "_norm2"])
            y = conv3x3_kn2row(t, p[k + "_conv2"])
            buf = buf.at[..., c:c + GROWTH_RATE].set(y)
            c += GROWTH_RATE
        num_features = c_tot
        if bi != len(BLOCK_CONFIG) - 1:
            # Transition: norm+ReLU (prologue) -> 1x1 conv -> 2x2 avg pool.
            xt = conv1x1_fused(buf, p[f"t{bi}_conv"], p[f"t{bi}_norm"], None,
                               out_dtype=jnp.float32)
            x = pool2d(xt, win=2, stride=2, pad=0, op="mean")
            num_features = c_tot // 2
        else:
            x = buf

    pooled = global_pool_bn_relu(x, p["norm5"])        # (N, 1024) f32
    return linear_sigmoid(pooled, p["fc_w"], p["fc_b"])  # (N, classCount)


# ------------------------------------ main ------------------------------------

if __name__ == "__main__":
    key = jax.random.PRNGKey(0)
    class_count = 14                       # CheXNet-style multi-label head
    batch, in_ch, spatial = 2, 3, 32       # small but valid for 5 downsamples

    params = init_params(key, class_count)
    x = jax.random.normal(jax.random.fold_in(key, 12345),
                          (batch, in_ch, spatial, spatial), jnp.float32)

    fwd = jax.jit(densenet121_forward)
    out = jax.block_until_ready(fwd(params, x))
    assert out.shape == (batch, class_count)
    assert bool(jnp.all(jnp.isfinite(out)))
    print("KERNEL_OK")
</pallas_src>

<mosaic_0001>
module attributes {stable_mosaic.version = 11 : i64} {
  func.func @_fused_matmul_kernel(%arg0: i32, %arg1: i32, %arg2: memref<512x256xbf16, #tpu.memory_space<vmem>>, %arg3: memref<256x64xbf16, #tpu.memory_space<vmem>>, %arg4: memref<1x256xf32, #tpu.memory_space<vmem>>, %arg5: memref<1x256xf32, #tpu.memory_space<vmem>>, %arg6: memref<1x64xf32, #tpu.memory_space<vmem>>, %arg7: memref<1x64xf32, #tpu.memory_space<vmem>>, %arg8: memref<512x64xf32, #tpu.memory_space<vmem>>, %arg9: memref<512x64xf32, #tpu.memory_space<vmem>>) attributes {dimension_semantics = [#tpu.dimension_semantics<parallel>, #tpu.dimension_semantics<arbitrary>], iteration_bounds = array<i64: 1, 1>, scalar_prefetch = 0 : i64, scratch_operands = 1 : i64, tpu.core_type = #tpu.core_type<tc>, window_params = [{transform_indices = @transform_0, window_bounds = array<i64: 512, 256>}, {transform_indices = @transform_1, window_bounds = array<i64: 256, 64>}, {transform_indices = @transform_2, window_bounds = array<i64: 1, 256>}, {transform_indices = @transform_3, window_bounds = array<i64: 1, 256>}, {pipeline_mode = #tpu.pipeline_mode<synchronous>, transform_indices = @transform_4, window_bounds = array<i64: 1, 64>}, {pipeline_mode = #tpu.pipeline_mode<synchronous>, transform_indices = @transform_5, window_bounds = array<i64: 1, 64>}, {transform_indices = @transform_6, window_bounds = array<i64: 512, 64>}]} {
    %c0_i32 = arith.constant 0 : i32
    %0 = arith.cmpi eq, %arg1, %c0_i32 : i32
    %1 = arith.extui %0 : i1 to i32
    %c0_i32_0 = arith.constant 0 : i32
    %2 = arith.cmpi ne, %1, %c0_i32_0 : i32
    scf.if %2 {
      %cst_10 = arith.constant 0.000000e+00 : f32
      %12 = vector.broadcast %cst_10 : f32 to vector<512x64xf32>
      %c0_11 = arith.constant 0 : index
      %c0_12 = arith.constant 0 : index
      %13 = vector.load %arg9[%c0_11, %c0_12] : memref<512x64xf32, #tpu.memory_space<vmem>>, vector<512x64xf32>
      tpu.vector_store %arg9[%c0_11, %c0_12], %12 {strides = array<i32>} : memref<512x64xf32, #tpu.memory_space<vmem>>, vector<512x64xf32>,
    } else {
    }
    %c0 = arith.constant 0 : index
    %c0_1 = arith.constant 0 : index
    %3 = vector.load %arg2[%c0, %c0_1] : memref<512x256xbf16, #tpu.memory_space<vmem>>, vector<512x256xbf16>
    %c0_2 = arith.constant 0 : index
    %c0_3 = arith.constant 0 : index
    %4 = vector.load %arg9[%c0_2, %c0_3] : memref<512x64xf32, #tpu.memory_space<vmem>>, vector<512x64xf32>
    %c0_4 = arith.constant 0 : index
    %c0_5 = arith.constant 0 : index
    %5 = vector.load %arg3[%c0_4, %c0_5] : memref<256x64xbf16, #tpu.memory_space<vmem>>, vector<256x64xbf16>
    %cst = arith.constant dense<0.000000e+00> : vector<512x64xf32>
    %6 = tpu.matmul %3, %5, %cst {dimension_numbers = #tpu.dot_dimension_numbers<[1], [0], [0], [1], [0, 0, 1, 1], [], []>} : vector<512x256xbf16>, vector<256x64xbf16>, vector<512x64xf32> -> vector<512x64xf32>
    %7 = arith.addf %4, %6 : vector<512x64xf32>
    %c0_6 = arith.constant 0 : index
    %c0_7 = arith.constant 0 : index
    %8 = vector.load %arg9[%c0_6, %c0_7] : memref<512x64xf32, #tpu.memory_space<vmem>>, vector<512x64xf32>
    tpu.vector_store %arg9[%c0_6, %c0_7], %7 {strides = array<i32>} : memref<512x64xf32, #tpu.memory_space<vmem>>, vector<512x64xf32>,
    %c0_i32_8 = arith.constant 0 : i32
    %9 = arith.cmpi eq, %arg1, %c0_i32_8 : i32
    %10 = arith.extui %9 : i1 to i32
    %c0_i32_9 = arith.constant 0 : i32
    %11 = arith.cmpi ne, %10, %c0_i32_9 : i32
    scf.if %11 {
      %c0_10 = arith.constant 0 : index
      %c0_11 = arith.constant 0 : index
      %12 = vector.load %arg9[%c0_10, %c0_11] : memref<512x64xf32, #tpu.memory_space<vmem>>, vector<512x64xf32>
      %c0_12 = arith.constant 0 : index
      %c0_13 = arith.constant 0 : index
      %13 = vector.load %arg6[%c0_12, %c0_13] : memref<1x64xf32, #tpu.memory_space<vmem>>, vector<1x64xf32>
      %14 = vector.broadcast %13 : vector<1x64xf32> to vector<512x64xf32>
      %15 = arith.mulf %12, %14 : vector<512x64xf32>
      %c0_14 = arith.constant 0 : index
      %c0_15 = arith.constant 0 : index
      %16 = vector.load %arg7[%c0_14, %c0_15] : memref<1x64xf32, #tpu.memory_space<vmem>>, vector<1x64xf32>
      %17 = vector.broadcast %16 : vector<1x64xf32> to vector<512x64xf32>
      %18 = arith.addf %15, %17 : vector<512x64xf32>
      %cst_16 = arith.constant 0.000000e+00 : f32
      %19 = vector.broadcast %cst_16 : f32 to vector<512x64xf32>
      %20 = arith.maximumf %18, %19 : vector<512x64xf32>
      %c0_17 = arith.constant 0 : index
      %c0_18 = arith.constant 0 : index
      %21 = vector.load %arg8[%c0_17, %c0_18] : memref<512x64xf32, #tpu.memory_space<vmem>>, vector<512x64xf32>
      tpu.vector_store %arg8[%c0_17, %c0_18], %20 {strides = array<i32>} : memref<512x64xf32, #tpu.memory_space<vmem>>, vector<512x64xf32>,
    } else {
    }
    return
  }
  func.func @transform_0(%arg0: i32, %arg1: i32) -> (i32, i32) {
    %c0_i32 = arith.constant 0 : i32
    return %arg0, %arg1 : i32, i32
  }
  func.func @transform_1(%arg0: i32, %arg1: i32) -> (i32, i32) {
    %c0_i32 = arith.constant 0 : i32
    %c0_i32_0 = arith.constant 0 : i32
    return %arg1, %c0_i32 : i32, i32
  }
  func.func @transform_2(%arg0: i32, %arg1: i32) -> (i32, i32) {
    %c0_i32 = arith.constant 0 : i32
    %c0_i32_0 = arith.constant 0 : i32
    return %c0_i32, %arg1 : i32, i32
  }
  func.func @transform_3(%arg0: i32, %arg1: i32) -> (i32, i32) {
    %c0_i32 = arith.constant 0 : i32
    %c0_i32_0 = arith.constant 0 : i32
    return %c0_i32, %arg1 : i32, i32
  }
  func.func @transform_4(%arg0: i32, %arg1: i32) -> (i32, i32) {
    %c0_i32 = arith.constant 0 : i32
    %c0_i32_0 = arith.constant 0 : i32
    %c0_i32_1 = arith.constant 0 : i32
    return %c0_i32, %c0_i32_0 : i32, i32
  }
  func.func @transform_5(%arg0: i32, %arg1: i32) -> (i32, i32) {
    %c0_i32 = arith.constant 0 : i32
    %c0_i32_0 = arith.constant 0 : i32
    %c0_i32_1 = arith.constant 0 : i32
    return %c0_i32, %c0_i32_0 : i32, i32
  }
  func.func @transform_6(%arg0: i32, %arg1: i32) -> (i32, i32) {
    %c0_i32 = arith.constant 0 : i32
    %c0_i32_0 = arith.constant 0 : i32
    return %arg0, %c0_i32 : i32, i32
  }
}

module attributes {stable_mosaic.version = 11 : i64} {
  func.func @_pool_reduce_kernel(%arg0: i32, %arg1: memref<1x72x8x64xf32, #tpu.memory_space<vmem>>, %arg2: memref<1x8x8x64xf32, #tpu.memory_space<vmem>>) attributes {dimension_semantics = [#tpu.dimension_semantics<parallel>], iteration_bounds = array<i64: 2>, scalar_prefetch = 0 : i64, scratch_operands = 0 : i64, tpu.core_type = #tpu.core_type<tc>, window_params = [{transform_indices = @transform_0, window_bounds = array<i64: 1, 72, 8, 64>}, {transform_indices = @transform_1, window_bounds = array<i64: 1, 8, 8, 64>}]} {
    %c0 = arith.constant 0 : index
    %c0_0 = arith.constant 0 : index
    %c0_1 = arith.constant 0 : index
    %c0_2 = arith.constant 0 : index
    %0 = vector.load %arg1[%c0, %c0_0, %c0_1, %c0_2] : memref<1x72x8x64xf32, #tpu.memory_space<vmem>>, vector<1x72x8x64xf32>
    %1 = vector.shape_cast %0 : vector<1x72x8x64xf32> to vector<72x8x64xf32>
    %2 = vector.extract_strided_slice %1 {offsets = [0, 0, 0], sizes = [8, 8, 64], strides = [1, 1, 1]} : vector<72x8x64xf32> to vector<8x8x64xf32>
    %3 = vector.extract_strided_slice %1 {offsets = [8, 0, 0], sizes = [8, 8, 64], strides = [1, 1, 1]} : vector<72x8x64xf32> to vector<8x8x64xf32>
    %4 = arith.maximumf %2, %3 : vector<8x8x64xf32>
    %5 = vector.extract_strided_slice %1 {offsets = [16, 0, 0], sizes = [8, 8, 64], strides = [1, 1, 1]} : vector<72x8x64xf32> to vector<8x8x64xf32>
    %6 = arith.maximumf %4, %5 : vector<8x8x64xf32>
    %7 = vector.extract_strided_slice %1 {offsets = [24, 0, 0], sizes = [8, 8, 64], strides = [1, 1, 1]} : vector<72x8x64xf32> to vector<8x8x64xf32>
    %8 = arith.maximumf %6, %7 : vector<8x8x64xf32>
    %9 = vector.extract_strided_slice %1 {offsets = [32, 0, 0], sizes = [8, 8, 64], strides = [1, 1, 1]} : vector<72x8x64xf32> to vector<8x8x64xf32>
    %10 = arith.maximumf %8, %9 : vector<8x8x64xf32>
    %11 = vector.extract_strided_slice %1 {offsets = [40, 0, 0], sizes = [8, 8, 64], strides = [1, 1, 1]} : vector<72x8x64xf32> to vector<8x8x64xf32>
    %12 = arith.maximumf %10, %11 : vector<8x8x64xf32>
    %13 = vector.extract_strided_slice %1 {offsets = [48, 0, 0], sizes = [8, 8, 64], strides = [1, 1, 1]} : vector<72x8x64xf32> to vector<8x8x64xf32>
    %14 = arith.maximumf %12, %13 : vector<8x8x64xf32>
    %15 = vector.extract_strided_slice %1 {offsets = [56, 0, 0], sizes = [8, 8, 64], strides = [1, 1, 1]} : vector<72x8x64xf32> to vector<8x8x64xf32>
    %16 = arith.maximumf %14, %15 : vector<8x8x64xf32>
    %17 = vector.extract_strided_slice %1 {offsets = [64, 0, 0], sizes = [8, 8, 64], strides = [1, 1, 1]} : vector<72x8x64xf32> to vector<8x8x64xf32>
    %18 = arith.maximumf %16, %17 : vector<8x8x64xf32>
    %c0_3 = arith.constant 0 : index
    %c0_4 = arith.constant 0 : index
    %c0_5 = arith.constant 0 : index
    %c0_6 = arith.constant 0 : index
    %19 = vector.load %arg2[%c0_3, %c0_4, %c0_5, %c0_6] : memref<1x8x8x64xf32, #tpu.memory_space<vmem>>, vector<1x8x8x64xf32>
    %20 = vector.shape_cast %19 : vector<1x8x8x64xf32> to vector<8x8x64xf32>
    %21 = vector.shape_cast %18 : vector<8x8x64xf32> to vector<1x8x8x64xf32>
    tpu.vector_store %arg2[%c0_3, %c0_4, %c0_5, %c0_6], %21 {strides = array<i32>} : memref<1x8x8x64xf32, #tpu.memory_space<vmem>>, vector<1x8x8x64xf32>,
    return
  }
  func.func @transform_0(%arg0: i32) -> (i32, i32, i32, i32) {
    %c0_i32 = arith.constant 0 : i32
    %c0_i32_0 = arith.constant 0 : i32
    %c0_i32_1 = arith.constant 0 : i32
    %c0_i32_2 = arith.constant 0 : i32
    return %arg0, %c0_i32, %c0_i32_0, %c0_i32_1 : i32, i32, i32, i32
  }
  func.func @transform_1(%arg0: i32) -> (i32, i32, i32, i32) {
    %c0_i32 = arith.constant 0 : i32
    %c0_i32_0 = arith.constant 0 : i32
    %c0_i32_1 = arith.constant 0 : i32
    %c0_i32_2 = arith.constant 0 : i32
    return %arg0, %c0_i32, %c0_i32_0, %c0_i32_1 : i32, i32, i32, i32
  }
}

module attributes {stable_mosaic.version = 11 : i64} {
  func.func @_fused_matmul_kernel(%arg0: i32, %arg1: i32, %arg2: memref<128x256xbf16, #tpu.memory_space<vmem>>, %arg3: memref<256x128xbf16, #tpu.memory_space<vmem>>, %arg4: memref<1x256xf32, #tpu.memory_space<vmem>>, %arg5: memref<1x256xf32, #tpu.memory_space<vmem>>, %arg6: memref<1x128xf32, #tpu.memory_space<vmem>>, %arg7: memref<1x128xf32, #tpu.memory_space<vmem>>, %arg8: memref<128x128xbf16, #tpu.memory_space<vmem>>, %arg9: memref<128x128xf32, #tpu.memory_space<vmem>>) attributes {dimension_semantics = [#tpu.dimension_semantics<parallel>, #tpu.dimension_semantics<arbitrary>], iteration_bounds = array<i64: 1, 1>, scalar_prefetch = 0 : i64, scratch_operands = 1 : i64, tpu.core_type = #tpu.core_type<tc>, window_params = [{transform_indices = @transform_0, window_bounds = array<i64: 128, 256>}, {transform_indices = @transform_1, window_bounds = array<i64: 256, 128>}, {transform_indices = @transform_2, window_bounds = array<i64: 1, 256>}, {transform_indices = @transform_3, window_bounds = array<i64: 1, 256>}, {pipeline_mode = #tpu.pipeline_mode<synchronous>, transform_indices = @transform_4, window_bounds = array<i64: 1, 128>}, {pipeline_mode = #tpu.pipeline_mode<synchronous>, transform_indices = @transform_5, window_bounds = array<i64: 1, 128>}, {transform_indices = @transform_6, window_bounds = array<i64: 128, 128>}]} {
    %c0_i32 = arith.constant 0 : i32
    %0 = arith.cmpi eq, %arg1, %c0_i32 : i32
    %1 = arith.extui %0 : i1 to i32
    %c0_i32_0 = arith.constant 0 : i32
    %2 = arith.cmpi ne, %1, %c0_i32_0 : i32
    scf.if %2 {
      %cst_15 = arith.constant 0.000000e+00 : f32
      %22 = vector.broadcast %cst_15 : f32 to vector<128x128xf32>
      %c0_16 = arith.constant 0 : index
      %c0_17 = arith.constant 0 : index
      %23 = vector.load %arg9[%c0_16, %c0_17] : memref<128x128xf32, #tpu.memory_space<vmem>>, vector<128x128xf32>
      tpu.vector_store %arg9[%c0_16, %c0_17], %22 {strides = array<i32>} : memref<128x128xf32, #tpu.memory_space<vmem>>, vector<128x128xf32>,
    } else {
    }
    %c0 = arith.constant 0 : index
    %c0_1 = arith.constant 0 : index
    %3 = vector.load %arg2[%c0, %c0_1] : memref<128x256xbf16, #tpu.memory_space<vmem>>, vector<128x256xbf16>
    %4 = arith.extf %3 : vector<128x256xbf16> to vector<128x256xf32>
    %c0_2 = arith.constant 0 : index
    %c0_3 = arith.constant 0 : index
    %5 = vector.load %arg4[%c0_2, %c0_3] : memref<1x256xf32, #tpu.memory_space<vmem>>, vector<1x256xf32>
    %6 = vector.broadcast %5 : vector<1x256xf32> to vector<128x256xf32>
    %7 = arith.mulf %4, %6 : vector<128x256xf32>
    %c0_4 = arith.constant 0 : index
    %c0_5 = arith.constant 0 : index
    %8 = vector.load %arg5[%c0_4, %c0_5] : memref<1x256xf32, #tpu.memory_space<vmem>>, vector<1x256xf32>
    %9 = vector.broadcast %8 : vector<1x256xf32> to vector<128x256xf32>
    %10 = arith.addf %7, %9 : vector<128x256xf32>
    %cst = arith.constant 0.000000e+00 : f32
    %11 = vector.broadcast %cst : f32 to vector<128x256xf32>
    %12 = arith.maximumf %10, %11 : vector<128x256xf32>
    %13 = arith.truncf %12 : vector<128x256xf32> to vector<128x256xbf16>
    %c0_6 = arith.constant 0 : index
    %c0_7 = arith.constant 0 : index
    %14 = vector.load %arg9[%c0_6, %c0_7] : memref<128x128xf32, #tpu.memory_space<vmem>>, vector<128x128xf32>
    %c0_8 = arith.constant 0 : index
    %c0_9 = arith.constant 0 : index
    %15 = vector.load %arg3[%c0_8, %c0_9] : memref<256x128xbf16, #tpu.memory_space<vmem>>, vector<256x128xbf16>
    %cst_10 = arith.constant dense<0.000000e+00> : vector<128x128xf32>
    %16 = tpu.matmul %13, %15, %cst_10 {dimension_numbers = #tpu.dot_dimension_numbers<[1], [0], [0], [1], [0, 0, 1, 1], [], []>} : vector<128x256xbf16>, vector<256x128xbf16>, vector<128x128xf32> -> vector<128x128xf32>
    %17 = arith.addf %14, %16 : vector<128x128xf32>
    %c0_11 = arith.constant 0 : index
    %c0_12 = arith.constant 0 : index
    %18 = vector.load %arg9[%c0_11, %c0_12] : memref<128x128xf32, #tpu.memory_space<vmem>>, vector<128x128xf32>
    tpu.vector_store %arg9[%c0_11, %c0_12], %17 {strides = array<i32>} : memref<128x128xf32, #tpu.memory_space<vmem>>, vector<128x128xf32>,
    %c0_i32_13 = arith.constant 0 : i32
    %19 = arith.cmpi eq, %arg1, %c0_i32_13 : i32
    %20 = arith.extui %19 : i1 to i32
    %c0_i32_14 = arith.constant 0 : i32
    %21 = arith.cmpi ne, %20, %c0_i32_14 : i32
    scf.if %21 {
      %c0_15 = arith.constant 0 : index
      %c0_16 = arith.constant 0 : index
      %22 = vector.load %arg9[%c0_15, %c0_16] : memref<128x128xf32, #tpu.memory_space<vmem>>, vector<128x128xf32>
      %c0_17 = arith.constant 0 : index
      %c0_18 = arith.constant 0 : index
      %23 = vector.load %arg6[%c0_17, %c0_18] : memref<1x128xf32, #tpu.memory_space<vmem>>, vector<1x128xf32>
      %24 = vector.broadcast %23 : vector<1x128xf32> to vector<128x128xf32>
      %25 = arith.mulf %22, %24 : vector<128x128xf32>
      %c0_19 = arith.constant 0 : index
      %c0_20 = arith.constant 0 : index
      %26 = vector.load %arg7[%c0_19, %c0_20] : memref<1x128xf32, #tpu.memory_space<vmem>>, vector<1x128xf32>
      %27 = vector.broadcast %26 : vector<1x128xf32> to vector<128x128xf32>
      %28 = arith.addf %25, %27 : vector<128x128xf32>
      %cst_21 = arith.constant 0.000000e+00 : f32
      %29 = vector.broadcast %cst_21 : f32 to vector<128x128xf32>
      %30 = arith.maximumf %28, %29 : vector<128x128xf32>
      %31 = arith.truncf %30 : vector<128x128xf32> to vector<128x128xbf16>
      %c0_22 = arith.constant 0 : index
      %c0_23 = arith.constant 0 : index
      %32 = vector.load %arg8[%c0_22, %c0_23] : memref<128x128xbf16, #tpu.memory_space<vmem>>, vector<128x128xbf16>
      tpu.vector_store %arg8[%c0_22, %c0_23], %31 {strides = array<i32>} : memref<128x128xbf16, #tpu.memory_space<vmem>>, vector<128x128xbf16>,
    } else {
    }
    return
  }
  func.func @transform_0(%arg0: i32, %arg1: i32) -> (i32, i32) {
    %c0_i32 = arith.constant 0 : i32
    return %arg0, %arg1 : i32, i32
  }
  func.func @transform_1(%arg0: i32, %arg1: i32) -> (i32, i32) {
    %c0_i32 = arith.constant 0 : i32
    %c0_i32_0 = arith.constant 0 : i32
    return %arg1, %c0_i32 : i32, i32
  }
  func.func @transform_2(%arg0: i32, %arg1: i32) -> (i32, i32) {
    %c0_i32 = arith.constant 0 : i32
    %c0_i32_0 = arith.constant 0 : i32
    return %c0_i32, %arg1 : i32, i32
  }
  func.func @transform_3(%arg0: i32, %arg1: i32) -> (i32, i32) {
    %c0_i32 = arith.constant 0 : i32
    %c0_i32_0 = arith.constant 0 : i32
    return %c0_i32, %arg1 : i32, i32
  }
  func.func @transform_4(%arg0: i32, %arg1: i32) -> (i32, i32) {
    %c0_i32 = arith.constant 0 : i32
    %c0_i32_0 = arith.constant 0 : i32
    %c0_i32_1 = arith.constant 0 : i32
    return %c0_i32, %c0_i32_0 : i32, i32
  }
  func.func @transform_5(%arg0: i32, %arg1: i32) -> (i32, i32) {
    %c0_i32 = arith.constant 0 : i32
    %c0_i32_0 = arith.constant 0 : i32
    %c0_i32_1 = arith.constant 0 : i32
    return %c0_i32, %c0_i32_0 : i32, i32
  }
  func.func @transform_6(%arg0: i32, %arg1: i32) -> (i32, i32) {
    %c0_i32 = arith.constant 0 : i32
    %c0_i32_0 = arith.constant 0 : i32
    return %arg0, %c0_i32 : i32, i32
  }
}

module attributes {stable_mosaic.version = 11 : i64} {
  func.func @_fused_matmul_kernel(%arg0: i32, %arg1: i32, %arg2: memref<200x128xbf16, #tpu.memory_space<vmem>>, %arg3: memref<128x288xbf16, #tpu.memory_space<vmem>>, %arg4: memref<1x128xf32, #tpu.memory_space<vmem>>, %arg5: memref<1x128xf32, #tpu.memory_space<vmem>>, %arg6: memref<1x288xf32, #tpu.memory_space<vmem>>, %arg7: memref<1x288xf32, #tpu.memory_space<vmem>>, %arg8: memref<200x288xbf16, #tpu.memory_space<vmem>>, %arg9: memref<200x288xf32, #tpu.memory_space<vmem>>) attributes {dimension_semantics = [#tpu.dimension_semantics<parallel>, #tpu.dimension_semantics<arbitrary>], iteration_bounds = array<i64: 1, 1>, scalar_prefetch = 0 : i64, scratch_operands = 1 : i64, tpu.core_type = #tpu.core_type<tc>, window_params = [{transform_indices = @transform_0, window_bounds = array<i64: 200, 128>}, {transform_indices = @transform_1, window_bounds = array<i64: 128, 288>}, {transform_indices = @transform_2, window_bounds = array<i64: 1, 128>}, {transform_indices = @transform_3, window_bounds = array<i64: 1, 128>}, {pipeline_mode = #tpu.pipeline_mode<synchronous>, transform_indices = @transform_4, window_bounds = array<i64: 1, 288>}, {pipeline_mode = #tpu.pipeline_mode<synchronous>, transform_indices = @transform_5, window_bounds = array<i64: 1, 288>}, {transform_indices = @transform_6, window_bounds = array<i64: 200, 288>}]} {
    %c0_i32 = arith.constant 0 : i32
    %0 = arith.cmpi eq, %arg1, %c0_i32 : i32
    %1 = arith.extui %0 : i1 to i32
    %c0_i32_0 = arith.constant 0 : i32
    %2 = arith.cmpi ne, %1, %c0_i32_0 : i32
    scf.if %2 {
      %cst_10 = arith.constant 0.000000e+00 : f32
      %12 = vector.broadcast %cst_10 : f32 to vector<200x288xf32>
      %c0_11 = arith.constant 0 : index
      %c0_12 = arith.constant 0 : index
      %13 = vector.load %arg9[%c0_11, %c0_12] : memref<200x288xf32, #tpu.memory_space<vmem>>, vector<200x288xf32>
      tpu.vector_store %arg9[%c0_11, %c0_12], %12 {strides = array<i32>} : memref<200x288xf32, #tpu.memory_space<vmem>>, vector<200x288xf32>,
    } else {
    }
    %c0 = arith.constant 0 : index
    %c0_1 = arith.constant 0 : index
    %3 = vector.load %arg2[%c0, %c0_1] : memref<200x128xbf16, #tpu.memory_space<vmem>>, vector<200x128xbf16>
    %c0_2 = arith.constant 0 : index
    %c0_3 = arith.constant 0 : index
    %4 = vector.load %arg9[%c0_2, %c0_3] : memref<200x288xf32, #tpu.memory_space<vmem>>, vector<200x288xf32>
    %c0_4 = arith.constant 0 : index
    %c0_5 = arith.constant 0 : index
    %5 = vector.load %arg3[%c0_4, %c0_5] : memref<128x288xbf16, #tpu.memory_space<vmem>>, vector<128x288xbf16>
    %cst = arith.constant dense<0.000000e+00> : vector<200x288xf32>
    %6 = tpu.matmul %3, %5, %cst {dimension_numbers = #tpu.dot_dimension_numbers<[1], [0], [0], [1], [0, 0, 1, 1], [], []>} : vector<200x128xbf16>, vector<128x288xbf16>, vector<200x288xf32> -> vector<200x288xf32>
    %7 = arith.addf %4, %6 : vector<200x288xf32>
    %c0_6 = arith.constant 0 : index
    %c0_7 = arith.constant 0 : index
    %8 = vector.load %arg9[%c0_6, %c0_7] : memref<200x288xf32, #tpu.memory_space<vmem>>, vector<200x288xf32>
    tpu.vector_store %arg9[%c0_6, %c0_7], %7 {strides = array<i32>} : memref<200x288xf32, #tpu.memory_space<vmem>>, vector<200x288xf32>,
    %c0_i32_8 = arith.constant 0 : i32
    %9 = arith.cmpi eq, %arg1, %c0_i32_8 : i32
    %10 = arith.extui %9 : i1 to i32
    %c0_i32_9 = arith.constant 0 : i32
    %11 = arith.cmpi ne, %10, %c0_i32_9 : i32
    scf.if %11 {
      %c0_10 = arith.constant 0 : index
      %c0_11 = arith.constant 0 : index
      %12 = vector.load %arg9[%c0_10, %c0_11] : memref<200x288xf32, #tpu.memory_space<vmem>>, vector<200x288xf32>
      %13 = arith.truncf %12 : vector<200x288xf32> to vector<200x288xbf16>
      %c0_12 = arith.constant 0 : index
      %c0_13 = arith.constant 0 : index
      %14 = vector.load %arg8[%c0_12, %c0_13] : memref<200x288xbf16, #tpu.memory_space<vmem>>, vector<200x288xbf16>
      tpu.vector_store %arg8[%c0_12, %c0_13], %13 {strides = array<i32>} : memref<200x288xbf16, #tpu.memory_space<vmem>>, vector<200x288xbf16>,
    } else {
    }
    return
  }
  func.func @transform_0(%arg0: i32, %arg1: i32) -> (i32, i32) {
    %c0_i32 = arith.constant 0 : i32
    return %arg0, %arg1 : i32, i32
  }
  func.func @transform_1(%arg0: i32, %arg1: i32) -> (i32, i32) {
    %c0_i32 = arith.constant 0 : i32
    %c0_i32_0 = arith.constant 0 : i32
    return %arg1, %c0_i32 : i32, i32
  }
  func.func @transform_2(%arg0: i32, %arg1: i32) -> (i32, i32) {
    %c0_i32 = arith.constant 0 : i32
    %c0_i32_0 = arith.constant 0 : i32
    return %c0_i32, %arg1 : i32, i32
  }
  func.func @transform_3(%arg0: i32, %arg1: i32) -> (i32, i32) {
    %c0_i32 = arith.constant 0 : i32
    %c0_i32_0 = arith.constant 0 : i32
    return %c0_i32, %arg1 : i32, i32
  }
  func.func @transform_4(%arg0: i32, %arg1: i32) -> (i32, i32) {
    %c0_i32 = arith.constant 0 : i32
    %c0_i32_0 = arith.constant 0 : i32
    %c0_i32_1 = arith.constant 0 : i32
    return %c0_i32, %c0_i32_0 : i32, i32
  }
  func.func @transform_5(%arg0: i32, %arg1: i32) -> (i32, i32) {
    %c0_i32 = arith.constant 0 : i32
    %c0_i32_0 = arith.constant 0 : i32
    %c0_i32_1 = arith.constant 0 : i32
    return %c0_i32, %c0_i32_0 : i32, i32
  }
  func.func @transform_6(%arg0: i32, %arg1: i32) -> (i32, i32) {
    %c0_i32 = arith.constant 0 : i32
    %c0_i32_0 = arith.constant 0 : i32
    return %arg0, %c0_i32 : i32, i32
  }
}

module attributes {stable_mosaic.version = 11 : i64} {
  func.func @_fused_matmul_kernel(%arg0: i32, %arg1: i32, %arg2: memref<128x256xbf16, #tpu.memory_space<vmem>>, %arg3: memref<256x128xbf16, #tpu.memory_space<vmem>>, %arg4: memref<1x256xf32, #tpu.memory_space<vmem>>, %arg5: memref<1x256xf32, #tpu.memory_space<vmem>>, %arg6: memref<1x128xf32, #tpu.memory_space<vmem>>, %arg7: memref<1x128xf32, #tpu.memory_space<vmem>>, %arg8: memref<128x128xf32, #tpu.memory_space<vmem>>, %arg9: memref<128x128xf32, #tpu.memory_space<vmem>>) attributes {dimension_semantics = [#tpu.dimension_semantics<parallel>, #tpu.dimension_semantics<arbitrary>], iteration_bounds = array<i64: 1, 1>, scalar_prefetch = 0 : i64, scratch_operands = 1 : i64, tpu.core_type = #tpu.core_type<tc>, window_params = [{transform_indices = @transform_0, window_bounds = array<i64: 128, 256>}, {transform_indices = @transform_1, window_bounds = array<i64: 256, 128>}, {transform_indices = @transform_2, window_bounds = array<i64: 1, 256>}, {transform_indices = @transform_3, window_bounds = array<i64: 1, 256>}, {pipeline_mode = #tpu.pipeline_mode<synchronous>, transform_indices = @transform_4, window_bounds = array<i64: 1, 128>}, {pipeline_mode = #tpu.pipeline_mode<synchronous>, transform_indices = @transform_5, window_bounds = array<i64: 1, 128>}, {transform_indices = @transform_6, window_bounds = array<i64: 128, 128>}]} {
    %c0_i32 = arith.constant 0 : i32
    %0 = arith.cmpi eq, %arg1, %c0_i32 : i32
    %1 = arith.extui %0 : i1 to i32
    %c0_i32_0 = arith.constant 0 : i32
    %2 = arith.cmpi ne, %1, %c0_i32_0 : i32
    scf.if %2 {
      %cst_15 = arith.constant 0.000000e+00 : f32
      %22 = vector.broadcast %cst_15 : f32 to vector<128x128xf32>
      %c0_16 = arith.constant 0 : index
      %c0_17 = arith.constant 0 : index
      %23 = vector.load %arg9[%c0_16, %c0_17] : memref<128x128xf32, #tpu.memory_space<vmem>>, vector<128x128xf32>
      tpu.vector_store %arg9[%c0_16, %c0_17], %22 {strides = array<i32>} : memref<128x128xf32, #tpu.memory_space<vmem>>, vector<128x128xf32>,
    } else {
    }
    %c0 = arith.constant 0 : index
    %c0_1 = arith.constant 0 : index
    %3 = vector.load %arg2[%c0, %c0_1] : memref<128x256xbf16, #tpu.memory_space<vmem>>, vector<128x256xbf16>
    %4 = arith.extf %3 : vector<128x256xbf16> to vector<128x256xf32>
    %c0_2 = arith.constant 0 : index
    %c0_3 = arith.constant 0 : index
    %5 = vector.load %arg4[%c0_2, %c0_3] : memref<1x256xf32, #tpu.memory_space<vmem>>, vector<1x256xf32>
    %6 = vector.broadcast %5 : vector<1x256xf32> to vector<128x256xf32>
    %7 = arith.mulf %4, %6 : vector<128x256xf32>
    %c0_4 = arith.constant 0 : index
    %c0_5 = arith.constant 0 : index
    %8 = vector.load %arg5[%c0_4, %c0_5] : memref<1x256xf32, #tpu.memory_space<vmem>>, vector<1x256xf32>
    %9 = vector.broadcast %8 : vector<1x256xf32> to vector<128x256xf32>
    %10 = arith.addf %7, %9 : vector<128x256xf32>
    %cst = arith.constant 0.000000e+00 : f32
    %11 = vector.broadcast %cst : f32 to vector<128x256xf32>
    %12 = arith.maximumf %10, %11 : vector<128x256xf32>
    %13 = arith.truncf %12 : vector<128x256xf32> to vector<128x256xbf16>
    %c0_6 = arith.constant 0 : index
    %c0_7 = arith.constant 0 : index
    %14 = vector.load %arg9[%c0_6, %c0_7] : memref<128x128xf32, #tpu.memory_space<vmem>>, vector<128x128xf32>
    %c0_8 = arith.constant 0 : index
    %c0_9 = arith.constant 0 : index
    %15 = vector.load %arg3[%c0_8, %c0_9] : memref<256x128xbf16, #tpu.memory_space<vmem>>, vector<256x128xbf16>
    %cst_10 = arith.constant dense<0.000000e+00> : vector<128x128xf32>
    %16 = tpu.matmul %13, %15, %cst_10 {dimension_numbers = #tpu.dot_dimension_numbers<[1], [0], [0], [1], [0, 0, 1, 1], [], []>} : vector<128x256xbf16>, vector<256x128xbf16>, vector<128x128xf32> -> vector<128x128xf32>
    %17 = arith.addf %14, %16 : vector<128x128xf32>
    %c0_11 = arith.constant 0 : index
    %c0_12 = arith.constant 0 : index
    %18 = vector.load %arg9[%c0_11, %c0_12] : memref<128x128xf32, #tpu.memory_space<vmem>>, vector<128x128xf32>
    tpu.vector_store %arg9[%c0_11, %c0_12], %17 {strides = array<i32>} : memref<128x128xf32, #tpu.memory_space<vmem>>, vector<128x128xf32>,
    %c0_i32_13 = arith.constant 0 : i32
    %19 = arith.cmpi eq, %arg1, %c0_i32_13 : i32
    %20 = arith.extui %19 : i1 to i32
    %c0_i32_14 = arith.constant 0 : i32
    %21 = arith.cmpi ne, %20, %c0_i32_14 : i32
    scf.if %21 {
      %c0_15 = arith.constant 0 : index
      %c0_16 = arith.constant 0 : index
      %22 = vector.load %arg9[%c0_15, %c0_16] : memref<128x128xf32, #tpu.memory_space<vmem>>, vector<128x128xf32>
      %c0_17 = arith.constant 0 : index
      %c0_18 = arith.constant 0 : index
      %23 = vector.load %arg8[%c0_17, %c0_18] : memref<128x128xf32, #tpu.memory_space<vmem>>, vector<128x128xf32>
      tpu.vector_store %arg8[%c0_17, %c0_18], %22 {strides = array<i32>} : memref<128x128xf32, #tpu.memory_space<vmem>>, vector<128x128xf32>,
    } else {
    }
    return
  }
  func.func @transform_0(%arg0: i32, %arg1: i32) -> (i32, i32) {
    %c0_i32 = arith.constant 0 : i32
    return %arg0, %arg1 : i32, i32
  }
  func.func @transform_1(%arg0: i32, %arg1: i32) -> (i32, i32) {
    %c0_i32 = arith.constant 0 : i32
    %c0_i32_0 = arith.constant 0 : i32
    return %arg1, %c0_i32 : i32, i32
  }
  func.func @transform_2(%arg0: i32, %arg1: i32) -> (i32, i32) {
    %c0_i32 = arith.constant 0 : i32
    %c0_i32_0 = arith.constant 0 : i32
    return %c0_i32, %arg1 : i32, i32
  }
  func.func @transform_3(%arg0: i32, %arg1: i32) -> (i32, i32) {
    %c0_i32 = arith.constant 0 : i32
    %c0_i32_0 = arith.constant 0 : i32
    return %c0_i32, %arg1 : i32, i32
  }
  func.func @transform_4(%arg0: i32, %arg1: i32) -> (i32, i32) {
    %c0_i32 = arith.constant 0 : i32
    %c0_i32_0 = arith.constant 0 : i32
    %c0_i32_1 = arith.constant 0 : i32
    return %c0_i32, %c0_i32_0 : i32, i32
  }
  func.func @transform_5(%arg0: i32, %arg1: i32) -> (i32, i32) {
    %c0_i32 = arith.constant 0 : i32
    %c0_i32_0 = arith.constant 0 : i32
    %c0_i32_1 = arith.constant 0 : i32
    return %c0_i32, %c0_i32_0 : i32, i32
  }
  func.func @transform_6(%arg0: i32, %arg1: i32) -> (i32, i32) {
    %c0_i32 = arith.constant 0 : i32
    %c0_i32_0 = arith.constant 0 : i32
    return %arg0, %c0_i32 : i32, i32
  }
}

module attributes {stable_mosaic.version = 11 : i64} {
  func.func @_pool_reduce_kernel(%arg0: i32, %arg1: memref<1x16x4x128xf32, #tpu.memory_space<vmem>>, %arg2: memref<1x4x4x128xf32, #tpu.memory_space<vmem>>) attributes {dimension_semantics = [#tpu.dimension_semantics<parallel>], iteration_bounds = array<i64: 2>, scalar_prefetch = 0 : i64, scratch_operands = 0 : i64, tpu.core_type = #tpu.core_type<tc>, window_params = [{transform_indices = @transform_0, window_bounds = array<i64: 1, 16, 4, 128>}, {transform_indices = @transform_1, window_bounds = array<i64: 1, 4, 4, 128>}]} {
    %c0 = arith.constant 0 : index
    %c0_0 = arith.constant 0 : index
    %c0_1 = arith.constant 0 : index
    %c0_2 = arith.constant 0 : index
    %0 = vector.load %arg1[%c0, %c0_0, %c0_1, %c0_2] : memref<1x16x4x128xf32, #tpu.memory_space<vmem>>, vector<1x16x4x128xf32>
    %1 = vector.shape_cast %0 : vector<1x16x4x128xf32> to vector<16x4x128xf32>
    %2 = vector.extract_strided_slice %1 {offsets = [0, 0, 0], sizes = [4, 4, 128], strides = [1, 1, 1]} : vector<16x4x128xf32> to vector<4x4x128xf32>
    %3 = vector.extract_strided_slice %1 {offsets = [4, 0, 0], sizes = [4, 4, 128], strides = [1, 1, 1]} : vector<16x4x128xf32> to vector<4x4x128xf32>
    %4 = arith.addf %2, %3 : vector<4x4x128xf32>
    %5 = vector.extract_strided_slice %1 {offsets = [8, 0, 0], sizes = [4, 4, 128], strides = [1, 1, 1]} : vector<16x4x128xf32> to vector<4x4x128xf32>
    %6 = arith.addf %4, %5 : vector<4x4x128xf32>
    %7 = vector.extract_strided_slice %1 {offsets = [12, 0, 0], sizes = [4, 4, 128], strides = [1, 1, 1]} : vector<16x4x128xf32> to vector<4x4x128xf32>
    %8 = arith.addf %6, %7 : vector<4x4x128xf32>
    %cst = arith.constant 2.500000e-01 : f32
    %9 = vector.broadcast %cst : f32 to vector<4x4x128xf32>
    %10 = arith.mulf %8, %9 : vector<4x4x128xf32>
    %c0_3 = arith.constant 0 : index
    %c0_4 = arith.constant 0 : index
    %c0_5 = arith.constant 0 : index
    %c0_6 = arith.constant 0 : index
    %11 = vector.load %arg2[%c0_3, %c0_4, %c0_5, %c0_6] : memref<1x4x4x128xf32, #tpu.memory_space<vmem>>, vector<1x4x4x128xf32>
    %12 = vector.shape_cast %11 : vector<1x4x4x128xf32> to vector<4x4x128xf32>
    %13 = vector.shape_cast %10 : vector<4x4x128xf32> to vector<1x4x4x128xf32>
    tpu.vector_store %arg2[%c0_3, %c0_4, %c0_5, %c0_6], %13 {strides = array<i32>} : memref<1x4x4x128xf32, #tpu.memory_space<vmem>>, vector<1x4x4x128xf32>,
    return
  }
  func.func @transform_0(%arg0: i32) -> (i32, i32, i32, i32) {
    %c0_i32 = arith.constant 0 : i32
    %c0_i32_0 = arith.constant 0 : i32
    %c0_i32_1 = arith.constant 0 : i32
    %c0_i32_2 = arith.constant 0 : i32
    return %arg0, %c0_i32, %c0_i32_0, %c0_i32_1 : i32, i32, i32, i32
  }
  func.func @transform_1(%arg0: i32) -> (i32, i32, i32, i32) {
    %c0_i32 = arith.constant 0 : i32
    %c0_i32_0 = arith.constant 0 : i32
    %c0_i32_1 = arith.constant 0 : i32
    %c0_i32_2 = arith.constant 0 : i32
    return %arg0, %c0_i32, %c0_i32_0, %c0_i32_1 : i32, i32, i32, i32
  }
}

module attributes {stable_mosaic.version = 11 : i64} {
  func.func @_fused_matmul_kernel(%arg0: i32, %arg1: i32, %arg2: memref<32x256xbf16, #tpu.memory_space<vmem>>, %arg3: memref<256x128xbf16, #tpu.memory_space<vmem>>, %arg4: memref<1x256xf32, #tpu.memory_space<vmem>>, %arg5: memref<1x256xf32, #tpu.memory_space<vmem>>, %arg6: memref<1x128xf32, #tpu.memory_space<vmem>>, %arg7: memref<1x128xf32, #tpu.memory_space<vmem>>, %arg8: memref<32x128xbf16, #tpu.memory_space<vmem>>, %arg9: memref<32x128xf32, #tpu.memory_space<vmem>>) attributes {dimension_semantics = [#tpu.dimension_semantics<parallel>, #tpu.dimension_semantics<arbitrary>], iteration_bounds = array<i64: 1, 1>, scalar_prefetch = 0 : i64, scratch_operands = 1 : i64, tpu.core_type = #tpu.core_type<tc>, window_params = [{transform_indices = @transform_0, window_bounds = array<i64: 32, 256>}, {transform_indices = @transform_1, window_bounds = array<i64: 256, 128>}, {transform_indices = @transform_2, window_bounds = array<i64: 1, 256>}, {transform_indices = @transform_3, window_bounds = array<i64: 1, 256>}, {pipeline_mode = #tpu.pipeline_mode<synchronous>, transform_indices = @transform_4, window_bounds = array<i64: 1, 128>}, {pipeline_mode = #tpu.pipeline_mode<synchronous>, transform_indices = @transform_5, window_bounds = array<i64: 1, 128>}, {transform_indices = @transform_6, window_bounds = array<i64: 32, 128>}]} {
    %c0_i32 = arith.constant 0 : i32
    %0 = arith.cmpi eq, %arg1, %c0_i32 : i32
    %1 = arith.extui %0 : i1 to i32
    %c0_i32_0 = arith.constant 0 : i32
    %2 = arith.cmpi ne, %1, %c0_i32_0 : i32
    scf.if %2 {
      %cst_15 = arith.constant 0.000000e+00 : f32
      %22 = vector.broadcast %cst_15 : f32 to vector<32x128xf32>
      %c0_16 = arith.constant 0 : index
      %c0_17 = arith.constant 0 : index
      %23 = vector.load %arg9[%c0_16, %c0_17] : memref<32x128xf32, #tpu.memory_space<vmem>>, vector<32x128xf32>
      tpu.vector_store %arg9[%c0_16, %c0_17], %22 {strides = array<i32>} : memref<32x128xf32, #tpu.memory_space<vmem>>, vector<32x128xf32>,
    } else {
    }
    %c0 = arith.constant 0 : index
    %c0_1 = arith.constant 0 : index
    %3 = vector.load %arg2[%c0, %c0_1] : memref<32x256xbf16, #tpu.memory_space<vmem>>, vector<32x256xbf16>
    %4 = arith.extf %3 : vector<32x256xbf16> to vector<32x256xf32>
    %c0_2 = arith.constant 0 : index
    %c0_3 = arith.constant 0 : index
    %5 = vector.load %arg4[%c0_2, %c0_3] : memref<1x256xf32, #tpu.memory_space<vmem>>, vector<1x256xf32>
    %6 = vector.broadcast %5 : vector<1x256xf32> to vector<32x256xf32>
    %7 = arith.mulf %4, %6 : vector<32x256xf32>
    %c0_4 = arith.constant 0 : index
    %c0_5 = arith.constant 0 : index
    %8 = vector.load %arg5[%c0_4, %c0_5] : memref<1x256xf32, #tpu.memory_space<vmem>>, vector<1x256xf32>
    %9 = vector.broadcast %8 : vector<1x256xf32> to vector<32x256xf32>
    %10 = arith.addf %7, %9 : vector<32x256xf32>
    %cst = arith.constant 0.000000e+00 : f32
    %11 = vector.broadcast %cst : f32 to vector<32x256xf32>
    %12 = arith.maximumf %10, %11 : vector<32x256xf32>
    %13 = arith.truncf %12 : vector<32x256xf32> to vector<32x256xbf16>
    %c0_6 = arith.constant 0 : index
    %c0_7 = arith.constant 0 : index
    %14 = vector.load %arg9[%c0_6, %c0_7] : memref<32x128xf32, #tpu.memory_space<vmem>>, vector<32x128xf32>
    %c0_8 = arith.constant 0 : index
    %c0_9 = arith.constant 0 : index
    %15 = vector.load %arg3[%c0_8, %c0_9] : memref<256x128xbf16, #tpu.memory_space<vmem>>, vector<256x128xbf16>
    %cst_10 = arith.constant dense<0.000000e+00> : vector<32x128xf32>
    %16 = tpu.matmul %13, %15, %cst_10 {dimension_numbers = #tpu.dot_dimension_numbers<[1], [0], [0], [1], [0, 0, 1, 1], [], []>} : vector<32x256xbf16>, vector<256x128xbf16>, vector<32x128xf32> -> vector<32x128xf32>
    %17 = arith.addf %14, %16 : vector<32x128xf32>
    %c0_11 = arith.constant 0 : index
    %c0_12 = arith.constant 0 : index
    %18 = vector.load %arg9[%c0_11, %c0_12] : memref<32x128xf32, #tpu.memory_space<vmem>>, vector<32x128xf32>
    tpu.vector_store %arg9[%c0_11, %c0_12], %17 {strides = array<i32>} : memref<32x128xf32, #tpu.memory_space<vmem>>, vector<32x128xf32>,
    %c0_i32_13 = arith.constant 0 : i32
    %19 = arith.cmpi eq, %arg1, %c0_i32_13 : i32
    %20 = arith.extui %19 : i1 to i32
    %c0_i32_14 = arith.constant 0 : i32
    %21 = arith.cmpi ne, %20, %c0_i32_14 : i32
    scf.if %21 {
      %c0_15 = arith.constant 0 : index
      %c0_16 = arith.constant 0 : index
      %22 = vector.load %arg9[%c0_15, %c0_16] : memref<32x128xf32, #tpu.memory_space<vmem>>, vector<32x128xf32>
      %c0_17 = arith.constant 0 : index
      %c0_18 = arith.constant 0 : index
      %23 = vector.load %arg6[%c0_17, %c0_18] : memref<1x128xf32, #tpu.memory_space<vmem>>, vector<1x128xf32>
      %24 = vector.broadcast %23 : vector<1x128xf32> to vector<32x128xf32>
      %25 = arith.mulf %22, %24 : vector<32x128xf32>
      %c0_19 = arith.constant 0 : index
      %c0_20 = arith.constant 0 : index
      %26 = vector.load %arg7[%c0_19, %c0_20] : memref<1x128xf32, #tpu.memory_space<vmem>>, vector<1x128xf32>
      %27 = vector.broadcast %26 : vector<1x128xf32> to vector<32x128xf32>
      %28 = arith.addf %25, %27 : vector<32x128xf32>
      %cst_21 = arith.constant 0.000000e+00 : f32
      %29 = vector.broadcast %cst_21 : f32 to vector<32x128xf32>
      %30 = arith.maximumf %28, %29 : vector<32x128xf32>
      %31 = arith.truncf %30 : vector<32x128xf32> to vector<32x128xbf16>
      %c0_22 = arith.constant 0 : index
      %c0_23 = arith.constant 0 : index
      %32 = vector.load %arg8[%c0_22, %c0_23] : memref<32x128xbf16, #tpu.memory_space<vmem>>, vector<32x128xbf16>
      tpu.vector_store %arg8[%c0_22, %c0_23], %31 {strides = array<i32>} : memref<32x128xbf16, #tpu.memory_space<vmem>>, vector<32x128xbf16>,
    } else {
    }
    return
  }
  func.func @transform_0(%arg0: i32, %arg1: i32) -> (i32, i32) {
    %c0_i32 = arith.constant 0 : i32
    return %arg0, %arg1 : i32, i32
  }
  func.func @transform_1(%arg0: i32, %arg1: i32) -> (i32, i32) {
    %c0_i32 = arith.constant 0 : i32
    %c0_i32_0 = arith.constant 0 : i32
    return %arg1, %c0_i32 : i32, i32
  }
  func.func @transform_2(%arg0: i32, %arg1: i32) -> (i32, i32) {
    %c0_i32 = arith.constant 0 : i32
    %c0_i32_0 = arith.constant 0 : i32
    return %c0_i32, %arg1 : i32, i32
  }
  func.func @transform_3(%arg0: i32, %arg1: i32) -> (i32, i32) {
    %c0_i32 = arith.constant 0 : i32
    %c0_i32_0 = arith.constant 0 : i32
    return %c0_i32, %arg1 : i32, i32
  }
  func.func @transform_4(%arg0: i32, %arg1: i32) -> (i32, i32) {
    %c0_i32 = arith.constant 0 : i32
    %c0_i32_0 = arith.constant 0 : i32
    %c0_i32_1 = arith.constant 0 : i32
    return %c0_i32, %c0_i32_0 : i32, i32
  }
  func.func @transform_5(%arg0: i32, %arg1: i32) -> (i32, i32) {
    %c0_i32 = arith.constant 0 : i32
    %c0_i32_0 = arith.constant 0 : i32
    %c0_i32_1 = arith.constant 0 : i32
    return %c0_i32, %c0_i32_0 : i32, i32
  }
  func.func @transform_6(%arg0: i32, %arg1: i32) -> (i32, i32) {
    %c0_i32 = arith.constant 0 : i32
    %c0_i32_0 = arith.constant 0 : i32
    return %arg0, %c0_i32 : i32, i32
  }
}

module attributes {stable_mosaic.version = 11 : i64} {
  func.func @_fused_matmul_kernel(%arg0: i32, %arg1: i32, %arg2: memref<72x128xbf16, #tpu.memory_space<vmem>>, %arg3: memref<128x288xbf16, #tpu.memory_space<vmem>>, %arg4: memref<1x128xf32, #tpu.memory_space<vmem>>, %arg5: memref<1x128xf32, #tpu.memory_space<vmem>>, %arg6: memref<1x288xf32, #tpu.memory_space<vmem>>, %arg7: memref<1x288xf32, #tpu.memory_space<vmem>>, %arg8: memref<72x288xbf16, #tpu.memory_space<vmem>>, %arg9: memref<72x288xf32, #tpu.memory_space<vmem>>) attributes {dimension_semantics = [#tpu.dimension_semantics<parallel>, #tpu.dimension_semantics<arbitrary>], iteration_bounds = array<i64: 1, 1>, scalar_prefetch = 0 : i64, scratch_operands = 1 : i64, tpu.core_type = #tpu.core_type<tc>, window_params = [{transform_indices = @transform_0, window_bounds = array<i64: 72, 128>}, {transform_indices = @transform_1, window_bounds = array<i64: 128, 288>}, {transform_indices = @transform_2, window_bounds = array<i64: 1, 128>}, {transform_indices = @transform_3, window_bounds = array<i64: 1, 128>}, {pipeline_mode = #tpu.pipeline_mode<synchronous>, transform_indices = @transform_4, window_bounds = array<i64: 1, 288>}, {pipeline_mode = #tpu.pipeline_mode<synchronous>, transform_indices = @transform_5, window_bounds = array<i64: 1, 288>}, {transform_indices = @transform_6, window_bounds = array<i64: 72, 288>}]} {
    %c0_i32 = arith.constant 0 : i32
    %0 = arith.cmpi eq, %arg1, %c0_i32 : i32
    %1 = arith.extui %0 : i1 to i32
    %c0_i32_0 = arith.constant 0 : i32
    %2 = arith.cmpi ne, %1, %c0_i32_0 : i32
    scf.if %2 {
      %cst_10 = arith.constant 0.000000e+00 : f32
      %12 = vector.broadcast %cst_10 : f32 to vector<72x288xf32>
      %c0_11 = arith.constant 0 : index
      %c0_12 = arith.constant 0 : index
      %13 = vector.load %arg9[%c0_11, %c0_12] : memref<72x288xf32, #tpu.memory_space<vmem>>, vector<72x288xf32>
      tpu.vector_store %arg9[%c0_11, %c0_12], %12 {strides = array<i32>} : memref<72x288xf32, #tpu.memory_space<vmem>>, vector<72x288xf32>,
    } else {
    }
    %c0 = arith.constant 0 : index
    %c0_1 = arith.constant 0 : index
    %3 = vector.load %arg2[%c0, %c0_1] : memref<72x128xbf16, #tpu.memory_space<vmem>>, vector<72x128xbf16>
    %c0_2 = arith.constant 0 : index
    %c0_3 = arith.constant 0 : index
    %4 = vector.load %arg9[%c0_2, %c0_3] : memref<72x288xf32, #tpu.memory_space<vmem>>, vector<72x288xf32>
    %c0_4 = arith.constant 0 : index
    %c0_5 = arith.constant 0 : index
    %5 = vector.load %arg3[%c0_4, %c0_5] : memref<128x288xbf16, #tpu.memory_space<vmem>>, vector<128x288xbf16>
    %cst = arith.constant dense<0.000000e+00> : vector<72x288xf32>
    %6 = tpu.matmul %3, %5, %cst {dimension_numbers = #tpu.dot_dimension_numbers<[1], [0], [0], [1], [0, 0, 1, 1], [], []>} : vector<72x128xbf16>, vector<128x288xbf16>, vector<72x288xf32> -> vector<72x288xf32>
    %7 = arith.addf %4, %6 : vector<72x288xf32>
    %c0_6 = arith.constant 0 : index
    %c0_7 = arith.constant 0 : index
    %8 = vector.load %arg9[%c0_6, %c0_7] : memref<72x288xf32, #tpu.memory_space<vmem>>, vector<72x288xf32>
    tpu.vector_store %arg9[%c0_6, %c0_7], %7 {strides = array<i32>} : memref<72x288xf32, #tpu.memory_space<vmem>>, vector<72x288xf32>,
    %c0_i32_8 = arith.constant 0 : i32
    %9 = arith.cmpi eq, %arg1, %c0_i32_8 : i32
    %10 = arith.extui %9 : i1 to i32
    %c0_i32_9 = arith.constant 0 : i32
    %11 = arith.cmpi ne, %10, %c0_i32_9 : i32
    scf.if %11 {
      %c0_10 = arith.constant 0 : index
      %c0_11 = arith.constant 0 : index
      %12 = vector.load %arg9[%c0_10, %c0_11] : memref<72x288xf32, #tpu.memory_space<vmem>>, vector<72x288xf32>
      %13 = arith.truncf %12 : vector<72x288xf32> to vector<72x288xbf16>
      %c0_12 = arith.constant 0 : index
      %c0_13 = arith.constant 0 : index
      %14 = vector.load %arg8[%c0_12, %c0_13] : memref<72x288xbf16, #tpu.memory_space<vmem>>, vector<72x288xbf16>
      tpu.vector_store %arg8[%c0_12, %c0_13], %13 {strides = array<i32>} : memref<72x288xbf16, #tpu.memory_space<vmem>>, vector<72x288xbf16>,
    } else {
    }
    return
  }
  func.func @transform_0(%arg0: i32, %arg1: i32) -> (i32, i32) {
    %c0_i32 = arith.constant 0 : i32
    return %arg0, %arg1 : i32, i32
  }
  func.func @transform_1(%arg0: i32, %arg1: i32) -> (i32, i32) {
    %c0_i32 = arith.constant 0 : i32
    %c0_i32_0 = arith.constant 0 : i32
    return %arg1, %c0_i32 : i32, i32
  }
  func.func @transform_2(%arg0: i32, %arg1: i32) -> (i32, i32) {
    %c0_i32 = arith.constant 0 : i32
    %c0_i32_0 = arith.constant 0 : i32
    return %c0_i32, %arg1 : i32, i32
  }
  func.func @transform_3(%arg0: i32, %arg1: i32) -> (i32, i32) {
    %c0_i32 = arith.constant 0 : i32
    %c0_i32_0 = arith.constant 0 : i32
    return %c0_i32, %arg1 : i32, i32
  }
  func.func @transform_4(%arg0: i32, %arg1: i32) -> (i32, i32) {
    %c0_i32 = arith.constant 0 : i32
    %c0_i32_0 = arith.constant 0 : i32
    %c0_i32_1 = arith.constant 0 : i32
    return %c0_i32, %c0_i32_0 : i32, i32
  }
  func.func @transform_5(%arg0: i32, %arg1: i32) -> (i32, i32) {
    %c0_i32 = arith.constant 0 : i32
    %c0_i32_0 = arith.constant 0 : i32
    %c0_i32_1 = arith.constant 0 : i32
    return %c0_i32, %c0_i32_0 : i32, i32
  }
  func.func @transform_6(%arg0: i32, %arg1: i32) -> (i32, i32) {
    %c0_i32 = arith.constant 0 : i32
    %c0_i32_0 = arith.constant 0 : i32
    return %arg0, %c0_i32 : i32, i32
  }
}

module attributes {stable_mosaic.version = 11 : i64} {
  func.func @_fused_matmul_kernel(%arg0: i32, %arg1: i32, %arg2: memref<32x256xbf16, #tpu.memory_space<vmem>>, %arg3: memref<256x128xbf16, #tpu.memory_space<vmem>>, %arg4: memref<1x256xf32, #tpu.memory_space<vmem>>, %arg5: memref<1x256xf32, #tpu.memory_space<vmem>>, %arg6: memref<1x128xf32, #tpu.memory_space<vmem>>, %arg7: memref<1x128xf32, #tpu.memory_space<vmem>>, %arg8: memref<32x128xbf16, #tpu.memory_space<vmem>>, %arg9: memref<32x128xf32, #tpu.memory_space<vmem>>) attributes {dimension_semantics = [#tpu.dimension_semantics<parallel>, #tpu.dimension_semantics<arbitrary>], iteration_bounds = array<i64: 1, 2>, scalar_prefetch = 0 : i64, scratch_operands = 1 : i64, tpu.core_type = #tpu.core_type<tc>, window_params = [{transform_indices = @transform_0, window_bounds = array<i64: 32, 256>}, {transform_indices = @transform_1, window_bounds = array<i64: 256, 128>}, {transform_indices = @transform_2, window_bounds = array<i64: 1, 256>}, {transform_indices = @transform_3, window_bounds = array<i64: 1, 256>}, {pipeline_mode = #tpu.pipeline_mode<synchronous>, transform_indices = @transform_4, window_bounds = array<i64: 1, 128>}, {pipeline_mode = #tpu.pipeline_mode<synchronous>, transform_indices = @transform_5, window_bounds = array<i64: 1, 128>}, {transform_indices = @transform_6, window_bounds = array<i64: 32, 128>}]} {
    %c0_i32 = arith.constant 0 : i32
    %0 = arith.cmpi eq, %arg1, %c0_i32 : i32
    %1 = arith.extui %0 : i1 to i32
    %c0_i32_0 = arith.constant 0 : i32
    %2 = arith.cmpi ne, %1, %c0_i32_0 : i32
    scf.if %2 {
      %cst_14 = arith.constant 0.000000e+00 : f32
      %22 = vector.broadcast %cst_14 : f32 to vector<32x128xf32>
      %c0_15 = arith.constant 0 : index
      %c0_16 = arith.constant 0 : index
      %23 = vector.load %arg9[%c0_15, %c0_16] : memref<32x128xf32, #tpu.memory_space<vmem>>, vector<32x128xf32>
      tpu.vector_store %arg9[%c0_15, %c0_16], %22 {strides = array<i32>} : memref<32x128xf32, #tpu.memory_space<vmem>>, vector<32x128xf32>,
    } else {
    }
    %c0 = arith.constant 0 : index
    %c0_1 = arith.constant 0 : index
    %3 = vector.load %arg2[%c0, %c0_1] : memref<32x256xbf16, #tpu.memory_space<vmem>>, vector<32x256xbf16>
    %4 = arith.extf %3 : vector<32x256xbf16> to vector<32x256xf32>
    %c0_2 = arith.constant 0 : index
    %c0_3 = arith.constant 0 : index
    %5 = vector.load %arg4[%c0_2, %c0_3] : memref<1x256xf32, #tpu.memory_space<vmem>>, vector<1x256xf32>
    %6 = vector.broadcast %5 : vector<1x256xf32> to vector<32x256xf32>
    %7 = arith.mulf %4, %6 : vector<32x256xf32>
    %c0_4 = arith.constant 0 : index
    %c0_5 = arith.constant 0 : index
    %8 = vector.load %arg5[%c0_4, %c0_5] : memref<1x256xf32, #tpu.memory_space<vmem>>, vector<1x256xf32>
    %9 = vector.broadcast %8 : vector<1x256xf32> to vector<32x256xf32>
    %10 = arith.addf %7, %9 : vector<32x256xf32>
    %cst = arith.constant 0.000000e+00 : f32
    %11 = vector.broadcast %cst : f32 to vector<32x256xf32>
    %12 = arith.maximumf %10, %11 : vector<32x256xf32>
    %13 = arith.truncf %12 : vector<32x256xf32> to vector<32x256xbf16>
    %c0_6 = arith.constant 0 : index
    %c0_7 = arith.constant 0 : index
    %14 = vector.load %arg9[%c0_6, %c0_7] : memref<32x128xf32, #tpu.memory_space<vmem>>, vector<32x128xf32>
    %c0_8 = arith.constant 0 : index
    %c0_9 = arith.constant 0 : index
    %15 = vector.load %arg3[%c0_8, %c0_9] : memref<256x128xbf16, #tpu.memory_space<vmem>>, vector<256x128xbf16>
    %cst_10 = arith.constant dense<0.000000e+00> : vector<32x128xf32>
    %16 = tpu.matmul %13, %15, %cst_10 {dimension_numbers = #tpu.dot_dimension_numbers<[1], [0], [0], [1], [0, 0, 1, 1], [], []>} : vector<32x256xbf16>, vector<256x128xbf16>, vector<32x128xf32> -> vector<32x128xf32>
    %17 = arith.addf %14, %16 : vector<32x128xf32>
    %c0_11 = arith.constant 0 : index
    %c0_12 = arith.constant 0 : index
    %18 = vector.load %arg9[%c0_11, %c0_12] : memref<32x128xf32, #tpu.memory_space<vmem>>, vector<32x128xf32>
    tpu.vector_store %arg9[%c0_11, %c0_12], %17 {strides = array<i32>} : memref<32x128xf32, #tpu.memory_space<vmem>>, vector<32x128xf32>,
    %c1_i32 = arith.constant 1 : i32
    %19 = arith.cmpi eq, %arg1, %c1_i32 : i32
    %20 = arith.extui %19 : i1 to i32
    %c0_i32_13 = arith.constant 0 : i32
    %21 = arith.cmpi ne, %20, %c0_i32_13 : i32
    scf.if %21 {
      %c0_14 = arith.constant 0 : index
      %c0_15 = arith.constant 0 : index
      %22 = vector.load %arg9[%c0_14, %c0_15] : memref<32x128xf32, #tpu.memory_space<vmem>>, vector<32x128xf32>
      %c0_16 = arith.constant 0 : index
      %c0_17 = arith.constant 0 : index
      %23 = vector.load %arg6[%c0_16, %c0_17] : memref<1x128xf32, #tpu.memory_space<vmem>>, vector<1x128xf32>
      %24 = vector.broadcast %23 : vector<1x128xf32> to vector<32x128xf32>
      %25 = arith.mulf %22, %24 : vector<32x128xf32>
      %c0_18 = arith.constant 0 : index
      %c0_19 = arith.constant 0 : index
      %26 = vector.load %arg7[%c0_18, %c0_19] : memref<1x128xf32, #tpu.memory_space<vmem>>, vector<1x128xf32>
      %27 = vector.broadcast %26 : vector<1x128xf32> to vector<32x128xf32>
      %28 = arith.addf %25, %27 : vector<32x128xf32>
      %cst_20 = arith.constant 0.000000e+00 : f32
      %29 = vector.broadcast %cst_20 : f32 to vector<32x128xf32>
      %30 = arith.maximumf %28, %29 : vector<32x128xf32>
      %31 = arith.truncf %30 : vector<32x128xf32> to vector<32x128xbf16>
      %c0_21 = arith.constant 0 : index
      %c0_22 = arith.constant 0 : index
      %32 = vector.load %arg8[%c0_21, %c0_22] : memref<32x128xbf16, #tpu.memory_space<vmem>>, vector<32x128xbf16>
      tpu.vector_store %arg8[%c0_21, %c0_22], %31 {strides = array<i32>} : memref<32x128xbf16, #tpu.memory_space<vmem>>, vector<32x128xbf16>,
    } else {
    }
    return
  }
  func.func @transform_0(%arg0: i32, %arg1: i32) -> (i32, i32) {
    %c0_i32 = arith.constant 0 : i32
    return %arg0, %arg1 : i32, i32
  }
  func.func @transform_1(%arg0: i32, %arg1: i32) -> (i32, i32) {
    %c0_i32 = arith.constant 0 : i32
    %c0_i32_0 = arith.constant 0 : i32
    return %arg1, %c0_i32 : i32, i32
  }
  func.func @transform_2(%arg0: i32, %arg1: i32) -> (i32, i32) {
    %c0_i32 = arith.constant 0 : i32
    %c0_i32_0 = arith.constant 0 : i32
    return %c0_i32, %arg1 : i32, i32
  }
  func.func @transform_3(%arg0: i32, %arg1: i32) -> (i32, i32) {
    %c0_i32 = arith.constant 0 : i32
    %c0_i32_0 = arith.constant 0 : i32
    return %c0_i32, %arg1 : i32, i32
  }
  func.func @transform_4(%arg0: i32, %arg1: i32) -> (i32, i32) {
    %c0_i32 = arith.constant 0 : i32
    %c0_i32_0 = arith.constant 0 : i32
    %c0_i32_1 = arith.constant 0 : i32
    return %c0_i32, %c0_i32_0 : i32, i32
  }
  func.func @transform_5(%arg0: i32, %arg1: i32) -> (i32, i32) {
    %c0_i32 = arith.constant 0 : i32
    %c0_i32_0 = arith.constant 0 : i32
    %c0_i32_1 = arith.constant 0 : i32
    return %c0_i32, %c0_i32_0 : i32, i32
  }
  func.func @transform_6(%arg0: i32, %arg1: i32) -> (i32, i32) {
    %c0_i32 = arith.constant 0 : i32
    %c0_i32_0 = arith.constant 0 : i32
    return %arg0, %c0_i32 : i32, i32
  }
}

module attributes {stable_mosaic.version = 11 : i64} {
  func.func @_fused_matmul_kernel(%arg0: i32, %arg1: i32, %arg2: memref<32x256xbf16, #tpu.memory_space<vmem>>, %arg3: memref<256x256xbf16, #tpu.memory_space<vmem>>, %arg4: memref<1x256xf32, #tpu.memory_space<vmem>>, %arg5: memref<1x256xf32, #tpu.memory_space<vmem>>, %arg6: memref<1x256xf32, #tpu.memory_space<vmem>>, %arg7: memref<1x256xf32, #tpu.memory_space<vmem>>, %arg8: memref<32x256xf32, #tpu.memory_space<vmem>>, %arg9: memref<32x256xf32, #tpu.memory_space<vmem>>) attributes {dimension_semantics = [#tpu.dimension_semantics<parallel>, #tpu.dimension_semantics<arbitrary>], iteration_bounds = array<i64: 1, 2>, scalar_prefetch = 0 : i64, scratch_operands = 1 : i64, tpu.core_type = #tpu.core_type<tc>, window_params = [{transform_indices = @transform_0, window_bounds = array<i64: 32, 256>}, {transform_indices = @transform_1, window_bounds = array<i64: 256, 256>}, {transform_indices = @transform_2, window_bounds = array<i64: 1, 256>}, {transform_indices = @transform_3, window_bounds = array<i64: 1, 256>}, {pipeline_mode = #tpu.pipeline_mode<synchronous>, transform_indices = @transform_4, window_bounds = array<i64: 1, 256>}, {pipeline_mode = #tpu.pipeline_mode<synchronous>, transform_indices = @transform_5, window_bounds = array<i64: 1, 256>}, {transform_indices = @transform_6, window_bounds = array<i64: 32, 256>}]} {
    %c0_i32 = arith.constant 0 : i32
    %0 = arith.cmpi eq, %arg1, %c0_i32 : i32
    %1 = arith.extui %0 : i1 to i32
    %c0_i32_0 = arith.constant 0 : i32
    %2 = arith.cmpi ne, %1, %c0_i32_0 : i32
    scf.if %2 {
      %cst_14 = arith.constant 0.000000e+00 : f32
      %22 = vector.broadcast %cst_14 : f32 to vector<32x256xf32>
      %c0_15 = arith.constant 0 : index
      %c0_16 = arith.constant 0 : index
      %23 = vector.load %arg9[%c0_15, %c0_16] : memref<32x256xf32, #tpu.memory_space<vmem>>, vector<32x256xf32>
      tpu.vector_store %arg9[%c0_15, %c0_16], %22 {strides = array<i32>} : memref<32x256xf32, #tpu.memory_space<vmem>>, vector<32x256xf32>,
    } else {
    }
    %c0 = arith.constant 0 : index
    %c0_1 = arith.constant 0 : index
    %3 = vector.load %arg2[%c0, %c0_1] : memref<32x256xbf16, #tpu.memory_space<vmem>>, vector<32x256xbf16>
    %4 = arith.extf %3 : vector<32x256xbf16> to vector<32x256xf32>
    %c0_2 = arith.constant 0 : index
    %c0_3 = arith.constant 0 : index
    %5 = vector.load %arg4[%c0_2, %c0_3] : memref<1x256xf32, #tpu.memory_space<vmem>>, vector<1x256xf32>
    %6 = vector.broadcast %5 : vector<1x256xf32> to vector<32x256xf32>
    %7 = arith.mulf %4, %6 : vector<32x256xf32>
    %c0_4 = arith.constant 0 : index
    %c0_5 = arith.constant 0 : index
    %8 = vector.load %arg5[%c0_4, %c0_5] : memref<1x256xf32, #tpu.memory_space<vmem>>, vector<1x256xf32>
    %9 = vector.broadcast %8 : vector<1x256xf32> to vector<32x256xf32>
    %10 = arith.addf %7, %9 : vector<32x256xf32>
    %cst = arith.constant 0.000000e+00 : f32
    %11 = vector.broadcast %cst : f32 to vector<32x256xf32>
    %12 = arith.maximumf %10, %11 : vector<32x256xf32>
    %13 = arith.truncf %12 : vector<32x256xf32> to vector<32x256xbf16>
    %c0_6 = arith.constant 0 : index
    %c0_7 = arith.constant 0 : index
    %14 = vector.load %arg9[%c0_6, %c0_7] : memref<32x256xf32, #tpu.memory_space<vmem>>, vector<32x256xf32>
    %c0_8 = arith.constant 0 : index
    %c0_9 = arith.constant 0 : index
    %15 = vector.load %arg3[%c0_8, %c0_9] : memref<256x256xbf16, #tpu.memory_space<vmem>>, vector<256x256xbf16>
    %cst_10 = arith.constant dense<0.000000e+00> : vector<32x256xf32>
    %16 = tpu.matmul %13, %15, %cst_10 {dimension_numbers = #tpu.dot_dimension_numbers<[1], [0], [0], [1], [0, 0, 1, 1], [], []>} : vector<32x256xbf16>, vector<256x256xbf16>, vector<32x256xf32> -> vector<32x256xf32>
    %17 = arith.addf %14, %16 : vector<32x256xf32>
    %c0_11 = arith.constant 0 : index
    %c0_12 = arith.constant 0 : index
    %18 = vector.load %arg9[%c0_11, %c0_12] : memref<32x256xf32, #tpu.memory_space<vmem>>, vector<32x256xf32>
    tpu.vector_store %arg9[%c0_11, %c0_12], %17 {strides = array<i32>} : memref<32x256xf32, #tpu.memory_space<vmem>>, vector<32x256xf32>,
    %c1_i32 = arith.constant 1 : i32
    %19 = arith.cmpi eq, %arg1, %c1_i32 : i32
    %20 = arith.extui %19 : i1 to i32
    %c0_i32_13 = arith.constant 0 : i32
    %21 = arith.cmpi ne, %20, %c0_i32_13 : i32
    scf.if %21 {
      %c0_14 = arith.constant 0 : index
      %c0_15 = arith.constant 0 : index
      %22 = vector.load %arg9[%c0_14, %c0_15] : memref<32x256xf32, #tpu.memory_space<vmem>>, vector<32x256xf32>
      %c0_16 = arith.constant 0 : index
      %c0_17 = arith.constant 0 : index
      %23 = vector.load %arg8[%c0_16, %c0_17] : memref<32x256xf32, #tpu.memory_space<vmem>>, vector<32x256xf32>
      tpu.vector_store %arg8[%c0_16, %c0_17], %22 {strides = array<i32>} : memref<32x256xf32, #tpu.memory_space<vmem>>, vector<32x256xf32>,
    } else {
    }
    return
  }
  func.func @transform_0(%arg0: i32, %arg1: i32) -> (i32, i32) {
    %c0_i32 = arith.constant 0 : i32
    return %arg0, %arg1 : i32, i32
  }
  func.func @transform_1(%arg0: i32, %arg1: i32) -> (i32, i32) {
    %c0_i32 = arith.constant 0 : i32
    %c0_i32_0 = arith.constant 0 : i32
    return %arg1, %c0_i32 : i32, i32
  }
  func.func @transform_2(%arg0: i32, %arg1: i32) -> (i32, i32) {
    %c0_i32 = arith.constant 0 : i32
    %c0_i32_0 = arith.constant 0 : i32
    return %c0_i32, %arg1 : i32, i32
  }
  func.func @transform_3(%arg0: i32, %arg1: i32) -> (i32, i32) {
    %c0_i32 = arith.constant 0 : i32
    %c0_i32_0 = arith.constant 0 : i32
    return %c0_i32, %arg1 : i32, i32
  }
  func.func @transform_4(%arg0: i32, %arg1: i32) -> (i32, i32) {
    %c0_i32 = arith.constant 0 : i32
    %c0_i32_0 = arith.constant 0 : i32
    %c0_i32_1 = arith.constant 0 : i32
    return %c0_i32, %c0_i32_0 : i32, i32
  }
  func.func @transform_5(%arg0: i32, %arg1: i32) -> (i32, i32) {
    %c0_i32 = arith.constant 0 : i32
    %c0_i32_0 = arith.constant 0 : i32
    %c0_i32_1 = arith.constant 0 : i32
    return %c0_i32, %c0_i32_0 : i32, i32
  }
  func.func @transform_6(%arg0: i32, %arg1: i32) -> (i32, i32) {
    %c0_i32 = arith.constant 0 : i32
    %c0_i32_0 = arith.constant 0 : i32
    return %arg0, %c0_i32 : i32, i32
  }
}

module attributes {stable_mosaic.version = 11 : i64} {
  func.func @_pool_reduce_kernel(%arg0: i32, %arg1: memref<1x8x2x256xf32, #tpu.memory_space<vmem>>, %arg2: memref<1x2x2x256xf32, #tpu.memory_space<vmem>>) attributes {dimension_semantics = [#tpu.dimension_semantics<parallel>], iteration_bounds = array<i64: 2>, scalar_prefetch = 0 : i64, scratch_operands = 0 : i64, tpu.core_type = #tpu.core_type<tc>, window_params = [{transform_indices = @transform_0, window_bounds = array<i64: 1, 8, 2, 256>}, {transform_indices = @transform_1, window_bounds = array<i64: 1, 2, 2, 256>}]} {
    %c0 = arith.constant 0 : index
    %c0_0 = arith.constant 0 : index
    %c0_1 = arith.constant 0 : index
    %c0_2 = arith.constant 0 : index
    %0 = vector.load %arg1[%c0, %c0_0, %c0_1, %c0_2] : memref<1x8x2x256xf32, #tpu.memory_space<vmem>>, vector<1x8x2x256xf32>
    %1 = vector.shape_cast %0 : vector<1x8x2x256xf32> to vector<8x2x256xf32>
    %2 = vector.extract_strided_slice %1 {offsets = [0, 0, 0], sizes = [2, 2, 256], strides = [1, 1, 1]} : vector<8x2x256xf32> to vector<2x2x256xf32>
    %3 = vector.extract_strided_slice %1 {offsets = [2, 0, 0], sizes = [2, 2, 256], strides = [1, 1, 1]} : vector<8x2x256xf32> to vector<2x2x256xf32>
    %4 = arith.addf %2, %3 : vector<2x2x256xf32>
    %5 = vector.extract_strided_slice %1 {offsets = [4, 0, 0], sizes = [2, 2, 256], strides = [1, 1, 1]} : vector<8x2x256xf32> to vector<2x2x256xf32>
    %6 = arith.addf %4, %5 : vector<2x2x256xf32>
    %7 = vector.extract_strided_slice %1 {offsets = [6, 0, 0], sizes = [2, 2, 256], strides = [1, 1, 1]} : vector<8x2x256xf32> to vector<2x2x256xf32>
    %8 = arith.addf %6, %7 : vector<2x2x256xf32>
    %cst = arith.constant 2.500000e-01 : f32
    %9 = vector.broadcast %cst : f32 to vector<2x2x256xf32>
    %10 = arith.mulf %8, %9 : vector<2x2x256xf32>
    %c0_3 = arith.constant 0 : index
    %c0_4 = arith.constant 0 : index
    %c0_5 = arith.constant 0 : index
    %c0_6 = arith.constant 0 : index
    %11 = vector.load %arg2[%c0_3, %c0_4, %c0_5, %c0_6] : memref<1x2x2x256xf32, #tpu.memory_space<vmem>>, vector<1x2x2x256xf32>
    %12 = vector.shape_cast %11 : vector<1x2x2x256xf32> to vector<2x2x256xf32>
    %13 = vector.shape_cast %10 : vector<2x2x256xf32> to vector<1x2x2x256xf32>
    tpu.vector_store %arg2[%c0_3, %c0_4, %c0_5, %c0_6], %13 {strides = array<i32>} : memref<1x2x2x256xf32, #tpu.memory_space<vmem>>, vector<1x2x2x256xf32>,
    return
  }
  func.func @transform_0(%arg0: i32) -> (i32, i32, i32, i32) {
    %c0_i32 = arith.constant 0 : i32
    %c0_i32_0 = arith.constant 0 : i32
    %c0_i32_1 = arith.constant 0 : i32
    %c0_i32_2 = arith.constant 0 : i32
    return %arg0, %c0_i32, %c0_i32_0, %c0_i32_1 : i32, i32, i32, i32
  }
  func.func @transform_1(%arg0: i32) -> (i32, i32, i32, i32) {
    %c0_i32 = arith.constant 0 : i32
    %c0_i32_0 = arith.constant 0 : i32
    %c0_i32_1 = arith.constant 0 : i32
    %c0_i32_2 = arith.constant 0 : i32
    return %arg0, %c0_i32, %c0_i32_0, %c0_i32_1 : i32, i32, i32, i32
  }
}

module attributes {stable_mosaic.version = 11 : i64} {
  func.func @_fused_matmul_kernel(%arg0: i32, %arg1: i32, %arg2: memref<8x256xbf16, #tpu.memory_space<vmem>>, %arg3: memref<256x128xbf16, #tpu.memory_space<vmem>>, %arg4: memref<1x256xf32, #tpu.memory_space<vmem>>, %arg5: memref<1x256xf32, #tpu.memory_space<vmem>>, %arg6: memref<1x128xf32, #tpu.memory_space<vmem>>, %arg7: memref<1x128xf32, #tpu.memory_space<vmem>>, %arg8: memref<8x128xbf16, #tpu.memory_space<vmem>>, %arg9: memref<8x128xf32, #tpu.memory_space<vmem>>) attributes {dimension_semantics = [#tpu.dimension_semantics<parallel>, #tpu.dimension_semantics<arbitrary>], iteration_bounds = array<i64: 1, 1>, scalar_prefetch = 0 : i64, scratch_operands = 1 : i64, tpu.core_type = #tpu.core_type<tc>, window_params = [{transform_indices = @transform_0, window_bounds = array<i64: 8, 256>}, {transform_indices = @transform_1, window_bounds = array<i64: 256, 128>}, {transform_indices = @transform_2, window_bounds = array<i64: 1, 256>}, {transform_indices = @transform_3, window_bounds = array<i64: 1, 256>}, {pipeline_mode = #tpu.pipeline_mode<synchronous>, transform_indices = @transform_4, window_bounds = array<i64: 1, 128>}, {pipeline_mode = #tpu.pipeline_mode<synchronous>, transform_indices = @transform_5, window_bounds = array<i64: 1, 128>}, {transform_indices = @transform_6, window_bounds = array<i64: 8, 128>}]} {
    %c0_i32 = arith.constant 0 : i32
    %0 = arith.cmpi eq, %arg1, %c0_i32 : i32
    %1 = arith.extui %0 : i1 to i32
    %c0_i32_0 = arith.constant 0 : i32
    %2 = arith.cmpi ne, %1, %c0_i32_0 : i32
    scf.if %2 {
      %cst_15 = arith.constant 0.000000e+00 : f32
      %22 = vector.broadcast %cst_15 : f32 to vector<8x128xf32>
      %c0_16 = arith.constant 0 : index
      %c0_17 = arith.constant 0 : index
      %23 = vector.load %arg9[%c0_16, %c0_17] : memref<8x128xf32, #tpu.memory_space<vmem>>, vector<8x128xf32>
      tpu.vector_store %arg9[%c0_16, %c0_17], %22 {strides = array<i32>} : memref<8x128xf32, #tpu.memory_space<vmem>>, vector<8x128xf32>,
    } else {
    }
    %c0 = arith.constant 0 : index
    %c0_1 = arith.constant 0 : index
    %3 = vector.load %arg2[%c0, %c0_1] : memref<8x256xbf16, #tpu.memory_space<vmem>>, vector<8x256xbf16>
    %4 = arith.extf %3 : vector<8x256xbf16> to vector<8x256xf32>
    %c0_2 = arith.constant 0 : index
    %c0_3 = arith.constant 0 : index
    %5 = vector.load %arg4[%c0_2, %c0_3] : memref<1x256xf32, #tpu.memory_space<vmem>>, vector<1x256xf32>
    %6 = vector.broadcast %5 : vector<1x256xf32> to vector<8x256xf32>
    %7 = arith.mulf %4, %6 : vector<8x256xf32>
    %c0_4 = arith.constant 0 : index
    %c0_5 = arith.constant 0 : index
    %8 = vector.load %arg5[%c0_4, %c0_5] : memref<1x256xf32, #tpu.memory_space<vmem>>, vector<1x256xf32>
    %9 = vector.broadcast %8 : vector<1x256xf32> to vector<8x256xf32>
    %10 = arith.addf %7, %9 : vector<8x256xf32>
    %cst = arith.constant 0.000000e+00 : f32
    %11 = vector.broadcast %cst : f32 to vector<8x256xf32>
    %12 = arith.maximumf %10, %11 : vector<8x256xf32>
    %13 = arith.truncf %12 : vector<8x256xf32> to vector<8x256xbf16>
    %c0_6 = arith.constant 0 : index
    %c0_7 = arith.constant 0 : index
    %14 = vector.load %arg9[%c0_6, %c0_7] : memref<8x128xf32, #tpu.memory_space<vmem>>, vector<8x128xf32>
    %c0_8 = arith.constant 0 : index
    %c0_9 = arith.constant 0 : index
    %15 = vector.load %arg3[%c0_8, %c0_9] : memref<256x128xbf16, #tpu.memory_space<vmem>>, vector<256x128xbf16>
    %cst_10 = arith.constant dense<0.000000e+00> : vector<8x128xf32>
    %16 = tpu.matmul %13, %15, %cst_10 {dimension_numbers = #tpu.dot_dimension_numbers<[1], [0], [0], [1], [0, 0, 1, 1], [], []>} : vector<8x256xbf16>, vector<256x128xbf16>, vector<8x128xf32> -> vector<8x128xf32>
    %17 = arith.addf %14, %16 : vector<8x128xf32>
    %c0_11 = arith.constant 0 : index
    %c0_12 = arith.constant 0 : index
    %18 = vector.load %arg9[%c0_11, %c0_12] : memref<8x128xf32, #tpu.memory_space<vmem>>, vector<8x128xf32>
    tpu.vector_store %arg9[%c0_11, %c0_12], %17 {strides = array<i32>} : memref<8x128xf32, #tpu.memory_space<vmem>>, vector<8x128xf32>,
    %c0_i32_13 = arith.constant 0 : i32
    %19 = arith.cmpi eq, %arg1, %c0_i32_13 : i32
    %20 = arith.extui %19 : i1 to i32
    %c0_i32_14 = arith.constant 0 : i32
    %21 = arith.cmpi ne, %20, %c0_i32_14 : i32
    scf.if %21 {
      %c0_15 = arith.constant 0 : index
      %c0_16 = arith.constant 0 : index
      %22 = vector.load %arg9[%c0_15, %c0_16] : memref<8x128xf32, #tpu.memory_space<vmem>>, vector<8x128xf32>
      %c0_17 = arith.constant 0 : index
      %c0_18 = arith.constant 0 : index
      %23 = vector.load %arg6[%c0_17, %c0_18] : memref<1x128xf32, #tpu.memory_space<vmem>>, vector<1x128xf32>
      %24 = vector.broadcast %23 : vector<1x128xf32> to vector<8x128xf32>
      %25 = arith.mulf %22, %24 : vector<8x128xf32>
      %c0_19 = arith.constant 0 : index
      %c0_20 = arith.constant 0 : index
      %26 = vector.load %arg7[%c0_19, %c0_20] : memref<1x128xf32, #tpu.memory_space<vmem>>, vector<1x128xf32>
      %27 = vector.broadcast %26 : vector<1x128xf32> to vector<8x128xf32>
      %28 = arith.addf %25, %27 : vector<8x128xf32>
      %cst_21 = arith.constant 0.000000e+00 : f32
      %29 = vector.broadcast %cst_21 : f32 to vector<8x128xf32>
      %30 = arith.maximumf %28, %29 : vector<8x128xf32>
      %31 = arith.truncf %30 : vector<8x128xf32> to vector<8x128xbf16>
      %c0_22 = arith.constant 0 : index
      %c0_23 = arith.constant 0 : index
      %32 = vector.load %arg8[%c0_22, %c0_23] : memref<8x128xbf16, #tpu.memory_space<vmem>>, vector<8x128xbf16>
      tpu.vector_store %arg8[%c0_22, %c0_23], %31 {strides = array<i32>} : memref<8x128xbf16, #tpu.memory_space<vmem>>, vector<8x128xbf16>,
    } else {
    }
    return
  }
  func.func @transform_0(%arg0: i32, %arg1: i32) -> (i32, i32) {
    %c0_i32 = arith.constant 0 : i32
    return %arg0, %arg1 : i32, i32
  }
  func.func @transform_1(%arg0: i32, %arg1: i32) -> (i32, i32) {
    %c0_i32 = arith.constant 0 : i32
    %c0_i32_0 = arith.constant 0 : i32
    return %arg1, %c0_i32 : i32, i32
  }
  func.func @transform_2(%arg0: i32, %arg1: i32) -> (i32, i32) {
    %c0_i32 = arith.constant 0 : i32
    %c0_i32_0 = arith.constant 0 : i32
    return %c0_i32, %arg1 : i32, i32
  }
  func.func @transform_3(%arg0: i32, %arg1: i32) -> (i32, i32) {
    %c0_i32 = arith.constant 0 : i32
    %c0_i32_0 = arith.constant 0 : i32
    return %c0_i32, %arg1 : i32, i32
  }
  func.func @transform_4(%arg0: i32, %arg1: i32) -> (i32, i32) {
    %c0_i32 = arith.constant 0 : i32
    %c0_i32_0 = arith.constant 0 : i32
    %c0_i32_1 = arith.constant 0 : i32
    return %c0_i32, %c0_i32_0 : i32, i32
  }
  func.func @transform_5(%arg0: i32, %arg1: i32) -> (i32, i32) {
    %c0_i32 = arith.constant 0 : i32
    %c0_i32_0 = arith.constant 0 : i32
    %c0_i32_1 = arith.constant 0 : i32
    return %c0_i32, %c0_i32_0 : i32, i32
  }
  func.func @transform_6(%arg0: i32, %arg1: i32) -> (i32, i32) {
    %c0_i32 = arith.constant 0 : i32
    %c0_i32_0 = arith.constant 0 : i32
    return %arg0, %c0_i32 : i32, i32
  }
}

module attributes {stable_mosaic.version = 11 : i64} {
  func.func @_fused_matmul_kernel(%arg0: i32, %arg1: i32, %arg2: memref<32x128xbf16, #tpu.memory_space<vmem>>, %arg3: memref<128x288xbf16, #tpu.memory_space<vmem>>, %arg4: memref<1x128xf32, #tpu.memory_space<vmem>>, %arg5: memref<1x128xf32, #tpu.memory_space<vmem>>, %arg6: memref<1x288xf32, #tpu.memory_space<vmem>>, %arg7: memref<1x288xf32, #tpu.memory_space<vmem>>, %arg8: memref<32x288xbf16, #tpu.memory_space<vmem>>, %arg9: memref<32x288xf32, #tpu.memory_space<vmem>>) attributes {dimension_semantics = [#tpu.dimension_semantics<parallel>, #tpu.dimension_semantics<arbitrary>], iteration_bounds = array<i64: 1, 1>, scalar_prefetch = 0 : i64, scratch_operands = 1 : i64, tpu.core_type = #tpu.core_type<tc>, window_params = [{transform_indices = @transform_0, window_bounds = array<i64: 32, 128>}, {transform_indices = @transform_1, window_bounds = array<i64: 128, 288>}, {transform_indices = @transform_2, window_bounds = array<i64: 1, 128>}, {transform_indices = @transform_3, window_bounds = array<i64: 1, 128>}, {pipeline_mode = #tpu.pipeline_mode<synchronous>, transform_indices = @transform_4, window_bounds = array<i64: 1, 288>}, {pipeline_mode = #tpu.pipeline_mode<synchronous>, transform_indices = @transform_5, window_bounds = array<i64: 1, 288>}, {transform_indices = @transform_6, window_bounds = array<i64: 32, 288>}]} {
    %c0_i32 = arith.constant 0 : i32
    %0 = arith.cmpi eq, %arg1, %c0_i32 : i32
    %1 = arith.extui %0 : i1 to i32
    %c0_i32_0 = arith.constant 0 : i32
    %2 = arith.cmpi ne, %1, %c0_i32_0 : i32
    scf.if %2 {
      %cst_10 = arith.constant 0.000000e+00 : f32
      %12 = vector.broadcast %cst_10 : f32 to vector<32x288xf32>
      %c0_11 = arith.constant 0 : index
      %c0_12 = arith.constant 0 : index
      %13 = vector.load %arg9[%c0_11, %c0_12] : memref<32x288xf32, #tpu.memory_space<vmem>>, vector<32x288xf32>
      tpu.vector_store %arg9[%c0_11, %c0_12], %12 {strides = array<i32>} : memref<32x288xf32, #tpu.memory_space<vmem>>, vector<32x288xf32>,
    } else {
    }
    %c0 = arith.constant 0 : index
    %c0_1 = arith.constant 0 : index
    %3 = vector.load %arg2[%c0, %c0_1] : memref<32x128xbf16, #tpu.memory_space<vmem>>, vector<32x128xbf16>
    %c0_2 = arith.constant 0 : index
    %c0_3 = arith.constant 0 : index
    %4 = vector.load %arg9[%c0_2, %c0_3] : memref<32x288xf32, #tpu.memory_space<vmem>>, vector<32x288xf32>
    %c0_4 = arith.constant 0 : index
    %c0_5 = arith.constant 0 : index
    %5 = vector.load %arg3[%c0_4, %c0_5] : memref<128x288xbf16, #tpu.memory_space<vmem>>, vector<128x288xbf16>
    %cst = arith.constant dense<0.000000e+00> : vector<32x288xf32>
    %6 = tpu.matmul %3, %5, %cst {dimension_numbers = #tpu.dot_dimension_numbers<[1], [0], [0], [1], [0, 0, 1, 1], [], []>} : vector<32x128xbf16>, vector<128x288xbf16>, vector<32x288xf32> -> vector<32x288xf32>
    %7 = arith.addf %4, %6 : vector<32x288xf32>
    %c0_6 = arith.constant 0 : index
    %c0_7 = arith.constant 0 : index
    %8 = vector.load %arg9[%c0_6, %c0_7] : memref<32x288xf32, #tpu.memory_space<vmem>>, vector<32x288xf32>
    tpu.vector_store %arg9[%c0_6, %c0_7], %7 {strides = array<i32>} : memref<32x288xf32, #tpu.memory_space<vmem>>, vector<32x288xf32>,
    %c0_i32_8 = arith.constant 0 : i32
    %9 = arith.cmpi eq, %arg1, %c0_i32_8 : i32
    %10 = arith.extui %9 : i1 to i32
    %c0_i32_9 = arith.constant 0 : i32
    %11 = arith.cmpi ne, %10, %c0_i32_9 : i32
    scf.if %11 {
      %c0_10 = arith.constant 0 : index
      %c0_11 = arith.constant 0 : index
      %12 = vector.load %arg9[%c0_10, %c0_11] : memref<32x288xf32, #tpu.memory_space<vmem>>, vector<32x288xf32>
      %13 = arith.truncf %12 : vector<32x288xf32> to vector<32x288xbf16>
      %c0_12 = arith.constant 0 : index
      %c0_13 = arith.constant 0 : index
      %14 = vector.load %arg8[%c0_12, %c0_13] : memref<32x288xbf16, #tpu.memory_space<vmem>>, vector<32x288xbf16>
      tpu.vector_store %arg8[%c0_12, %c0_13], %13 {strides = array<i32>} : memref<32x288xbf16, #tpu.memory_space<vmem>>, vector<32x288xbf16>,
    } else {
    }
    return
  }
  func.func @transform_0(%arg0: i32, %arg1: i32) -> (i32, i32) {
    %c0_i32 = arith.constant 0 : i32
    return %arg0, %arg1 : i32, i32
  }
  func.func @transform_1(%arg0: i32, %arg1: i32) -> (i32, i32) {
    %c0_i32 = arith.constant 0 : i32
    %c0_i32_0 = arith.constant 0 : i32
    return %arg1, %c0_i32 : i32, i32
  }
  func.func @transform_2(%arg0: i32, %arg1: i32) -> (i32, i32) {
    %c0_i32 = arith.constant 0 : i32
    %c0_i32_0 = arith.constant 0 : i32
    return %c0_i32, %arg1 : i32, i32
  }
  func.func @transform_3(%arg0: i32, %arg1: i32) -> (i32, i32) {
    %c0_i32 = arith.constant 0 : i32
    %c0_i32_0 = arith.constant 0 : i32
    return %c0_i32, %arg1 : i32, i32
  }
  func.func @transform_4(%arg0: i32, %arg1: i32) -> (i32, i32) {
    %c0_i32 = arith.constant 0 : i32
    %c0_i32_0 = arith.constant 0 : i32
    %c0_i32_1 = arith.constant 0 : i32
    return %c0_i32, %c0_i32_0 : i32, i32
  }
  func.func @transform_5(%arg0: i32, %arg1: i32) -> (i32, i32) {
    %c0_i32 = arith.constant 0 : i32
    %c0_i32_0 = arith.constant 0 : i32
    %c0_i32_1 = arith.constant 0 : i32
    return %c0_i32, %c0_i32_0 : i32, i32
  }
  func.func @transform_6(%arg0: i32, %arg1: i32) -> (i32, i32) {
    %c0_i32 = arith.constant 0 : i32
    %c0_i32_0 = arith.constant 0 : i32
    return %arg0, %c0_i32 : i32, i32
  }
}

module attributes {stable_mosaic.version = 11 : i64} {
  func.func @_fused_matmul_kernel(%arg0: i32, %arg1: i32, %arg2: memref<8x256xbf16, #tpu.memory_space<vmem>>, %arg3: memref<256x128xbf16, #tpu.memory_space<vmem>>, %arg4: memref<1x256xf32, #tpu.memory_space<vmem>>, %arg5: memref<1x256xf32, #tpu.memory_space<vmem>>, %arg6: memref<1x128xf32, #tpu.memory_space<vmem>>, %arg7: memref<1x128xf32, #tpu.memory_space<vmem>>, %arg8: memref<8x128xbf16, #tpu.memory_space<vmem>>, %arg9: memref<8x128xf32, #tpu.memory_space<vmem>>) attributes {dimension_semantics = [#tpu.dimension_semantics<parallel>, #tpu.dimension_semantics<arbitrary>], iteration_bounds = array<i64: 1, 2>, scalar_prefetch = 0 : i64, scratch_operands = 1 : i64, tpu.core_type = #tpu.core_type<tc>, window_params = [{transform_indices = @transform_0, window_bounds = array<i64: 8, 256>}, {transform_indices = @transform_1, window_bounds = array<i64: 256, 128>}, {transform_indices = @transform_2, window_bounds = array<i64: 1, 256>}, {transform_indices = @transform_3, window_bounds = array<i64: 1, 256>}, {pipeline_mode = #tpu.pipeline_mode<synchronous>, transform_indices = @transform_4, window_bounds = array<i64: 1, 128>}, {pipeline_mode = #tpu.pipeline_mode<synchronous>, transform_indices = @transform_5, window_bounds = array<i64: 1, 128>}, {transform_indices = @transform_6, window_bounds = array<i64: 8, 128>}]} {
    %c0_i32 = arith.constant 0 : i32
    %0 = arith.cmpi eq, %arg1, %c0_i32 : i32
    %1 = arith.extui %0 : i1 to i32
    %c0_i32_0 = arith.constant 0 : i32
    %2 = arith.cmpi ne, %1, %c0_i32_0 : i32
    scf.if %2 {
      %cst_14 = arith.constant 0.000000e+00 : f32
      %22 = vector.broadcast %cst_14 : f32 to vector<8x128xf32>
      %c0_15 = arith.constant 0 : index
      %c0_16 = arith.constant 0 : index
      %23 = vector.load %arg9[%c0_15, %c0_16] : memref<8x128xf32, #tpu.memory_space<vmem>>, vector<8x128xf32>
      tpu.vector_store %arg9[%c0_15, %c0_16], %22 {strides = array<i32>} : memref<8x128xf32, #tpu.memory_space<vmem>>, vector<8x128xf32>,
    } else {
    }
    %c0 = arith.constant 0 : index
    %c0_1 = arith.constant 0 : index
    %3 = vector.load %arg2[%c0, %c0_1] : memref<8x256xbf16, #tpu.memory_space<vmem>>, vector<8x256xbf16>
    %4 = arith.extf %3 : vector<8x256xbf16> to vector<8x256xf32>
    %c0_2 = arith.constant 0 : index
    %c0_3 = arith.constant 0 : index
    %5 = vector.load %arg4[%c0_2, %c0_3] : memref<1x256xf32, #tpu.memory_space<vmem>>, vector<1x256xf32>
    %6 = vector.broadcast %5 : vector<1x256xf32> to vector<8x256xf32>
    %7 = arith.mulf %4, %6 : vector<8x256xf32>
    %c0_4 = arith.constant 0 : index
    %c0_5 = arith.constant 0 : index
    %8 = vector.load %arg5[%c0_4, %c0_5] : memref<1x256xf32, #tpu.memory_space<vmem>>, vector<1x256xf32>
    %9 = vector.broadcast %8 : vector<1x256xf32> to vector<8x256xf32>
    %10 = arith.addf %7, %9 : vector<8x256xf32>
    %cst = arith.constant 0.000000e+00 : f32
    %11 = vector.broadcast %cst : f32 to vector<8x256xf32>
    %12 = arith.maximumf %10, %11 : vector<8x256xf32>
    %13 = arith.truncf %12 : vector<8x256xf32> to vector<8x256xbf16>
    %c0_6 = arith.constant 0 : index
    %c0_7 = arith.constant 0 : index
    %14 = vector.load %arg9[%c0_6, %c0_7] : memref<8x128xf32, #tpu.memory_space<vmem>>, vector<8x128xf32>
    %c0_8 = arith.constant 0 : index
    %c0_9 = arith.constant 0 : index
    %15 = vector.load %arg3[%c0_8, %c0_9] : memref<256x128xbf16, #tpu.memory_space<vmem>>, vector<256x128xbf16>
    %cst_10 = arith.constant dense<0.000000e+00> : vector<8x128xf32>
    %16 = tpu.matmul %13, %15, %cst_10 {dimension_numbers = #tpu.dot_dimension_numbers<[1], [0], [0], [1], [0, 0, 1, 1], [], []>} : vector<8x256xbf16>, vector<256x128xbf16>, vector<8x128xf32> -> vector<8x128xf32>
    %17 = arith.addf %14, %16 : vector<8x128xf32>
    %c0_11 = arith.constant 0 : index
    %c0_12 = arith.constant 0 : index
    %18 = vector.load %arg9[%c0_11, %c0_12] : memref<8x128xf32, #tpu.memory_space<vmem>>, vector<8x128xf32>
    tpu.vector_store %arg9[%c0_11, %c0_12], %17 {strides = array<i32>} : memref<8x128xf32, #tpu.memory_space<vmem>>, vector<8x128xf32>,
    %c1_i32 = arith.constant 1 : i32
    %19 = arith.cmpi eq, %arg1, %c1_i32 : i32
    %20 = arith.extui %19 : i1 to i32
    %c0_i32_13 = arith.constant 0 : i32
    %21 = arith.cmpi ne, %20, %c0_i32_13 : i32
    scf.if %21 {
      %c0_14 = arith.constant 0 : index
      %c0_15 = arith.constant 0 : index
      %22 = vector.load %arg9[%c0_14, %c0_15] : memref<8x128xf32, #tpu.memory_space<vmem>>, vector<8x128xf32>
      %c0_16 = arith.constant 0 : index
      %c0_17 = arith.constant 0 : index
      %23 = vector.load %arg6[%c0_16, %c0_17] : memref<1x128xf32, #tpu.memory_space<vmem>>, vector<1x128xf32>
      %24 = vector.broadcast %23 : vector<1x128xf32> to vector<8x128xf32>
      %25 = arith.mulf %22, %24 : vector<8x128xf32>
      %c0_18 = arith.constant 0 : index
      %c0_19 = arith.constant 0 : index
      %26 = vector.load %arg7[%c0_18, %c0_19] : memref<1x128xf32, #tpu.memory_space<vmem>>, vector<1x128xf32>
      %27 = vector.broadcast %26 : vector<1x128xf32> to vector<8x128xf32>
      %28 = arith.addf %25, %27 : vector<8x128xf32>
      %cst_20 = arith.constant 0.000000e+00 : f32
      %29 = vector.broadcast %cst_20 : f32 to vector<8x128xf32>
      %30 = arith.maximumf %28, %29 : vector<8x128xf32>
      %31 = arith.truncf %30 : vector<8x128xf32> to vector<8x128xbf16>
      %c0_21 = arith.constant 0 : index
      %c0_22 = arith.constant 0 : index
      %32 = vector.load %arg8[%c0_21, %c0_22] : memref<8x128xbf16, #tpu.memory_space<vmem>>, vector<8x128xbf16>
      tpu.vector_store %arg8[%c0_21, %c0_22], %31 {strides = array<i32>} : memref<8x128xbf16, #tpu.memory_space<vmem>>, vector<8x128xbf16>,
    } else {
    }
    return
  }
  func.func @transform_0(%arg0: i32, %arg1: i32) -> (i32, i32) {
    %c0_i32 = arith.constant 0 : i32
    return %arg0, %arg1 : i32, i32
  }
  func.func @transform_1(%arg0: i32, %arg1: i32) -> (i32, i32) {
    %c0_i32 = arith.constant 0 : i32
    %c0_i32_0 = arith.constant 0 : i32
    return %arg1, %c0_i32 : i32, i32
  }
  func.func @transform_2(%arg0: i32, %arg1: i32) -> (i32, i32) {
    %c0_i32 = arith.constant 0 : i32
    %c0_i32_0 = arith.constant 0 : i32
    return %c0_i32, %arg1 : i32, i32
  }
  func.func @transform_3(%arg0: i32, %arg1: i32) -> (i32, i32) {
    %c0_i32 = arith.constant 0 : i32
    %c0_i32_0 = arith.constant 0 : i32
    return %c0_i32, %arg1 : i32, i32
  }
  func.func @transform_4(%arg0: i32, %arg1: i32) -> (i32, i32) {
    %c0_i32 = arith.constant 0 : i32
    %c0_i32_0 = arith.constant 0 : i32
    %c0_i32_1 = arith.constant 0 : i32
    return %c0_i32, %c0_i32_0 : i32, i32
  }
  func.func @transform_5(%arg0: i32, %arg1: i32) -> (i32, i32) {
    %c0_i32 = arith.constant 0 : i32
    %c0_i32_0 = arith.constant 0 : i32
    %c0_i32_1 = arith.constant 0 : i32
    return %c0_i32, %c0_i32_0 : i32, i32
  }
  func.func @transform_6(%arg0: i32, %arg1: i32) -> (i32, i32) {
    %c0_i32 = arith.constant 0 : i32
    %c0_i32_0 = arith.constant 0 : i32
    return %arg0, %c0_i32 : i32, i32
  }
}

module attributes {stable_mosaic.version = 11 : i64} {
  func.func @_fused_matmul_kernel(%arg0: i32, %arg1: i32, %arg2: memref<8x256xbf16, #tpu.memory_space<vmem>>, %arg3: memref<256x128xbf16, #tpu.memory_space<vmem>>, %arg4: memref<1x256xf32, #tpu.memory_space<vmem>>, %arg5: memref<1x256xf32, #tpu.memory_space<vmem>>, %arg6: memref<1x128xf32, #tpu.memory_space<vmem>>, %arg7: memref<1x128xf32, #tpu.memory_space<vmem>>, %arg8: memref<8x128xbf16, #tpu.memory_space<vmem>>, %arg9: memref<8x128xf32, #tpu.memory_space<vmem>>) attributes {dimension_semantics = [#tpu.dimension_semantics<parallel>, #tpu.dimension_semantics<arbitrary>], iteration_bounds = array<i64: 1, 3>, scalar_prefetch = 0 : i64, scratch_operands = 1 : i64, tpu.core_type = #tpu.core_type<tc>, window_params = [{transform_indices = @transform_0, window_bounds = array<i64: 8, 256>}, {transform_indices = @transform_1, window_bounds = array<i64: 256, 128>}, {transform_indices = @transform_2, window_bounds = array<i64: 1, 256>}, {transform_indices = @transform_3, window_bounds = array<i64: 1, 256>}, {pipeline_mode = #tpu.pipeline_mode<synchronous>, transform_indices = @transform_4, window_bounds = array<i64: 1, 128>}, {pipeline_mode = #tpu.pipeline_mode<synchronous>, transform_indices = @transform_5, window_bounds = array<i64: 1, 128>}, {transform_indices = @transform_6, window_bounds = array<i64: 8, 128>}]} {
    %c0_i32 = arith.constant 0 : i32
    %0 = arith.cmpi eq, %arg1, %c0_i32 : i32
    %1 = arith.extui %0 : i1 to i32
    %c0_i32_0 = arith.constant 0 : i32
    %2 = arith.cmpi ne, %1, %c0_i32_0 : i32
    scf.if %2 {
      %cst_14 = arith.constant 0.000000e+00 : f32
      %22 = vector.broadcast %cst_14 : f32 to vector<8x128xf32>
      %c0_15 = arith.constant 0 : index
      %c0_16 = arith.constant 0 : index
      %23 = vector.load %arg9[%c0_15, %c0_16] : memref<8x128xf32, #tpu.memory_space<vmem>>, vector<8x128xf32>
      tpu.vector_store %arg9[%c0_15, %c0_16], %22 {strides = array<i32>} : memref<8x128xf32, #tpu.memory_space<vmem>>, vector<8x128xf32>,
    } else {
    }
    %c0 = arith.constant 0 : index
    %c0_1 = arith.constant 0 : index
    %3 = vector.load %arg2[%c0, %c0_1] : memref<8x256xbf16, #tpu.memory_space<vmem>>, vector<8x256xbf16>
    %4 = arith.extf %3 : vector<8x256xbf16> to vector<8x256xf32>
    %c0_2 = arith.constant 0 : index
    %c0_3 = arith.constant 0 : index
    %5 = vector.load %arg4[%c0_2, %c0_3] : memref<1x256xf32, #tpu.memory_space<vmem>>, vector<1x256xf32>
    %6 = vector.broadcast %5 : vector<1x256xf32> to vector<8x256xf32>
    %7 = arith.mulf %4, %6 : vector<8x256xf32>
    %c0_4 = arith.constant 0 : index
    %c0_5 = arith.constant 0 : index
    %8 = vector.load %arg5[%c0_4, %c0_5] : memref<1x256xf32, #tpu.memory_space<vmem>>, vector<1x256xf32>
    %9 = vector.broadcast %8 : vector<1x256xf32> to vector<8x256xf32>
    %10 = arith.addf %7, %9 : vector<8x256xf32>
    %cst = arith.constant 0.000000e+00 : f32
    %11 = vector.broadcast %cst : f32 to vector<8x256xf32>
    %12 = arith.maximumf %10, %11 : vector<8x256xf32>
    %13 = arith.truncf %12 : vector<8x256xf32> to vector<8x256xbf16>
    %c0_6 = arith.constant 0 : index
    %c0_7 = arith.constant 0 : index
    %14 = vector.load %arg9[%c0_6, %c0_7] : memref<8x128xf32, #tpu.memory_space<vmem>>, vector<8x128xf32>
    %c0_8 = arith.constant 0 : index
    %c0_9 = arith.constant 0 : index
    %15 = vector.load %arg3[%c0_8, %c0_9] : memref<256x128xbf16, #tpu.memory_space<vmem>>, vector<256x128xbf16>
    %cst_10 = arith.constant dense<0.000000e+00> : vector<8x128xf32>
    %16 = tpu.matmul %13, %15, %cst_10 {dimension_numbers = #tpu.dot_dimension_numbers<[1], [0], [0], [1], [0, 0, 1, 1], [], []>} : vector<8x256xbf16>, vector<256x128xbf16>, vector<8x128xf32> -> vector<8x128xf32>
    %17 = arith.addf %14, %16 : vector<8x128xf32>
    %c0_11 = arith.constant 0 : index
    %c0_12 = arith.constant 0 : index
    %18 = vector.load %arg9[%c0_11, %c0_12] : memref<8x128xf32, #tpu.memory_space<vmem>>, vector<8x128xf32>
    tpu.vector_store %arg9[%c0_11, %c0_12], %17 {strides = array<i32>} : memref<8x128xf32, #tpu.memory_space<vmem>>, vector<8x128xf32>,
    %c2_i32 = arith.constant 2 : i32
    %19 = arith.cmpi eq, %arg1, %c2_i32 : i32
    %20 = arith.extui %19 : i1 to i32
    %c0_i32_13 = arith.constant 0 : i32
    %21 = arith.cmpi ne, %20, %c0_i32_13 : i32
    scf.if %21 {
      %c0_14 = arith.constant 0 : index
      %c0_15 = arith.constant 0 : index
      %22 = vector.load %arg9[%c0_14, %c0_15] : memref<8x128xf32, #tpu.memory_space<vmem>>, vector<8x128xf32>
      %c0_16 = arith.constant 0 : index
      %c0_17 = arith.constant 0 : index
      %23 = vector.load %arg6[%c0_16, %c0_17] : memref<1x128xf32, #tpu.memory_space<vmem>>, vector<1x128xf32>
      %24 = vector.broadcast %23 : vector<1x128xf32> to vector<8x128xf32>
      %25 = arith.mulf %22, %24 : vector<8x128xf32>
      %c0_18 = arith.constant 0 : index
      %c0_19 = arith.constant 0 : index
      %26 = vector.load %arg7[%c0_18, %c0_19] : memref<1x128xf32, #tpu.memory_space<vmem>>, vector<1x128xf32>
      %27 = vector.broadcast %26 : vector<1x128xf32> to vector<8x128xf32>
      %28 = arith.addf %25, %27 : vector<8x128xf32>
      %cst_20 = arith.constant 0.000000e+00 : f32
      %29 = vector.broadcast %cst_20 : f32 to vector<8x128xf32>
      %30 = arith.maximumf %28, %29 : vector<8x128xf32>
      %31 = arith.truncf %30 : vector<8x128xf32> to vector<8x128xbf16>
      %c0_21 = arith.constant 0 : index
      %c0_22 = arith.constant 0 : index
      %32 = vector.load %arg8[%c0_21, %c0_22] : memref<8x128xbf16, #tpu.memory_space<vmem>>, vector<8x128xbf16>
      tpu.vector_store %arg8[%c0_21, %c0_22], %31 {strides = array<i32>} : memref<8x128xbf16, #tpu.memory_space<vmem>>, vector<8x128xbf16>,
    } else {
    }
    return
  }
  func.func @transform_0(%arg0: i32, %arg1: i32) -> (i32, i32) {
    %c0_i32 = arith.constant 0 : i32
    return %arg0, %arg1 : i32, i32
  }
  func.func @transform_1(%arg0: i32, %arg1: i32) -> (i32, i32) {
    %c0_i32 = arith.constant 0 : i32
    %c0_i32_0 = arith.constant 0 : i32
    return %arg1, %c0_i32 : i32, i32
  }
  func.func @transform_2(%arg0: i32, %arg1: i32) -> (i32, i32) {
    %c0_i32 = arith.constant 0 : i32
    %c0_i32_0 = arith.constant 0 : i32
    return %c0_i32, %arg1 : i32, i32
  }
  func.func @transform_3(%arg0: i32, %arg1: i32) -> (i32, i32) {
    %c0_i32 = arith.constant 0 : i32
    %c0_i32_0 = arith.constant 0 : i32
    return %c0_i32, %arg1 : i32, i32
  }
  func.func @transform_4(%arg0: i32, %arg1: i32) -> (i32, i32) {
    %c0_i32 = arith.constant 0 : i32
    %c0_i32_0 = arith.constant 0 : i32
    %c0_i32_1 = arith.constant 0 : i32
    return %c0_i32, %c0_i32_0 : i32, i32
  }
  func.func @transform_5(%arg0: i32, %arg1: i32) -> (i32, i32) {
    %c0_i32 = arith.constant 0 : i32
    %c0_i32_0 = arith.constant 0 : i32
    %c0_i32_1 = arith.constant 0 : i32
    return %c0_i32, %c0_i32_0 : i32, i32
  }
  func.func @transform_6(%arg0: i32, %arg1: i32) -> (i32, i32) {
    %c0_i32 = arith.constant 0 : i32
    %c0_i32_0 = arith.constant 0 : i32
    return %arg0, %c0_i32 : i32, i32
  }
}

module attributes {stable_mosaic.version = 11 : i64} {
  func.func @_fused_matmul_kernel(%arg0: i32, %arg1: i32, %arg2: memref<8x256xbf16, #tpu.memory_space<vmem>>, %arg3: memref<256x128xbf16, #tpu.memory_space<vmem>>, %arg4: memref<1x256xf32, #tpu.memory_space<vmem>>, %arg5: memref<1x256xf32, #tpu.memory_space<vmem>>, %arg6: memref<1x128xf32, #tpu.memory_space<vmem>>, %arg7: memref<1x128xf32, #tpu.memory_space<vmem>>, %arg8: memref<8x128xbf16, #tpu.memory_space<vmem>>, %arg9: memref<8x128xf32, #tpu.memory_space<vmem>>) attributes {dimension_semantics = [#tpu.dimension_semantics<parallel>, #tpu.dimension_semantics<arbitrary>], iteration_bounds = array<i64: 1, 4>, scalar_prefetch = 0 : i64, scratch_operands = 1 : i64, tpu.core_type = #tpu.core_type<tc>, window_params = [{transform_indices = @transform_0, window_bounds = array<i64: 8, 256>}, {transform_indices = @transform_1, window_bounds = array<i64: 256, 128>}, {transform_indices = @transform_2, window_bounds = array<i64: 1, 256>}, {transform_indices = @transform_3, window_bounds = array<i64: 1, 256>}, {pipeline_mode = #tpu.pipeline_mode<synchronous>, transform_indices = @transform_4, window_bounds = array<i64: 1, 128>}, {pipeline_mode = #tpu.pipeline_mode<synchronous>, transform_indices = @transform_5, window_bounds = array<i64: 1, 128>}, {transform_indices = @transform_6, window_bounds = array<i64: 8, 128>}]} {
    %c0_i32 = arith.constant 0 : i32
    %0 = arith.cmpi eq, %arg1, %c0_i32 : i32
    %1 = arith.extui %0 : i1 to i32
    %c0_i32_0 = arith.constant 0 : i32
    %2 = arith.cmpi ne, %1, %c0_i32_0 : i32
    scf.if %2 {
      %cst_14 = arith.constant 0.000000e+00 : f32
      %22 = vector.broadcast %cst_14 : f32 to vector<8x128xf32>
      %c0_15 = arith.constant 0 : index
      %c0_16 = arith.constant 0 : index
      %23 = vector.load %arg9[%c0_15, %c0_16] : memref<8x128xf32, #tpu.memory_space<vmem>>, vector<8x128xf32>
      tpu.vector_store %arg9[%c0_15, %c0_16], %22 {strides = array<i32>} : memref<8x128xf32, #tpu.memory_space<vmem>>, vector<8x128xf32>,
    } else {
    }
    %c0 = arith.constant 0 : index
    %c0_1 = arith.constant 0 : index
    %3 = vector.load %arg2[%c0, %c0_1] : memref<8x256xbf16, #tpu.memory_space<vmem>>, vector<8x256xbf16>
    %4 = arith.extf %3 : vector<8x256xbf16> to vector<8x256xf32>
    %c0_2 = arith.constant 0 : index
    %c0_3 = arith.constant 0 : index
    %5 = vector.load %arg4[%c0_2, %c0_3] : memref<1x256xf32, #tpu.memory_space<vmem>>, vector<1x256xf32>
    %6 = vector.broadcast %5 : vector<1x256xf32> to vector<8x256xf32>
    %7 = arith.mulf %4, %6 : vector<8x256xf32>
    %c0_4 = arith.constant 0 : index
    %c0_5 = arith.constant 0 : index
    %8 = vector.load %arg5[%c0_4, %c0_5] : memref<1x256xf32, #tpu.memory_space<vmem>>, vector<1x256xf32>
    %9 = vector.broadcast %8 : vector<1x256xf32> to vector<8x256xf32>
    %10 = arith.addf %7, %9 : vector<8x256xf32>
    %cst = arith.constant 0.000000e+00 : f32
    %11 = vector.broadcast %cst : f32 to vector<8x256xf32>
    %12 = arith.maximumf %10, %11 : vector<8x256xf32>
    %13 = arith.truncf %12 : vector<8x256xf32> to vector<8x256xbf16>
    %c0_6 = arith.constant 0 : index
    %c0_7 = arith.constant 0 : index
    %14 = vector.load %arg9[%c0_6, %c0_7] : memref<8x128xf32, #tpu.memory_space<vmem>>, vector<8x128xf32>
    %c0_8 = arith.constant 0 : index
    %c0_9 = arith.constant 0 : index
    %15 = vector.load %arg3[%c0_8, %c0_9] : memref<256x128xbf16, #tpu.memory_space<vmem>>, vector<256x128xbf16>
    %cst_10 = arith.constant dense<0.000000e+00> : vector<8x128xf32>
    %16 = tpu.matmul %13, %15, %cst_10 {dimension_numbers = #tpu.dot_dimension_numbers<[1], [0], [0], [1], [0, 0, 1, 1], [], []>} : vector<8x256xbf16>, vector<256x128xbf16>, vector<8x128xf32> -> vector<8x128xf32>
    %17 = arith.addf %14, %16 : vector<8x128xf32>
    %c0_11 = arith.constant 0 : index
    %c0_12 = arith.constant 0 : index
    %18 = vector.load %arg9[%c0_11, %c0_12] : memref<8x128xf32, #tpu.memory_space<vmem>>, vector<8x128xf32>
    tpu.vector_store %arg9[%c0_11, %c0_12], %17 {strides = array<i32>} : memref<8x128xf32, #tpu.memory_space<vmem>>, vector<8x128xf32>,
    %c3_i32 = arith.constant 3 : i32
    %19 = arith.cmpi eq, %arg1, %c3_i32 : i32
    %20 = arith.extui %19 : i1 to i32
    %c0_i32_13 = arith.constant 0 : i32
    %21 = arith.cmpi ne, %20, %c0_i32_13 : i32
    scf.if %21 {
      %c0_14 = arith.constant 0 : index
      %c0_15 = arith.constant 0 : index
      %22 = vector.load %arg9[%c0_14, %c0_15] : memref<8x128xf32, #tpu.memory_space<vmem>>, vector<8x128xf32>
      %c0_16 = arith.constant 0 : index
      %c0_17 = arith.constant 0 : index
      %23 = vector.load %arg6[%c0_16, %c0_17] : memref<1x128xf32, #tpu.memory_space<vmem>>, vector<1x128xf32>
      %24 = vector.broadcast %23 : vector<1x128xf32> to vector<8x128xf32>
      %25 = arith.mulf %22, %24 : vector<8x128xf32>
      %c0_18 = arith.constant 0 : index
      %c0_19 = arith.constant 0 : index
      %26 = vector.load %arg7[%c0_18, %c0_19] : memref<1x128xf32, #tpu.memory_space<vmem>>, vector<1x128xf32>
      %27 = vector.broadcast %26 : vector<1x128xf32> to vector<8x128xf32>
      %28 = arith.addf %25, %27 : vector<8x128xf32>
      %cst_20 = arith.constant 0.000000e+00 : f32
      %29 = vector.broadcast %cst_20 : f32 to vector<8x128xf32>
      %30 = arith.maximumf %28, %29 : vector<8x128xf32>
      %31 = arith.truncf %30 : vector<8x128xf32> to vector<8x128xbf16>
      %c0_21 = arith.constant 0 : index
      %c0_22 = arith.constant 0 : index
      %32 = vector.load %arg8[%c0_21, %c0_22] : memref<8x128xbf16, #tpu.memory_space<vmem>>, vector<8x128xbf16>
      tpu.vector_store %arg8[%c0_21, %c0_22], %31 {strides = array<i32>} : memref<8x128xbf16, #tpu.memory_space<vmem>>, vector<8x128xbf16>,
    } else {
    }
    return
  }
  func.func @transform_0(%arg0: i32, %arg1: i32) -> (i32, i32) {
    %c0_i32 = arith.constant 0 : i32
    return %arg0, %arg1 : i32, i32
  }
  func.func @transform_1(%arg0: i32, %arg1: i32) -> (i32, i32) {
    %c0_i32 = arith.constant 0 : i32
    %c0_i32_0 = arith.constant 0 : i32
    return %arg1, %c0_i32 : i32, i32
  }
  func.func @transform_2(%arg0: i32, %arg1: i32) -> (i32, i32) {
    %c0_i32 = arith.constant 0 : i32
    %c0_i32_0 = arith.constant 0 : i32
    return %c0_i32, %arg1 : i32, i32
  }
  func.func @transform_3(%arg0: i32, %arg1: i32) -> (i32, i32) {
    %c0_i32 = arith.constant 0 : i32
    %c0_i32_0 = arith.constant 0 : i32
    return %c0_i32, %arg1 : i32, i32
  }
  func.func @transform_4(%arg0: i32, %arg1: i32) -> (i32, i32) {
    %c0_i32 = arith.constant 0 : i32
    %c0_i32_0 = arith.constant 0 : i32
    %c0_i32_1 = arith.constant 0 : i32
    return %c0_i32, %c0_i32_0 : i32, i32
  }
  func.func @transform_5(%arg0: i32, %arg1: i32) -> (i32, i32) {
    %c0_i32 = arith.constant 0 : i32
    %c0_i32_0 = arith.constant 0 : i32
    %c0_i32_1 = arith.constant 0 : i32
    return %c0_i32, %c0_i32_0 : i32, i32
  }
  func.func @transform_6(%arg0: i32, %arg1: i32) -> (i32, i32) {
    %c0_i32 = arith.constant 0 : i32
    %c0_i32_0 = arith.constant 0 : i32
    return %arg0, %c0_i32 : i32, i32
  }
}

module attributes {stable_mosaic.version = 11 : i64} {
  func.func @_fused_matmul_kernel(%arg0: i32, %arg1: i32, %arg2: memref<8x256xbf16, #tpu.memory_space<vmem>>, %arg3: memref<256x512xbf16, #tpu.memory_space<vmem>>, %arg4: memref<1x256xf32, #tpu.memory_space<vmem>>, %arg5: memref<1x256xf32, #tpu.memory_space<vmem>>, %arg6: memref<1x512xf32, #tpu.memory_space<vmem>>, %arg7: memref<1x512xf32, #tpu.memory_space<vmem>>, %arg8: memref<8x512xf32, #tpu.memory_space<vmem>>, %arg9: memref<8x512xf32, #tpu.memory_space<vmem>>) attributes {dimension_semantics = [#tpu.dimension_semantics<parallel>, #tpu.dimension_semantics<arbitrary>], iteration_bounds = array<i64: 1, 4>, scalar_prefetch = 0 : i64, scratch_operands = 1 : i64, tpu.core_type = #tpu.core_type<tc>, window_params = [{transform_indices = @transform_0, window_bounds = array<i64: 8, 256>}, {transform_indices = @transform_1, window_bounds = array<i64: 256, 512>}, {transform_indices = @transform_2, window_bounds = array<i64: 1, 256>}, {transform_indices = @transform_3, window_bounds = array<i64: 1, 256>}, {pipeline_mode = #tpu.pipeline_mode<synchronous>, transform_indices = @transform_4, window_bounds = array<i64: 1, 512>}, {pipeline_mode = #tpu.pipeline_mode<synchronous>, transform_indices = @transform_5, window_bounds = array<i64: 1, 512>}, {transform_indices = @transform_6, window_bounds = array<i64: 8, 512>}]} {
    %c0_i32 = arith.constant 0 : i32
    %0 = arith.cmpi eq, %arg1, %c0_i32 : i32
    %1 = arith.extui %0 : i1 to i32
    %c0_i32_0 = arith.constant 0 : i32
    %2 = arith.cmpi ne, %1, %c0_i32_0 : i32
    scf.if %2 {
      %cst_14 = arith.constant 0.000000e+00 : f32
      %22 = vector.broadcast %cst_14 : f32 to vector<8x512xf32>
      %c0_15 = arith.constant 0 : index
      %c0_16 = arith.constant 0 : index
      %23 = vector.load %arg9[%c0_15, %c0_16] : memref<8x512xf32, #tpu.memory_space<vmem>>, vector<8x512xf32>
      tpu.vector_store %arg9[%c0_15, %c0_16], %22 {strides = array<i32>} : memref<8x512xf32, #tpu.memory_space<vmem>>, vector<8x512xf32>,
    } else {
    }
    %c0 = arith.constant 0 : index
    %c0_1 = arith.constant 0 : index
    %3 = vector.load %arg2[%c0, %c0_1] : memref<8x256xbf16, #tpu.memory_space<vmem>>, vector<8x256xbf16>
    %4 = arith.extf %3 : vector<8x256xbf16> to vector<8x256xf32>
    %c0_2 = arith.constant 0 : index
    %c0_3 = arith.constant 0 : index
    %5 = vector.load %arg4[%c0_2, %c0_3] : memref<1x256xf32, #tpu.memory_space<vmem>>, vector<1x256xf32>
    %6 = vector.broadcast %5 : vector<1x256xf32> to vector<8x256xf32>
    %7 = arith.mulf %4, %6 : vector<8x256xf32>
    %c0_4 = arith.constant 0 : index
    %c0_5 = arith.constant 0 : index
    %8 = vector.load %arg5[%c0_4, %c0_5] : memref<1x256xf32, #tpu.memory_space<vmem>>, vector<1x256xf32>
    %9 = vector.broadcast %8 : vector<1x256xf32> to vector<8x256xf32>
    %10 = arith.addf %7, %9 : vector<8x256xf32>
    %cst = arith.constant 0.000000e+00 : f32
    %11 = vector.broadcast %cst : f32 to vector<8x256xf32>
    %12 = arith.maximumf %10, %11 : vector<8x256xf32>
    %13 = arith.truncf %12 : vector<8x256xf32> to vector<8x256xbf16>
    %c0_6 = arith.constant 0 : index
    %c0_7 = arith.constant 0 : index
    %14 = vector.load %arg9[%c0_6, %c0_7] : memref<8x512xf32, #tpu.memory_space<vmem>>, vector<8x512xf32>
    %c0_8 = arith.constant 0 : index
    %c0_9 = arith.constant 0 : index
    %15 = vector.load %arg3[%c0_8, %c0_9] : memref<256x512xbf16, #tpu.memory_space<vmem>>, vector<256x512xbf16>
    %cst_10 = arith.constant dense<0.000000e+00> : vector<8x512xf32>
    %16 = tpu.matmul %13, %15, %cst_10 {dimension_numbers = #tpu.dot_dimension_numbers<[1], [0], [0], [1], [0, 0, 1, 1], [], []>} : vector<8x256xbf16>, vector<256x512xbf16>, vector<8x512xf32> -> vector<8x512xf32>
    %17 = arith.addf %14, %16 : vector<8x512xf32>
    %c0_11 = arith.constant 0 : index
    %c0_12 = arith.constant 0 : index
    %18 = vector.load %arg9[%c0_11, %c0_12] : memref<8x512xf32, #tpu.memory_space<vmem>>, vector<8x512xf32>
    tpu.vector_store %arg9[%c0_11, %c0_12], %17 {strides = array<i32>} : memref<8x512xf32, #tpu.memory_space<vmem>>, vector<8x512xf32>,
    %c3_i32 = arith.constant 3 : i32
    %19 = arith.cmpi eq, %arg1, %c3_i32 : i32
    %20 = arith.extui %19 : i1 to i32
    %c0_i32_13 = arith.constant 0 : i32
    %21 = arith.cmpi ne, %20, %c0_i32_13 : i32
    scf.if %21 {
      %c0_14 = arith.constant 0 : index
      %c0_15 = arith.constant 0 : index
      %22 = vector.load %arg9[%c0_14, %c0_15] : memref<8x512xf32, #tpu.memory_space<vmem>>, vector<8x512xf32>
      %c0_16 = arith.constant 0 : index
      %c0_17 = arith.constant 0 : index
      %23 = vector.load %arg8[%c0_16, %c0_17] : memref<8x512xf32, #tpu.memory_space<vmem>>, vector<8x512xf32>
      tpu.vector_store %arg8[%c0_16, %c0_17], %22 {strides = array<i32>} : memref<8x512xf32, #tpu.memory_space<vmem>>, vector<8x512xf32>,
    } else {
    }
    return
  }
  func.func @transform_0(%arg0: i32, %arg1: i32) -> (i32, i32) {
    %c0_i32 = arith.constant 0 : i32
    return %arg0, %arg1 : i32, i32
  }
  func.func @transform_1(%arg0: i32, %arg1: i32) -> (i32, i32) {
    %c0_i32 = arith.constant 0 : i32
    %c0_i32_0 = arith.constant 0 : i32
    return %arg1, %c0_i32 : i32, i32
  }
  func.func @transform_2(%arg0: i32, %arg1: i32) -> (i32, i32) {
    %c0_i32 = arith.constant 0 : i32
    %c0_i32_0 = arith.constant 0 : i32
    return %c0_i32, %arg1 : i32, i32
  }
  func.func @transform_3(%arg0: i32, %arg1: i32) -> (i32, i32) {
    %c0_i32 = arith.constant 0 : i32
    %c0_i32_0 = arith.constant 0 : i32
    return %c0_i32, %arg1 : i32, i32
  }
  func.func @transform_4(%arg0: i32, %arg1: i32) -> (i32, i32) {
    %c0_i32 = arith.constant 0 : i32
    %c0_i32_0 = arith.constant 0 : i32
    %c0_i32_1 = arith.constant 0 : i32
    return %c0_i32, %c0_i32_0 : i32, i32
  }
  func.func @transform_5(%arg0: i32, %arg1: i32) -> (i32, i32) {
    %c0_i32 = arith.constant 0 : i32
    %c0_i32_0 = arith.constant 0 : i32
    %c0_i32_1 = arith.constant 0 : i32
    return %c0_i32, %c0_i32_0 : i32, i32
  }
  func.func @transform_6(%arg0: i32, %arg1: i32) -> (i32, i32) {
    %c0_i32 = arith.constant 0 : i32
    %c0_i32_0 = arith.constant 0 : i32
    return %arg0, %c0_i32 : i32, i32
  }
}

module attributes {stable_mosaic.version = 11 : i64} {
  func.func @_pool_reduce_kernel(%arg0: i32, %arg1: memref<1x4x1x512xf32, #tpu.memory_space<vmem>>, %arg2: memref<1x1x1x512xf32, #tpu.memory_space<vmem>>) attributes {dimension_semantics = [#tpu.dimension_semantics<parallel>], iteration_bounds = array<i64: 2>, scalar_prefetch = 0 : i64, scratch_operands = 0 : i64, tpu.core_type = #tpu.core_type<tc>, window_params = [{transform_indices = @transform_0, window_bounds = array<i64: 1, 4, 1, 512>}, {transform_indices = @transform_1, window_bounds = array<i64: 1, 1, 1, 512>}]} {
    %c0 = arith.constant 0 : index
    %c0_0 = arith.constant 0 : index
    %c0_1 = arith.constant 0 : index
    %c0_2 = arith.constant 0 : index
    %0 = vector.load %arg1[%c0, %c0_0, %c0_1, %c0_2] : memref<1x4x1x512xf32, #tpu.memory_space<vmem>>, vector<1x4x1x512xf32>
    %1 = vector.shape_cast %0 : vector<1x4x1x512xf32> to vector<4x1x512xf32>
    %2 = vector.extract_strided_slice %1 {offsets = [0, 0, 0], sizes = [1, 1, 512], strides = [1, 1, 1]} : vector<4x1x512xf32> to vector<1x1x512xf32>
    %3 = vector.extract_strided_slice %1 {offsets = [1, 0, 0], sizes = [1, 1, 512], strides = [1, 1, 1]} : vector<4x1x512xf32> to vector<1x1x512xf32>
    %4 = arith.addf %2, %3 : vector<1x1x512xf32>
    %5 = vector.extract_strided_slice %1 {offsets = [2, 0, 0], sizes = [1, 1, 512], strides = [1, 1, 1]} : vector<4x1x512xf32> to vector<1x1x512xf32>
    %6 = arith.addf %4, %5 : vector<1x1x512xf32>
    %7 = vector.extract_strided_slice %1 {offsets = [3, 0, 0], sizes = [1, 1, 512], strides = [1, 1, 1]} : vector<4x1x512xf32> to vector<1x1x512xf32>
    %8 = arith.addf %6, %7 : vector<1x1x512xf32>
    %cst = arith.constant 2.500000e-01 : f32
    %9 = vector.broadcast %cst : f32 to vector<1x1x512xf32>
    %10 = arith.mulf %8, %9 : vector<1x1x512xf32>
    %c0_3 = arith.constant 0 : index
    %c0_4 = arith.constant 0 : index
    %c0_5 = arith.constant 0 : index
    %c0_6 = arith.constant 0 : index
    %11 = vector.load %arg2[%c0_3, %c0_4, %c0_5, %c0_6] : memref<1x1x1x512xf32, #tpu.memory_space<vmem>>, vector<1x1x1x512xf32>
    %12 = vector.shape_cast %11 : vector<1x1x1x512xf32> to vector<1x1x512xf32>
    %13 = vector.shape_cast %10 : vector<1x1x512xf32> to vector<1x1x1x512xf32>
    tpu.vector_store %arg2[%c0_3, %c0_4, %c0_5, %c0_6], %13 {strides = array<i32>} : memref<1x1x1x512xf32, #tpu.memory_space<vmem>>, vector<1x1x1x512xf32>,
    return
  }
  func.func @transform_0(%arg0: i32) -> (i32, i32, i32, i32) {
    %c0_i32 = arith.constant 0 : i32
    %c0_i32_0 = arith.constant 0 : i32
    %c0_i32_1 = arith.constant 0 : i32
    %c0_i32_2 = arith.constant 0 : i32
    return %arg0, %c0_i32, %c0_i32_0, %c0_i32_1 : i32, i32, i32, i32
  }
  func.func @transform_1(%arg0: i32) -> (i32, i32, i32, i32) {
    %c0_i32 = arith.constant 0 : i32
    %c0_i32_0 = arith.constant 0 : i32
    %c0_i32_1 = arith.constant 0 : i32
    %c0_i32_2 = arith.constant 0 : i32
    return %arg0, %c0_i32, %c0_i32_0, %c0_i32_1 : i32, i32, i32, i32
  }
}

module attributes {stable_mosaic.version = 11 : i64} {
  func.func @_fused_matmul_kernel(%arg0: i32, %arg1: i32, %arg2: memref<24x128xbf16, #tpu.memory_space<vmem>>, %arg3: memref<128x288xbf16, #tpu.memory_space<vmem>>, %arg4: memref<1x128xf32, #tpu.memory_space<vmem>>, %arg5: memref<1x128xf32, #tpu.memory_space<vmem>>, %arg6: memref<1x288xf32, #tpu.memory_space<vmem>>, %arg7: memref<1x288xf32, #tpu.memory_space<vmem>>, %arg8: memref<24x288xbf16, #tpu.memory_space<vmem>>, %arg9: memref<24x288xf32, #tpu.memory_space<vmem>>) attributes {dimension_semantics = [#tpu.dimension_semantics<parallel>, #tpu.dimension_semantics<arbitrary>], iteration_bounds = array<i64: 1, 1>, scalar_prefetch = 0 : i64, scratch_operands = 1 : i64, tpu.core_type = #tpu.core_type<tc>, window_params = [{transform_indices = @transform_0, window_bounds = array<i64: 24, 128>}, {transform_indices = @transform_1, window_bounds = array<i64: 128, 288>}, {transform_indices = @transform_2, window_bounds = array<i64: 1, 128>}, {transform_indices = @transform_3, window_bounds = array<i64: 1, 128>}, {pipeline_mode = #tpu.pipeline_mode<synchronous>, transform_indices = @transform_4, window_bounds = array<i64: 1, 288>}, {pipeline_mode = #tpu.pipeline_mode<synchronous>, transform_indices = @transform_5, window_bounds = array<i64: 1, 288>}, {transform_indices = @transform_6, window_bounds = array<i64: 24, 288>}]} {
    %c0_i32 = arith.constant 0 : i32
    %0 = arith.cmpi eq, %arg1, %c0_i32 : i32
    %1 = arith.extui %0 : i1 to i32
    %c0_i32_0 = arith.constant 0 : i32
    %2 = arith.cmpi ne, %1, %c0_i32_0 : i32
    scf.if %2 {
      %cst_10 = arith.constant 0.000000e+00 : f32
      %12 = vector.broadcast %cst_10 : f32 to vector<24x288xf32>
      %c0_11 = arith.constant 0 : index
      %c0_12 = arith.constant 0 : index
      %13 = vector.load %arg9[%c0_11, %c0_12] : memref<24x288xf32, #tpu.memory_space<vmem>>, vector<24x288xf32>
      tpu.vector_store %arg9[%c0_11, %c0_12], %12 {strides = array<i32>} : memref<24x288xf32, #tpu.memory_space<vmem>>, vector<24x288xf32>,
    } else {
    }
    %c0 = arith.constant 0 : index
    %c0_1 = arith.constant 0 : index
    %3 = vector.load %arg2[%c0, %c0_1] : memref<24x128xbf16, #tpu.memory_space<vmem>>, vector<24x128xbf16>
    %c0_2 = arith.constant 0 : index
    %c0_3 = arith.constant 0 : index
    %4 = vector.load %arg9[%c0_2, %c0_3] : memref<24x288xf32, #tpu.memory_space<vmem>>, vector<24x288xf32>
    %c0_4 = arith.constant 0 : index
    %c0_5 = arith.constant 0 : index
    %5 = vector.load %arg3[%c0_4, %c0_5] : memref<128x288xbf16, #tpu.memory_space<vmem>>, vector<128x288xbf16>
    %cst = arith.constant dense<0.000000e+00> : vector<24x288xf32>
    %6 = tpu.matmul %3, %5, %cst {dimension_numbers = #tpu.dot_dimension_numbers<[1], [0], [0], [1], [0, 0, 1, 1], [], []>} : vector<24x128xbf16>, vector<128x288xbf16>, vector<24x288xf32> -> vector<24x288xf32>
    %7 = arith.addf %4, %6 : vector<24x288xf32>
    %c0_6 = arith.constant 0 : index
    %c0_7 = arith.constant 0 : index
    %8 = vector.load %arg9[%c0_6, %c0_7] : memref<24x288xf32, #tpu.memory_space<vmem>>, vector<24x288xf32>
    tpu.vector_store %arg9[%c0_6, %c0_7], %7 {strides = array<i32>} : memref<24x288xf32, #tpu.memory_space<vmem>>, vector<24x288xf32>,
    %c0_i32_8 = arith.constant 0 : i32
    %9 = arith.cmpi eq, %arg1, %c0_i32_8 : i32
    %10 = arith.extui %9 : i1 to i32
    %c0_i32_9 = arith.constant 0 : i32
    %11 = arith.cmpi ne, %10, %c0_i32_9 : i32
    scf.if %11 {
      %c0_10 = arith.constant 0 : index
      %c0_11 = arith.constant 0 : index
      %12 = vector.load %arg9[%c0_10, %c0_11] : memref<24x288xf32, #tpu.memory_space<vmem>>, vector<24x288xf32>
      %13 = arith.truncf %12 : vector<24x288xf32> to vector<24x288xbf16>
      %c0_12 = arith.constant 0 : index
      %c0_13 = arith.constant 0 : index
      %14 = vector.load %arg8[%c0_12, %c0_13] : memref<24x288xbf16, #tpu.memory_space<vmem>>, vector<24x288xbf16>
      tpu.vector_store %arg8[%c0_12, %c0_13], %13 {strides = array<i32>} : memref<24x288xbf16, #tpu.memory_space<vmem>>, vector<24x288xbf16>,
    } else {
    }
    return
  }
  func.func @transform_0(%arg0: i32, %arg1: i32) -> (i32, i32) {
    %c0_i32 = arith.constant 0 : i32
    return %arg0, %arg1 : i32, i32
  }
  func.func @transform_1(%arg0: i32, %arg1: i32) -> (i32, i32) {
    %c0_i32 = arith.constant 0 : i32
    %c0_i32_0 = arith.constant 0 : i32
    return %arg1, %c0_i32 : i32, i32
  }
  func.func @transform_2(%arg0: i32, %arg1: i32) -> (i32, i32) {
    %c0_i32 = arith.constant 0 : i32
    %c0_i32_0 = arith.constant 0 : i32
    return %c0_i32, %arg1 : i32, i32
  }
  func.func @transform_3(%arg0: i32, %arg1: i32) -> (i32, i32) {
    %c0_i32 = arith.constant 0 : i32
    %c0_i32_0 = arith.constant 0 : i32
    return %c0_i32, %arg1 : i32, i32
  }
  func.func @transform_4(%arg0: i32, %arg1: i32) -> (i32, i32) {
    %c0_i32 = arith.constant 0 : i32
    %c0_i32_0 = arith.constant 0 : i32
    %c0_i32_1 = arith.constant 0 : i32
    return %c0_i32, %c0_i32_0 : i32, i32
  }
  func.func @transform_5(%arg0: i32, %arg1: i32) -> (i32, i32) {
    %c0_i32 = arith.constant 0 : i32
    %c0_i32_0 = arith.constant 0 : i32
    %c0_i32_1 = arith.constant 0 : i32
    return %c0_i32, %c0_i32_0 : i32, i32
  }
  func.func @transform_6(%arg0: i32, %arg1: i32) -> (i32, i32) {
    %c0_i32 = arith.constant 0 : i32
    %c0_i32_0 = arith.constant 0 : i32
    return %arg0, %c0_i32 : i32, i32
  }
}

module attributes {stable_mosaic.version = 11 : i64} {
  func.func @_gap_kernel(%arg0: i32, %arg1: memref<1x1x1024xbf16, #tpu.memory_space<vmem>>, %arg2: memref<1x1024xf32, #tpu.memory_space<vmem>>, %arg3: memref<1x1024xf32, #tpu.memory_space<vmem>>, %arg4: memref<1x1x1024xf32, #tpu.memory_space<vmem>>) attributes {dimension_semantics = [#tpu.dimension_semantics<parallel>], iteration_bounds = array<i64: 2>, scalar_prefetch = 0 : i64, scratch_operands = 0 : i64, tpu.core_type = #tpu.core_type<tc>, window_params = [{transform_indices = @transform_0, window_bounds = array<i64: 1, 1, 1024>}, {pipeline_mode = #tpu.pipeline_mode<synchronous>, transform_indices = @transform_1, window_bounds = array<i64: 1, 1024>}, {pipeline_mode = #tpu.pipeline_mode<synchronous>, transform_indices = @transform_2, window_bounds = array<i64: 1, 1024>}, {transform_indices = @transform_3, window_bounds = array<i64: 1, 1, 1024>}]} {
    %c0 = arith.constant 0 : index
    %c0_0 = arith.constant 0 : index
    %c0_1 = arith.constant 0 : index
    %0 = vector.load %arg1[%c0, %c0_0, %c0_1] : memref<1x1x1024xbf16, #tpu.memory_space<vmem>>, vector<1x1x1024xbf16>
    %1 = vector.shape_cast %0 : vector<1x1x1024xbf16> to vector<1x1024xbf16>
    %2 = arith.extf %1 : vector<1x1024xbf16> to vector<1x1024xf32>
    %c0_2 = arith.constant 0 : index
    %c0_3 = arith.constant 0 : index
    %3 = vector.load %arg2[%c0_2, %c0_3] : memref<1x1024xf32, #tpu.memory_space<vmem>>, vector<1x1024xf32>
    %4 = vector.shape_cast %3 : vector<1x1024xf32> to vector<1024xf32>
    %5 = vector.shape_cast %4 : vector<1024xf32> to vector<1x1024xf32>
    %6 = arith.mulf %2, %5 : vector<1x1024xf32>
    %c0_4 = arith.constant 0 : index
    %c0_5 = arith.constant 0 : index
    %7 = vector.load %arg3[%c0_4, %c0_5] : memref<1x1024xf32, #tpu.memory_space<vmem>>, vector<1x1024xf32>
    %8 = vector.shape_cast %7 : vector<1x1024xf32> to vector<1024xf32>
    %9 = vector.shape_cast %8 : vector<1024xf32> to vector<1x1024xf32>
    %10 = arith.addf %6, %9 : vector<1x1024xf32>
    %cst = arith.constant 0.000000e+00 : f32
    %11 = vector.broadcast %cst : f32 to vector<1x1024xf32>
    %12 = arith.maximumf %10, %11 : vector<1x1024xf32>
    %cst_6 = arith.constant dense<0.000000e+00> : vector<1024xf32>
    %13 = vector.multi_reduction <add>, %12, %cst_6 [0] : vector<1x1024xf32> to vector<1024xf32>
    %cst_7 = arith.constant 1.000000e+00 : f32
    %14 = vector.broadcast %cst_7 : f32 to vector<1024xf32>
    %15 = arith.divf %13, %14 : vector<1024xf32>
    %c0_8 = arith.constant 0 : index
    %c0_9 = arith.constant 0 : index
    %c0_10 = arith.constant 0 : index
    %16 = vector.load %arg4[%c0_8, %c0_9, %c0_10] : memref<1x1x1024xf32, #tpu.memory_space<vmem>>, vector<1x1x1024xf32>
    %17 = vector.shape_cast %16 : vector<1x1x1024xf32> to vector<1024xf32>
    %18 = vector.shape_cast %15 : vector<1024xf32> to vector<1x1x1024xf32>
    tpu.vector_store %arg4[%c0_8, %c0_9, %c0_10], %18 {strides = array<i32>} : memref<1x1x1024xf32, #tpu.memory_space<vmem>>, vector<1x1x1024xf32>,
    return
  }
  func.func @transform_0(%arg0: i32) -> (i32, i32, i32) {
    %c0_i32 = arith.constant 0 : i32
    %c0_i32_0 = arith.constant 0 : i32
    %c0_i32_1 = arith.constant 0 : i32
    return %arg0, %c0_i32, %c0_i32_0 : i32, i32, i32
  }
  func.func @transform_1(%arg0: i32) -> (i32, i32) {
    %c0_i32 = arith.constant 0 : i32
    %c0_i32_0 = arith.constant 0 : i32
    %c0_i32_1 = arith.constant 0 : i32
    return %c0_i32, %c0_i32_0 : i32, i32
  }
  func.func @transform_2(%arg0: i32) -> (i32, i32) {
    %c0_i32 = arith.constant 0 : i32
    %c0_i32_0 = arith.constant 0 : i32
    %c0_i32_1 = arith.constant 0 : i32
    return %c0_i32, %c0_i32_0 : i32, i32
  }
  func.func @transform_3(%arg0: i32) -> (i32, i32, i32) {
    %c0_i32 = arith.constant 0 : i32
    %c0_i32_0 = arith.constant 0 : i32
    %c0_i32_1 = arith.constant 0 : i32
    return %arg0, %c0_i32, %c0_i32_0 : i32, i32, i32
  }
}

module attributes {stable_mosaic.version = 11 : i64} {
  func.func @_head_kernel(%arg0: i32, %arg1: memref<8x1024xf32, #tpu.memory_space<vmem>>, %arg2: memref<1024x14xf32, #tpu.memory_space<vmem>>, %arg3: memref<1x14xf32, #tpu.memory_space<vmem>>, %arg4: memref<8x14xf32, #tpu.memory_space<vmem>>) attributes {dimension_semantics = [#tpu.dimension_semantics<arbitrary>], iteration_bounds = array<i64: 1>, scalar_prefetch = 0 : i64, scratch_operands = 0 : i64, tpu.core_type = #tpu.core_type<tc>, window_params = [{pipeline_mode = #tpu.pipeline_mode<synchronous>, transform_indices = @transform_0, window_bounds = array<i64: 8, 1024>}, {pipeline_mode = #tpu.pipeline_mode<synchronous>, transform_indices = @transform_1, window_bounds = array<i64: 1024, 14>}, {pipeline_mode = #tpu.pipeline_mode<synchronous>, transform_indices = @transform_2, window_bounds = array<i64: 1, 14>}, {pipeline_mode = #tpu.pipeline_mode<synchronous>, transform_indices = @transform_3, window_bounds = array<i64: 8, 14>}]} {
    %c0 = arith.constant 0 : index
    %c0_0 = arith.constant 0 : index
    %0 = vector.load %arg1[%c0, %c0_0] : memref<8x1024xf32, #tpu.memory_space<vmem>>, vector<8x1024xf32>
    %c0_1 = arith.constant 0 : index
    %c0_2 = arith.constant 0 : index
    %1 = vector.load %arg2[%c0_1, %c0_2] : memref<1024x14xf32, #tpu.memory_space<vmem>>, vector<1024x14xf32>
    %cst = arith.constant dense<0.000000e+00> : vector<8x14xf32>
    %2 = tpu.matmul %0, %1, %cst {dimension_numbers = #tpu.dot_dimension_numbers<[1], [0], [0], [1], [0, 0, 1, 1], [], []>} : vector<8x1024xf32>, vector<1024x14xf32>, vector<8x14xf32> -> vector<8x14xf32>
    %c0_3 = arith.constant 0 : index
    %c0_4 = arith.constant 0 : index
    %3 = vector.load %arg3[%c0_3, %c0_4] : memref<1x14xf32, #tpu.memory_space<vmem>>, vector<1x14xf32>
    %4 = vector.broadcast %3 : vector<1x14xf32> to vector<8x14xf32>
    %5 = arith.addf %2, %4 : vector<8x14xf32>
    %6 = arith.negf %5 : vector<8x14xf32>
    %7 = math.exp %6 : vector<8x14xf32>
    %cst_5 = arith.constant 1.000000e+00 : f32
    %8 = vector.broadcast %cst_5 : f32 to vector<8x14xf32>
    %9 = arith.addf %8, %7 : vector<8x14xf32>
    %10 = arith.divf %8, %9 : vector<8x14xf32>
    %c0_6 = arith.constant 0 : index
    %c0_7 = arith.constant 0 : index
    %11 = vector.load %arg4[%c0_6, %c0_7] : memref<8x14xf32, #tpu.memory_space<vmem>>, vector<8x14xf32>
    tpu.vector_store %arg4[%c0_6, %c0_7], %10 {strides = array<i32>} : memref<8x14xf32, #tpu.memory_space<vmem>>, vector<8x14xf32>,
    return
  }
  func.func @transform_0(%arg0: i32) -> (i32, i32) {
    %c0_i32 = arith.constant 0 : i32
    %c0_i32_0 = arith.constant 0 : i32
    %c0_i32_1 = arith.constant 0 : i32
    return %c0_i32, %c0_i32_0 : i32, i32
  }
  func.func @transform_1(%arg0: i32) -> (i32, i32) {
    %c0_i32 = arith.constant 0 : i32
    %c0_i32_0 = arith.constant 0 : i32
    %c0_i32_1 = arith.constant 0 : i32
    return %c0_i32, %c0_i32_0 : i32, i32
  }
  func.func @transform_2(%arg0: i32) -> (i32, i32) {
    %c0_i32 = arith.constant 0 : i32
    %c0_i32_0 = arith.constant 0 : i32
    %c0_i32_1 = arith.constant 0 : i32
    return %c0_i32, %c0_i32_0 : i32, i32
  }
  func.func @transform_3(%arg0: i32) -> (i32, i32) {
    %c0_i32 = arith.constant 0 : i32
    %c0_i32_0 = arith.constant 0 : i32
    %c0_i32_1 = arith.constant 0 : i32
    return %c0_i32, %c0_i32_0 : i32, i32
  }
}

</mosaic_0001>

<bundles_post_ra>
// kernel: densenet121_forward.127
= control target key start
LH: loop header
LB: loop body
LE: loop exit
PB: predicated region body
PF: predicated region fallthrough
CT: control target
= control target key end

     0   :  { %s355_s6 = smov 0   ;;  %s468_s0 = inlined_call_operand.vmem [shape: f32[2,72,8,64], index: 0, kind: input, shape index: {}]   ;;  %s469_s1 = inlined_call_operand.vmem [shape: f32[2,8,8,64], index: 1, kind: output, shape index: {}]  }
   0x1 LB: > { %s317_s7 = sadd.s32 4294967295, %s343_s6   ;;  %p321_p0 = scmp.ge.s32.totalorder %s343_s6, 1  ;;  %s343_s6 = sphi %s355_s6, %s11_s6  }
   0x2   : > { %p87_p1 = scmp.lt.s32.totalorder %s343_s6, 3 }
   0x4   : > { %p88_p2 = pnand %p321_p0, %p87_p1 }
   0x5   : > { %p107_p3 = scmp.lt.s32.totalorder (!%p88_p2), %s317_s7, 1 }
   0x6   : > { %91 = sbr.rel (%p88_p2) target bundleno = 51 (0x33), region = 24 }
   0xb   : > { %s471_s7 = smov (!%p107_p3, %s317_s7), 1  ;;  %vm253_vm0 = vcmask 523264  }
   0xc   : > { %s328_s8 = smul.u32 576, %s471_s7  ;;  %s327_s12 = sshll.u32 %s471_s7, 6 }
   0xd   : > { %s407_s15 = scalar_lea.vmem %s469_s1, %s327_s12 }
   0xe   : > { %s369_s11 = scalar_lea.vmem %s468_s0, %s328_s8 }
   0xf   : > { %v117_v0 = vld [vmem:[%s369_s11] sm:$0xff]  ;;  %v118_v6 = vld [vmem:[%s369_s11 + $0x8] sm:$0xff]  ;;  %v119_v15 = vld [vmem:[%s369_s11 + $0x10] sm:$0xff] }
  0x10   : > { %v125_v1 = vld [vmem:[%s369_s11 + $0x40] sm:$0xff]  ;;  %v126_v7 = vld [vmem:[%s369_s11 + $0x48] sm:$0xff]  ;;  %v127_v16 = vld [vmem:[%s369_s11 + $0x50] sm:$0xff] }
  0x11   : > { %v133_v2 = vld [vmem:[%s369_s11 + $0x80] sm:$0xff]  ;;  %v189_v3 = vmax.f32 %v117_v0, %v125_v1  ;;  %v134_v8 = vld [vmem:[%s369_s11 + $0x88] sm:$0xff]  ;;  %v190_v10 = vmax.f32 %v118_v6, %v126_v7  ;;  %v135_v17 = vld [vmem:[%s369_s11 + $0x90] sm:$0xff]  ;;  %v191_v20 = vmax.f32 %v119_v15, %v127_v16 }
  0x12   : > { %v141_v4 = vld [vmem:[%s369_s11 + $0xc0] sm:$0xff]  ;;  %v142_v13 = vld [vmem:[%s369_s11 + $0xc8] sm:$0xff]  ;;  %v143_v24 = vld [vmem:[%s369_s11 + $0xd0] sm:$0xff] }
  0x13   : > { %v197_v5 = vmax.f32 %v189_v3, %v133_v2  ;;  %v149_v9 = vld [vmem:[%s369_s11 + $0x100] sm:$0xff]  ;;  %v198_v14 = vmax.f32 %v190_v10, %v134_v8  ;;  %v150_v19 = vld [vmem:[%s369_s11 + $0x108] sm:$0xff]  ;;  %v199_v26 = vmax.f32 %v191_v20, %v135_v17  ;;  %v120_v27 = vld [vmem:[%s369_s11 + $0x18] sm:$0xff] }
  0x14   : > { %v157_v11 = vld [vmem:[%s369_s11 + $0x140] sm:$0xff]  ;;  %v158_v22 = vld [vmem:[%s369_s11 + $0x148] sm:$0xff]  ;;  %v128_v28 = vld [vmem:[%s369_s11 + $0x58] sm:$0xff] }
  0x15   : > { %v205_v12 = vmax.f32 %v197_v5, %v141_v4  ;;  %v165_v21 = vld [vmem:[%s369_s11 + $0x180] sm:$0xff]  ;;  %v206_v23 = vmax.f32 %v198_v14, %v142_v13  ;;  %v136_v29 = vld [vmem:[%s369_s11 + $0x98] sm:$0xff]  ;;  %v151_v33 = vld [vmem:[%s369_s11 + $0x110] sm:$0xff]  ;;  %v192_v34 = vmax.f32 %v120_v27, %v128_v28  ;;  %v207_v38 = vmax.f32 %v199_v26, %v143_v24 }
  0x16   : > { %v173_v30 = vld [vmem:[%s369_s11 + $0x1c0] sm:$0xff]  ;;  %v166_v36 = vld [vmem:[%s369_s11 + $0x188] sm:$0xff]  ;;  %v159_v37 = vld [vmem:[%s369_s11 + $0x150] sm:$0xff] }
  0x17   : > { %v213_v18 = vmax.f32 %v205_v12, %v149_v9  ;;  %v181_v31 = vld [vmem:[%s369_s11 + $0x200] sm:$0xff]  ;;  %v214_v32 = vmax.f32 %v206_v23, %v150_v19  ;;  %v144_v39 = vld [vmem:[%s369_s11 + $0xd8] sm:$0xff]  ;;  %v200_v41 = vmax.f32 %v192_v34, %v136_v29  ;;  %v174_v46 = vld [vmem:[%s369_s11 + $0x1c8] sm:$0xff]  ;;  %v215_v48 = vmax.f32 %v207_v38, %v151_v33 }
  0x18   : > { %v121_v42 = vld [vmem:[%s369_s11 + $0x20] sm:$0xff]  ;;  %v182_v47 = vld [vmem:[%s369_s11 + $0x208] sm:$0xff]  ;;  %v152_v49 = vld [vmem:[%s369_s11 + $0x118] sm:$0xff] }
  0x19   : > { %v221_v25 = vmax.f32 %v213_v18, %v157_v11  ;;  %v222_v40 = vmax.f32 %v214_v32, %v158_v22  ;;  %v129_v43 = vld [vmem:[%s369_s11 + $0x60] sm:$0xff]  ;;  %v167_v52 = vld [vmem:[%s369_s11 + $0x190] sm:$0xff]  ;;  %v160_v53 = vld [vmem:[%s369_s11 + $0x158] sm:$0xff]  ;;  %v208_v54 = vmax.f32 %v200_v41, %v144_v39  ;;  %v223_v57 = vmax.f32 %v215_v48, %v159_v37 }
  0x1a   : > { %v137_v44 = vld [vmem:[%s369_s11 + $0xa0] sm:$0xff]  ;;  %v193_v50 = vmax.f32 %v121_v42, %v129_v43  ;;  %v122_v59 = vld [vmem:[%s369_s11 + $0x28] sm:$0xff]  ;;  %v175_v63 = vld [vmem:[%s369_s11 + $0x1d0] sm:$0xff] }
  0x1b   : > { %v229_v35 = vmax.f32 %v221_v25, %v165_v21  ;;  %v230_v51 = vmax.f32 %v222_v40, %v166_v36  ;;  %v145_v55 = vld [vmem:[%s369_s11 + $0xe0] sm:$0xff]  ;;  %v130_v60 = vld [vmem:[%s369_s11 + $0x68] sm:$0xff]  ;;  %v183_v0 = vld [vmem:[%s369_s11 + $0x210] sm:$0xff]  ;;  %v216_v1 = vmax.f32 %v208_v54, %v152_v49  ;;  %v231_v4 = vmax.f32 %v223_v57, %v167_v52 }
  0x1c   : > { %v201_v58 = vmax.f32 %v193_v50, %v137_v44  ;;  %v138_v61 = vld [vmem:[%s369_s11 + $0xa8] sm:$0xff]  ;;  %v153_v2 = vld [vmem:[%s369_s11 + $0x120] sm:$0xff]  ;;  %v194_v3 = vmax.f32 %v122_v59, %v130_v60  ;;  %v168_v5 = vld [vmem:[%s369_s11 + $0x198] sm:$0xff] }
  0x1d   : > { %v237_v45 = vmax.f32 %v229_v35, %v173_v30  ;;  %v238_v62 = vmax.f32 %v230_v51, %v174_v46  ;;  %v161_v6 = vld [vmem:[%s369_s11 + $0x160] sm:$0xff]  ;;  %v146_v8 = vld [vmem:[%s369_s11 + $0xe8] sm:$0xff]  ;;  %v224_v10 = vmax.f32 %v216_v1, %v160_v53  ;;  %v123_v12 = vld [vmem:[%s369_s11 + $0x30] sm:$0xff]  ;;  %v239_v15 = vmax.f32 %v231_v4, %v175_v63 }
  0x1e   : > { %v209_v7 = vmax.f32 %v201_v58, %v145_v55  ;;  %v202_v11 = vmax.f32 %v194_v3, %v138_v61  ;;  %v131_v13 = vld [vmem:[%s369_s11 + $0x70] sm:$0xff]  ;;  %v176_v16 = vld [vmem:[%s369_s11 + $0x1d8] sm:$0xff]  ;;  %v154_v19 = vld [vmem:[%s369_s11 + $0x128] sm:$0xff] }
  0x1f   : > { %v245_v56 = vmax.f32 %v237_v45, %v181_v31  ;;  %v246_v9 = vmax.f32 %v238_v62, %v182_v47  ;;  %v139_v14 = vld [vmem:[%s369_s11 + $0xb0] sm:$0xff]  ;;  %v184_v17 = vld [vmem:[%s369_s11 + $0x218] sm:$0xff]  ;;  %v195_v20 = vmax.f32 %v123_v12, %v131_v13  ;;  %v232_v21 = vmax.f32 %v224_v10, %v168_v5  ;;  %v169_v22 = vld [vmem:[%s369_s11 + $0x1a0] sm:$0xff] }
  0x20   : > { %v217_v18 = vmax.f32 %v209_v7, %v153_v2  ;;  %v162_v23 = vld [vmem:[%s369_s11 + $0x168] sm:$0xff]  ;;  %v210_v24 = vmax.f32 %v202_v11, %v146_v8  ;;  %v147_v25 = vld [vmem:[%s369_s11 + $0xf0] sm:$0xff]  ;;  %v247_v26 = vmax.f32 %v239_v15, %v183_v0  ;;  %v124_v29 = vld [vmem:[%s369_s11 + $0x38] sm:$0xff] }
  0x21   : > { %254 = vst.msk [vmem:[%s407_s15] sm:$0xff] %vm253_vm0, %v245_v56  ;;  %255 = vst.msk [vmem:[%s407_s15 + $0x8] sm:$0xff] %vm253_vm0, %v246_v9  ;;  %v203_v28 = vmax.f32 %v195_v20, %v139_v14  ;;  %v132_v30 = vld [vmem:[%s369_s11 + $0x78] sm:$0xff]  ;;  %v240_v32 = vmax.f32 %v232_v21, %v176_v16  ;;  %v177_v33 = vld [vmem:[%s369_s11 + $0x1e0] sm:$0xff] }
  0x22   : > { %v225_v27 = vmax.f32 %v217_v18, %v161_v6  ;;  %v140_v31 = vld [vmem:[%s369_s11 + $0xb8] sm:$0xff]  ;;  %v218_v34 = vmax.f32 %v210_v24, %v154_v19  ;;  %v155_v35 = vld [vmem:[%s369_s11 + $0x130] sm:$0xff]  ;;  %v196_v36 = vmax.f32 %v124_v29, %v132_v30  ;;  %256 = vst.msk [vmem:[%s407_s15 + $0x10] sm:$0xff] %vm253_vm0, %v247_v26  ;;  %v170_v38 = vld [vmem:[%s369_s11 + $0x1a8] sm:$0xff] }
  0x23   : > { %v211_v39 = vmax.f32 %v203_v28, %v147_v25  ;;  %v148_v40 = vld [vmem:[%s369_s11 + $0xf8] sm:$0xff]  ;;  %v248_v41 = vmax.f32 %v240_v32, %v184_v17  ;;  %v185_v42 = vld [vmem:[%s369_s11 + $0x220] sm:$0xff]  ;;  %v163_v44 = vld [vmem:[%s369_s11 + $0x170] sm:$0xff] }
  0x24   : > { %v233_v37 = vmax.f32 %v225_v27, %v169_v22  ;;  %v226_v43 = vmax.f32 %v218_v34, %v162_v23  ;;  %v204_v45 = vmax.f32 %v196_v36, %v140_v31  ;;  %v178_v47 = vld [vmem:[%s369_s11 + $0x1e8] sm:$0xff]  ;;  %v156_v49 = vld [vmem:[%s369_s11 + $0x138] sm:$0xff]  ;;  %v171_v51 = vld [vmem:[%s369_s11 + $0x1b0] sm:$0xff] }
  0x25   : > { %v219_v48 = vmax.f32 %v211_v39, %v155_v35  ;;  %257 = vst.msk [vmem:[%s407_s15 + $0x18] sm:$0xff] %vm253_vm0, %v248_v41  ;;  %v186_v54 = vld [vmem:[%s369_s11 + $0x228] sm:$0xff]  ;;  %v164_v56 = vld [vmem:[%s369_s11 + $0x178] sm:$0xff]  ;;  %v179_v58 = vld [vmem:[%s369_s11 + $0x1f0] sm:$0xff] }
  0x26   : > { %v241_v46 = vmax.f32 %v233_v37, %v177_v33  ;;  %v234_v50 = vmax.f32 %v226_v43, %v170_v38  ;;  %v212_v52 = vmax.f32 %v204_v45, %v148_v40  ;;  %v172_v61 = vld [vmem:[%s369_s11 + $0x1b8] sm:$0xff]  ;;  %v187_v63 = vld [vmem:[%s369_s11 + $0x230] sm:$0xff] }
  0x27   : > { %v227_v55 = vmax.f32 %v219_v48, %v163_v44  ;;  %v180_v2 = vld [vmem:[%s369_s11 + $0x1f8] sm:$0xff] }
  0x28   : > { %v249_v53 = vmax.f32 %v241_v46, %v185_v42  ;;  %v242_v57 = vmax.f32 %v234_v50, %v178_v47  ;;  %v220_v59 = vmax.f32 %v212_v52, %v156_v49  ;;  %v188_v5 = vld [vmem:[%s369_s11 + $0x238] sm:$0xff] }
  0x29   : > { %v235_v60 = vmax.f32 %v227_v55, %v171_v51 }
  0x2a   : > { %258 = vst.msk [vmem:[%s407_s15 + $0x20] sm:$0xff] %vm253_vm0, %v249_v53  ;;  %v250_v62 = vmax.f32 %v242_v57, %v186_v54  ;;  %v228_v0 = vmax.f32 %v220_v59, %v164_v56 }
  0x2b   : > { %v243_v1 = vmax.f32 %v235_v60, %v179_v58 }
  0x2c   : > { %259 = vst.msk [vmem:[%s407_s15 + $0x28] sm:$0xff] %vm253_vm0, %v250_v62  ;;  %v236_v3 = vmax.f32 %v228_v0, %v172_v61 }
  0x2d   : > { %v251_v4 = vmax.f32 %v243_v1, %v187_v63 }
  0x2e   : > { %v244_v6 = vmax.f32 %v236_v3, %v180_v2 }
  0x2f   : > { %260 = vst.msk [vmem:[%s407_s15 + $0x30] sm:$0xff] %vm253_vm0, %v251_v4 }
  0x30   : > { %v252_v7 = vmax.f32 %v244_v6, %v188_v5 }
  0x32   : > { %261 = vst.msk [vmem:[%s407_s15 + $0x38] sm:$0xff] %vm253_vm0, %v252_v7 }
  0x33 PF: > { %s11_s6 = sadd.s32 1, %s343_s6  }
  0x34   : > { %p8_p4 = scmp.ge.s32.totalorder %s11_s6, 4  }
  0x36   :  { %10 = sbr.rel (!%p8_p4) target bundleno = 1 (0x1), region = 54 }

// kernel: densenet121_forward.128
= control target key start
LH: loop header
LB: loop body
LE: loop exit
PB: predicated region body
PF: predicated region fallthrough
CT: control target
= control target key end

     0   :  { %v94_v5 = vlaneseq  ;;  %s1138_s1 = inlined_call_operand.vmem [shape: bf16[256,128], index: 1, kind: input, shape index: {}]   ;;  %s1139_s0 = inlined_call_operand.vmem [shape: bf16[128,256], index: 0, kind: input, shape index: {}]   ;;  %s1140_s2 = inlined_call_operand.vmem [shape: f32[1,256], index: 2, kind: input, shape index: {}]   ;;  %s1141_s3 = inlined_call_operand.vmem [shape: f32[1,256], index: 3, kind: input, shape index: {}]   ;;  %s1142_s4 = inlined_call_operand.vmem [shape: f32[1,128], index: 4, kind: input, shape index: {}]   ;;  %s1143_s5 = inlined_call_operand.vmem [shape: f32[1,128], index: 5, kind: input, shape index: {}]   ;;  %s1144_s6 = inlined_call_operand.vmem [shape: bf16[128,128], index: 6, kind: output, shape index: {}]  }
   0x1   :  { %v843_v0 = vld [vmem:[%s1138_s1 + $0x78] sm:$0xff]   ;;  %v845_v2 = vld [vmem:[%s1138_s1 + $0x70] sm:$0xff]   ;;  %v847_v4 = vld [vmem:[%s1138_s1 + $0x68] sm:$0xff]  }
   0x2   :  { %v844_v1 = vld [vmem:[%s1138_s1 + $0x38] sm:$0xff]   ;;  %763 = vmatprep.subr.bf16.mxu0 %v843_v0  ;;  %827 = vmatprep.subr.bf16.mxu1 %v843_v0  ;;  %v846_v3 = vld [vmem:[%s1138_s1 + $0x30] sm:$0xff]   ;;  %v848_v6 = vld [vmem:[%s1138_s1 + $0x28] sm:$0xff]   ;;  %v95_v8 = vshrl.u32 %v94_v5, 7 }
   0x3   :  { %764 = vmatpush3.bf16.msra.mxu0 %v844_v1  ;;  %835 = vmatpush3.bf16.msra.mxu1 %v844_v1  ;;  %v849_v7 = vld [vmem:[%s1138_s1 + $0x60] sm:$0xff]   ;;  %v851_v10 = vld [vmem:[%s1138_s1 + $0x58] sm:$0xff]   ;;  %v853_v14 = vld [vmem:[%s1138_s1 + $0x50] sm:$0xff]  }
   0x4   :  { %765 = vmatprep.subr.bf16.mxu0 %v845_v2  ;;  %828 = vmatprep.subr.bf16.mxu1 %v845_v2  ;;  %v850_v9 = vld [vmem:[%s1138_s1 + $0x20] sm:$0xff]   ;;  %v96_v11 = vsub.s32 0, %v95_v8  ;;  %v852_v12 = vld [vmem:[%s1138_s1 + $0x18] sm:$0xff]   ;;  %v100_v13 = vsub.s32 1, %v95_v8  ;;  %v45_v16 = vld [vmem:[%s1139_s0 + $0x8] sm:$0xff] }
   0x5   :  { %v44_v15 = vld [vmem:[%s1139_s0] sm:$0xff]  ;;  %v62_v20 = vunpack.c.l.bf16 %v45_v16  ;;  %v63_v21 = vunpack.c.h.bf16 %v45_v16  ;;  %v53_v24 = vld [vmem:[%s1139_s0 + $0x48] sm:$0xff]  ;;  %v956_v29 = vld [vmem:[%s1139_s0 + $0x10] sm:$0xff] }
   0x6   :  { %v92_v17 = vld [vmem:[%s1140_s2] sm:$0x3]  ;;  %v60_v18 = vunpack.c.l.bf16 %v44_v15  ;;  %v61_v19 = vunpack.c.h.bf16 %v44_v15  ;;  %v854_v30 = vld [vmem:[%s1138_s1 + $0x10] sm:$0xff]   ;;  %v78_v33 = vunpack.c.l.bf16 %v53_v24  ;;  %v79_v34 = vunpack.c.h.bf16 %v53_v24  ;;  %v855_v35 = vld [vmem:[%s1138_s1 + $0x48] sm:$0xff]  }
   0x7   :  { %766 = vmatpush3.bf16.msra.mxu0 %v846_v3  ;;  %836 = vmatpush3.bf16.msra.mxu1 %v846_v3  ;;  %v136_v22 = vld [vmem:[%s1141_s3] sm:$0x3]  ;;  %v945_v25 = vrot.slane %v92_v17, %v96_v11  ;;  %v947_v26 = vrot.slane %v92_v17, %v100_v13  ;;  %v47_v39 = vld [vmem:[%s1139_s0 + $0x18] sm:$0xff]  ;;  %v65_v40 = vunpack.c.h.bf16 %v956_v29  ;;  %v856_v49 = vld [vmem:[%s1138_s1 + $0x8] sm:$0xff]  }
   0x8   :  { %767 = vmatprep.subr.bf16.mxu0 %v847_v4  ;;  %829 = vmatprep.subr.bf16.mxu1 %v847_v4  ;;  %v52_v23 = vld [vmem:[%s1139_s0 + $0x40] sm:$0xff]  ;;  %v949_v27 = vrot.slane %v136_v22, %v96_v11  ;;  %v951_v28 = vrot.slane %v136_v22, %v100_v13  ;;  %v67_v53 = vunpack.c.h.bf16 %v47_v39  ;;  %v54_v59 = vld [vmem:[%s1139_s0 + $0x50] sm:$0xff]  ;;  %v55_v0 = vld [vmem:[%s1139_s0 + $0x58] sm:$0xff]  ;;  %v64_v13 = vunpack.c.l.bf16 %v956_v29 }
   0x9   :  { %v76_v31 = vunpack.c.l.bf16 %v52_v23  ;;  %v77_v32 = vunpack.c.h.bf16 %v52_v23  ;;  %v105_v36 = vmul.f32 %v947_v26, %v61_v19  ;;  %v107_v37 = vmul.f32 %v947_v26, %v63_v21  ;;  %v857_v54 = vld [vmem:[%s1138_s1 + $0x40] sm:$0xff]  }
   0xa   :  { %v104_v38 = vmul.f32 %v945_v25, %v60_v18  ;;  %v123_v42 = vmul.f32 %v947_v26, %v79_v34  ;;  %v106_v43 = vmul.f32 %v945_v25, %v62_v20  ;;  %v122_v48 = vmul.f32 %v945_v25, %v78_v33  ;;  %v858_v5 = vld [vmem:[%s1138_s1] sm:$0xff]  }
   0xb   :  { %768 = vmatpush3.bf16.msra.mxu0 %v848_v6  ;;  %837 = vmatpush3.bf16.msra.mxu1 %v848_v6  ;;  %v121_v41 = vmul.f32 %v947_v26, %v77_v32  ;;  %v120_v44 = vmul.f32 %v945_v25, %v76_v31  ;;  %v149_v45 = vadd.f32 %v951_v28, %v105_v36  ;;  %v66_v16 = vunpack.c.l.bf16 %v47_v39  ;;  %v48_v18 = vld [vmem:[%s1139_s0 + $0x20] sm:$0xff]  ;;  %v49_v31 = vld [vmem:[%s1139_s0 + $0x28] sm:$0xff] }
   0xc   :  { %769 = vmatprep.subr.bf16.mxu0 %v849_v7  ;;  %830 = vmatprep.subr.bf16.mxu1 %v849_v7  ;;  %v151_v46 = vadd.f32 %v951_v28, %v107_v37  ;;  %v148_v47 = vadd.f32 %v949_v27, %v104_v38  ;;  %v167_v51 = vadd.f32 %v951_v28, %v123_v42  ;;  %v80_v17 = vunpack.c.l.bf16 %v54_v59  ;;  %v56_v36 = vld [vmem:[%s1139_s0 + $0x60] sm:$0xff] }
   0xd   :  { %v165_v50 = vadd.f32 %v951_v28, %v121_v41  ;;  %v150_v52 = vadd.f32 %v949_v27, %v106_v43  ;;  %v181_v55 = vmax.f32 %v149_v45, 0.0  ;;  %v164_v58 = vadd.f32 %v949_v27, %v120_v44  ;;  %v57_v41 = vld [vmem:[%s1139_s0 + $0x68] sm:$0xff] }
   0xe   :  { %v183_v56 = vmax.f32 %v151_v46, 0.0  ;;  %v180_v57 = vmax.f32 %v148_v47, 0.0  ;;  %v199_v61 = vmax.f32 %v167_v51, 0.0  ;;  %v166_v63 = vadd.f32 %v949_v27, %v122_v48 }
   0xf   :  { %770 = vmatpush3.bf16.msra.mxu0 %v850_v9  ;;  %838 = vmatpush3.bf16.msra.mxu1 %v850_v9  ;;  %v197_v60 = vmax.f32 %v165_v50, 0.0  ;;  %v182_v62 = vmax.f32 %v150_v52, 0.0  ;;  %v196_v2 = vmax.f32 %v164_v58, 0.0  ;;  %v109_v3 = vmul.f32 %v947_v26, %v65_v40 }
  0x10   :  { %771 = vmatprep.subr.bf16.mxu0 %v851_v10  ;;  %831 = vmatprep.subr.bf16.mxu1 %v851_v10  ;;  %v213_v1 = vpack.c.bf16 %v183_v56, %v181_v55  ;;  %v111_v4 = vmul.f32 %v947_v26, %v67_v53  ;;  %v198_v8 = vmax.f32 %v166_v63, 0.0  ;;  %v81_v9 = vunpack.c.h.bf16 %v54_v59 }
  0x11   :  { %v221_v6 = vpack.c.bf16 %v199_v61, %v197_v60  ;;  %v212_v7 = vpack.c.bf16 %v182_v62, %v180_v57  ;;  %v153_v10 = vadd.f32 %v951_v28, %v109_v3  ;;  %v108_v22 = vmul.f32 %v945_v25, %v64_v13  ;;  %v50_v62 = vld [vmem:[%s1139_s0 + $0x30] sm:$0xff] }
  0x12   :  { %v155_v11 = vadd.f32 %v951_v28, %v111_v4  ;;  %404 = vmatprep.mubr.bf16.mxu0 %v213_v1  ;;  %v125_v15 = vmul.f32 %v947_v26, %v81_v9  ;;  %v110_v24 = vmul.f32 %v945_v25, %v66_v16  ;;  %v82_v29 = vunpack.c.l.bf16 %v55_v0 }
  0x13   :  { %772 = vmatpush3.bf16.msra.mxu0 %v852_v12  ;;  %839 = vmatpush3.bf16.msra.mxu1 %v852_v12  ;;  %v83_v12 = vunpack.c.h.bf16 %v55_v0  ;;  %v185_v19 = vmax.f32 %v153_v10, 0.0  ;;  %v152_v34 = vadd.f32 %v949_v27, %v108_v22  ;;  %v71_v44 = vunpack.c.h.bf16 %v49_v31 }
  0x14   :  { %773 = vmatprep.subr.bf16.mxu0 %v853_v14  ;;  %832 = vmatprep.subr.bf16.mxu1 %v853_v14  ;;  %v220_v14 = vpack.c.bf16 %v198_v8, %v196_v2  ;;  %v187_v20 = vmax.f32 %v155_v11, 0.0  ;;  %v169_v23 = vadd.f32 %v951_v28, %v125_v15  ;;  %v154_v38 = vadd.f32 %v949_v27, %v110_v24 }
  0x15   :  { %436 = vmatprep.mubr.bf16.mxu1 %v221_v6  ;;  %v127_v21 = vmul.f32 %v947_v26, %v83_v12  ;;  %v126_v39 = vmul.f32 %v945_v25, %v82_v29  ;;  %v184_v43 = vmax.f32 %v152_v34, 0.0  ;;  %v115_v51 = vmul.f32 %v947_v26, %v71_v44  ;;  %v58_v12 = vld [vmem:[%s1139_s0 + $0x70] sm:$0xff] }
  0x16   :  { %v215_v32 = vpack.c.bf16 %v187_v20, %v185_v19  ;;  %v201_v37 = vmax.f32 %v169_v23, 0.0  ;;  %v186_v46 = vmax.f32 %v154_v38, 0.0  ;;  %v87_v53 = vunpack.c.h.bf16 %v57_v41 }
  0x17   :  { %774 = vmatpush3.bf16.msra.mxu0 %v854_v30  ;;  %840 = vmatpush3.bf16.msra.mxu1 %v854_v30  ;;  %v124_v30 = vmul.f32 %v945_v25, %v80_v17  ;;  %v171_v33 = vadd.f32 %v951_v28, %v127_v21  ;;  %v170_v47 = vadd.f32 %v949_v27, %v126_v39  ;;  %v68_v57 = vunpack.c.l.bf16 %v48_v18  ;;  %v59_v17 = vld [vmem:[%s1139_s0 + $0x78] sm:$0xff] }
  0x18   :  { %775 = vmatprep.subr.bf16.mxu0 %v855_v35  ;;  %833 = vmatprep.subr.bf16.mxu1 %v855_v35  ;;  %v69_v35 = vunpack.c.h.bf16 %v48_v18  ;;  %v159_v58 = vadd.f32 %v951_v28, %v115_v51  ;;  %v131_v60 = vmul.f32 %v947_v26, %v87_v53  ;;  %v70_v61 = vunpack.c.l.bf16 %v49_v31 }
  0x19   :  { %v168_v40 = vadd.f32 %v949_v27, %v124_v30  ;;  %v203_v42 = vmax.f32 %v171_v33, 0.0  ;;  %v202_v55 = vmax.f32 %v170_v47, 0.0  ;;  %v112_v1 = vmul.f32 %v945_v25, %v68_v57 }
  0x1a   :  { %v113_v45 = vmul.f32 %v947_v26, %v69_v35  ;;  %v84_v2 = vunpack.c.l.bf16 %v56_v36  ;;  %v191_v3 = vmax.f32 %v159_v58, 0.0  ;;  %v175_v4 = vadd.f32 %v951_v28, %v131_v60 }
  0x1b   :  { %776 = vmatpush3.bf16.msra.mxu0 %v856_v49  ;;  %841 = vmatpush3.bf16.msra.mxu1 %v856_v49  ;;  %v200_v48 = vmax.f32 %v168_v40, 0.0  ;;  %v85_v49 = vunpack.c.h.bf16 %v56_v36  ;;  %v223_v50 = vpack.c.bf16 %v203_v42, %v201_v37  ;;  %v86_v6 = vunpack.c.l.bf16 %v57_v41 }
  0x1c   :  { %777 = vmatprep.subr.bf16.mxu0 %v857_v54  ;;  %834 = vmatprep.subr.bf16.mxu1 %v857_v54  ;;  %v157_v52 = vadd.f32 %v951_v28, %v113_v45  ;;  %v214_v54 = vpack.c.bf16 %v186_v46, %v184_v43  ;;  %v156_v9 = vadd.f32 %v949_v27, %v112_v1  ;;  %v73_v11 = vunpack.c.h.bf16 %v50_v62 }
  0x1d   :  { %v129_v56 = vmul.f32 %v947_v26, %v85_v49  ;;  %v222_v63 = vpack.c.bf16 %v202_v55, %v200_v48  ;;  %v128_v10 = vmul.f32 %v945_v25, %v84_v2  ;;  %v130_v16 = vmul.f32 %v945_v25, %v86_v6 }
  0x1e   :  { %v189_v59 = vmax.f32 %v157_v52, 0.0  ;;  %v188_v18 = vmax.f32 %v156_v9, 0.0  ;;  %v117_v21 = vmul.f32 %v947_v26, %v73_v11  ;;  %v89_v29 = vunpack.c.h.bf16 %v58_v12  ;;  %v1082_v9 = vld [vmem:[%s1143_s5] ss:$0 sm:$0xff] }
  0x1f   :  { %778 = vmatpush3.bf16.msra.mxu0 %v858_v5  ;;  %842 = vmatpush3.bf16.msra.mxu1 %v858_v5  ;;  %v173_v0 = vadd.f32 %v951_v28, %v129_v56  ;;  %v114_v5 = vmul.f32 %v945_v25, %v70_v61  ;;  %v172_v19 = vadd.f32 %v949_v27, %v128_v10  ;;  %v91_v33 = vunpack.c.h.bf16 %v59_v17 }
  0x20   :  { %v217_v13 = vpack.c.bf16 %v191_v3, %v189_v59  ;;  %v174_v24 = vadd.f32 %v949_v27, %v130_v16  ;;  %v133_v36 = vmul.f32 %v947_v26, %v89_v29  ;;  %v72_v37 = vunpack.c.l.bf16 %v50_v62 }
  0x21   :  { %v205_v8 = vmax.f32 %v173_v0, 0.0  ;;  %v158_v15 = vadd.f32 %v949_v27, %v114_v5  ;;  %v204_v30 = vmax.f32 %v172_v19, 0.0  ;;  %v135_v40 = vmul.f32 %v947_v26, %v91_v33 }
  0x22   :  { %405 = vmatmul.mubr.bf16.vlgmr.msra.gmra.mxu0 %v212_v7  ;;  %437 = vmatmul.mubr.bf16.vlgmr.msra.gmra.mxu1 %v220_v14  ;;  %v51_v7 = vld [vmem:[%s1139_s0 + $0x38] sm:$0xff]  ;;  %v207_v14 = vmax.f32 %v175_v4, 0.0  ;;  %v206_v35 = vmax.f32 %v174_v24, 0.0  ;;  %v177_v43 = vadd.f32 %v951_v28, %v133_v36  ;;  %v116_v44 = vmul.f32 %v945_v25, %v72_v37 }
  0x23   :  { %412 = vmatprep.mubr.bf16.mxu0 %v215_v32  ;;  %444 = vmatprep.mubr.bf16.mxu1 %v223_v50  ;;  %v75_v20 = vunpack.c.h.bf16 %v51_v7  ;;  %v190_v23 = vmax.f32 %v158_v15, 0.0  ;;  %v161_v32 = vadd.f32 %v951_v28, %v117_v21  ;;  %v74_v41 = vunpack.c.l.bf16 %v51_v7 }
  0x24   :  { %v225_v22 = vpack.c.bf16 %v207_v14, %v205_v8  ;;  %v224_v42 = vpack.c.bf16 %v206_v35, %v204_v30  ;;  %v88_v45 = vunpack.c.l.bf16 %v58_v12  ;;  %v179_v47 = vadd.f32 %v951_v28, %v135_v40 }
  0x25   :  { %v119_v31 = vmul.f32 %v947_v26, %v75_v20  ;;  %v216_v34 = vpack.c.bf16 %v190_v23, %v188_v18  ;;  %v193_v39 = vmax.f32 %v161_v32, 0.0  ;;  %v118_v48 = vmul.f32 %v945_v25, %v74_v41 }
  0x26   :  { %v90_v49 = vunpack.c.l.bf16 %v59_v17  ;;  %v209_v50 = vmax.f32 %v177_v43, 0.0  ;;  %v160_v51 = vadd.f32 %v949_v27, %v116_v44  ;;  %v132_v26 = vmul.f32 %v945_v25, %v88_v45 }
  0x27   :  { %v163_v38 = vadd.f32 %v951_v28, %v119_v31  ;;  %v211_v53 = vmax.f32 %v179_v47, 0.0 }
  0x28   :  { %v134_v55 = vmul.f32 %v945_v25, %v90_v49  ;;  %v192_v56 = vmax.f32 %v160_v51, 0.0  ;;  %v176_v57 = vadd.f32 %v949_v27, %v132_v26  ;;  %v1075_v25 = vld [vmem:[%s1142_s4] ss:$0 sm:$0xff] }
  0x29   :  { %v195_v46 = vmax.f32 %v163_v38, 0.0  ;;  %v227_v28 = vpack.c.bf16 %v211_v53, %v209_v50 }
  0x2a   :  { %413 = vmatmul.mubr.bf16.gmra.mxu0 %v214_v54  ;;  %445 = vmatmul.mubr.bf16.gmra.mxu1 %v222_v63  ;;  %v162_v54 = vadd.f32 %v949_v27, %v118_v48  ;;  %v178_v59 = vadd.f32 %v949_v27, %v134_v55  ;;  %v208_v60 = vmax.f32 %v176_v57, 0.0 }
  0x2b   :  { %420 = vmatprep.mubr.bf16.mxu0 %v217_v13  ;;  %452 = vmatprep.mubr.bf16.mxu1 %v225_v22  ;;  %v219_v52 = vpack.c.bf16 %v195_v46, %v193_v39 }
  0x2c   :  { %v194_v58 = vmax.f32 %v162_v54, 0.0  ;;  %v210_v62 = vmax.f32 %v178_v59, 0.0 }
  0x2e   :  { %v218_v61 = vpack.c.bf16 %v194_v58, %v192_v56  ;;  %v226_v63 = vpack.c.bf16 %v210_v62, %v208_v60 }
  0x32   :  { %421 = vmatmul.mubr.bf16.gmra.mxu0 %v216_v34  ;;  %453 = vmatmul.mubr.bf16.gmra.mxu1 %v224_v42 }
  0x33   :  { %428 = vmatprep.mubr.bf16.mxu0 %v219_v52  ;;  %460 = vmatprep.mubr.bf16.mxu1 %v227_v28 }
  0x3a   :  { %429 = vmatmul.mubr.bf16.gmra.mxu0 %v218_v61  ;;  %461 = vmatmul.mubr.bf16.gmra.mxu1 %v226_v63 }
  0xe2   :  { %v779_v0 = vpop.f32.mrf.mxu0  ;;  %v803_v1 = vpop.f32.mrf.mxu1 }
  0xe4   :  { %v780_v2 = vpop.f32.mrf.mxu0  ;;  %v804_v3 = vpop.f32.mrf.mxu1 }
  0xe5   :  { %v781_v4 = vadd.f32 %v780_v2, %v779_v0  ;;  %v805_v5 = vadd.f32 %v804_v3, %v803_v1 }
  0xe6   :  { %v782_v6 = vpop.f32.mrf.mxu0  ;;  %v806_v27 = vpop.f32.mrf.mxu1 }
  0xe7   :  { %v527_v7 = vmul.f32 %v781_v4, %v1075_v25  ;;  %v535_v8 = vmul.f32 %v805_v5, %v1075_v25 }
  0xe8   :  { %v783_v10 = vpop.f32.mrf.mxu0  ;;  %v807_v11 = vpop.f32.mrf.mxu1 }
  0xe9   :  { %v784_v12 = vadd.f32 %v783_v10, %v782_v6  ;;  %v808_v13 = vadd.f32 %v807_v11, %v806_v27  ;;  %v550_v16 = vadd.f32 %v1082_v9, %v527_v7  ;;  %v558_v17 = vadd.f32 %v1082_v9, %v535_v8 }
  0xea   :  { %v785_v14 = vpop.f32.mrf.mxu0  ;;  %v809_v15 = vpop.f32.mrf.mxu1 }
  0xeb   :  { %v528_v18 = vmul.f32 %v784_v12, %v1075_v25  ;;  %v536_v19 = vmul.f32 %v808_v13, %v1075_v25  ;;  %v566_v32 = vmax.f32 %v550_v16, 0.0  ;;  %v574_v33 = vmax.f32 %v558_v17, 0.0 }
  0xec   :  { %v786_v20 = vpop.f32.mrf.mxu0  ;;  %v810_v21 = vpop.f32.mrf.mxu1 }
  0xed   :  { %v551_v22 = vadd.f32 %v1082_v9, %v528_v18  ;;  %v559_v23 = vadd.f32 %v1082_v9, %v536_v19  ;;  %v787_v24 = vadd.f32 %v786_v20, %v785_v14  ;;  %v811_v29 = vadd.f32 %v810_v21, %v809_v15 }
  0xee   :  { %v788_v30 = vpop.f32.mrf.mxu0  ;;  %v812_v31 = vpop.f32.mrf.mxu1 }
  0xef   :  { %v567_v34 = vmax.f32 %v551_v22, 0.0  ;;  %v575_v35 = vmax.f32 %v559_v23, 0.0  ;;  %v529_v36 = vmul.f32 %v787_v24, %v1075_v25  ;;  %v537_v37 = vmul.f32 %v811_v29, %v1075_v25 }
  0xf0   :  { %v789_v38 = vpop.f32.mrf.mxu0  ;;  %v813_v39 = vpop.f32.mrf.mxu1 }
  0xf1   :  { %v719_v40 = vpack.c.bf16 %v567_v34, %v566_v32  ;;  %v739_v41 = vpack.c.bf16 %v575_v35, %v574_v33  ;;  %v790_v42 = vadd.f32 %v789_v38, %v788_v30  ;;  %v814_v43 = vadd.f32 %v813_v39, %v812_v31 }
  0xf2   :  { %v791_v44 = vpop.f32.mrf.mxu0  ;;  %v815_v45 = vpop.f32.mrf.mxu1  ;;  %v552_v46 = vadd.f32 %v1082_v9, %v529_v36  ;;  %v560_v47 = vadd.f32 %v1082_v9, %v537_v37 }
  0xf3   :  { %720 = vst [vmem:[%s1144_s6] sm:$0xff] %v719_v40   ;;  %759 = vst [vmem:[%s1144_s6 + $0x20] sm:$0xff] %v739_v41   ;;  %v530_v48 = vmul.f32 %v790_v42, %v1075_v25  ;;  %v538_v49 = vmul.f32 %v814_v43, %v1075_v25 }
  0xf4   :  { %v792_v50 = vpop.f32.mrf.mxu0  ;;  %v816_v51 = vpop.f32.mrf.mxu1  ;;  %v568_v58 = vmax.f32 %v552_v46, 0.0  ;;  %v576_v59 = vmax.f32 %v560_v47, 0.0 }
  0xf5   :  { %v793_v26 = vadd.f32 %v792_v50, %v791_v44  ;;  %v817_v52 = vadd.f32 %v816_v51, %v815_v45  ;;  %v553_v53 = vadd.f32 %v1082_v9, %v530_v48  ;;  %v561_v54 = vadd.f32 %v1082_v9, %v538_v49 }
  0xf6   :  { %v794_v55 = vpop.f32.mrf.mxu0  ;;  %v818_v56 = vpop.f32.mrf.mxu1 }
  0xf7   :  { %v531_v57 = vmul.f32 %v793_v26, %v1075_v25  ;;  %v539_v28 = vmul.f32 %v817_v52, %v1075_v25  ;;  %v569_v60 = vmax.f32 %v553_v53, 0.0  ;;  %v577_v61 = vmax.f32 %v561_v54, 0.0 }
  0xf8   :  { %v795_v62 = vpop.f32.mrf.mxu0  ;;  %v819_v63 = vpop.f32.mrf.mxu1 }
  0xf9   :  { %v796_v0 = vadd.f32 %v795_v62, %v794_v55  ;;  %v820_v1 = vadd.f32 %v819_v63, %v818_v56  ;;  %v724_v2 = vpack.c.bf16 %v569_v60, %v568_v58  ;;  %v744_v3 = vpack.c.bf16 %v577_v61, %v576_v59 }
  0xfa   :  { %v554_v4 = vadd.f32 %v1082_v9, %v531_v57  ;;  %v797_v5 = vpop.f32.mrf.mxu0  ;;  %v562_v6 = vadd.f32 %v1082_v9, %v539_v28  ;;  %v821_v8 = vpop.f32.mrf.mxu1 }
  0xfb   :  { %v532_v27 = vmul.f32 %v796_v0, %v1075_v25  ;;  %v540_v7 = vmul.f32 %v820_v1, %v1075_v25  ;;  %756 = vst [vmem:[%s1144_s6 + $0x8] sm:$0xff] %v724_v2   ;;  %760 = vst [vmem:[%s1144_s6 + $0x28] sm:$0xff] %v744_v3  }
  0xfc   :  { %v798_v10 = vpop.f32.mrf.mxu0  ;;  %v822_v14 = vpop.f32.mrf.mxu1  ;;  %v570_v15 = vmax.f32 %v554_v4, 0.0  ;;  %v578_v18 = vmax.f32 %v562_v6, 0.0 }
  0xfd   :  { %v555_v11 = vadd.f32 %v1082_v9, %v532_v27  ;;  %v563_v12 = vadd.f32 %v1082_v9, %v540_v7  ;;  %v799_v13 = vadd.f32 %v798_v10, %v797_v5  ;;  %v823_v16 = vadd.f32 %v822_v14, %v821_v8 }
  0xfe   :  { %v800_v17 = vpop.f32.mrf.mxu0  ;;  %v824_v22 = vpop.f32.mrf.mxu1 }
  0xff   :  { %v571_v19 = vmax.f32 %v555_v11, 0.0  ;;  %v579_v20 = vmax.f32 %v563_v12, 0.0  ;;  %v533_v21 = vmul.f32 %v799_v13, %v1075_v25  ;;  %v541_v23 = vmul.f32 %v823_v16, %v1075_v25 }
 0x100   :  { %v801_v24 = vpop.f32.mrf.mxu0  ;;  %v825_v32 = vpop.f32.mrf.mxu1 }
 0x101   :  { %v729_v29 = vpack.c.bf16 %v571_v19, %v570_v15  ;;  %v749_v30 = vpack.c.bf16 %v579_v20, %v578_v18  ;;  %v802_v31 = vadd.f32 %v801_v24, %v800_v17  ;;  %v826_v33 = vadd.f32 %v825_v32, %v824_v22 }
 0x102   :  { %v556_v34 = vadd.f32 %v1082_v9, %v533_v21  ;;  %v564_v36 = vadd.f32 %v1082_v9, %v541_v23 }
 0x103   :  { %757 = vst [vmem:[%s1144_s6 + $0x10] sm:$0xff] %v729_v29   ;;  %761 = vst [vmem:[%s1144_s6 + $0x30] sm:$0xff] %v749_v30   ;;  %v534_v35 = vmul.f32 %v802_v31, %v1075_v25  ;;  %v542_v37 = vmul.f32 %v826_v33, %v1075_v25 }
 0x104   :  { %v572_v40 = vmax.f32 %v556_v34, 0.0  ;;  %v580_v42 = vmax.f32 %v564_v36, 0.0 }
 0x105   :  { %v557_v38 = vadd.f32 %v1082_v9, %v534_v35  ;;  %v565_v39 = vadd.f32 %v1082_v9, %v542_v37 }
 0x107   :  { %v573_v41 = vmax.f32 %v557_v38, 0.0  ;;  %v581_v43 = vmax.f32 %v565_v39, 0.0 }
 0x109   :  { %v734_v44 = vpack.c.bf16 %v573_v41, %v572_v40  ;;  %v754_v45 = vpack.c.bf16 %v581_v43, %v580_v42 }
 0x10b   :  { %758 = vst [vmem:[%s1144_s6 + $0x18] sm:$0xff] %v734_v44   ;;  %762 = vst [vmem:[%s1144_s6 + $0x38] sm:$0xff] %v754_v45  }

// kernel: densenet121_forward.126
= control target key start
LH: loop header
LB: loop body
LE: loop exit
PB: predicated region body
PF: predicated region fallthrough
CT: control target
= control target key end

     0   :  { %v1658_v0 = vmov 0   ;;  %vm28_vm0 = vcmask 523264   ;;  %v1659_v19 = vmov 0.0   ;;  %s2567_s2 = inlined_call_operand.vmem [shape: f32[1,256], index: 2, kind: input, shape index: {}, may-alias: {2,3}]   ;;  %s2568_s3 = inlined_call_operand.vmem [shape: f32[1,256], index: 3, kind: input, shape index: {}, may-alias: {2,3}]   ;;  %s2569_s1 = inlined_call_operand.vmem [shape: bf16[256,64], index: 1, kind: input, shape index: {}]   ;;  %s2570_s0 = inlined_call_operand.vmem [shape: bf16[512,256], index: 0, kind: input, shape index: {}]   ;;  %s2571_s4 = inlined_call_operand.vmem [shape: f32[1,64], index: 4, kind: input, shape index: {}]   ;;  %s2572_s5 = inlined_call_operand.vmem [shape: f32[1,64], index: 5, kind: input, shape index: {}]   ;;  %s2573_s6 = inlined_call_operand.vmem [shape: f32[512,64], index: 6, kind: output, shape index: {}]  }
   0x1   :  { %669 = vmatprep.subr.bf16.mxu0 %v1658_v0  ;;  %1510 = vmatprep.subr.bf16.mxu1 %v1658_v0  ;;  %v1544_v1 = vld [vmem:[%s2569_s1 + $0x38] sm:$0xff]   ;;  %v1545_v2 = vld [vmem:[%s2569_s1 + $0x30] sm:$0xff]   ;;  %v1546_v3 = vld [vmem:[%s2569_s1 + $0x28] sm:$0xff]   ;;  %29 = vst.msk [vmem:[#allocation2] sm:$0xff] %vm28_vm0, %v1659_v19 }
   0x2   :  { %670 = vmatpush1.bf16.msra.mxu0 %v1544_v1  ;;  %1526 = vmatpush1.bf16.msra.mxu1 %v1544_v1  ;;  %v1547_v4 = vld [vmem:[%s2569_s1 + $0x20] sm:$0xff]   ;;  %v1548_v5 = vld [vmem:[%s2569_s1 + $0x18] sm:$0xff]   ;;  %v1549_v7 = vld [vmem:[%s2569_s1 + $0x10] sm:$0xff]   ;;  %30 = vst.msk [vmem:[#allocation2 + $0x8] sm:$0xff] %vm28_vm0, %v1659_v19 }
   0x3   :  { %671 = vmatprep.subr.bf16.mxu0 %v1658_v0  ;;  %1511 = vmatprep.subr.bf16.mxu1 %v1658_v0  ;;  %v1562_v6 = vld [vmem:[%s2570_s0 + $0x4] ss:$8 sps:$4 sm:$0xff]   ;;  %v1552_v11 = vld [vmem:[%s2569_s1 + $0x78] sm:$0xff]   ;;  %v1553_v12 = vld [vmem:[%s2569_s1 + $0x70] sm:$0xff]   ;;  %31 = vst.msk [vmem:[#allocation2 + $0x10] sm:$0xff] %vm28_vm0, %v1659_v19 }
   0x4   :  { %v1565_v8 = vld [vmem:[%s2570_s0 + $0x104] ss:$8 sps:$4 sm:$0xff]   ;;  %701 = vmatprep.mubr.bf16.mxu0 %v1562_v6  ;;  %v1556_v15 = vld [vmem:[%s2569_s1 + $0x58] sm:$0xff]   ;;  %v1557_v16 = vld [vmem:[%s2569_s1 + $0x50] sm:$0xff]   ;;  %32 = vst.msk [vmem:[#allocation2 + $0x18] sm:$0xff] %vm28_vm0, %v1659_v19 }
   0x5   :  { %829 = vmatprep.mubr.bf16.mxu1 %v1565_v8  ;;  %v1550_v9 = vld [vmem:[%s2569_s1 + $0x8] sm:$0xff]   ;;  %v1551_v10 = vld [vmem:[%s2569_s1] sm:$0xff]   ;;  %33 = vst.msk [vmem:[#allocation2 + $0x20] sm:$0xff] %vm28_vm0, %v1659_v19  ;;  %34 = vst.msk [vmem:[#allocation2 + $0x28] sm:$0xff] %vm28_vm0, %v1659_v19 }
   0x6   :  { %672 = vmatpush1.bf16.msra.mxu0 %v1545_v2  ;;  %1527 = vmatpush1.bf16.msra.mxu1 %v1545_v2  ;;  %v1554_v13 = vld [vmem:[%s2569_s1 + $0x68] sm:$0xff]   ;;  %v1555_v14 = vld [vmem:[%s2569_s1 + $0x60] sm:$0xff]   ;;  %35 = vst.msk [vmem:[#allocation2 + $0x30] sm:$0xff] %vm28_vm0, %v1659_v19  ;;  %36 = vst.msk [vmem:[#allocation2 + $0x38] sm:$0xff] %vm28_vm0, %v1659_v19 }
   0x7   :  { %673 = vmatprep.subr.bf16.mxu0 %v1658_v0  ;;  %1512 = vmatprep.subr.bf16.mxu1 %v1658_v0  ;;  %v1558_v17 = vld [vmem:[%s2569_s1 + $0x48] sm:$0xff]   ;;  %v1779_v18 = vld [vmem:[%s2569_s1 + $0x40] sm:$0xff]   ;;  %37 = vst.msk [vmem:[#allocation2 + $0x40] sm:$0xff] %vm28_vm0, %v1659_v19  ;;  %38 = vst.msk [vmem:[#allocation2 + $0x48] sm:$0xff] %vm28_vm0, %v1659_v19 }
   0x8   :  { %39 = vst.msk [vmem:[#allocation2 + $0x50] sm:$0xff] %vm28_vm0, %v1659_v19  ;;  %40 = vst.msk [vmem:[#allocation2 + $0x58] sm:$0xff] %vm28_vm0, %v1659_v19  ;;  %v1560_v20 = vld [vmem:[%s2570_s0] ss:$8 sps:$4 sm:$0xff]   ;;  %v1566_v22 = vld [vmem:[%s2570_s0 + $0x14] ss:$8 sps:$4 sm:$0xff]  }
   0x9   :  { %41 = vst.msk [vmem:[#allocation2 + $0x60] sm:$0xff] %vm28_vm0, %v1659_v19  ;;  %42 = vst.msk [vmem:[#allocation2 + $0x68] sm:$0xff] %vm28_vm0, %v1659_v19  ;;  %v1563_v21 = vld [vmem:[%s2570_s0 + $0x100] ss:$8 sps:$4 sm:$0xff]   ;;  %v1568_v23 = vld [vmem:[%s2570_s0 + $0x114] ss:$8 sps:$4 sm:$0xff]  }
   0xa   :  { %674 = vmatpush1.bf16.msra.mxu0 %v1546_v3  ;;  %1528 = vmatpush1.bf16.msra.mxu1 %v1546_v3  ;;  %43 = vst.msk [vmem:[#allocation2 + $0x70] sm:$0xff] %vm28_vm0, %v1659_v19  ;;  %44 = vst.msk [vmem:[#allocation2 + $0x78] sm:$0xff] %vm28_vm0, %v1659_v19  ;;  %v1570_v24 = vld [vmem:[%s2570_s0 + $0x10] ss:$8 sps:$4 sm:$0xff]   ;;  %v1572_v26 = vld [vmem:[%s2570_s0 + $0x24] ss:$8 sps:$4 sm:$0xff]  }
   0xb   :  { %675 = vmatprep.subr.bf16.mxu0 %v1658_v0  ;;  %1513 = vmatprep.subr.bf16.mxu1 %v1658_v0  ;;  %45 = vst.msk [vmem:[#allocation2 + $0x80] sm:$0xff] %vm28_vm0, %v1659_v19  ;;  %46 = vst.msk [vmem:[#allocation2 + $0x88] sm:$0xff] %vm28_vm0, %v1659_v19  ;;  %v1571_v25 = vld [vmem:[%s2570_s0 + $0x110] ss:$8 sps:$4 sm:$0xff]   ;;  %v1574_v27 = vld [vmem:[%s2570_s0 + $0x124] ss:$8 sps:$4 sm:$0xff]  }
   0xc   :  { %47 = vst.msk [vmem:[#allocation2 + $0x90] sm:$0xff] %vm28_vm0, %v1659_v19  ;;  %48 = vst.msk [vmem:[#allocation2 + $0x98] sm:$0xff] %vm28_vm0, %v1659_v19  ;;  %v1576_v28 = vld [vmem:[%s2570_s0 + $0x20] ss:$8 sps:$4 sm:$0xff]   ;;  %v1578_v30 = vld [vmem:[%s2570_s0 + $0x34] ss:$8 sps:$4 sm:$0xff]  }
   0xd   :  { %49 = vst.msk [vmem:[#allocation2 + $0xa0] sm:$0xff] %vm28_vm0, %v1659_v19  ;;  %50 = vst.msk [vmem:[#allocation2 + $0xa8] sm:$0xff] %vm28_vm0, %v1659_v19  ;;  %v1577_v29 = vld [vmem:[%s2570_s0 + $0x120] ss:$8 sps:$4 sm:$0xff]   ;;  %v1580_v31 = vld [vmem:[%s2570_s0 + $0x134] ss:$8 sps:$4 sm:$0xff]  }
   0xe   :  { %676 = vmatpush1.bf16.msra.mxu0 %v1547_v4  ;;  %1529 = vmatpush1.bf16.msra.mxu1 %v1547_v4  ;;  %51 = vst.msk [vmem:[#allocation2 + $0xb0] sm:$0xff] %vm28_vm0, %v1659_v19  ;;  %52 = vst.msk [vmem:[#allocation2 + $0xb8] sm:$0xff] %vm28_vm0, %v1659_v19  ;;  %v1582_v32 = vld [vmem:[%s2570_s0 + $0x30] ss:$8 sps:$4 sm:$0xff]   ;;  %v1584_v34 = vld [vmem:[%s2570_s0 + $0x44] ss:$8 sps:$4 sm:$0xff]  }
   0xf   :  { %677 = vmatprep.subr.bf16.mxu0 %v1658_v0  ;;  %1514 = vmatprep.subr.bf16.mxu1 %v1658_v0  ;;  %53 = vst.msk [vmem:[#allocation2 + $0xc0] sm:$0xff] %vm28_vm0, %v1659_v19  ;;  %54 = vst.msk [vmem:[#allocation2 + $0xc8] sm:$0xff] %vm28_vm0, %v1659_v19  ;;  %v1583_v33 = vld [vmem:[%s2570_s0 + $0x130] ss:$8 sps:$4 sm:$0xff]   ;;  %v1586_v35 = vld [vmem:[%s2570_s0 + $0x144] ss:$8 sps:$4 sm:$0xff]  }
  0x10   :  { %55 = vst.msk [vmem:[#allocation2 + $0xd0] sm:$0xff] %vm28_vm0, %v1659_v19  ;;  %56 = vst.msk [vmem:[#allocation2 + $0xd8] sm:$0xff] %vm28_vm0, %v1659_v19  ;;  %v1588_v36 = vld [vmem:[%s2570_s0 + $0x40] ss:$8 sps:$4 sm:$0xff]   ;;  %v1590_v38 = vld [vmem:[%s2570_s0 + $0x54] ss:$8 sps:$4 sm:$0xff]  }
  0x11   :  { %57 = vst.msk [vmem:[#allocation2 + $0xe0] sm:$0xff] %vm28_vm0, %v1659_v19  ;;  %58 = vst.msk [vmem:[#allocation2 + $0xe8] sm:$0xff] %vm28_vm0, %v1659_v19  ;;  %v1589_v37 = vld [vmem:[%s2570_s0 + $0x140] ss:$8 sps:$4 sm:$0xff]   ;;  %v1592_v39 = vld [vmem:[%s2570_s0 + $0x154] ss:$8 sps:$4 sm:$0xff]  }
  0x12   :  { %678 = vmatpush1.bf16.msra.mxu0 %v1548_v5  ;;  %1530 = vmatpush1.bf16.msra.mxu1 %v1548_v5  ;;  %59 = vst.msk [vmem:[#allocation2 + $0xf0] sm:$0xff] %vm28_vm0, %v1659_v19  ;;  %60 = vst.msk [vmem:[#allocation2 + $0xf8] sm:$0xff] %vm28_vm0, %v1659_v19  ;;  %v1594_v40 = vld [vmem:[%s2570_s0 + $0x50] ss:$8 sps:$4 sm:$0xff]   ;;  %v1596_v42 = vld [vmem:[%s2570_s0 + $0x64] ss:$8 sps:$4 sm:$0xff]  }
  0x13   :  { %679 = vmatprep.subr.bf16.mxu0 %v1658_v0  ;;  %1515 = vmatprep.subr.bf16.mxu1 %v1658_v0  ;;  %61 = vst.msk [vmem:[#allocation2 + $0x100] sm:$0xff] %vm28_vm0, %v1659_v19  ;;  %62 = vst.msk [vmem:[#allocation2 + $0x108] sm:$0xff] %vm28_vm0, %v1659_v19  ;;  %v1595_v41 = vld [vmem:[%s2570_s0 + $0x150] ss:$8 sps:$4 sm:$0xff]   ;;  %v1598_v43 = vld [vmem:[%s2570_s0 + $0x164] ss:$8 sps:$4 sm:$0xff]  }
  0x14   :  { %63 = vst.msk [vmem:[#allocation2 + $0x110] sm:$0xff] %vm28_vm0, %v1659_v19  ;;  %64 = vst.msk [vmem:[#allocation2 + $0x118] sm:$0xff] %vm28_vm0, %v1659_v19  ;;  %v1600_v44 = vld [vmem:[%s2570_s0 + $0x60] ss:$8 sps:$4 sm:$0xff]   ;;  %v1602_v46 = vld [vmem:[%s2570_s0 + $0x74] ss:$8 sps:$4 sm:$0xff]  }
  0x15   :  { %65 = vst.msk [vmem:[#allocation2 + $0x120] sm:$0xff] %vm28_vm0, %v1659_v19  ;;  %66 = vst.msk [vmem:[#allocation2 + $0x128] sm:$0xff] %vm28_vm0, %v1659_v19  ;;  %v1601_v45 = vld [vmem:[%s2570_s0 + $0x160] ss:$8 sps:$4 sm:$0xff]   ;;  %v1604_v47 = vld [vmem:[%s2570_s0 + $0x174] ss:$8 sps:$4 sm:$0xff]  }
  0x16   :  { %680 = vmatpush1.bf16.msra.mxu0 %v1549_v7  ;;  %1531 = vmatpush1.bf16.msra.mxu1 %v1549_v7  ;;  %67 = vst.msk [vmem:[#allocation2 + $0x130] sm:$0xff] %vm28_vm0, %v1659_v19  ;;  %68 = vst.msk [vmem:[#allocation2 + $0x138] sm:$0xff] %vm28_vm0, %v1659_v19  ;;  %v1606_v48 = vld [vmem:[%s2570_s0 + $0x70] ss:$8 sps:$4 sm:$0xff]   ;;  %v1608_v50 = vld [vmem:[%s2570_s0 + $0x84] ss:$8 sps:$4 sm:$0xff]  }
  0x17   :  { %681 = vmatprep.subr.bf16.mxu0 %v1658_v0  ;;  %1516 = vmatprep.subr.bf16.mxu1 %v1658_v0  ;;  %69 = vst.msk [vmem:[#allocation2 + $0x140] sm:$0xff] %vm28_vm0, %v1659_v19  ;;  %70 = vst.msk [vmem:[#allocation2 + $0x148] sm:$0xff] %vm28_vm0, %v1659_v19  ;;  %v1607_v49 = vld [vmem:[%s2570_s0 + $0x170] ss:$8 sps:$4 sm:$0xff]   ;;  %v1610_v51 = vld [vmem:[%s2570_s0 + $0x184] ss:$8 sps:$4 sm:$0xff]  }
  0x18   :  { %71 = vst.msk [vmem:[#allocation2 + $0x150] sm:$0xff] %vm28_vm0, %v1659_v19  ;;  %72 = vst.msk [vmem:[#allocation2 + $0x158] sm:$0xff] %vm28_vm0, %v1659_v19  ;;  %v1612_v52 = vld [vmem:[%s2570_s0 + $0x80] ss:$8 sps:$4 sm:$0xff]   ;;  %v1614_v54 = vld [vmem:[%s2570_s0 + $0x94] ss:$8 sps:$4 sm:$0xff]  }
  0x19   :  { %73 = vst.msk [vmem:[#allocation2 + $0x160] sm:$0xff] %vm28_vm0, %v1659_v19  ;;  %74 = vst.msk [vmem:[#allocation2 + $0x168] sm:$0xff] %vm28_vm0, %v1659_v19  ;;  %v1613_v53 = vld [vmem:[%s2570_s0 + $0x180] ss:$8 sps:$4 sm:$0xff]   ;;  %v1616_v55 = vld [vmem:[%s2570_s0 + $0x194] ss:$8 sps:$4 sm:$0xff]  }
  0x1a   :  { %682 = vmatpush1.bf16.msra.mxu0 %v1550_v9  ;;  %1532 = vmatpush1.bf16.msra.mxu1 %v1550_v9  ;;  %75 = vst.msk [vmem:[#allocation2 + $0x170] sm:$0xff] %vm28_vm0, %v1659_v19  ;;  %76 = vst.msk [vmem:[#allocation2 + $0x178] sm:$0xff] %vm28_vm0, %v1659_v19  ;;  %v1618_v56 = vld [vmem:[%s2570_s0 + $0x90] ss:$8 sps:$4 sm:$0xff]   ;;  %v1620_v58 = vld [vmem:[%s2570_s0 + $0xa4] ss:$8 sps:$4 sm:$0xff]  }
  0x1b   :  { %683 = vmatprep.subr.bf16.mxu0 %v1658_v0  ;;  %1517 = vmatprep.subr.bf16.mxu1 %v1658_v0  ;;  %77 = vst.msk [vmem:[#allocation2 + $0x180] sm:$0xff] %vm28_vm0, %v1659_v19  ;;  %78 = vst.msk [vmem:[#allocation2 + $0x188] sm:$0xff] %vm28_vm0, %v1659_v19  ;;  %v1619_v57 = vld [vmem:[%s2570_s0 + $0x190] ss:$8 sps:$4 sm:$0xff]   ;;  %v1622_v59 = vld [vmem:[%s2570_s0 + $0x1a4] ss:$8 sps:$4 sm:$0xff]  }
  0x1c   :  { %79 = vst.msk [vmem:[#allocation2 + $0x190] sm:$0xff] %vm28_vm0, %v1659_v19  ;;  %80 = vst.msk [vmem:[#allocation2 + $0x198] sm:$0xff] %vm28_vm0, %v1659_v19  ;;  %v1624_v60 = vld [vmem:[%s2570_s0 + $0xa0] ss:$8 sps:$4 sm:$0xff]   ;;  %v1626_v62 = vld [vmem:[%s2570_s0 + $0xb4] ss:$8 sps:$4 sm:$0xff]  }
  0x1d   :  { %81 = vst.msk [vmem:[#allocation2 + $0x1a0] sm:$0xff] %vm28_vm0, %v1659_v19  ;;  %82 = vst.msk [vmem:[#allocation2 + $0x1a8] sm:$0xff] %vm28_vm0, %v1659_v19  ;;  %v1625_v61 = vld [vmem:[%s2570_s0 + $0x1a0] ss:$8 sps:$4 sm:$0xff]   ;;  %v1628_v63 = vld [vmem:[%s2570_s0 + $0x1b4] ss:$8 sps:$4 sm:$0xff]  }
  0x1e   :  { %684 = vmatpush1.bf16.msra.mxu0 %v1551_v10  ;;  %1533 = vmatpush1.bf16.msra.mxu1 %v1551_v10  ;;  %83 = vst.msk [vmem:[#allocation2 + $0x1b0] sm:$0xff] %vm28_vm0, %v1659_v19  ;;  %84 = vst.msk [vmem:[#allocation2 + $0x1b8] sm:$0xff] %vm28_vm0, %v1659_v19  ;;  %v1631_v1 = vld [vmem:[%s2570_s0 + $0x1b0] ss:$8 sps:$4 sm:$0xff]   ;;  %v1632_v2 = vld [vmem:[%s2570_s0 + $0xc4] ss:$8 sps:$4 sm:$0xff]  }
  0x1f   :  { %685 = vmatprep.subr.bf16.mxu0 %v1658_v0  ;;  %1518 = vmatprep.subr.bf16.mxu1 %v1658_v0  ;;  %85 = vst.msk [vmem:[#allocation2 + $0x1c0] sm:$0xff] %vm28_vm0, %v1659_v19  ;;  %86 = vst.msk [vmem:[#allocation2 + $0x1c8] sm:$0xff] %vm28_vm0, %v1659_v19  ;;  %v1634_v3 = vld [vmem:[%s2570_s0 + $0x1c4] ss:$8 sps:$4 sm:$0xff]   ;;  %v1636_v4 = vld [vmem:[%s2570_s0 + $0xc0] ss:$8 sps:$4 sm:$0xff]  }
  0x20   :  { %87 = vst.msk [vmem:[#allocation2 + $0x1d0] sm:$0xff] %vm28_vm0, %v1659_v19  ;;  %88 = vst.msk [vmem:[#allocation2 + $0x1d8] sm:$0xff] %vm28_vm0, %v1659_v19  ;;  %v1637_v5 = vld [vmem:[%s2570_s0 + $0x1c0] ss:$8 sps:$4 sm:$0xff]   ;;  %v1638_v6 = vld [vmem:[%s2570_s0 + $0xd4] ss:$8 sps:$4 sm:$0xff]  }
  0x21   :  { %89 = vst.msk [vmem:[#allocation2 + $0x1e0] sm:$0xff] %vm28_vm0, %v1659_v19  ;;  %90 = vst.msk [vmem:[#allocation2 + $0x1e8] sm:$0xff] %vm28_vm0, %v1659_v19  ;;  %v1640_v7 = vld [vmem:[%s2570_s0 + $0x1d4] ss:$8 sps:$4 sm:$0xff]   ;;  %v1642_v8 = vld [vmem:[%s2570_s0 + $0xd0] ss:$8 sps:$4 sm:$0xff]  }
  0x22   :  { %686 = vmatpush2.bf16.msra.mxu0 %v1552_v11  ;;  %1534 = vmatpush2.bf16.msra.mxu1 %v1552_v11  ;;  %91 = vst.msk [vmem:[#allocation2 + $0x1f0] sm:$0xff] %vm28_vm0, %v1659_v19  ;;  %92 = vst.msk [vmem:[#allocation2 + $0x1f8] sm:$0xff] %vm28_vm0, %v1659_v19  ;;  %v1643_v9 = vld [vmem:[%s2570_s0 + $0x1d0] ss:$8 sps:$4 sm:$0xff]   ;;  %v1644_v10 = vld [vmem:[%s2570_s0 + $0xe4] ss:$8 sps:$4 sm:$0xff]  }
  0x23   :  { %687 = vmatprep.subr.bf16.mxu0 %v1658_v0  ;;  %1519 = vmatprep.subr.bf16.mxu1 %v1658_v0  ;;  %v1646_v11 = vld [vmem:[%s2570_s0 + $0x1e4] ss:$8 sps:$4 sm:$0xff]  }
  0x24   :  { %v189_v19 = vld [vmem:[#allocation2 + $0x100] sm:$0xff] }
  0x26   :  { %688 = vmatpush2.bf16.msra.mxu0 %v1553_v12  ;;  %1535 = vmatpush2.bf16.msra.mxu1 %v1553_v12  ;;  %v1648_v12 = vld [vmem:[%s2570_s0 + $0xe0] ss:$8 sps:$4 sm:$0xff]  }
  0x27   :  { %689 = vmatprep.subr.bf16.mxu0 %v1658_v0  ;;  %1520 = vmatprep.subr.bf16.mxu1 %v1658_v0 }
  0x2a   :  { %690 = vmatpush2.bf16.msra.mxu0 %v1554_v13  ;;  %1536 = vmatpush2.bf16.msra.mxu1 %v1554_v13  ;;  %v1649_v13 = vld [vmem:[%s2570_s0 + $0x1e0] ss:$8 sps:$4 sm:$0xff]  }
  0x2b   :  { %691 = vmatprep.subr.bf16.mxu0 %v1658_v0  ;;  %1521 = vmatprep.subr.bf16.mxu1 %v1658_v0 }
  0x2e   :  { %692 = vmatpush2.bf16.msra.mxu0 %v1555_v14  ;;  %1537 = vmatpush2.bf16.msra.mxu1 %v1555_v14  ;;  %v1650_v14 = vld [vmem:[%s2570_s0 + $0xf4] ss:$8 sps:$4 sm:$0xff]  }
  0x2f   :  { %693 = vmatprep.subr.bf16.mxu0 %v1658_v0  ;;  %1522 = vmatprep.subr.bf16.mxu1 %v1658_v0 }
  0x32   :  { %694 = vmatpush2.bf16.msra.mxu0 %v1556_v15  ;;  %1538 = vmatpush2.bf16.msra.mxu1 %v1556_v15  ;;  %v1652_v15 = vld [vmem:[%s2570_s0 + $0x1f4] ss:$8 sps:$4 sm:$0xff]  }
  0x33   :  { %695 = vmatprep.subr.bf16.mxu0 %v1658_v0  ;;  %1523 = vmatprep.subr.bf16.mxu1 %v1658_v0 }
  0x36   :  { %696 = vmatpush2.bf16.msra.mxu0 %v1557_v16  ;;  %1539 = vmatpush2.bf16.msra.mxu1 %v1557_v16  ;;  %v1654_v16 = vld [vmem:[%s2570_s0 + $0xf0] ss:$8 sps:$4 sm:$0xff]  }
  0x37   :  { %697 = vmatprep.subr.bf16.mxu0 %v1658_v0  ;;  %1524 = vmatprep.subr.bf16.mxu1 %v1658_v0 }
  0x3a   :  { %698 = vmatpush2.bf16.msra.mxu0 %v1558_v17  ;;  %1540 = vmatpush2.bf16.msra.mxu1 %v1558_v17  ;;  %v1655_v17 = vld [vmem:[%s2570_s0 + $0x1f0] ss:$8 sps:$4 sm:$0xff]  }
  0x3b   :  { %699 = vmatprep.subr.bf16.mxu0 %v1658_v0  ;;  %1525 = vmatprep.subr.bf16.mxu1 %v1658_v0  ;;  %v1630_v0 = vld [vmem:[%s2570_s0 + $0xb0] ss:$8 sps:$4 sm:$0xff]  }
  0x3e   :  { %700 = vmatpush2.bf16.msra.mxu0 %v1779_v18  ;;  %1541 = vmatpush2.bf16.msra.mxu1 %v1779_v18  ;;  %v157_v18 = vld [vmem:[#allocation2] sm:$0xff] }
  0x41   :  { %702 = vmatmul.mubr.bf16.vlgmr.msra.gmra.mxu0 %v1560_v20  ;;  %830 = vmatmul.mubr.bf16.vlgmr.msra.gmra.mxu1 %v1563_v21 }
  0x42   :  { %709 = vmatprep.mubr.bf16.mxu0 %v1566_v22  ;;  %837 = vmatprep.mubr.bf16.mxu1 %v1568_v23 }
  0x49   :  { %710 = vmatmul.mubr.bf16.gmra.mxu0 %v1570_v24  ;;  %838 = vmatmul.mubr.bf16.gmra.mxu1 %v1571_v25 }
  0x4a   :  { %717 = vmatprep.mubr.bf16.mxu0 %v1572_v26  ;;  %845 = vmatprep.mubr.bf16.mxu1 %v1574_v27  ;;  %v158_v26 = vld [vmem:[#allocation2 + $0x8] sm:$0xff] }
  0x4b   :  { %v190_v27 = vld [vmem:[#allocation2 + $0x108] sm:$0xff] }
  0x51   :  { %718 = vmatmul.mubr.bf16.gmra.mxu0 %v1576_v28  ;;  %846 = vmatmul.mubr.bf16.gmra.mxu1 %v1577_v29 }
  0x52   :  { %725 = vmatprep.mubr.bf16.mxu0 %v1578_v30  ;;  %853 = vmatprep.mubr.bf16.mxu1 %v1580_v31 }
  0x59   :  { %726 = vmatmul.mubr.bf16.gmra.mxu0 %v1582_v32  ;;  %854 = vmatmul.mubr.bf16.gmra.mxu1 %v1583_v33 }
  0x5a   :  { %733 = vmatprep.mubr.bf16.mxu0 %v1584_v34  ;;  %861 = vmatprep.mubr.bf16.mxu1 %v1586_v35  ;;  %v159_v34 = vld [vmem:[#allocation2 + $0x10] sm:$0xff] }
  0x5b   :  { %v191_v35 = vld [vmem:[#allocation2 + $0x110] sm:$0xff] }
  0x61   :  { %734 = vmatmul.mubr.bf16.gmra.mxu0 %v1588_v36  ;;  %862 = vmatmul.mubr.bf16.gmra.mxu1 %v1589_v37  ;;  %v2106_v36 = vld [vmem:[%s2571_s4] ss:$0 sm:$0xff] }
  0x62   :  { %741 = vmatprep.mubr.bf16.mxu0 %v1590_v38  ;;  %869 = vmatprep.mubr.bf16.mxu1 %v1592_v39  ;;  %v2111_v39 = vld [vmem:[%s2572_s5] ss:$0 sm:$0xff] }
  0x69   :  { %742 = vmatmul.mubr.bf16.gmra.mxu0 %v1594_v40  ;;  %870 = vmatmul.mubr.bf16.gmra.mxu1 %v1595_v41 }
  0x6a   :  { %749 = vmatprep.mubr.bf16.mxu0 %v1596_v42  ;;  %877 = vmatprep.mubr.bf16.mxu1 %v1598_v43  ;;  %v160_v42 = vld [vmem:[#allocation2 + $0x18] sm:$0xff] }
  0x71   :  { %750 = vmatmul.mubr.bf16.gmra.mxu0 %v1600_v44  ;;  %878 = vmatmul.mubr.bf16.gmra.mxu1 %v1601_v45 }
  0x72   :  { %757 = vmatprep.mubr.bf16.mxu0 %v1602_v46  ;;  %885 = vmatprep.mubr.bf16.mxu1 %v1604_v47  ;;  %v192_v47 = vld [vmem:[#allocation2 + $0x118] sm:$0xff] }
  0x79   :  { %758 = vmatmul.mubr.bf16.gmra.mxu0 %v1606_v48  ;;  %886 = vmatmul.mubr.bf16.gmra.mxu1 %v1607_v49 }
  0x7a   :  { %765 = vmatprep.mubr.bf16.mxu0 %v1608_v50  ;;  %893 = vmatprep.mubr.bf16.mxu1 %v1610_v51 }
  0x81   :  { %766 = vmatmul.mubr.bf16.gmra.mxu0 %v1612_v52  ;;  %894 = vmatmul.mubr.bf16.gmra.mxu1 %v1613_v53 }
  0x82   :  { %773 = vmatprep.mubr.bf16.mxu0 %v1614_v54  ;;  %901 = vmatprep.mubr.bf16.mxu1 %v1616_v55 }
  0x89   :  { %774 = vmatmul.mubr.bf16.gmra.mxu0 %v1618_v56  ;;  %902 = vmatmul.mubr.bf16.gmra.mxu1 %v1619_v57  ;;  %v161_v56 = vld [vmem:[#allocation2 + $0x20] sm:$0xff] }
  0x8a   :  { %781 = vmatprep.mubr.bf16.mxu0 %v1620_v58  ;;  %909 = vmatprep.mubr.bf16.mxu1 %v1622_v59 }
  0x91   :  { %782 = vmatmul.mubr.bf16.gmra.mxu0 %v1624_v60  ;;  %910 = vmatmul.mubr.bf16.gmra.mxu1 %v1625_v61  ;;  %v193_v61 = vld [vmem:[#allocation2 + $0x120] sm:$0xff] }
  0x92   :  { %789 = vmatprep.mubr.bf16.mxu0 %v1626_v62  ;;  %917 = vmatprep.mubr.bf16.mxu1 %v1628_v63 }
  0x99   :  { %790 = vmatmul.mubr.bf16.gmra.mxu0 %v1630_v0  ;;  %918 = vmatmul.mubr.bf16.gmra.mxu1 %v1631_v1 }
  0x9a   :  { %797 = vmatprep.mubr.bf16.mxu0 %v1632_v2  ;;  %925 = vmatprep.mubr.bf16.mxu1 %v1634_v3 }
  0xa1   :  { %798 = vmatmul.mubr.bf16.gmra.mxu0 %v1636_v4  ;;  %926 = vmatmul.mubr.bf16.gmra.mxu1 %v1637_v5 }
  0xa2   :  { %805 = vmatprep.mubr.bf16.mxu0 %v1638_v6  ;;  %933 = vmatprep.mubr.bf16.mxu1 %v1640_v7 }
  0xa9   :  { %806 = vmatmul.mubr.bf16.gmra.mxu0 %v1642_v8  ;;  %934 = vmatmul.mubr.bf16.gmra.mxu1 %v1643_v9  ;;  %v162_v8 = vld [vmem:[#allocation2 + $0x28] sm:$0xff] }
  0xaa   :  { %813 = vmatprep.mubr.bf16.mxu0 %v1644_v10  ;;  %941 = vmatprep.mubr.bf16.mxu1 %v1646_v11 }
  0xb1   :  { %814 = vmatmul.mubr.bf16.gmra.mxu0 %v1648_v12  ;;  %942 = vmatmul.mubr.bf16.gmra.mxu1 %v1649_v13  ;;  %v194_v13 = vld [vmem:[#allocation2 + $0x128] sm:$0xff] }
  0xb2   :  { %821 = vmatprep.mubr.bf16.mxu0 %v1650_v14  ;;  %949 = vmatprep.mubr.bf16.mxu1 %v1652_v15 }
  0xb9   :  { %822 = vmatmul.mubr.bf16.gmra.mxu0 %v1654_v16  ;;  %950 = vmatmul.mubr.bf16.gmra.mxu1 %v1655_v17 }
 0x101   :  { %v703_v20 = vpop.f32.mrf.mxu0  ;;  %v831_v21 = vpop.f32.mrf.mxu1 }
 0x102   :  { %v958_v22 = vadd.f32 %v703_v20, %v157_v18  ;;  %v990_v23 = vadd.f32 %v831_v21, %v189_v19 }
 0x103   :  { %v705_v24 = vpop.f32.mrf.mxu0  ;;  %v833_v25 = vpop.f32.mrf.mxu1 }
 0x104   :  { %1023 = vst.msk [vmem:[#allocation2] sm:$0xff] %vm28_vm0, %v958_v22  ;;  %1055 = vst.msk [vmem:[#allocation2 + $0x100] sm:$0xff] %vm28_vm0, %v990_v23  ;;  %v163_v24 = vld [vmem:[#allocation2 + $0x30] sm:$0xff] }
 0x105   :  { %v706_v28 = vpop.f32.mrf.mxu0  ;;  %v834_v29 = vpop.f32.mrf.mxu1 }
 0x106   :  { %v959_v30 = vadd.f32 %v706_v28, %v158_v26  ;;  %v991_v31 = vadd.f32 %v834_v29, %v190_v27  ;;  %v195_v29 = vld [vmem:[#allocation2 + $0x130] sm:$0xff] }
 0x107   :  { %v708_v32 = vpop.f32.mrf.mxu0  ;;  %v836_v33 = vpop.f32.mrf.mxu1 }
 0x108   :  { %1024 = vst.msk [vmem:[#allocation2 + $0x8] sm:$0xff] %vm28_vm0, %v959_v30  ;;  %1056 = vst.msk [vmem:[#allocation2 + $0x108] sm:$0xff] %vm28_vm0, %v991_v31 }
 0x109   :  { %v711_v37 = vpop.f32.mrf.mxu0  ;;  %v839_v38 = vpop.f32.mrf.mxu1 }
 0x10a   :  { %v960_v40 = vadd.f32 %v711_v37, %v159_v34  ;;  %v992_v41 = vadd.f32 %v839_v38, %v191_v35 }
 0x10b   :  { %v1090_v43 = vld [vmem:[#allocation2] sm:$0xff]  ;;  %v713_v45 = vpop.f32.mrf.mxu0  ;;  %v841_v46 = vpop.f32.mrf.mxu1 }
 0x10c   :  { %v1122_v44 = vld [vmem:[#allocation2 + $0x100] sm:$0xff]  ;;  %v1161_v48 = vmul.f32 %v2106_v36, %v1090_v43  ;;  %1025 = vst.msk [vmem:[#allocation2 + $0x10] sm:$0xff] %vm28_vm0, %v960_v40  ;;  %1057 = vst.msk [vmem:[#allocation2 + $0x110] sm:$0xff] %vm28_vm0, %v992_v41 }
 0x10d   :  { %v1193_v49 = vmul.f32 %v2106_v36, %v1122_v44  ;;  %v714_v50 = vpop.f32.mrf.mxu0  ;;  %v842_v51 = vpop.f32.mrf.mxu1 }
 0x10e   :  { %v1232_v52 = vadd.f32 %v2111_v39, %v1161_v48  ;;  %v961_v54 = vadd.f32 %v714_v50, %v160_v42  ;;  %v993_v55 = vadd.f32 %v842_v51, %v192_v47  ;;  %v164_v42 = vld [vmem:[#allocation2 + $0x38] sm:$0xff] }
 0x10f   :  { %v1264_v53 = vadd.f32 %v2111_v39, %v1193_v49  ;;  %v1091_v57 = vld [vmem:[#allocation2 + $0x8] sm:$0xff]  ;;  %v716_v59 = vpop.f32.mrf.mxu0  ;;  %v844_v60 = vpop.f32.mrf.mxu1  ;;  %v196_v47 = vld [vmem:[#allocation2 + $0x138] sm:$0xff] }
 0x110   :  { %v1123_v58 = vld [vmem:[#allocation2 + $0x108] sm:$0xff]  ;;  %v1296_v62 = vmax.f32 %v1232_v52, 0.0  ;;  %v1162_v0 = vmul.f32 %v2106_v36, %v1091_v57  ;;  %1026 = vst.msk [vmem:[#allocation2 + $0x18] sm:$0xff] %vm28_vm0, %v961_v54  ;;  %1058 = vst.msk [vmem:[#allocation2 + $0x118] sm:$0xff] %vm28_vm0, %v993_v55 }
 0x111   :  { %v1328_v63 = vmax.f32 %v1264_v53, 0.0  ;;  %v1194_v1 = vmul.f32 %v2106_v36, %v1123_v58  ;;  %v719_v2 = vpop.f32.mrf.mxu0  ;;  %v847_v3 = vpop.f32.mrf.mxu1  ;;  %v165_v58 = vld [vmem:[#allocation2 + $0x40] sm:$0xff] }
 0x112   :  { %1360 = vst.msk [vmem:[%s2573_s6] sm:$0xff] %vm28_vm0, %v1296_v62  ;;  %v1233_v4 = vadd.f32 %v2111_v39, %v1162_v0  ;;  %v962_v6 = vadd.f32 %v719_v2, %v161_v56  ;;  %v994_v7 = vadd.f32 %v847_v3, %v193_v61 }
 0x113   :  { %1392 = vst.msk [vmem:[%s2573_s6 + $0x100] sm:$0xff] %vm28_vm0, %v1328_v63  ;;  %v1265_v5 = vadd.f32 %v2111_v39, %v1194_v1  ;;  %v1092_v9 = vld [vmem:[#allocation2 + $0x10] sm:$0xff]  ;;  %v721_v11 = vpop.f32.mrf.mxu0  ;;  %v849_v12 = vpop.f32.mrf.mxu1  ;;  %v197_v63 = vld [vmem:[#allocation2 + $0x140] sm:$0xff] }
 0x114   :  { %v1124_v10 = vld [vmem:[#allocation2 + $0x110] sm:$0xff]  ;;  %v1297_v14 = vmax.f32 %v1233_v4, 0.0  ;;  %v1163_v16 = vmul.f32 %v2106_v36, %v1092_v9  ;;  %1027 = vst.msk [vmem:[#allocation2 + $0x20] sm:$0xff] %vm28_vm0, %v962_v6  ;;  %1059 = vst.msk [vmem:[#allocation2 + $0x120] sm:$0xff] %vm28_vm0, %v994_v7 }
 0x115   :  { %v1329_v15 = vmax.f32 %v1265_v5, 0.0  ;;  %v1195_v17 = vmul.f32 %v2106_v36, %v1124_v10  ;;  %v722_v18 = vpop.f32.mrf.mxu0  ;;  %v850_v19 = vpop.f32.mrf.mxu1  ;;  %v166_v10 = vld [vmem:[#allocation2 + $0x48] sm:$0xff] }
 0x116   :  { %1361 = vst.msk [vmem:[%s2573_s6 + $0x8] sm:$0xff] %vm28_vm0, %v1297_v14  ;;  %v1234_v20 = vadd.f32 %v2111_v39, %v1163_v16  ;;  %v963_v22 = vadd.f32 %v722_v18, %v162_v8  ;;  %v995_v23 = vadd.f32 %v850_v19, %v194_v13 }
 0x117   :  { %1393 = vst.msk [vmem:[%s2573_s6 + $0x108] sm:$0xff] %vm28_vm0, %v1329_v15  ;;  %v1266_v21 = vadd.f32 %v2111_v39, %v1195_v17  ;;  %v1093_v25 = vld [vmem:[#allocation2 + $0x18] sm:$0xff]  ;;  %v724_v27 = vpop.f32.mrf.mxu0  ;;  %v852_v28 = vpop.f32.mrf.mxu1  ;;  %v198_v15 = vld [vmem:[#allocation2 + $0x148] sm:$0xff] }
 0x118   :  { %v1125_v26 = vld [vmem:[#allocation2 + $0x118] sm:$0xff]  ;;  %v1298_v30 = vmax.f32 %v1234_v20, 0.0  ;;  %v1164_v32 = vmul.f32 %v2106_v36, %v1093_v25  ;;  %1028 = vst.msk [vmem:[#allocation2 + $0x28] sm:$0xff] %vm28_vm0, %v963_v22  ;;  %1060 = vst.msk [vmem:[#allocation2 + $0x128] sm:$0xff] %vm28_vm0, %v995_v23 }
 0x119   :  { %v1330_v31 = vmax.f32 %v1266_v21, 0.0  ;;  %v1196_v33 = vmul.f32 %v2106_v36, %v1125_v26  ;;  %v727_v34 = vpop.f32.mrf.mxu0  ;;  %v855_v35 = vpop.f32.mrf.mxu1  ;;  %v167_v26 = vld [vmem:[#allocation2 + $0x50] sm:$0xff] }
 0x11a   :  { %1362 = vst.msk [vmem:[%s2573_s6 + $0x10] sm:$0xff] %vm28_vm0, %v1298_v30  ;;  %v1235_v37 = vadd.f32 %v2111_v39, %v1164_v32  ;;  %v964_v40 = vadd.f32 %v727_v34, %v163_v24  ;;  %v996_v41 = vadd.f32 %v855_v35, %v195_v29 }
 0x11b   :  { %1394 = vst.msk [vmem:[%s2573_s6 + $0x110] sm:$0xff] %vm28_vm0, %v1330_v31  ;;  %v1267_v38 = vadd.f32 %v2111_v39, %v1196_v33  ;;  %v1094_v43 = vld [vmem:[#allocation2 + $0x20] sm:$0xff]  ;;  %v729_v45 = vpop.f32.mrf.mxu0  ;;  %v857_v46 = vpop.f32.mrf.mxu1  ;;  %v199_v31 = vld [vmem:[#allocation2 + $0x150] sm:$0xff] }
 0x11c   :  { %v1126_v44 = vld [vmem:[#allocation2 + $0x120] sm:$0xff]  ;;  %v1299_v48 = vmax.f32 %v1235_v37, 0.0  ;;  %v1165_v50 = vmul.f32 %v2106_v36, %v1094_v43  ;;  %1029 = vst.msk [vmem:[#allocation2 + $0x30] sm:$0xff] %vm28_vm0, %v964_v40  ;;  %1061 = vst.msk [vmem:[#allocation2 + $0x130] sm:$0xff] %vm28_vm0, %v996_v41 }
 0x11d   :  { %v1331_v49 = vmax.f32 %v1267_v38, 0.0  ;;  %v1197_v51 = vmul.f32 %v2106_v36, %v1126_v44  ;;  %v730_v52 = vpop.f32.mrf.mxu0  ;;  %v858_v53 = vpop.f32.mrf.mxu1  ;;  %v168_v44 = vld [vmem:[#allocation2 + $0x58] sm:$0xff] }
 0x11e   :  { %1363 = vst.msk [vmem:[%s2573_s6 + $0x18] sm:$0xff] %vm28_vm0, %v1299_v48  ;;  %v1236_v54 = vadd.f32 %v2111_v39, %v1165_v50  ;;  %v965_v56 = vadd.f32 %v730_v52, %v164_v42  ;;  %v997_v57 = vadd.f32 %v858_v53, %v196_v47 }
 0x11f   :  { %1395 = vst.msk [vmem:[%s2573_s6 + $0x118] sm:$0xff] %vm28_vm0, %v1331_v49  ;;  %v1268_v55 = vadd.f32 %v2111_v39, %v1197_v51  ;;  %v1095_v59 = vld [vmem:[#allocation2 + $0x28] sm:$0xff]  ;;  %v732_v61 = vpop.f32.mrf.mxu0  ;;  %v860_v62 = vpop.f32.mrf.mxu1  ;;  %v200_v49 = vld [vmem:[#allocation2 + $0x158] sm:$0xff] }
 0x120   :  { %v1127_v60 = vld [vmem:[#allocation2 + $0x128] sm:$0xff]  ;;  %v1300_v0 = vmax.f32 %v1236_v54, 0.0  ;;  %v1166_v2 = vmul.f32 %v2106_v36, %v1095_v59  ;;  %1030 = vst.msk [vmem:[#allocation2 + $0x38] sm:$0xff] %vm28_vm0, %v965_v56  ;;  %1062 = vst.msk [vmem:[#allocation2 + $0x138] sm:$0xff] %vm28_vm0, %v997_v57 }
 0x121   :  { %v1332_v1 = vmax.f32 %v1268_v55, 0.0  ;;  %v1198_v3 = vmul.f32 %v2106_v36, %v1127_v60  ;;  %v735_v4 = vpop.f32.mrf.mxu0  ;;  %v863_v5 = vpop.f32.mrf.mxu1  ;;  %v169_v60 = vld [vmem:[#allocation2 + $0x60] sm:$0xff] }
 0x122   :  { %1364 = vst.msk [vmem:[%s2573_s6 + $0x20] sm:$0xff] %vm28_vm0, %v1300_v0  ;;  %v1237_v6 = vadd.f32 %v2111_v39, %v1166_v2  ;;  %v966_v8 = vadd.f32 %v735_v4, %v165_v58  ;;  %v998_v9 = vadd.f32 %v863_v5, %v197_v63 }
 0x123   :  { %1396 = vst.msk [vmem:[%s2573_s6 + $0x120] sm:$0xff] %vm28_vm0, %v1332_v1  ;;  %v1269_v7 = vadd.f32 %v2111_v39, %v1198_v3  ;;  %v1096_v11 = vld [vmem:[#allocation2 + $0x30] sm:$0xff]  ;;  %v737_v13 = vpop.f32.mrf.mxu0  ;;  %v865_v14 = vpop.f32.mrf.mxu1  ;;  %v201_v1 = vld [vmem:[#allocation2 + $0x160] sm:$0xff] }
 0x124   :  { %v1128_v12 = vld [vmem:[#allocation2 + $0x130] sm:$0xff]  ;;  %v1301_v16 = vmax.f32 %v1237_v6, 0.0  ;;  %v1167_v18 = vmul.f32 %v2106_v36, %v1096_v11  ;;  %1031 = vst.msk [vmem:[#allocation2 + $0x40] sm:$0xff] %vm28_vm0, %v966_v8  ;;  %1063 = vst.msk [vmem:[#allocation2 + $0x140] sm:$0xff] %vm28_vm0, %v998_v9 }
 0x125   :  { %v1333_v17 = vmax.f32 %v1269_v7, 0.0  ;;  %v1199_v19 = vmul.f32 %v2106_v36, %v1128_v12  ;;  %v738_v20 = vpop.f32.mrf.mxu0  ;;  %v866_v21 = vpop.f32.mrf.mxu1  ;;  %v170_v12 = vld [vmem:[#allocation2 + $0x68] sm:$0xff] }
 0x126   :  { %1365 = vst.msk [vmem:[%s2573_s6 + $0x28] sm:$0xff] %vm28_vm0, %v1301_v16  ;;  %v1238_v22 = vadd.f32 %v2111_v39, %v1167_v18  ;;  %v967_v24 = vadd.f32 %v738_v20, %v166_v10  ;;  %v999_v25 = vadd.f32 %v866_v21, %v198_v15 }
 0x127   :  { %1397 = vst.msk [vmem:[%s2573_s6 + $0x128] sm:$0xff] %vm28_vm0, %v1333_v17  ;;  %v1270_v23 = vadd.f32 %v2111_v39, %v1199_v19  ;;  %v1097_v27 = vld [vmem:[#allocation2 + $0x38] sm:$0xff]  ;;  %v740_v29 = vpop.f32.mrf.mxu0  ;;  %v868_v30 = vpop.f32.mrf.mxu1  ;;  %v202_v17 = vld [vmem:[#allocation2 + $0x168] sm:$0xff] }
 0x128   :  { %v1129_v28 = vld [vmem:[#allocation2 + $0x138] sm:$0xff]  ;;  %v1302_v32 = vmax.f32 %v1238_v22, 0.0  ;;  %v1168_v34 = vmul.f32 %v2106_v36, %v1097_v27  ;;  %1032 = vst.msk [vmem:[#allocation2 + $0x48] sm:$0xff] %vm28_vm0, %v967_v24  ;;  %1064 = vst.msk [vmem:[#allocation2 + $0x148] sm:$0xff] %vm28_vm0, %v999_v25 }
 0x129   :  { %v1334_v33 = vmax.f32 %v1270_v23, 0.0  ;;  %v1200_v35 = vmul.f32 %v2106_v36, %v1129_v28  ;;  %v743_v37 = vpop.f32.mrf.mxu0  ;;  %v871_v38 = vpop.f32.mrf.mxu1  ;;  %v171_v28 = vld [vmem:[#allocation2 + $0x70] sm:$0xff] }
 0x12a   :  { %1366 = vst.msk [vmem:[%s2573_s6 + $0x30] sm:$0xff] %vm28_vm0, %v1302_v32  ;;  %v1239_v40 = vadd.f32 %v2111_v39, %v1168_v34  ;;  %v968_v42 = vadd.f32 %v743_v37, %v167_v26  ;;  %v1000_v43 = vadd.f32 %v871_v38, %v199_v31 }
 0x12b   :  { %1398 = vst.msk [vmem:[%s2573_s6 + $0x130] sm:$0xff] %vm28_vm0, %v1334_v33  ;;  %v1271_v41 = vadd.f32 %v2111_v39, %v1200_v35  ;;  %v1098_v45 = vld [vmem:[#allocation2 + $0x40] sm:$0xff]  ;;  %v745_v47 = vpop.f32.mrf.mxu0  ;;  %v873_v48 = vpop.f32.mrf.mxu1  ;;  %v203_v33 = vld [vmem:[#allocation2 + $0x170] sm:$0xff] }
 0x12c   :  { %v1130_v46 = vld [vmem:[#allocation2 + $0x140] sm:$0xff]  ;;  %v1303_v50 = vmax.f32 %v1239_v40, 0.0  ;;  %v1169_v52 = vmul.f32 %v2106_v36, %v1098_v45  ;;  %1033 = vst.msk [vmem:[#allocation2 + $0x50] sm:$0xff] %vm28_vm0, %v968_v42  ;;  %1065 = vst.msk [vmem:[#allocation2 + $0x150] sm:$0xff] %vm28_vm0, %v1000_v43 }
 0x12d   :  { %v1335_v51 = vmax.f32 %v1271_v41, 0.0  ;;  %v1201_v53 = vmul.f32 %v2106_v36, %v1130_v46  ;;  %v746_v54 = vpop.f32.mrf.mxu0  ;;  %v874_v55 = vpop.f32.mrf.mxu1  ;;  %v172_v46 = vld [vmem:[#allocation2 + $0x78] sm:$0xff] }
 0x12e   :  { %1367 = vst.msk [vmem:[%s2573_s6 + $0x38] sm:$0xff] %vm28_vm0, %v1303_v50  ;;  %v1240_v56 = vadd.f32 %v2111_v39, %v1169_v52  ;;  %v969_v58 = vadd.f32 %v746_v54, %v168_v44  ;;  %v1001_v59 = vadd.f32 %v874_v55, %v200_v49 }
 0x12f   :  { %1399 = vst.msk [vmem:[%s2573_s6 + $0x138] sm:$0xff] %vm28_vm0, %v1335_v51  ;;  %v1272_v57 = vadd.f32 %v2111_v39, %v1201_v53  ;;  %v1099_v61 = vld [vmem:[#allocation2 + $0x48] sm:$0xff]  ;;  %v748_v63 = vpop.f32.mrf.mxu0  ;;  %v876_v0 = vpop.f32.mrf.mxu1  ;;  %v204_v51 = vld [vmem:[#allocation2 + $0x178] sm:$0xff] }
 0x130   :  { %v1131_v62 = vld [vmem:[#allocation2 + $0x148] sm:$0xff]  ;;  %v1304_v2 = vmax.f32 %v1240_v56, 0.0  ;;  %v1170_v4 = vmul.f32 %v2106_v36, %v1099_v61  ;;  %1034 = vst.msk [vmem:[#allocation2 + $0x58] sm:$0xff] %vm28_vm0, %v969_v58  ;;  %1066 = vst.msk [vmem:[#allocation2 + $0x158] sm:$0xff] %vm28_vm0, %v1001_v59 }
 0x131   :  { %v1336_v3 = vmax.f32 %v1272_v57, 0.0  ;;  %v1202_v5 = vmul.f32 %v2106_v36, %v1131_v62  ;;  %v751_v6 = vpop.f32.mrf.mxu0  ;;  %v879_v7 = vpop.f32.mrf.mxu1  ;;  %v173_v62 = vld [vmem:[#allocation2 + $0x80] sm:$0xff] }
 0x132   :  { %1368 = vst.msk [vmem:[%s2573_s6 + $0x40] sm:$0xff] %vm28_vm0, %v1304_v2  ;;  %v1241_v8 = vadd.f32 %v2111_v39, %v1170_v4  ;;  %v970_v10 = vadd.f32 %v751_v6, %v169_v60  ;;  %v1002_v11 = vadd.f32 %v879_v7, %v201_v1 }
 0x133   :  { %1400 = vst.msk [vmem:[%s2573_s6 + $0x140] sm:$0xff] %vm28_vm0, %v1336_v3  ;;  %v1273_v9 = vadd.f32 %v2111_v39, %v1202_v5  ;;  %v1100_v13 = vld [vmem:[#allocation2 + $0x50] sm:$0xff]  ;;  %v753_v15 = vpop.f32.mrf.mxu0  ;;  %v881_v16 = vpop.f32.mrf.mxu1  ;;  %v205_v3 = vld [vmem:[#allocation2 + $0x180] sm:$0xff] }
 0x134   :  { %v1132_v14 = vld [vmem:[#allocation2 + $0x150] sm:$0xff]  ;;  %v1305_v18 = vmax.f32 %v1241_v8, 0.0  ;;  %v1171_v20 = vmul.f32 %v2106_v36, %v1100_v13  ;;  %1035 = vst.msk [vmem:[#allocation2 + $0x60] sm:$0xff] %vm28_vm0, %v970_v10  ;;  %1067 = vst.msk [vmem:[#allocation2 + $0x160] sm:$0xff] %vm28_vm0, %v1002_v11 }
 0x135   :  { %v1337_v19 = vmax.f32 %v1273_v9, 0.0  ;;  %v1203_v21 = vmul.f32 %v2106_v36, %v1132_v14  ;;  %v754_v22 = vpop.f32.mrf.mxu0  ;;  %v882_v23 = vpop.f32.mrf.mxu1  ;;  %v174_v14 = vld [vmem:[#allocation2 + $0x88] sm:$0xff] }
 0x136   :  { %1369 = vst.msk [vmem:[%s2573_s6 + $0x48] sm:$0xff] %vm28_vm0, %v1305_v18  ;;  %v1242_v24 = vadd.f32 %v2111_v39, %v1171_v20  ;;  %v971_v26 = vadd.f32 %v754_v22, %v170_v12  ;;  %v1003_v27 = vadd.f32 %v882_v23, %v202_v17 }
 0x137   :  { %1401 = vst.msk [vmem:[%s2573_s6 + $0x148] sm:$0xff] %vm28_vm0, %v1337_v19  ;;  %v1274_v25 = vadd.f32 %v2111_v39, %v1203_v21  ;;  %v1101_v29 = vld [vmem:[#allocation2 + $0x58] sm:$0xff]  ;;  %v756_v31 = vpop.f32.mrf.mxu0  ;;  %v884_v32 = vpop.f32.mrf.mxu1  ;;  %v206_v19 = vld [vmem:[#allocation2 + $0x188] sm:$0xff] }
 0x138   :  { %v1133_v30 = vld [vmem:[#allocation2 + $0x158] sm:$0xff]  ;;  %v1306_v34 = vmax.f32 %v1242_v24, 0.0  ;;  %v1172_v37 = vmul.f32 %v2106_v36, %v1101_v29  ;;  %1036 = vst.msk [vmem:[#allocation2 + $0x68] sm:$0xff] %vm28_vm0, %v971_v26  ;;  %1068 = vst.msk [vmem:[#allocation2 + $0x168] sm:$0xff] %vm28_vm0, %v1003_v27 }
 0x139   :  { %v1338_v35 = vmax.f32 %v1274_v25, 0.0  ;;  %v1204_v38 = vmul.f32 %v2106_v36, %v1133_v30  ;;  %v759_v40 = vpop.f32.mrf.mxu0  ;;  %v887_v41 = vpop.f32.mrf.mxu1  ;;  %v175_v30 = vld [vmem:[#allocation2 + $0x90] sm:$0xff] }
 0x13a   :  { %1370 = vst.msk [vmem:[%s2573_s6 + $0x50] sm:$0xff] %vm28_vm0, %v1306_v34  ;;  %v1243_v42 = vadd.f32 %v2111_v39, %v1172_v37  ;;  %v972_v44 = vadd.f32 %v759_v40, %v171_v28  ;;  %v1004_v45 = vadd.f32 %v887_v41, %v203_v33 }
 0x13b   :  { %1402 = vst.msk [vmem:[%s2573_s6 + $0x150] sm:$0xff] %vm28_vm0, %v1338_v35  ;;  %v1275_v43 = vadd.f32 %v2111_v39, %v1204_v38  ;;  %v1102_v47 = vld [vmem:[#allocation2 + $0x60] sm:$0xff]  ;;  %v761_v49 = vpop.f32.mrf.mxu0  ;;  %v889_v50 = vpop.f32.mrf.mxu1  ;;  %v207_v35 = vld [vmem:[#allocation2 + $0x190] sm:$0xff] }
 0x13c   :  { %v1134_v48 = vld [vmem:[#allocation2 + $0x160] sm:$0xff]  ;;  %v1307_v52 = vmax.f32 %v1243_v42, 0.0  ;;  %v1173_v54 = vmul.f32 %v2106_v36, %v1102_v47  ;;  %1037 = vst.msk [vmem:[#allocation2 + $0x70] sm:$0xff] %vm28_vm0, %v972_v44  ;;  %1069 = vst.msk [vmem:[#allocation2 + $0x170] sm:$0xff] %vm28_vm0, %v1004_v45 }
 0x13d   :  { %v1339_v53 = vmax.f32 %v1275_v43, 0.0  ;;  %v1205_v55 = vmul.f32 %v2106_v36, %v1134_v48  ;;  %v762_v56 = vpop.f32.mrf.mxu0  ;;  %v890_v57 = vpop.f32.mrf.mxu1  ;;  %v176_v48 = vld [vmem:[#allocation2 + $0x98] sm:$0xff] }
 0x13e   :  { %1371 = vst.msk [vmem:[%s2573_s6 + $0x58] sm:$0xff] %vm28_vm0, %v1307_v52  ;;  %v1244_v58 = vadd.f32 %v2111_v39, %v1173_v54  ;;  %v973_v60 = vadd.f32 %v762_v56, %v172_v46  ;;  %v1005_v61 = vadd.f32 %v890_v57, %v204_v51 }
 0x13f   :  { %1403 = vst.msk [vmem:[%s2573_s6 + $0x158] sm:$0xff] %vm28_vm0, %v1339_v53  ;;  %v1276_v59 = vadd.f32 %v2111_v39, %v1205_v55  ;;  %v1103_v63 = vld [vmem:[#allocation2 + $0x68] sm:$0xff]  ;;  %v764_v1 = vpop.f32.mrf.mxu0  ;;  %v892_v2 = vpop.f32.mrf.mxu1  ;;  %v208_v53 = vld [vmem:[#allocation2 + $0x198] sm:$0xff] }
 0x140   :  { %v1135_v0 = vld [vmem:[#allocation2 + $0x168] sm:$0xff]  ;;  %v1308_v4 = vmax.f32 %v1244_v58, 0.0  ;;  %v1174_v6 = vmul.f32 %v2106_v36, %v1103_v63  ;;  %1038 = vst.msk [vmem:[#allocation2 + $0x78] sm:$0xff] %vm28_vm0, %v973_v60  ;;  %1070 = vst.msk [vmem:[#allocation2 + $0x178] sm:$0xff] %vm28_vm0, %v1005_v61 }
 0x141   :  { %v1340_v5 = vmax.f32 %v1276_v59, 0.0  ;;  %v1206_v7 = vmul.f32 %v2106_v36, %v1135_v0  ;;  %v767_v8 = vpop.f32.mrf.mxu0  ;;  %v895_v9 = vpop.f32.mrf.mxu1  ;;  %v177_v0 = vld [vmem:[#allocation2 + $0xa0] sm:$0xff] }
 0x142   :  { %1372 = vst.msk [vmem:[%s2573_s6 + $0x60] sm:$0xff] %vm28_vm0, %v1308_v4  ;;  %v1245_v10 = vadd.f32 %v2111_v39, %v1174_v6  ;;  %v974_v12 = vadd.f32 %v767_v8, %v173_v62  ;;  %v1006_v13 = vadd.f32 %v895_v9, %v205_v3 }
 0x143   :  { %1404 = vst.msk [vmem:[%s2573_s6 + $0x160] sm:$0xff] %vm28_vm0, %v1340_v5  ;;  %v1277_v11 = vadd.f32 %v2111_v39, %v1206_v7  ;;  %v1104_v15 = vld [vmem:[#allocation2 + $0x70] sm:$0xff]  ;;  %v769_v17 = vpop.f32.mrf.mxu0  ;;  %v897_v18 = vpop.f32.mrf.mxu1  ;;  %v209_v5 = vld [vmem:[#allocation2 + $0x1a0] sm:$0xff] }
 0x144   :  { %v1136_v16 = vld [vmem:[#allocation2 + $0x170] sm:$0xff]  ;;  %v1309_v20 = vmax.f32 %v1245_v10, 0.0  ;;  %v1175_v22 = vmul.f32 %v2106_v36, %v1104_v15  ;;  %1039 = vst.msk [vmem:[#allocation2 + $0x80] sm:$0xff] %vm28_vm0, %v974_v12  ;;  %1071 = vst.msk [vmem:[#allocation2 + $0x180] sm:$0xff] %vm28_vm0, %v1006_v13 }
 0x145   :  { %v1341_v21 = vmax.f32 %v1277_v11, 0.0  ;;  %v1207_v23 = vmul.f32 %v2106_v36, %v1136_v16  ;;  %v770_v24 = vpop.f32.mrf.mxu0  ;;  %v898_v25 = vpop.f32.mrf.mxu1  ;;  %v178_v16 = vld [vmem:[#allocation2 + $0xa8] sm:$0xff] }
 0x146   :  { %1373 = vst.msk [vmem:[%s2573_s6 + $0x68] sm:$0xff] %vm28_vm0, %v1309_v20  ;;  %v1246_v26 = vadd.f32 %v2111_v39, %v1175_v22  ;;  %v975_v28 = vadd.f32 %v770_v24, %v174_v14  ;;  %v1007_v29 = vadd.f32 %v898_v25, %v206_v19 }
 0x147   :  { %1405 = vst.msk [vmem:[%s2573_s6 + $0x168] sm:$0xff] %vm28_vm0, %v1341_v21  ;;  %v1278_v27 = vadd.f32 %v2111_v39, %v1207_v23  ;;  %v1105_v31 = vld [vmem:[#allocation2 + $0x78] sm:$0xff]  ;;  %v772_v33 = vpop.f32.mrf.mxu0  ;;  %v900_v34 = vpop.f32.mrf.mxu1  ;;  %v210_v21 = vld [vmem:[#allocation2 + $0x1a8] sm:$0xff] }
 0x148   :  { %v1137_v32 = vld [vmem:[#allocation2 + $0x178] sm:$0xff]  ;;  %v1310_v37 = vmax.f32 %v1246_v26, 0.0  ;;  %v1176_v40 = vmul.f32 %v2106_v36, %v1105_v31  ;;  %1040 = vst.msk [vmem:[#allocation2 + $0x88] sm:$0xff] %vm28_vm0, %v975_v28  ;;  %1072 = vst.msk [vmem:[#allocation2 + $0x188] sm:$0xff] %vm28_vm0, %v1007_v29 }
 0x149   :  { %v1342_v38 = vmax.f32 %v1278_v27, 0.0  ;;  %v1208_v41 = vmul.f32 %v2106_v36, %v1137_v32  ;;  %v775_v42 = vpop.f32.mrf.mxu0  ;;  %v903_v43 = vpop.f32.mrf.mxu1  ;;  %v179_v32 = vld [vmem:[#allocation2 + $0xb0] sm:$0xff] }
 0x14a   :  { %1374 = vst.msk [vmem:[%s2573_s6 + $0x70] sm:$0xff] %vm28_vm0, %v1310_v37  ;;  %v1247_v44 = vadd.f32 %v2111_v39, %v1176_v40  ;;  %v976_v46 = vadd.f32 %v775_v42, %v175_v30  ;;  %v1008_v47 = vadd.f32 %v903_v43, %v207_v35 }
 0x14b   :  { %1406 = vst.msk [vmem:[%s2573_s6 + $0x170] sm:$0xff] %vm28_vm0, %v1342_v38  ;;  %v1279_v45 = vadd.f32 %v2111_v39, %v1208_v41  ;;  %v1106_v49 = vld [vmem:[#allocation2 + $0x80] sm:$0xff]  ;;  %v777_v51 = vpop.f32.mrf.mxu0  ;;  %v905_v52 = vpop.f32.mrf.mxu1  ;;  %v211_v38 = vld [vmem:[#allocation2 + $0x1b0] sm:$0xff] }
 0x14c   :  { %v1138_v50 = vld [vmem:[#allocation2 + $0x180] sm:$0xff]  ;;  %v1311_v54 = vmax.f32 %v1247_v44, 0.0  ;;  %v1177_v56 = vmul.f32 %v2106_v36, %v1106_v49  ;;  %1041 = vst.msk [vmem:[#allocation2 + $0x90] sm:$0xff] %vm28_vm0, %v976_v46  ;;  %1073 = vst.msk [vmem:[#allocation2 + $0x190] sm:$0xff] %vm28_vm0, %v1008_v47 }
 0x14d   :  { %v1343_v55 = vmax.f32 %v1279_v45, 0.0  ;;  %v1209_v57 = vmul.f32 %v2106_v36, %v1138_v50  ;;  %v778_v58 = vpop.f32.mrf.mxu0  ;;  %v906_v59 = vpop.f32.mrf.mxu1  ;;  %v180_v50 = vld [vmem:[#allocation2 + $0xb8] sm:$0xff] }
 0x14e   :  { %1375 = vst.msk [vmem:[%s2573_s6 + $0x78] sm:$0xff] %vm28_vm0, %v1311_v54  ;;  %v1248_v60 = vadd.f32 %v2111_v39, %v1177_v56  ;;  %v977_v62 = vadd.f32 %v778_v58, %v176_v48  ;;  %v1009_v63 = vadd.f32 %v906_v59, %v208_v53 }
 0x14f   :  { %1407 = vst.msk [vmem:[%s2573_s6 + $0x178] sm:$0xff] %vm28_vm0, %v1343_v55  ;;  %v1280_v61 = vadd.f32 %v2111_v39, %v1209_v57  ;;  %v1107_v1 = vld [vmem:[#allocation2 + $0x88] sm:$0xff]  ;;  %v780_v3 = vpop.f32.mrf.mxu0  ;;  %v908_v4 = vpop.f32.mrf.mxu1  ;;  %v212_v55 = vld [vmem:[#allocation2 + $0x1b8] sm:$0xff] }
 0x150   :  { %v1139_v2 = vld [vmem:[#allocation2 + $0x188] sm:$0xff]  ;;  %v1312_v6 = vmax.f32 %v1248_v60, 0.0  ;;  %v1178_v8 = vmul.f32 %v2106_v36, %v1107_v1  ;;  %1042 = vst.msk [vmem:[#allocation2 + $0x98] sm:$0xff] %vm28_vm0, %v977_v62  ;;  %1074 = vst.msk [vmem:[#allocation2 + $0x198] sm:$0xff] %vm28_vm0, %v1009_v63 }
 0x151   :  { %v1344_v7 = vmax.f32 %v1280_v61, 0.0  ;;  %v1210_v9 = vmul.f32 %v2106_v36, %v1139_v2  ;;  %v783_v10 = vpop.f32.mrf.mxu0  ;;  %v911_v11 = vpop.f32.mrf.mxu1  ;;  %v181_v2 = vld [vmem:[#allocation2 + $0xc0] sm:$0xff] }
 0x152   :  { %1376 = vst.msk [vmem:[%s2573_s6 + $0x80] sm:$0xff] %vm28_vm0, %v1312_v6  ;;  %v1249_v12 = vadd.f32 %v2111_v39, %v1178_v8  ;;  %v978_v14 = vadd.f32 %v783_v10, %v177_v0  ;;  %v1010_v15 = vadd.f32 %v911_v11, %v209_v5 }
 0x153   :  { %1408 = vst.msk [vmem:[%s2573_s6 + $0x180] sm:$0xff] %vm28_vm0, %v1344_v7  ;;  %v1281_v13 = vadd.f32 %v2111_v39, %v1210_v9  ;;  %v1108_v17 = vld [vmem:[#allocation2 + $0x90] sm:$0xff]  ;;  %v785_v19 = vpop.f32.mrf.mxu0  ;;  %v913_v20 = vpop.f32.mrf.mxu1  ;;  %v213_v7 = vld [vmem:[#allocation2 + $0x1c0] sm:$0xff] }
 0x154   :  { %v1140_v18 = vld [vmem:[#allocation2 + $0x190] sm:$0xff]  ;;  %v1313_v22 = vmax.f32 %v1249_v12, 0.0  ;;  %v1179_v24 = vmul.f32 %v2106_v36, %v1108_v17  ;;  %1043 = vst.msk [vmem:[#allocation2 + $0xa0] sm:$0xff] %vm28_vm0, %v978_v14  ;;  %1075 = vst.msk [vmem:[#allocation2 + $0x1a0] sm:$0xff] %vm28_vm0, %v1010_v15 }
 0x155   :  { %v1345_v23 = vmax.f32 %v1281_v13, 0.0  ;;  %v1211_v25 = vmul.f32 %v2106_v36, %v1140_v18  ;;  %v786_v26 = vpop.f32.mrf.mxu0  ;;  %v914_v27 = vpop.f32.mrf.mxu1  ;;  %v182_v18 = vld [vmem:[#allocation2 + $0xc8] sm:$0xff] }
 0x156   :  { %1377 = vst.msk [vmem:[%s2573_s6 + $0x88] sm:$0xff] %vm28_vm0, %v1313_v22  ;;  %v1250_v28 = vadd.f32 %v2111_v39, %v1179_v24  ;;  %v979_v30 = vadd.f32 %v786_v26, %v178_v16  ;;  %v1011_v31 = vadd.f32 %v914_v27, %v210_v21 }
 0x157   :  { %1409 = vst.msk [vmem:[%s2573_s6 + $0x188] sm:$0xff] %vm28_vm0, %v1345_v23  ;;  %v1282_v29 = vadd.f32 %v2111_v39, %v1211_v25  ;;  %v1109_v33 = vld [vmem:[#allocation2 + $0x98] sm:$0xff]  ;;  %v788_v35 = vpop.f32.mrf.mxu0  ;;  %v916_v37 = vpop.f32.mrf.mxu1  ;;  %v214_v23 = vld [vmem:[#allocation2 + $0x1c8] sm:$0xff] }
 0x158   :  { %v1141_v34 = vld [vmem:[#allocation2 + $0x198] sm:$0xff]  ;;  %v1314_v40 = vmax.f32 %v1250_v28, 0.0  ;;  %v1180_v42 = vmul.f32 %v2106_v36, %v1109_v33  ;;  %1044 = vst.msk [vmem:[#allocation2 + $0xa8] sm:$0xff] %vm28_vm0, %v979_v30  ;;  %1076 = vst.msk [vmem:[#allocation2 + $0x1a8] sm:$0xff] %vm28_vm0, %v1011_v31 }
 0x159   :  { %v1346_v41 = vmax.f32 %v1282_v29, 0.0  ;;  %v1212_v43 = vmul.f32 %v2106_v36, %v1141_v34  ;;  %v791_v44 = vpop.f32.mrf.mxu0  ;;  %v919_v45 = vpop.f32.mrf.mxu1  ;;  %v183_v34 = vld [vmem:[#allocation2 + $0xd0] sm:$0xff] }
 0x15a   :  { %1378 = vst.msk [vmem:[%s2573_s6 + $0x90] sm:$0xff] %vm28_vm0, %v1314_v40  ;;  %v1251_v46 = vadd.f32 %v2111_v39, %v1180_v42  ;;  %v980_v48 = vadd.f32 %v791_v44, %v179_v32  ;;  %v1012_v49 = vadd.f32 %v919_v45, %v211_v38 }
 0x15b   :  { %1410 = vst.msk [vmem:[%s2573_s6 + $0x190] sm:$0xff] %vm28_vm0, %v1346_v41  ;;  %v1283_v47 = vadd.f32 %v2111_v39, %v1212_v43  ;;  %v1110_v51 = vld [vmem:[#allocation2 + $0xa0] sm:$0xff]  ;;  %v793_v53 = vpop.f32.mrf.mxu0  ;;  %v921_v54 = vpop.f32.mrf.mxu1  ;;  %v215_v41 = vld [vmem:[#allocation2 + $0x1d0] sm:$0xff] }
 0x15c   :  { %v1142_v52 = vld [vmem:[#allocation2 + $0x1a0] sm:$0xff]  ;;  %v1315_v56 = vmax.f32 %v1251_v46, 0.0  ;;  %v1181_v58 = vmul.f32 %v2106_v36, %v1110_v51  ;;  %1045 = vst.msk [vmem:[#allocation2 + $0xb0] sm:$0xff] %vm28_vm0, %v980_v48  ;;  %1077 = vst.msk [vmem:[#allocation2 + $0x1b0] sm:$0xff] %vm28_vm0, %v1012_v49 }
 0x15d   :  { %v1347_v57 = vmax.f32 %v1283_v47, 0.0  ;;  %v1213_v59 = vmul.f32 %v2106_v36, %v1142_v52  ;;  %v794_v60 = vpop.f32.mrf.mxu0  ;;  %v922_v61 = vpop.f32.mrf.mxu1  ;;  %v184_v52 = vld [vmem:[#allocation2 + $0xd8] sm:$0xff] }
 0x15e   :  { %1379 = vst.msk [vmem:[%s2573_s6 + $0x98] sm:$0xff] %vm28_vm0, %v1315_v56  ;;  %v1252_v62 = vadd.f32 %v2111_v39, %v1181_v58  ;;  %v981_v0 = vadd.f32 %v794_v60, %v180_v50  ;;  %v1013_v1 = vadd.f32 %v922_v61, %v212_v55 }
 0x15f   :  { %1411 = vst.msk [vmem:[%s2573_s6 + $0x198] sm:$0xff] %vm28_vm0, %v1347_v57  ;;  %v1284_v63 = vadd.f32 %v2111_v39, %v1213_v59  ;;  %v1111_v3 = vld [vmem:[#allocation2 + $0xa8] sm:$0xff]  ;;  %v796_v5 = vpop.f32.mrf.mxu0  ;;  %v924_v6 = vpop.f32.mrf.mxu1  ;;  %v216_v57 = vld [vmem:[#allocation2 + $0x1d8] sm:$0xff] }
 0x160   :  { %v1143_v4 = vld [vmem:[#allocation2 + $0x1a8] sm:$0xff]  ;;  %v1316_v8 = vmax.f32 %v1252_v62, 0.0  ;;  %v1182_v10 = vmul.f32 %v2106_v36, %v1111_v3  ;;  %1046 = vst.msk [vmem:[#allocation2 + $0xb8] sm:$0xff] %vm28_vm0, %v981_v0  ;;  %1078 = vst.msk [vmem:[#allocation2 + $0x1b8] sm:$0xff] %vm28_vm0, %v1013_v1 }
 0x161   :  { %v1348_v9 = vmax.f32 %v1284_v63, 0.0  ;;  %v1214_v11 = vmul.f32 %v2106_v36, %v1143_v4  ;;  %v799_v12 = vpop.f32.mrf.mxu0  ;;  %v927_v13 = vpop.f32.mrf.mxu1  ;;  %v185_v4 = vld [vmem:[#allocation2 + $0xe0] sm:$0xff] }
 0x162   :  { %1380 = vst.msk [vmem:[%s2573_s6 + $0xa0] sm:$0xff] %vm28_vm0, %v1316_v8  ;;  %v1253_v14 = vadd.f32 %v2111_v39, %v1182_v10  ;;  %v982_v16 = vadd.f32 %v799_v12, %v181_v2  ;;  %v1014_v17 = vadd.f32 %v927_v13, %v213_v7  ;;  %v2459_v13 = vld [vmem:[%s2571_s4] ss:$0 sm:$0xff] }
 0x163   :  { %1412 = vst.msk [vmem:[%s2573_s6 + $0x1a0] sm:$0xff] %vm28_vm0, %v1348_v9  ;;  %v1285_v15 = vadd.f32 %v2111_v39, %v1214_v11  ;;  %v1112_v19 = vld [vmem:[#allocation2 + $0xb0] sm:$0xff]  ;;  %v801_v21 = vpop.f32.mrf.mxu0  ;;  %v929_v22 = vpop.f32.mrf.mxu1  ;;  %v217_v9 = vld [vmem:[#allocation2 + $0x1e0] sm:$0xff] }
 0x164   :  { %v1144_v20 = vld [vmem:[#allocation2 + $0x1b0] sm:$0xff]  ;;  %v1317_v24 = vmax.f32 %v1253_v14, 0.0  ;;  %v1183_v26 = vmul.f32 %v2106_v36, %v1112_v19  ;;  %1047 = vst.msk [vmem:[#allocation2 + $0xc0] sm:$0xff] %vm28_vm0, %v982_v16  ;;  %1079 = vst.msk [vmem:[#allocation2 + $0x1c0] sm:$0xff] %vm28_vm0, %v1014_v17 }
 0x165   :  { %v1349_v25 = vmax.f32 %v1285_v15, 0.0  ;;  %v1215_v27 = vmul.f32 %v2106_v36, %v1144_v20  ;;  %v802_v28 = vpop.f32.mrf.mxu0  ;;  %v930_v29 = vpop.f32.mrf.mxu1  ;;  %v186_v20 = vld [vmem:[#allocation2 + $0xe8] sm:$0xff] }
 0x166   :  { %1381 = vst.msk [vmem:[%s2573_s6 + $0xa8] sm:$0xff] %vm28_vm0, %v1317_v24  ;;  %v1254_v30 = vadd.f32 %v2111_v39, %v1183_v26  ;;  %v983_v32 = vadd.f32 %v802_v28, %v182_v18  ;;  %v1015_v33 = vadd.f32 %v930_v29, %v214_v23 }
 0x167   :  { %1413 = vst.msk [vmem:[%s2573_s6 + $0x1a8] sm:$0xff] %vm28_vm0, %v1349_v25  ;;  %v1286_v31 = vadd.f32 %v2111_v39, %v1215_v27  ;;  %v1113_v35 = vld [vmem:[#allocation2 + $0xb8] sm:$0xff]  ;;  %v804_v38 = vpop.f32.mrf.mxu0  ;;  %v932_v40 = vpop.f32.mrf.mxu1  ;;  %v218_v25 = vld [vmem:[#allocation2 + $0x1e8] sm:$0xff] }
 0x168   :  { %v1145_v37 = vld [vmem:[#allocation2 + $0x1b8] sm:$0xff]  ;;  %v1318_v42 = vmax.f32 %v1254_v30, 0.0  ;;  %v1184_v44 = vmul.f32 %v2106_v36, %v1113_v35  ;;  %1048 = vst.msk [vmem:[#allocation2 + $0xc8] sm:$0xff] %vm28_vm0, %v983_v32  ;;  %1080 = vst.msk [vmem:[#allocation2 + $0x1c8] sm:$0xff] %vm28_vm0, %v1015_v33 }
 0x169   :  { %v1350_v43 = vmax.f32 %v1286_v31, 0.0  ;;  %v1216_v45 = vmul.f32 %v2106_v36, %v1145_v37  ;;  %v807_v46 = vpop.f32.mrf.mxu0  ;;  %v935_v47 = vpop.f32.mrf.mxu1  ;;  %v187_v37 = vld [vmem:[#allocation2 + $0xf0] sm:$0xff] }
 0x16a   :  { %1382 = vst.msk [vmem:[%s2573_s6 + $0xb0] sm:$0xff] %vm28_vm0, %v1318_v42  ;;  %v1255_v48 = vadd.f32 %v2111_v39, %v1184_v44  ;;  %v984_v50 = vadd.f32 %v807_v46, %v183_v34  ;;  %v1016_v51 = vadd.f32 %v935_v47, %v215_v41 }
 0x16b   :  { %1414 = vst.msk [vmem:[%s2573_s6 + $0x1b0] sm:$0xff] %vm28_vm0, %v1350_v43  ;;  %v1287_v49 = vadd.f32 %v2111_v39, %v1216_v45  ;;  %v1114_v53 = vld [vmem:[#allocation2 + $0xc0] sm:$0xff]  ;;  %v809_v55 = vpop.f32.mrf.mxu0  ;;  %v937_v56 = vpop.f32.mrf.mxu1  ;;  %v219_v43 = vld [vmem:[#allocation2 + $0x1f0] sm:$0xff] }
 0x16c   :  { %v1146_v54 = vld [vmem:[#allocation2 + $0x1c0] sm:$0xff]  ;;  %v1319_v58 = vmax.f32 %v1255_v48, 0.0  ;;  %v1185_v60 = vmul.f32 %v2106_v36, %v1114_v53  ;;  %1049 = vst.msk [vmem:[#allocation2 + $0xd0] sm:$0xff] %vm28_vm0, %v984_v50  ;;  %1081 = vst.msk [vmem:[#allocation2 + $0x1d0] sm:$0xff] %vm28_vm0, %v1016_v51 }
 0x16d   :  { %v1351_v59 = vmax.f32 %v1287_v49, 0.0  ;;  %v1217_v61 = vmul.f32 %v2106_v36, %v1146_v54  ;;  %v810_v62 = vpop.f32.mrf.mxu0  ;;  %v938_v63 = vpop.f32.mrf.mxu1  ;;  %v188_v54 = vld [vmem:[#allocation2 + $0xf8] sm:$0xff] }
 0x16e   :  { %1383 = vst.msk [vmem:[%s2573_s6 + $0xb8] sm:$0xff] %vm28_vm0, %v1319_v58  ;;  %v1256_v0 = vadd.f32 %v2111_v39, %v1185_v60  ;;  %v985_v2 = vadd.f32 %v810_v62, %v184_v52  ;;  %v1017_v3 = vadd.f32 %v938_v63, %v216_v57 }
 0x16f   :  { %1415 = vst.msk [vmem:[%s2573_s6 + $0x1b8] sm:$0xff] %vm28_vm0, %v1351_v59  ;;  %v1288_v1 = vadd.f32 %v2111_v39, %v1217_v61  ;;  %v1115_v5 = vld [vmem:[#allocation2 + $0xc8] sm:$0xff]  ;;  %v812_v7 = vpop.f32.mrf.mxu0  ;;  %v940_v8 = vpop.f32.mrf.mxu1  ;;  %v220_v59 = vld [vmem:[#allocation2 + $0x1f8] sm:$0xff] }
 0x170   :  { %v1147_v6 = vld [vmem:[#allocation2 + $0x1c8] sm:$0xff]  ;;  %v1320_v10 = vmax.f32 %v1256_v0, 0.0  ;;  %v1186_v12 = vmul.f32 %v2106_v36, %v1115_v5  ;;  %1050 = vst.msk [vmem:[#allocation2 + $0xd8] sm:$0xff] %vm28_vm0, %v985_v2  ;;  %1082 = vst.msk [vmem:[#allocation2 + $0x1d8] sm:$0xff] %vm28_vm0, %v1017_v3  ;;  %v2475_v36 = vld [vmem:[%s2572_s5] ss:$0 sm:$0xff] }
 0x171   :  { %v1352_v11 = vmax.f32 %v1288_v1, 0.0  ;;  %v1218_v14 = vmul.f32 %v2459_v13, %v1147_v6  ;;  %v815_v39 = vpop.f32.mrf.mxu0  ;;  %v943_v15 = vpop.f32.mrf.mxu1 }
 0x172   :  { %1384 = vst.msk [vmem:[%s2573_s6 + $0xc0] sm:$0xff] %vm28_vm0, %v1320_v10  ;;  %v1257_v16 = vadd.f32 %v2475_v36, %v1186_v12  ;;  %v986_v18 = vadd.f32 %v815_v39, %v185_v4  ;;  %v1018_v19 = vadd.f32 %v943_v15, %v217_v9 }
 0x173   :  { %1416 = vst.msk [vmem:[%s2573_s6 + $0x1c0] sm:$0xff] %vm28_vm0, %v1352_v11  ;;  %v1289_v17 = vadd.f32 %v2475_v36, %v1218_v14  ;;  %v1116_v21 = vld [vmem:[#allocation2 + $0xd0] sm:$0xff]  ;;  %v817_v23 = vpop.f32.mrf.mxu0  ;;  %v945_v24 = vpop.f32.mrf.mxu1 }
 0x174   :  { %v1148_v22 = vld [vmem:[#allocation2 + $0x1d0] sm:$0xff]  ;;  %v1321_v26 = vmax.f32 %v1257_v16, 0.0  ;;  %v1187_v28 = vmul.f32 %v2459_v13, %v1116_v21  ;;  %1051 = vst.msk [vmem:[#allocation2 + $0xe0] sm:$0xff] %vm28_vm0, %v986_v18  ;;  %1083 = vst.msk [vmem:[#allocation2 + $0x1e0] sm:$0xff] %vm28_vm0, %v1018_v19 }
 0x175   :  { %v1353_v27 = vmax.f32 %v1289_v17, 0.0  ;;  %v1219_v29 = vmul.f32 %v2459_v13, %v1148_v22  ;;  %v818_v30 = vpop.f32.mrf.mxu0  ;;  %v946_v31 = vpop.f32.mrf.mxu1 }
 0x176   :  { %1385 = vst.msk [vmem:[%s2573_s6 + $0xc8] sm:$0xff] %vm28_vm0, %v1321_v26  ;;  %v1258_v32 = vadd.f32 %v2475_v36, %v1187_v28  ;;  %v987_v34 = vadd.f32 %v818_v30, %v186_v20  ;;  %v1019_v35 = vadd.f32 %v946_v31, %v218_v25 }
 0x177   :  { %1417 = vst.msk [vmem:[%s2573_s6 + $0x1c8] sm:$0xff] %vm28_vm0, %v1353_v27  ;;  %v1290_v33 = vadd.f32 %v2475_v36, %v1219_v29  ;;  %v1117_v38 = vld [vmem:[#allocation2 + $0xd8] sm:$0xff]  ;;  %v820_v41 = vpop.f32.mrf.mxu0  ;;  %v948_v42 = vpop.f32.mrf.mxu1 }
 0x178   :  { %v1149_v40 = vld [vmem:[#allocation2 + $0x1d8] sm:$0xff]  ;;  %v1322_v44 = vmax.f32 %v1258_v32, 0.0  ;;  %v1188_v46 = vmul.f32 %v2459_v13, %v1117_v38  ;;  %1052 = vst.msk [vmem:[#allocation2 + $0xe8] sm:$0xff] %vm28_vm0, %v987_v34  ;;  %1084 = vst.msk [vmem:[#allocation2 + $0x1e8] sm:$0xff] %vm28_vm0, %v1019_v35 }
 0x179   :  { %v1354_v45 = vmax.f32 %v1290_v33, 0.0  ;;  %v1220_v47 = vmul.f32 %v2459_v13, %v1149_v40  ;;  %v823_v48 = vpop.f32.mrf.mxu0  ;;  %v951_v49 = vpop.f32.mrf.mxu1 }
 0x17a   :  { %1386 = vst.msk [vmem:[%s2573_s6 + $0xd0] sm:$0xff] %vm28_vm0, %v1322_v44  ;;  %v1259_v50 = vadd.f32 %v2475_v36, %v1188_v46  ;;  %v988_v52 = vadd.f32 %v823_v48, %v187_v37  ;;  %v1020_v53 = vadd.f32 %v951_v49, %v219_v43 }
 0x17b   :  { %1418 = vst.msk [vmem:[%s2573_s6 + $0x1d0] sm:$0xff] %vm28_vm0, %v1354_v45  ;;  %v1291_v51 = vadd.f32 %v2475_v36, %v1220_v47  ;;  %v1118_v55 = vld [vmem:[#allocation2 + $0xe0] sm:$0xff]  ;;  %v825_v57 = vpop.f32.mrf.mxu0  ;;  %v953_v58 = vpop.f32.mrf.mxu1 }
 0x17c   :  { %v1150_v56 = vld [vmem:[#allocation2 + $0x1e0] sm:$0xff]  ;;  %v1323_v60 = vmax.f32 %v1259_v50, 0.0  ;;  %v1189_v62 = vmul.f32 %v2459_v13, %v1118_v55  ;;  %1053 = vst.msk [vmem:[#allocation2 + $0xf0] sm:$0xff] %vm28_vm0, %v988_v52  ;;  %1085 = vst.msk [vmem:[#allocation2 + $0x1f0] sm:$0xff] %vm28_vm0, %v1020_v53 }
 0x17d   :  { %v1355_v61 = vmax.f32 %v1291_v51, 0.0  ;;  %v1221_v63 = vmul.f32 %v2459_v13, %v1150_v56  ;;  %v826_v0 = vpop.f32.mrf.mxu0  ;;  %v954_v1 = vpop.f32.mrf.mxu1 }
 0x17e   :  { %1387 = vst.msk [vmem:[%s2573_s6 + $0xd8] sm:$0xff] %vm28_vm0, %v1323_v60  ;;  %v1260_v2 = vadd.f32 %v2475_v36, %v1189_v62  ;;  %v989_v4 = vadd.f32 %v826_v0, %v188_v54  ;;  %v1021_v5 = vadd.f32 %v954_v1, %v220_v59 }
 0x17f   :  { %1419 = vst.msk [vmem:[%s2573_s6 + $0x1d8] sm:$0xff] %vm28_vm0, %v1355_v61  ;;  %v1292_v3 = vadd.f32 %v2475_v36, %v1221_v63  ;;  %v1119_v6 = vld [vmem:[#allocation2 + $0xe8] sm:$0xff]  ;;  %v828_v8 = vpop.f32.mrf.mxu0  ;;  %v956_v9 = vpop.f32.mrf.mxu1 }
 0x180   :  { %v1151_v7 = vld [vmem:[#allocation2 + $0x1e8] sm:$0xff]  ;;  %v1324_v10 = vmax.f32 %v1260_v2, 0.0  ;;  %v1190_v12 = vmul.f32 %v2459_v13, %v1119_v6  ;;  %1054 = vst.msk [vmem:[#allocation2 + $0xf8] sm:$0xff] %vm28_vm0, %v989_v4  ;;  %1086 = vst.msk [vmem:[#allocation2 + $0x1f8] sm:$0xff] %vm28_vm0, %v1021_v5 }
 0x181   :  { %v1356_v11 = vmax.f32 %v1292_v3, 0.0  ;;  %v1222_v14 = vmul.f32 %v2459_v13, %v1151_v7 }
 0x182   :  { %1388 = vst.msk [vmem:[%s2573_s6 + $0xe0] sm:$0xff] %vm28_vm0, %v1324_v10  ;;  %v1261_v39 = vadd.f32 %v2475_v36, %v1190_v12 }
 0x183   :  { %1420 = vst.msk [vmem:[%s2573_s6 + $0x1e0] sm:$0xff] %vm28_vm0, %v1356_v11  ;;  %v1293_v15 = vadd.f32 %v2475_v36, %v1222_v14  ;;  %v1120_v16 = vld [vmem:[#allocation2 + $0xf0] sm:$0xff] }
 0x184   :  { %v1152_v17 = vld [vmem:[#allocation2 + $0x1f0] sm:$0xff]  ;;  %v1325_v18 = vmax.f32 %v1261_v39, 0.0  ;;  %v1191_v20 = vmul.f32 %v2459_v13, %v1120_v16 }
 0x185   :  { %v1357_v19 = vmax.f32 %v1293_v15, 0.0  ;;  %v1223_v21 = vmul.f32 %v2459_v13, %v1152_v17 }
 0x186   :  { %1389 = vst.msk [vmem:[%s2573_s6 + $0xe8] sm:$0xff] %vm28_vm0, %v1325_v18  ;;  %v1262_v22 = vadd.f32 %v2475_v36, %v1191_v20 }
 0x187   :  { %1421 = vst.msk [vmem:[%s2573_s6 + $0x1e8] sm:$0xff] %vm28_vm0, %v1357_v19  ;;  %v1294_v23 = vadd.f32 %v2475_v36, %v1223_v21  ;;  %v1121_v24 = vld [vmem:[#allocation2 + $0xf8] sm:$0xff] }
 0x188   :  { %v1153_v25 = vld [vmem:[#allocation2 + $0x1f8] sm:$0xff]  ;;  %v1326_v26 = vmax.f32 %v1262_v22, 0.0  ;;  %v1192_v28 = vmul.f32 %v2459_v13, %v1121_v24 }
 0x189   :  { %v1358_v27 = vmax.f32 %v1294_v23, 0.0  ;;  %v1224_v29 = vmul.f32 %v2459_v13, %v1153_v25 }
 0x18a   :  { %1390 = vst.msk [vmem:[%s2573_s6 + $0xf0] sm:$0xff] %vm28_vm0, %v1326_v26  ;;  %v1263_v30 = vadd.f32 %v2475_v36, %v1192_v28 }
 0x18b   :  { %1422 = vst.msk [vmem:[%s2573_s6 + $0x1f0] sm:$0xff] %vm28_vm0, %v1358_v27  ;;  %v1295_v31 = vadd.f32 %v2475_v36, %v1224_v29 }
 0x18c   :  { %v1327_v32 = vmax.f32 %v1263_v30, 0.0 }
 0x18d   :  { %v1359_v33 = vmax.f32 %v1295_v31, 0.0 }
 0x18e   :  { %1391 = vst.msk [vmem:[%s2573_s6 + $0xf8] sm:$0xff] %vm28_vm0, %v1327_v32 }
 0x18f   :  { %1423 = vst.msk [vmem:[%s2573_s6 + $0x1f8] sm:$0xff] %vm28_vm0, %v1359_v33 }

// kernel: densenet121_forward.129
= control target key start
LH: loop header
LB: loop body
LE: loop exit
PB: predicated region body
PF: predicated region fallthrough
CT: control target
= control target key end

     0   :  { %v1548_v0 = vmov 0.0   ;;  %vm1549_vm0 = vmmov 0   ;;  %v1550_v3 = vmov 0   ;;  %vm30_vm1 = vcmask 261120   ;;  %s1994_s1 = inlined_call_operand.vmem [shape: bf16[128,288], index: 1, kind: input, shape index: {}]   ;;  %s1995_s2 = inlined_call_operand.vmem [shape: f32[1,128], index: 2, kind: input, shape index: {}, may-alias: {2,3}]   ;;  %s1996_s3 = inlined_call_operand.vmem [shape: f32[1,128], index: 3, kind: input, shape index: {}, may-alias: {2,3}]   ;;  %s1997_s4 = inlined_call_operand.vmem [shape: f32[1,288], index: 4, kind: input, shape index: {}, may-alias: {4,5}]   ;;  %s1998_s5 = inlined_call_operand.vmem [shape: f32[1,288], index: 5, kind: input, shape index: {}, may-alias: {4,5}]   ;;  %s1999_s0 = inlined_call_operand.vmem [shape: bf16[200,128], index: 0, kind: input, shape index: {}]   ;;  %s2000_s6 = inlined_call_operand.vmem [shape: bf16[200,288], index: 6, kind: output, shape index: {}]  }
   0x1   :  { %1432 = vmatprep.subr.bf16.mxu1 %v1548_v0  ;;  %v1503_v1 = vld [vmem:[%s1994_s1 + $0xac] ss:$12 sps:$4 sm:$0xff]   ;;  %1448 = vmatprep.mubr.msk.bf16.mxu1 %vm1549_vm0, %v1548_v0  ;;  %v1505_v2 = vld [vmem:[%s1994_s1 + $0xb0] ss:$12 sps:$4 sm:$0xff]   ;;  %v1506_v4 = vld [vmem:[%s1994_s1 + $0xa8] ss:$12 sps:$4 sm:$0xff]  }
   0x2   :  { %472 = vmatprep.mubr.bf16.mxu0 %v1550_v3  ;;  %440 = vmatprep.subr.bf16.mxu0 %v1503_v1  ;;  %v1507_v5 = vld [vmem:[%s1994_s1 + $0x94] ss:$12 sps:$4 sm:$0xff]   ;;  %v1509_v6 = vld [vmem:[%s1994_s1 + $0x98] ss:$12 sps:$4 sm:$0xff]   ;;  %v1510_v7 = vld [vmem:[%s1994_s1 + $0x90] ss:$12 sps:$4 sm:$0xff]  }
   0x3   :  { %1433 = vmatpush3.bf16.msra.mxu1 %v1505_v2  ;;  %441 = vmatpush1.bf16.msra.mxu0 %v1506_v4  ;;  %v1511_v8 = vld [vmem:[%s1994_s1 + $0x7c] ss:$12 sps:$4 sm:$0xff]   ;;  %31 = vst.msk [vmem:[#allocation2 + $0x10] sm:$0xff] %vm30_vm1, %v1548_v0  ;;  %34 = vst.msk [vmem:[#allocation2 + $0x28] sm:$0xff] %vm30_vm1, %v1548_v0  ;;  %v1513_v9 = vld [vmem:[%s1994_s1 + $0x80] ss:$12 sps:$4 sm:$0xff]  }
   0x4   :  { %1434 = vmatprep.subr.bf16.mxu1 %v1548_v0  ;;  %442 = vmatprep.subr.bf16.mxu0 %v1507_v5  ;;  %37 = vst.msk [vmem:[#allocation2 + $0x40] sm:$0xff] %vm30_vm1, %v1548_v0  ;;  %40 = vst.msk [vmem:[#allocation2 + $0x58] sm:$0xff] %vm30_vm1, %v1548_v0  ;;  %v1514_v10 = vld [vmem:[%s1994_s1 + $0x78] ss:$12 sps:$4 sm:$0xff]   ;;  %v1517_v12 = vld [vmem:[%s1994_s1 + $0x68] ss:$12 sps:$4 sm:$0xff]  }
   0x5   :  { %43 = vst.msk [vmem:[#allocation2 + $0x70] sm:$0xff] %vm30_vm1, %v1548_v0  ;;  %46 = vst.msk [vmem:[#allocation2 + $0x88] sm:$0xff] %vm30_vm1, %v1548_v0  ;;  %v1515_v11 = vld [vmem:[%s1994_s1 + $0x64] ss:$12 sps:$4 sm:$0xff]   ;;  %v1518_v13 = vld [vmem:[%s1994_s1 + $0x60] ss:$12 sps:$4 sm:$0xff]  }
   0x6   :  { %49 = vst.msk [vmem:[#allocation2 + $0xa0] sm:$0xff] %vm30_vm1, %v1548_v0  ;;  %52 = vst.msk [vmem:[#allocation2 + $0xb8] sm:$0xff] %vm30_vm1, %v1548_v0  ;;  %v1519_v14 = vld [vmem:[%s1994_s1 + $0x4c] ss:$12 sps:$4 sm:$0xff]   ;;  %v1521_v15 = vld [vmem:[%s1994_s1 + $0x50] ss:$12 sps:$4 sm:$0xff]  }
   0x7   :  { %55 = vst.msk [vmem:[#allocation2 + $0xd0] sm:$0xff] %vm30_vm1, %v1548_v0  ;;  %58 = vst.msk [vmem:[#allocation2 + $0xe8] sm:$0xff] %vm30_vm1, %v1548_v0  ;;  %1435 = vmatpush3.bf16.msra.mxu1 %v1509_v6  ;;  %443 = vmatpush1.bf16.msra.mxu0 %v1510_v7  ;;  %v1522_v16 = vld [vmem:[%s1994_s1 + $0x48] ss:$12 sps:$4 sm:$0xff]   ;;  %v1525_v18 = vld [vmem:[%s1994_s1 + $0x38] ss:$12 sps:$4 sm:$0xff]  }
   0x8   :  { %61 = vst.msk [vmem:[#allocation2 + $0x100] sm:$0xff] %vm30_vm1, %v1548_v0  ;;  %64 = vst.msk [vmem:[#allocation2 + $0x118] sm:$0xff] %vm30_vm1, %v1548_v0  ;;  %1436 = vmatprep.subr.bf16.mxu1 %v1548_v0  ;;  %444 = vmatprep.subr.bf16.mxu0 %v1511_v8  ;;  %v1523_v17 = vld [vmem:[%s1994_s1 + $0x34] ss:$12 sps:$4 sm:$0xff]   ;;  %v1526_v19 = vld [vmem:[%s1994_s1 + $0x30] ss:$12 sps:$4 sm:$0xff]  }
   0x9   :  { %67 = vst.msk [vmem:[#allocation2 + $0x130] sm:$0xff] %vm30_vm1, %v1548_v0  ;;  %70 = vst.msk [vmem:[#allocation2 + $0x148] sm:$0xff] %vm30_vm1, %v1548_v0  ;;  %v1527_v20 = vld [vmem:[%s1994_s1 + $0x1c] ss:$12 sps:$4 sm:$0xff]   ;;  %v1529_v21 = vld [vmem:[%s1994_s1 + $0x20] ss:$12 sps:$4 sm:$0xff]  }
   0xa   :  { %73 = vst.msk [vmem:[#allocation2 + $0x160] sm:$0xff] %vm30_vm1, %v1548_v0  ;;  %76 = vst.msk [vmem:[#allocation2 + $0x178] sm:$0xff] %vm30_vm1, %v1548_v0  ;;  %v1530_v22 = vld [vmem:[%s1994_s1 + $0x18] ss:$12 sps:$4 sm:$0xff]   ;;  %v1533_v24 = vld [vmem:[%s1994_s1 + $0x8] ss:$12 sps:$4 sm:$0xff]  }
   0xb   :  { %79 = vst.msk [vmem:[#allocation2 + $0x190] sm:$0xff] %vm30_vm1, %v1548_v0  ;;  %82 = vst.msk [vmem:[#allocation2 + $0x1a8] sm:$0xff] %vm30_vm1, %v1548_v0  ;;  %1437 = vmatpush3.bf16.msra.mxu1 %v1513_v9  ;;  %445 = vmatpush1.bf16.msra.mxu0 %v1514_v10  ;;  %v1531_v23 = vld [vmem:[%s1994_s1 + $0x4] ss:$12 sps:$4 sm:$0xff]   ;;  %v1534_v25 = vld [vmem:[%s1994_s1] ss:$12 sps:$4 sm:$0xff]  }
   0xc   :  { %85 = vst.msk [vmem:[#allocation2 + $0x1c0] sm:$0xff] %vm30_vm1, %v1548_v0  ;;  %88 = vst.msk [vmem:[#allocation2 + $0x1d8] sm:$0xff] %vm30_vm1, %v1548_v0  ;;  %1438 = vmatprep.subr.bf16.mxu1 %v1548_v0  ;;  %446 = vmatprep.subr.bf16.mxu0 %v1515_v11  ;;  %v1535_v26 = vld [vmem:[%s1999_s0] sm:$0xff]   ;;  %v1536_v27 = vld [vmem:[%s1999_s0 + $0x8] sm:$0xff]   ;;  %vm1220_vm2 = vcmask 257024  }
   0xd   :  { %91 = vst.msk [vmem:[#allocation2 + $0x1f0] sm:$0xff] %vm30_vm1, %v1548_v0  ;;  %94 = vst.msk [vmem:[#allocation2 + $0x208] sm:$0xff] %vm30_vm1, %v1548_v0  ;;  %v1537_v28 = vld [vmem:[%s1999_s0 + $0x10] sm:$0xff]   ;;  %v1538_v29 = vld [vmem:[%s1999_s0 + $0x18] sm:$0xff]  }
   0xe   :  { %97 = vst.msk [vmem:[#allocation2 + $0x220] sm:$0xff] %vm30_vm1, %v1548_v0  ;;  %100 = vst.msk [vmem:[#allocation2 + $0x238] sm:$0xff] %vm30_vm1, %v1548_v0  ;;  %v1539_v30 = vld [vmem:[%s1999_s0 + $0x20] sm:$0xff]   ;;  %v1540_v31 = vld [vmem:[%s1999_s0 + $0x28] sm:$0xff]  }
   0xf   :  { %103 = vst.msk [vmem:[#allocation2 + $0x250] sm:$0xff] %vm30_vm1, %v1548_v0  ;;  %1439 = vmatpush3.bf16.msra.mxu1 %v1517_v12  ;;  %447 = vmatpush1.bf16.msra.mxu0 %v1518_v13  ;;  %v1541_v32 = vld [vmem:[%s1999_s0 + $0x30] sm:$0xff]   ;;  %v1542_v33 = vld [vmem:[%s1999_s0 + $0x38] sm:$0xff]   ;;  %v1543_v34 = vld [vmem:[%s1999_s0 + $0x40] sm:$0xff]  }
  0x10   :  { %1440 = vmatprep.subr.bf16.mxu1 %v1548_v0  ;;  %448 = vmatprep.subr.bf16.mxu0 %v1519_v14  ;;  %v1544_v35 = vld [vmem:[%s1999_s0 + $0x48] sm:$0xff]   ;;  %v1545_v36 = vld [vmem:[%s1999_s0 + $0x50] sm:$0xff]   ;;  %v1546_v37 = vld [vmem:[%s1999_s0 + $0x58] sm:$0xff]  }
  0x11   :  { %v1547_v38 = vld [vmem:[%s1999_s0 + $0x60] ss:$0 sps:$4 sm:$0xff]   ;;  %v131_v39 = vld [vmem:[#allocation2 + $0x10] sm:$0xff]  ;;  %v134_v44 = vld [vmem:[#allocation2 + $0x28] sm:$0xff] }
  0x12   :  { %v137_v51 = vld [vmem:[#allocation2 + $0x40] sm:$0xff]  ;;  %v140_v59 = vld [vmem:[#allocation2 + $0x58] sm:$0xff]  ;;  %v143_v4 = vld [vmem:[#allocation2 + $0x70] sm:$0xff] }
  0x13   :  { %1441 = vmatpush3.bf16.msra.mxu1 %v1521_v15  ;;  %449 = vmatpush1.bf16.msra.mxu0 %v1522_v16  ;;  %v146_v13 = vld [vmem:[#allocation2 + $0x88] sm:$0xff] }
  0x14   :  { %1442 = vmatprep.subr.bf16.mxu1 %v1548_v0  ;;  %450 = vmatprep.subr.bf16.mxu0 %v1523_v17 }
  0x17   :  { %1443 = vmatpush3.bf16.msra.mxu1 %v1525_v18  ;;  %451 = vmatpush1.bf16.msra.mxu0 %v1526_v19 }
  0x18   :  { %1444 = vmatprep.subr.bf16.mxu1 %v1548_v0  ;;  %452 = vmatprep.subr.bf16.mxu0 %v1527_v20 }
  0x1b   :  { %1445 = vmatpush3.bf16.msra.mxu1 %v1529_v21  ;;  %453 = vmatpush1.bf16.msra.mxu0 %v1530_v22  ;;  %v149_v22 = vld [vmem:[#allocation2 + $0xa0] sm:$0xff] }
  0x1c   :  { %1446 = vmatprep.subr.bf16.mxu1 %v1548_v0  ;;  %454 = vmatprep.subr.bf16.mxu0 %v1531_v23 }
  0x1f   :  { %1447 = vmatpush3.bf16.msra.mxu1 %v1533_v24  ;;  %455 = vmatpush1.bf16.msra.mxu0 %v1534_v25 }
  0x22   :  { %1449 = vmatmul.mubr.bf16.vlgmr.msra.gmra.mxu1 %v1535_v26  ;;  %473 = vmatmul.mubr.bf16.vlgmr.msra.gmra.mxu0 %v1535_v26 }
  0x23   :  { %1452 = vmatprep.mubr.msk.bf16.mxu1 %vm1549_vm0, %v1548_v0  ;;  %482 = vmatprep.mubr.bf16.mxu0 %v1550_v3 }
  0x2a   :  { %1453 = vmatmul.mubr.bf16.gmra.mxu1 %v1536_v27  ;;  %483 = vmatmul.mubr.bf16.gmra.mxu0 %v1536_v27 }
  0x2b   :  { %1456 = vmatprep.mubr.msk.bf16.mxu1 %vm1549_vm0, %v1548_v0  ;;  %492 = vmatprep.mubr.bf16.mxu0 %v1550_v3 }
  0x32   :  { %1457 = vmatmul.mubr.bf16.gmra.mxu1 %v1537_v28  ;;  %493 = vmatmul.mubr.bf16.gmra.mxu0 %v1537_v28 }
  0x33   :  { %1460 = vmatprep.mubr.msk.bf16.mxu1 %vm1549_vm0, %v1548_v0  ;;  %502 = vmatprep.mubr.bf16.mxu0 %v1550_v3 }
  0x3a   :  { %1461 = vmatmul.mubr.bf16.gmra.mxu1 %v1538_v29  ;;  %503 = vmatmul.mubr.bf16.gmra.mxu0 %v1538_v29 }
  0x3b   :  { %1464 = vmatprep.mubr.msk.bf16.mxu1 %vm1549_vm0, %v1548_v0  ;;  %512 = vmatprep.mubr.bf16.mxu0 %v1550_v3 }
  0x42   :  { %1465 = vmatmul.mubr.bf16.gmra.mxu1 %v1539_v30  ;;  %513 = vmatmul.mubr.bf16.gmra.mxu0 %v1539_v30 }
  0x43   :  { %1468 = vmatprep.mubr.msk.bf16.mxu1 %vm1549_vm0, %v1548_v0  ;;  %522 = vmatprep.mubr.bf16.mxu0 %v1550_v3 }
  0x4a   :  { %1469 = vmatmul.mubr.bf16.gmra.mxu1 %v1540_v31  ;;  %523 = vmatmul.mubr.bf16.gmra.mxu0 %v1540_v31  ;;  %v152_v31 = vld [vmem:[#allocation2 + $0xb8] sm:$0xff] }
  0x4b   :  { %1472 = vmatprep.mubr.msk.bf16.mxu1 %vm1549_vm0, %v1548_v0  ;;  %532 = vmatprep.mubr.bf16.mxu0 %v1550_v3 }
  0x52   :  { %1473 = vmatmul.mubr.bf16.gmra.mxu1 %v1541_v32  ;;  %533 = vmatmul.mubr.bf16.gmra.mxu0 %v1541_v32 }
  0x53   :  { %1476 = vmatprep.mubr.msk.bf16.mxu1 %vm1549_vm0, %v1548_v0  ;;  %542 = vmatprep.mubr.bf16.mxu0 %v1550_v3 }
  0x5a   :  { %1477 = vmatmul.mubr.bf16.gmra.mxu1 %v1542_v33  ;;  %543 = vmatmul.mubr.bf16.gmra.mxu0 %v1542_v33 }
  0x5b   :  { %1480 = vmatprep.mubr.msk.bf16.mxu1 %vm1549_vm0, %v1548_v0  ;;  %552 = vmatprep.mubr.bf16.mxu0 %v1550_v3 }
  0x62   :  { %1481 = vmatmul.mubr.bf16.gmra.mxu1 %v1543_v34  ;;  %553 = vmatmul.mubr.bf16.gmra.mxu0 %v1543_v34 }
  0x63   :  { %1484 = vmatprep.mubr.msk.bf16.mxu1 %vm1549_vm0, %v1548_v0  ;;  %562 = vmatprep.mubr.bf16.mxu0 %v1550_v3 }
  0x6a   :  { %1485 = vmatmul.mubr.bf16.gmra.mxu1 %v1544_v35  ;;  %563 = vmatmul.mubr.bf16.gmra.mxu0 %v1544_v35 }
  0x6b   :  { %1488 = vmatprep.mubr.msk.bf16.mxu1 %vm1549_vm0, %v1548_v0  ;;  %572 = vmatprep.mubr.bf16.mxu0 %v1550_v3 }
  0x72   :  { %1489 = vmatmul.mubr.bf16.gmra.mxu1 %v1545_v36  ;;  %573 = vmatmul.mubr.bf16.gmra.mxu0 %v1545_v36 }
  0x73   :  { %1492 = vmatprep.mubr.msk.bf16.mxu1 %vm1549_vm0, %v1548_v0  ;;  %582 = vmatprep.mubr.bf16.mxu0 %v1550_v3 }
  0x7a   :  { %1493 = vmatmul.mubr.bf16.gmra.mxu1 %v1546_v37  ;;  %583 = vmatmul.mubr.bf16.gmra.mxu0 %v1546_v37 }
  0x7b   :  { %1496 = vmatprep.mubr.msk.bf16.mxu1 %vm1549_vm0, %v1548_v0  ;;  %592 = vmatprep.mubr.bf16.mxu0 %v1550_v3 }
  0x82   :  { %1497 = vmatmul.mubr.bf16.gmra.mxu1 %v1547_v38  ;;  %593 = vmatmul.mubr.bf16.gmra.mxu0 %v1547_v38 }
  0xe2   :  { %v635_v40 = vpop.f32.mrf.mxu1  ;;  %v474_v42 = vpop.f32.mrf.mxu0 }
  0xe3   :  { %v739_v41 = vadd.f32 %v635_v40, %v131_v39  ;;  %v155_v40 = vld [vmem:[#allocation2 + $0xd0] sm:$0xff] }
  0xe4   :  { %v1450_v43 = vpop.f32.mrf.mxu1  ;;  %v476_v45 = vpop.f32.mrf.mxu0 }
  0xe5   :  { %815 = vst.msk [vmem:[#allocation2 + $0x10] sm:$0xff] %vm30_vm1, %v739_v41  ;;  %v1361_v49 = vpack.c.bf16 %v476_v45, %v474_v42 }
  0xe6   :  { %v638_v46 = vpop.f32.mrf.mxu1  ;;  %v478_v48 = vpop.f32.mrf.mxu0 }
  0xe7   :  { %v742_v47 = vadd.f32 %v638_v46, %v134_v44  ;;  %1219 = vst [vmem:[%s2000_s6] sm:$0xff] %v1361_v49  ;;  %v158_v49 = vld [vmem:[#allocation2 + $0xe8] sm:$0xff] }
  0xe8   :  { %v1451_v50 = vpop.f32.mrf.mxu1  ;;  %v480_v52 = vpop.f32.mrf.mxu0 }
  0xe9   :  { %818 = vst.msk [vmem:[#allocation2 + $0x28] sm:$0xff] %vm30_vm1, %v742_v47  ;;  %v1363_v57 = vpack.c.bf16 %v480_v52, %v478_v48 }
  0xea   :  { %v643_v53 = vpop.f32.mrf.mxu1  ;;  %v484_v55 = vpop.f32.mrf.mxu0 }
  0xeb   :  { %v745_v54 = vadd.f32 %v643_v53, %v137_v51  ;;  %1222 = vst [vmem:[%s2000_s6 + $0xc] sm:$0xff] %v1363_v57 }
  0xec   :  { %v893_v56 = vld [vmem:[#allocation2 + $0x10] sm:$0xff]  ;;  %v1454_v58 = vpop.f32.mrf.mxu1  ;;  %v486_v61 = vpop.f32.mrf.mxu0 }
  0xed   :  { %v1362_v60 = vpack.c.bf16 %v893_v56, %v893_v56  ;;  %821 = vst.msk [vmem:[#allocation2 + $0x40] sm:$0xff] %vm30_vm1, %v745_v54  ;;  %v1365_v2 = vpack.c.bf16 %v486_v61, %v484_v55  ;;  %v161_v58 = vld [vmem:[#allocation2 + $0x100] sm:$0xff] }
  0xee   :  { %v646_v62 = vpop.f32.mrf.mxu1  ;;  %v488_v0 = vpop.f32.mrf.mxu0 }
  0xef   :  { %1221 = vst.msk [vmem:[%s2000_s6 + $0x8] sm:$0xf] %vm1220_vm2, %v1362_v60  ;;  %v748_v63 = vadd.f32 %v646_v62, %v140_v59  ;;  %1224 = vst [vmem:[%s2000_s6 + $0x18] sm:$0xff] %v1365_v2 }
  0xf0   :  { %v896_v1 = vld [vmem:[#allocation2 + $0x28] sm:$0xff]  ;;  %v1455_v3 = vpop.f32.mrf.mxu1  ;;  %v490_v6 = vpop.f32.mrf.mxu0 }
  0xf1   :  { %v1364_v5 = vpack.c.bf16 %v896_v1, %v896_v1  ;;  %824 = vst.msk [vmem:[#allocation2 + $0x58] sm:$0xff] %vm30_vm1, %v748_v63  ;;  %v1367_v11 = vpack.c.bf16 %v490_v6, %v488_v0  ;;  %v164_v3 = vld [vmem:[#allocation2 + $0x118] sm:$0xff] }
  0xf2   :  { %v651_v7 = vpop.f32.mrf.mxu1  ;;  %v494_v9 = vpop.f32.mrf.mxu0 }
  0xf3   :  { %1223 = vst.msk [vmem:[%s2000_s6 + $0x14] sm:$0xf] %vm1220_vm2, %v1364_v5  ;;  %v751_v8 = vadd.f32 %v651_v7, %v143_v4  ;;  %1226 = vst [vmem:[%s2000_s6 + $0x24] sm:$0xff] %v1367_v11 }
  0xf4   :  { %v899_v10 = vld [vmem:[#allocation2 + $0x40] sm:$0xff]  ;;  %v1458_v12 = vpop.f32.mrf.mxu1  ;;  %v496_v15 = vpop.f32.mrf.mxu0 }
  0xf5   :  { %v1366_v14 = vpack.c.bf16 %v899_v10, %v899_v10  ;;  %827 = vst.msk [vmem:[#allocation2 + $0x70] sm:$0xff] %vm30_vm1, %v751_v8  ;;  %v1369_v20 = vpack.c.bf16 %v496_v15, %v494_v9  ;;  %v167_v12 = vld [vmem:[#allocation2 + $0x130] sm:$0xff] }
  0xf6   :  { %v654_v16 = vpop.f32.mrf.mxu1  ;;  %v498_v18 = vpop.f32.mrf.mxu0 }
  0xf7   :  { %1225 = vst.msk [vmem:[%s2000_s6 + $0x20] sm:$0xf] %vm1220_vm2, %v1366_v14  ;;  %v754_v17 = vadd.f32 %v654_v16, %v146_v13  ;;  %1228 = vst [vmem:[%s2000_s6 + $0x30] sm:$0xff] %v1369_v20 }
  0xf8   :  { %v902_v19 = vld [vmem:[#allocation2 + $0x58] sm:$0xff]  ;;  %v1459_v21 = vpop.f32.mrf.mxu1  ;;  %v500_v24 = vpop.f32.mrf.mxu0 }
  0xf9   :  { %v1368_v23 = vpack.c.bf16 %v902_v19, %v902_v19  ;;  %830 = vst.msk [vmem:[#allocation2 + $0x88] sm:$0xff] %vm30_vm1, %v754_v17  ;;  %v1371_v29 = vpack.c.bf16 %v500_v24, %v498_v18  ;;  %v170_v21 = vld [vmem:[#allocation2 + $0x148] sm:$0xff] }
  0xfa   :  { %v659_v25 = vpop.f32.mrf.mxu1  ;;  %v504_v27 = vpop.f32.mrf.mxu0 }
  0xfb   :  { %1227 = vst.msk [vmem:[%s2000_s6 + $0x2c] sm:$0xf] %vm1220_vm2, %v1368_v23  ;;  %v757_v26 = vadd.f32 %v659_v25, %v149_v22  ;;  %1230 = vst [vmem:[%s2000_s6 + $0x3c] sm:$0xff] %v1371_v29 }
  0xfc   :  { %v905_v28 = vld [vmem:[#allocation2 + $0x70] sm:$0xff]  ;;  %v1462_v30 = vpop.f32.mrf.mxu1  ;;  %v506_v33 = vpop.f32.mrf.mxu0 }
  0xfd   :  { %v1370_v32 = vpack.c.bf16 %v905_v28, %v905_v28  ;;  %833 = vst.msk [vmem:[#allocation2 + $0xa0] sm:$0xff] %vm30_vm1, %v757_v26  ;;  %v1373_v38 = vpack.c.bf16 %v506_v33, %v504_v27  ;;  %v173_v30 = vld [vmem:[#allocation2 + $0x160] sm:$0xff] }
  0xfe   :  { %v662_v34 = vpop.f32.mrf.mxu1  ;;  %v508_v36 = vpop.f32.mrf.mxu0 }
  0xff   :  { %1229 = vst.msk [vmem:[%s2000_s6 + $0x38] sm:$0xf] %vm1220_vm2, %v1370_v32  ;;  %v760_v35 = vadd.f32 %v662_v34, %v152_v31  ;;  %1232 = vst [vmem:[%s2000_s6 + $0x48] sm:$0xff] %v1373_v38 }
 0x100   :  { %v908_v37 = vld [vmem:[#allocation2 + $0x88] sm:$0xff]  ;;  %v1463_v39 = vpop.f32.mrf.mxu1  ;;  %v510_v42 = vpop.f32.mrf.mxu0 }
 0x101   :  { %v1372_v41 = vpack.c.bf16 %v908_v37, %v908_v37  ;;  %836 = vst.msk [vmem:[#allocation2 + $0xb8] sm:$0xff] %vm30_vm1, %v760_v35  ;;  %v1375_v47 = vpack.c.bf16 %v510_v42, %v508_v36  ;;  %v176_v39 = vld [vmem:[#allocation2 + $0x178] sm:$0xff] }
 0x102   :  { %v667_v43 = vpop.f32.mrf.mxu1  ;;  %v514_v45 = vpop.f32.mrf.mxu0 }
 0x103   :  { %1231 = vst.msk [vmem:[%s2000_s6 + $0x44] sm:$0xf] %vm1220_vm2, %v1372_v41  ;;  %v763_v44 = vadd.f32 %v667_v43, %v155_v40  ;;  %1234 = vst [vmem:[%s2000_s6 + $0x54] sm:$0xff] %v1375_v47 }
 0x104   :  { %v911_v46 = vld [vmem:[#allocation2 + $0xa0] sm:$0xff]  ;;  %v1466_v48 = vpop.f32.mrf.mxu1  ;;  %v516_v51 = vpop.f32.mrf.mxu0 }
 0x105   :  { %v1374_v50 = vpack.c.bf16 %v911_v46, %v911_v46  ;;  %839 = vst.msk [vmem:[#allocation2 + $0xd0] sm:$0xff] %vm30_vm1, %v763_v44  ;;  %v1377_v56 = vpack.c.bf16 %v516_v51, %v514_v45  ;;  %v179_v48 = vld [vmem:[#allocation2 + $0x190] sm:$0xff] }
 0x106   :  { %v670_v52 = vpop.f32.mrf.mxu1  ;;  %v518_v54 = vpop.f32.mrf.mxu0 }
 0x107   :  { %1233 = vst.msk [vmem:[%s2000_s6 + $0x50] sm:$0xf] %vm1220_vm2, %v1374_v50  ;;  %v766_v53 = vadd.f32 %v670_v52, %v158_v49  ;;  %1236 = vst [vmem:[%s2000_s6 + $0x60] sm:$0xff] %v1377_v56 }
 0x108   :  { %v914_v55 = vld [vmem:[#allocation2 + $0xb8] sm:$0xff]  ;;  %v1467_v57 = vpop.f32.mrf.mxu1  ;;  %v520_v60 = vpop.f32.mrf.mxu0 }
 0x109   :  { %v1376_v59 = vpack.c.bf16 %v914_v55, %v914_v55  ;;  %842 = vst.msk [vmem:[#allocation2 + $0xe8] sm:$0xff] %vm30_vm1, %v766_v53  ;;  %v1379_v1 = vpack.c.bf16 %v520_v60, %v518_v54  ;;  %v182_v57 = vld [vmem:[#allocation2 + $0x1a8] sm:$0xff] }
 0x10a   :  { %v675_v61 = vpop.f32.mrf.mxu1  ;;  %v524_v63 = vpop.f32.mrf.mxu0 }
 0x10b   :  { %1235 = vst.msk [vmem:[%s2000_s6 + $0x5c] sm:$0xf] %vm1220_vm2, %v1376_v59  ;;  %v769_v62 = vadd.f32 %v675_v61, %v161_v58  ;;  %1238 = vst [vmem:[%s2000_s6 + $0x6c] sm:$0xff] %v1379_v1 }
 0x10c   :  { %v917_v0 = vld [vmem:[#allocation2 + $0xd0] sm:$0xff]  ;;  %v1470_v2 = vpop.f32.mrf.mxu1  ;;  %v526_v5 = vpop.f32.mrf.mxu0 }
 0x10d   :  { %v1378_v4 = vpack.c.bf16 %v917_v0, %v917_v0  ;;  %845 = vst.msk [vmem:[#allocation2 + $0x100] sm:$0xff] %vm30_vm1, %v769_v62  ;;  %v1381_v10 = vpack.c.bf16 %v526_v5, %v524_v63  ;;  %v185_v2 = vld [vmem:[#allocation2 + $0x1c0] sm:$0xff] }
 0x10e   :  { %v678_v6 = vpop.f32.mrf.mxu1  ;;  %v528_v8 = vpop.f32.mrf.mxu0 }
 0x10f   :  { %1237 = vst.msk [vmem:[%s2000_s6 + $0x68] sm:$0xf] %vm1220_vm2, %v1378_v4  ;;  %v772_v7 = vadd.f32 %v678_v6, %v164_v3  ;;  %1240 = vst [vmem:[%s2000_s6 + $0x78] sm:$0xff] %v1381_v10 }
 0x110   :  { %v920_v9 = vld [vmem:[#allocation2 + $0xe8] sm:$0xff]  ;;  %v1471_v11 = vpop.f32.mrf.mxu1  ;;  %v530_v14 = vpop.f32.mrf.mxu0 }
 0x111   :  { %v1380_v13 = vpack.c.bf16 %v920_v9, %v920_v9  ;;  %848 = vst.msk [vmem:[#allocation2 + $0x118] sm:$0xff] %vm30_vm1, %v772_v7  ;;  %v1383_v19 = vpack.c.bf16 %v530_v14, %v528_v8  ;;  %v188_v11 = vld [vmem:[#allocation2 + $0x1d8] sm:$0xff] }
 0x112   :  { %v683_v15 = vpop.f32.mrf.mxu1  ;;  %v534_v17 = vpop.f32.mrf.mxu0 }
 0x113   :  { %1239 = vst.msk [vmem:[%s2000_s6 + $0x74] sm:$0xf] %vm1220_vm2, %v1380_v13  ;;  %v775_v16 = vadd.f32 %v683_v15, %v167_v12  ;;  %1242 = vst [vmem:[%s2000_s6 + $0x84] sm:$0xff] %v1383_v19 }
 0x114   :  { %v923_v18 = vld [vmem:[#allocation2 + $0x100] sm:$0xff]  ;;  %v1474_v20 = vpop.f32.mrf.mxu1  ;;  %v536_v23 = vpop.f32.mrf.mxu0 }
 0x115   :  { %v1382_v22 = vpack.c.bf16 %v923_v18, %v923_v18  ;;  %851 = vst.msk [vmem:[#allocation2 + $0x130] sm:$0xff] %vm30_vm1, %v775_v16  ;;  %v1385_v28 = vpack.c.bf16 %v536_v23, %v534_v17  ;;  %v191_v20 = vld [vmem:[#allocation2 + $0x1f0] sm:$0xff] }
 0x116   :  { %v686_v24 = vpop.f32.mrf.mxu1  ;;  %v538_v26 = vpop.f32.mrf.mxu0 }
 0x117   :  { %1241 = vst.msk [vmem:[%s2000_s6 + $0x80] sm:$0xf] %vm1220_vm2, %v1382_v22  ;;  %v778_v25 = vadd.f32 %v686_v24, %v170_v21  ;;  %1244 = vst [vmem:[%s2000_s6 + $0x90] sm:$0xff] %v1385_v28 }
 0x118   :  { %v926_v27 = vld [vmem:[#allocation2 + $0x118] sm:$0xff]  ;;  %v1475_v29 = vpop.f32.mrf.mxu1  ;;  %v540_v32 = vpop.f32.mrf.mxu0 }
 0x119   :  { %v1384_v31 = vpack.c.bf16 %v926_v27, %v926_v27  ;;  %854 = vst.msk [vmem:[#allocation2 + $0x148] sm:$0xff] %vm30_vm1, %v778_v25  ;;  %v1387_v37 = vpack.c.bf16 %v540_v32, %v538_v26  ;;  %v194_v29 = vld [vmem:[#allocation2 + $0x208] sm:$0xff] }
 0x11a   :  { %v691_v33 = vpop.f32.mrf.mxu1  ;;  %v544_v35 = vpop.f32.mrf.mxu0 }
 0x11b   :  { %1243 = vst.msk [vmem:[%s2000_s6 + $0x8c] sm:$0xf] %vm1220_vm2, %v1384_v31  ;;  %v781_v34 = vadd.f32 %v691_v33, %v173_v30  ;;  %1246 = vst [vmem:[%s2000_s6 + $0x9c] sm:$0xff] %v1387_v37 }
 0x11c   :  { %v929_v36 = vld [vmem:[#allocation2 + $0x130] sm:$0xff]  ;;  %v1478_v38 = vpop.f32.mrf.mxu1  ;;  %v546_v41 = vpop.f32.mrf.mxu0 }
 0x11d   :  { %v1386_v40 = vpack.c.bf16 %v929_v36, %v929_v36  ;;  %857 = vst.msk [vmem:[#allocation2 + $0x160] sm:$0xff] %vm30_vm1, %v781_v34  ;;  %v1389_v46 = vpack.c.bf16 %v546_v41, %v544_v35  ;;  %v197_v38 = vld [vmem:[#allocation2 + $0x220] sm:$0xff] }
 0x11e   :  { %v694_v42 = vpop.f32.mrf.mxu1  ;;  %v548_v44 = vpop.f32.mrf.mxu0 }
 0x11f   :  { %1245 = vst.msk [vmem:[%s2000_s6 + $0x98] sm:$0xf] %vm1220_vm2, %v1386_v40  ;;  %v784_v43 = vadd.f32 %v694_v42, %v176_v39  ;;  %1248 = vst [vmem:[%s2000_s6 + $0xa8] sm:$0xff] %v1389_v46 }
 0x120   :  { %v932_v45 = vld [vmem:[#allocation2 + $0x148] sm:$0xff]  ;;  %v1479_v47 = vpop.f32.mrf.mxu1  ;;  %v550_v50 = vpop.f32.mrf.mxu0 }
 0x121   :  { %v1388_v49 = vpack.c.bf16 %v932_v45, %v932_v45  ;;  %860 = vst.msk [vmem:[#allocation2 + $0x178] sm:$0xff] %vm30_vm1, %v784_v43  ;;  %v1391_v55 = vpack.c.bf16 %v550_v50, %v548_v44  ;;  %v200_v47 = vld [vmem:[#allocation2 + $0x238] sm:$0xff] }
 0x122   :  { %v699_v51 = vpop.f32.mrf.mxu1  ;;  %v554_v53 = vpop.f32.mrf.mxu0 }
 0x123   :  { %1247 = vst.msk [vmem:[%s2000_s6 + $0xa4] sm:$0xf] %vm1220_vm2, %v1388_v49  ;;  %v787_v52 = vadd.f32 %v699_v51, %v179_v48  ;;  %1250 = vst [vmem:[%s2000_s6 + $0xb4] sm:$0xff] %v1391_v55 }
 0x124   :  { %v935_v54 = vld [vmem:[#allocation2 + $0x160] sm:$0xff]  ;;  %v1482_v56 = vpop.f32.mrf.mxu1  ;;  %v556_v59 = vpop.f32.mrf.mxu0 }
 0x125   :  { %v1390_v58 = vpack.c.bf16 %v935_v54, %v935_v54  ;;  %863 = vst.msk [vmem:[#allocation2 + $0x190] sm:$0xff] %vm30_vm1, %v787_v52  ;;  %v1393_v0 = vpack.c.bf16 %v556_v59, %v554_v53  ;;  %v203_v56 = vld [vmem:[#allocation2 + $0x250] sm:$0xff] }
 0x126   :  { %v702_v60 = vpop.f32.mrf.mxu1  ;;  %v558_v62 = vpop.f32.mrf.mxu0 }
 0x127   :  { %1249 = vst.msk [vmem:[%s2000_s6 + $0xb0] sm:$0xf] %vm1220_vm2, %v1390_v58  ;;  %v790_v61 = vadd.f32 %v702_v60, %v182_v57  ;;  %1252 = vst [vmem:[%s2000_s6 + $0xc0] sm:$0xff] %v1393_v0 }
 0x128   :  { %v938_v63 = vld [vmem:[#allocation2 + $0x178] sm:$0xff]  ;;  %v1483_v1 = vpop.f32.mrf.mxu1  ;;  %v560_v4 = vpop.f32.mrf.mxu0 }
 0x129   :  { %v1392_v3 = vpack.c.bf16 %v938_v63, %v938_v63  ;;  %866 = vst.msk [vmem:[#allocation2 + $0x1a8] sm:$0xff] %vm30_vm1, %v790_v61  ;;  %v1395_v9 = vpack.c.bf16 %v560_v4, %v558_v62 }
 0x12a   :  { %v707_v5 = vpop.f32.mrf.mxu1  ;;  %v564_v7 = vpop.f32.mrf.mxu0 }
 0x12b   :  { %1251 = vst.msk [vmem:[%s2000_s6 + $0xbc] sm:$0xf] %vm1220_vm2, %v1392_v3  ;;  %v793_v6 = vadd.f32 %v707_v5, %v185_v2  ;;  %1254 = vst [vmem:[%s2000_s6 + $0xcc] sm:$0xff] %v1395_v9 }
 0x12c   :  { %v941_v8 = vld [vmem:[#allocation2 + $0x190] sm:$0xff]  ;;  %v1486_v10 = vpop.f32.mrf.mxu1  ;;  %v566_v13 = vpop.f32.mrf.mxu0 }
 0x12d   :  { %v1394_v12 = vpack.c.bf16 %v941_v8, %v941_v8  ;;  %869 = vst.msk [vmem:[#allocation2 + $0x1c0] sm:$0xff] %vm30_vm1, %v793_v6  ;;  %v1397_v18 = vpack.c.bf16 %v566_v13, %v564_v7 }
 0x12e   :  { %v710_v14 = vpop.f32.mrf.mxu1  ;;  %v568_v16 = vpop.f32.mrf.mxu0 }
 0x12f   :  { %1253 = vst.msk [vmem:[%s2000_s6 + $0xc8] sm:$0xf] %vm1220_vm2, %v1394_v12  ;;  %v796_v15 = vadd.f32 %v710_v14, %v188_v11  ;;  %1256 = vst [vmem:[%s2000_s6 + $0xd8] sm:$0xff] %v1397_v18 }
 0x130   :  { %v944_v17 = vld [vmem:[#allocation2 + $0x1a8] sm:$0xff]  ;;  %v1487_v19 = vpop.f32.mrf.mxu1  ;;  %v570_v22 = vpop.f32.mrf.mxu0 }
 0x131   :  { %v1396_v21 = vpack.c.bf16 %v944_v17, %v944_v17  ;;  %872 = vst.msk [vmem:[#allocation2 + $0x1d8] sm:$0xff] %vm30_vm1, %v796_v15  ;;  %v1399_v27 = vpack.c.bf16 %v570_v22, %v568_v16 }
 0x132   :  { %v715_v23 = vpop.f32.mrf.mxu1  ;;  %v574_v25 = vpop.f32.mrf.mxu0 }
 0x133   :  { %1255 = vst.msk [vmem:[%s2000_s6 + $0xd4] sm:$0xf] %vm1220_vm2, %v1396_v21  ;;  %v799_v24 = vadd.f32 %v715_v23, %v191_v20  ;;  %1258 = vst [vmem:[%s2000_s6 + $0xe4] sm:$0xff] %v1399_v27 }
 0x134   :  { %v947_v26 = vld [vmem:[#allocation2 + $0x1c0] sm:$0xff]  ;;  %v1490_v28 = vpop.f32.mrf.mxu1  ;;  %v576_v31 = vpop.f32.mrf.mxu0 }
 0x135   :  { %v1398_v30 = vpack.c.bf16 %v947_v26, %v947_v26  ;;  %875 = vst.msk [vmem:[#allocation2 + $0x1f0] sm:$0xff] %vm30_vm1, %v799_v24  ;;  %v1401_v36 = vpack.c.bf16 %v576_v31, %v574_v25 }
 0x136   :  { %v718_v32 = vpop.f32.mrf.mxu1  ;;  %v578_v34 = vpop.f32.mrf.mxu0 }
 0x137   :  { %1257 = vst.msk [vmem:[%s2000_s6 + $0xe0] sm:$0xf] %vm1220_vm2, %v1398_v30  ;;  %v802_v33 = vadd.f32 %v718_v32, %v194_v29  ;;  %1260 = vst [vmem:[%s2000_s6 + $0xf0] sm:$0xff] %v1401_v36 }
 0x138   :  { %v950_v35 = vld [vmem:[#allocation2 + $0x1d8] sm:$0xff]  ;;  %v1491_v37 = vpop.f32.mrf.mxu1  ;;  %v580_v40 = vpop.f32.mrf.mxu0 }
 0x139   :  { %v1400_v39 = vpack.c.bf16 %v950_v35, %v950_v35  ;;  %878 = vst.msk [vmem:[#allocation2 + $0x208] sm:$0xff] %vm30_vm1, %v802_v33  ;;  %v1403_v45 = vpack.c.bf16 %v580_v40, %v578_v34 }
 0x13a   :  { %v723_v41 = vpop.f32.mrf.mxu1  ;;  %v584_v43 = vpop.f32.mrf.mxu0 }
 0x13b   :  { %1259 = vst.msk [vmem:[%s2000_s6 + $0xec] sm:$0xf] %vm1220_vm2, %v1400_v39  ;;  %v805_v42 = vadd.f32 %v723_v41, %v197_v38  ;;  %1262 = vst [vmem:[%s2000_s6 + $0xfc] sm:$0xff] %v1403_v45 }
 0x13c   :  { %v953_v44 = vld [vmem:[#allocation2 + $0x1f0] sm:$0xff]  ;;  %v1494_v46 = vpop.f32.mrf.mxu1  ;;  %v586_v49 = vpop.f32.mrf.mxu0 }
 0x13d   :  { %v1402_v48 = vpack.c.bf16 %v953_v44, %v953_v44  ;;  %881 = vst.msk [vmem:[#allocation2 + $0x220] sm:$0xff] %vm30_vm1, %v805_v42  ;;  %v1405_v54 = vpack.c.bf16 %v586_v49, %v584_v43 }
 0x13e   :  { %v726_v50 = vpop.f32.mrf.mxu1  ;;  %v588_v52 = vpop.f32.mrf.mxu0 }
 0x13f   :  { %1261 = vst.msk [vmem:[%s2000_s6 + $0xf8] sm:$0xf] %vm1220_vm2, %v1402_v48  ;;  %v808_v51 = vadd.f32 %v726_v50, %v200_v47  ;;  %1264 = vst [vmem:[%s2000_s6 + $0x108] sm:$0xff] %v1405_v54 }
 0x140   :  { %v956_v53 = vld [vmem:[#allocation2 + $0x208] sm:$0xff]  ;;  %v1495_v55 = vpop.f32.mrf.mxu1  ;;  %v590_v58 = vpop.f32.mrf.mxu0 }
 0x141   :  { %v1404_v57 = vpack.c.bf16 %v956_v53, %v956_v53  ;;  %884 = vst.msk [vmem:[#allocation2 + $0x238] sm:$0xff] %vm30_vm1, %v808_v51  ;;  %v1407_v63 = vpack.c.bf16 %v590_v58, %v588_v52 }
 0x142   :  { %v731_v59 = vpop.f32.mrf.mxu1  ;;  %v594_v61 = vpop.f32.mrf.mxu0 }
 0x143   :  { %1263 = vst.msk [vmem:[%s2000_s6 + $0x104] sm:$0xf] %vm1220_vm2, %v1404_v57  ;;  %v811_v60 = vadd.f32 %v731_v59, %v203_v56  ;;  %1266 = vst [vmem:[%s2000_s6 + $0x114] sm:$0xff] %v1407_v63 }
 0x144   :  { %v959_v62 = vld [vmem:[#allocation2 + $0x220] sm:$0xff]  ;;  %v1498_v0 = vpop.f32.mrf.mxu1  ;;  %v596_v2 = vpop.f32.mrf.mxu0 }
 0x145   :  { %v1406_v1 = vpack.c.bf16 %v959_v62, %v959_v62  ;;  %887 = vst.msk [vmem:[#allocation2 + $0x250] sm:$0xff] %vm30_vm1, %v811_v60  ;;  %v1409_v6 = vpack.c.bf16 %v596_v2, %v594_v61 }
 0x146   :  { %v734_v3 = vpop.f32.mrf.mxu1  ;;  %v598_v4 = vpop.f32.mrf.mxu0 }
 0x147   :  { %1265 = vst.msk [vmem:[%s2000_s6 + $0x110] sm:$0xf] %vm1220_vm2, %v1406_v1  ;;  %1268 = vst [vmem:[%s2000_s6 + $0x120] sm:$0xff] %v1409_v6 }
 0x148   :  { %v962_v5 = vld [vmem:[#allocation2 + $0x238] sm:$0xff]  ;;  %v1499_v7 = vpop.f32.mrf.mxu1  ;;  %v599_v9 = vpop.f32.mrf.mxu0 }
 0x149   :  { %v1408_v8 = vpack.c.bf16 %v962_v5, %v962_v5 }
 0x14b   :  { %1267 = vst.msk [vmem:[%s2000_s6 + $0x11c] sm:$0xf] %vm1220_vm2, %v1408_v8 }
 0x14c   :  { %v965_v10 = vld [vmem:[#allocation2 + $0x250] sm:$0xff] }
 0x14d   :  { %v1410_v11 = vpack.c.bf16 %v965_v10, %v965_v10 }
 0x14f   :  { %1269 = vst.msk [vmem:[%s2000_s6 + $0x128] sm:$0xf] %vm1220_vm2, %v1410_v11 }

// kernel: densenet121_forward.140
= control target key start
LH: loop header
LB: loop body
LE: loop exit
PB: predicated region body
PF: predicated region fallthrough
CT: control target
= control target key end

     0   :  { %v94_v5 = vlaneseq  ;;  %s913_s1 = inlined_call_operand.vmem [shape: bf16[256,128], index: 1, kind: input, shape index: {}]   ;;  %s914_s4 = inlined_call_operand.vmem [shape: f32[1,128], index: 4, kind: input, shape index: {}, may-alias: {4,5}]   ;;  %s915_s5 = inlined_call_operand.vmem [shape: f32[1,128], index: 5, kind: input, shape index: {}, may-alias: {4,5}]   ;;  %s916_s0 = inlined_call_operand.vmem [shape: bf16[128,256], index: 0, kind: input, shape index: {}]   ;;  %s917_s2 = inlined_call_operand.vmem [shape: f32[1,256], index: 2, kind: input, shape index: {}]   ;;  %s918_s3 = inlined_call_operand.vmem [shape: f32[1,256], index: 3, kind: input, shape index: {}]   ;;  %s919_s6 = inlined_call_operand.vmem [shape: f32[128,128], index: 6, kind: output, shape index: {}]  }
   0x1   :  { %v636_v0 = vld [vmem:[%s913_s1 + $0x78] sm:$0xff]   ;;  %v638_v2 = vld [vmem:[%s913_s1 + $0x70] sm:$0xff]   ;;  %v640_v4 = vld [vmem:[%s913_s1 + $0x68] sm:$0xff]  }
   0x2   :  { %v637_v1 = vld [vmem:[%s913_s1 + $0x38] sm:$0xff]   ;;  %556 = vmatprep.subr.bf16.mxu0 %v636_v0  ;;  %620 = vmatprep.subr.bf16.mxu1 %v636_v0  ;;  %v639_v3 = vld [vmem:[%s913_s1 + $0x30] sm:$0xff]   ;;  %v641_v6 = vld [vmem:[%s913_s1 + $0x28] sm:$0xff]   ;;  %v95_v8 = vshrl.u32 %v94_v5, 7 }
   0x3   :  { %557 = vmatpush3.bf16.msra.mxu0 %v637_v1  ;;  %628 = vmatpush3.bf16.msra.mxu1 %v637_v1  ;;  %v642_v7 = vld [vmem:[%s913_s1 + $0x60] sm:$0xff]   ;;  %v644_v10 = vld [vmem:[%s913_s1 + $0x58] sm:$0xff]   ;;  %v646_v14 = vld [vmem:[%s913_s1 + $0x50] sm:$0xff]  }
   0x4   :  { %558 = vmatprep.subr.bf16.mxu0 %v638_v2  ;;  %621 = vmatprep.subr.bf16.mxu1 %v638_v2  ;;  %v643_v9 = vld [vmem:[%s913_s1 + $0x20] sm:$0xff]   ;;  %v96_v11 = vsub.s32 0, %v95_v8  ;;  %v645_v12 = vld [vmem:[%s913_s1 + $0x18] sm:$0xff]   ;;  %v100_v13 = vsub.s32 1, %v95_v8  ;;  %v45_v16 = vld [vmem:[%s916_s0 + $0x8] sm:$0xff] }
   0x5   :  { %v44_v15 = vld [vmem:[%s916_s0] sm:$0xff]  ;;  %v62_v20 = vunpack.c.l.bf16 %v45_v16  ;;  %v63_v21 = vunpack.c.h.bf16 %v45_v16  ;;  %v53_v24 = vld [vmem:[%s916_s0 + $0x48] sm:$0xff]  ;;  %v749_v29 = vld [vmem:[%s916_s0 + $0x10] sm:$0xff] }
   0x6   :  { %v92_v17 = vld [vmem:[%s917_s2] sm:$0x3]  ;;  %v60_v18 = vunpack.c.l.bf16 %v44_v15  ;;  %v61_v19 = vunpack.c.h.bf16 %v44_v15  ;;  %v647_v30 = vld [vmem:[%s913_s1 + $0x10] sm:$0xff]   ;;  %v78_v33 = vunpack.c.l.bf16 %v53_v24  ;;  %v79_v34 = vunpack.c.h.bf16 %v53_v24  ;;  %v648_v35 = vld [vmem:[%s913_s1 + $0x48] sm:$0xff]  }
   0x7   :  { %559 = vmatpush3.bf16.msra.mxu0 %v639_v3  ;;  %629 = vmatpush3.bf16.msra.mxu1 %v639_v3  ;;  %v136_v22 = vld [vmem:[%s918_s3] sm:$0x3]  ;;  %v738_v25 = vrot.slane %v92_v17, %v96_v11  ;;  %v740_v26 = vrot.slane %v92_v17, %v100_v13  ;;  %v47_v39 = vld [vmem:[%s916_s0 + $0x18] sm:$0xff]  ;;  %v65_v40 = vunpack.c.h.bf16 %v749_v29  ;;  %v649_v49 = vld [vmem:[%s913_s1 + $0x8] sm:$0xff]  }
   0x8   :  { %560 = vmatprep.subr.bf16.mxu0 %v640_v4  ;;  %622 = vmatprep.subr.bf16.mxu1 %v640_v4  ;;  %v52_v23 = vld [vmem:[%s916_s0 + $0x40] sm:$0xff]  ;;  %v742_v27 = vrot.slane %v136_v22, %v96_v11  ;;  %v744_v28 = vrot.slane %v136_v22, %v100_v13  ;;  %v67_v53 = vunpack.c.h.bf16 %v47_v39  ;;  %v54_v59 = vld [vmem:[%s916_s0 + $0x50] sm:$0xff]  ;;  %v55_v0 = vld [vmem:[%s916_s0 + $0x58] sm:$0xff]  ;;  %v64_v13 = vunpack.c.l.bf16 %v749_v29 }
   0x9   :  { %v76_v31 = vunpack.c.l.bf16 %v52_v23  ;;  %v77_v32 = vunpack.c.h.bf16 %v52_v23  ;;  %v105_v36 = vmul.f32 %v740_v26, %v61_v19  ;;  %v107_v37 = vmul.f32 %v740_v26, %v63_v21  ;;  %v650_v54 = vld [vmem:[%s913_s1 + $0x40] sm:$0xff]  }
   0xa   :  { %v104_v38 = vmul.f32 %v738_v25, %v60_v18  ;;  %v123_v42 = vmul.f32 %v740_v26, %v79_v34  ;;  %v106_v43 = vmul.f32 %v738_v25, %v62_v20  ;;  %v122_v48 = vmul.f32 %v738_v25, %v78_v33  ;;  %v651_v5 = vld [vmem:[%s913_s1] sm:$0xff]  }
   0xb   :  { %561 = vmatpush3.bf16.msra.mxu0 %v641_v6  ;;  %630 = vmatpush3.bf16.msra.mxu1 %v641_v6  ;;  %v121_v41 = vmul.f32 %v740_v26, %v77_v32  ;;  %v120_v44 = vmul.f32 %v738_v25, %v76_v31  ;;  %v149_v45 = vadd.f32 %v744_v28, %v105_v36  ;;  %v66_v16 = vunpack.c.l.bf16 %v47_v39  ;;  %v48_v18 = vld [vmem:[%s916_s0 + $0x20] sm:$0xff]  ;;  %v49_v31 = vld [vmem:[%s916_s0 + $0x28] sm:$0xff] }
   0xc   :  { %562 = vmatprep.subr.bf16.mxu0 %v642_v7  ;;  %623 = vmatprep.subr.bf16.mxu1 %v642_v7  ;;  %v151_v46 = vadd.f32 %v744_v28, %v107_v37  ;;  %v148_v47 = vadd.f32 %v742_v27, %v104_v38  ;;  %v167_v51 = vadd.f32 %v744_v28, %v123_v42  ;;  %v80_v17 = vunpack.c.l.bf16 %v54_v59  ;;  %v56_v36 = vld [vmem:[%s916_s0 + $0x60] sm:$0xff] }
   0xd   :  { %v165_v50 = vadd.f32 %v744_v28, %v121_v41  ;;  %v150_v52 = vadd.f32 %v742_v27, %v106_v43  ;;  %v181_v55 = vmax.f32 %v149_v45, 0.0  ;;  %v164_v58 = vadd.f32 %v742_v27, %v120_v44  ;;  %v57_v41 = vld [vmem:[%s916_s0 + $0x68] sm:$0xff] }
   0xe   :  { %v183_v56 = vmax.f32 %v151_v46, 0.0  ;;  %v180_v57 = vmax.f32 %v148_v47, 0.0  ;;  %v199_v61 = vmax.f32 %v167_v51, 0.0  ;;  %v166_v63 = vadd.f32 %v742_v27, %v122_v48 }
   0xf   :  { %563 = vmatpush3.bf16.msra.mxu0 %v643_v9  ;;  %631 = vmatpush3.bf16.msra.mxu1 %v643_v9  ;;  %v197_v60 = vmax.f32 %v165_v50, 0.0  ;;  %v182_v62 = vmax.f32 %v150_v52, 0.0  ;;  %v196_v2 = vmax.f32 %v164_v58, 0.0  ;;  %v109_v3 = vmul.f32 %v740_v26, %v65_v40 }
  0x10   :  { %564 = vmatprep.subr.bf16.mxu0 %v644_v10  ;;  %624 = vmatprep.subr.bf16.mxu1 %v644_v10  ;;  %v213_v1 = vpack.c.bf16 %v183_v56, %v181_v55  ;;  %v111_v4 = vmul.f32 %v740_v26, %v67_v53  ;;  %v198_v8 = vmax.f32 %v166_v63, 0.0  ;;  %v81_v9 = vunpack.c.h.bf16 %v54_v59 }
  0x11   :  { %v221_v6 = vpack.c.bf16 %v199_v61, %v197_v60  ;;  %v212_v7 = vpack.c.bf16 %v182_v62, %v180_v57  ;;  %v153_v10 = vadd.f32 %v744_v28, %v109_v3  ;;  %v108_v22 = vmul.f32 %v738_v25, %v64_v13  ;;  %v50_v62 = vld [vmem:[%s916_s0 + $0x30] sm:$0xff] }
  0x12   :  { %v155_v11 = vadd.f32 %v744_v28, %v111_v4  ;;  %404 = vmatprep.mubr.bf16.mxu0 %v213_v1  ;;  %v125_v15 = vmul.f32 %v740_v26, %v81_v9  ;;  %v110_v24 = vmul.f32 %v738_v25, %v66_v16  ;;  %v82_v29 = vunpack.c.l.bf16 %v55_v0 }
  0x13   :  { %565 = vmatpush3.bf16.msra.mxu0 %v645_v12  ;;  %632 = vmatpush3.bf16.msra.mxu1 %v645_v12  ;;  %v83_v12 = vunpack.c.h.bf16 %v55_v0  ;;  %v185_v19 = vmax.f32 %v153_v10, 0.0  ;;  %v152_v34 = vadd.f32 %v742_v27, %v108_v22  ;;  %v71_v44 = vunpack.c.h.bf16 %v49_v31 }
  0x14   :  { %566 = vmatprep.subr.bf16.mxu0 %v646_v14  ;;  %625 = vmatprep.subr.bf16.mxu1 %v646_v14  ;;  %v220_v14 = vpack.c.bf16 %v198_v8, %v196_v2  ;;  %v187_v20 = vmax.f32 %v155_v11, 0.0  ;;  %v169_v23 = vadd.f32 %v744_v28, %v125_v15  ;;  %v154_v38 = vadd.f32 %v742_v27, %v110_v24 }
  0x15   :  { %436 = vmatprep.mubr.bf16.mxu1 %v221_v6  ;;  %v127_v21 = vmul.f32 %v740_v26, %v83_v12  ;;  %v126_v39 = vmul.f32 %v738_v25, %v82_v29  ;;  %v184_v43 = vmax.f32 %v152_v34, 0.0  ;;  %v115_v51 = vmul.f32 %v740_v26, %v71_v44  ;;  %v58_v12 = vld [vmem:[%s916_s0 + $0x70] sm:$0xff] }
  0x16   :  { %v215_v32 = vpack.c.bf16 %v187_v20, %v185_v19  ;;  %v201_v37 = vmax.f32 %v169_v23, 0.0  ;;  %v186_v46 = vmax.f32 %v154_v38, 0.0  ;;  %v87_v53 = vunpack.c.h.bf16 %v57_v41 }
  0x17   :  { %567 = vmatpush3.bf16.msra.mxu0 %v647_v30  ;;  %633 = vmatpush3.bf16.msra.mxu1 %v647_v30  ;;  %v124_v30 = vmul.f32 %v738_v25, %v80_v17  ;;  %v171_v33 = vadd.f32 %v744_v28, %v127_v21  ;;  %v170_v47 = vadd.f32 %v742_v27, %v126_v39  ;;  %v68_v57 = vunpack.c.l.bf16 %v48_v18  ;;  %v59_v17 = vld [vmem:[%s916_s0 + $0x78] sm:$0xff] }
  0x18   :  { %568 = vmatprep.subr.bf16.mxu0 %v648_v35  ;;  %626 = vmatprep.subr.bf16.mxu1 %v648_v35  ;;  %v69_v35 = vunpack.c.h.bf16 %v48_v18  ;;  %v159_v58 = vadd.f32 %v744_v28, %v115_v51  ;;  %v131_v60 = vmul.f32 %v740_v26, %v87_v53  ;;  %v70_v61 = vunpack.c.l.bf16 %v49_v31 }
  0x19   :  { %v168_v40 = vadd.f32 %v742_v27, %v124_v30  ;;  %v203_v42 = vmax.f32 %v171_v33, 0.0  ;;  %v202_v55 = vmax.f32 %v170_v47, 0.0  ;;  %v112_v1 = vmul.f32 %v738_v25, %v68_v57 }
  0x1a   :  { %v113_v45 = vmul.f32 %v740_v26, %v69_v35  ;;  %v84_v2 = vunpack.c.l.bf16 %v56_v36  ;;  %v191_v3 = vmax.f32 %v159_v58, 0.0  ;;  %v175_v4 = vadd.f32 %v744_v28, %v131_v60 }
  0x1b   :  { %569 = vmatpush3.bf16.msra.mxu0 %v649_v49  ;;  %634 = vmatpush3.bf16.msra.mxu1 %v649_v49  ;;  %v200_v48 = vmax.f32 %v168_v40, 0.0  ;;  %v85_v49 = vunpack.c.h.bf16 %v56_v36  ;;  %v223_v50 = vpack.c.bf16 %v203_v42, %v201_v37  ;;  %v86_v6 = vunpack.c.l.bf16 %v57_v41 }
  0x1c   :  { %570 = vmatprep.subr.bf16.mxu0 %v650_v54  ;;  %627 = vmatprep.subr.bf16.mxu1 %v650_v54  ;;  %v157_v52 = vadd.f32 %v744_v28, %v113_v45  ;;  %v214_v54 = vpack.c.bf16 %v186_v46, %v184_v43  ;;  %v156_v9 = vadd.f32 %v742_v27, %v112_v1  ;;  %v73_v11 = vunpack.c.h.bf16 %v50_v62 }
  0x1d   :  { %v129_v56 = vmul.f32 %v740_v26, %v85_v49  ;;  %v222_v63 = vpack.c.bf16 %v202_v55, %v200_v48  ;;  %v128_v10 = vmul.f32 %v738_v25, %v84_v2  ;;  %v130_v16 = vmul.f32 %v738_v25, %v86_v6 }
  0x1e   :  { %v189_v59 = vmax.f32 %v157_v52, 0.0  ;;  %v188_v18 = vmax.f32 %v156_v9, 0.0  ;;  %v117_v21 = vmul.f32 %v740_v26, %v73_v11  ;;  %v89_v29 = vunpack.c.h.bf16 %v58_v12 }
  0x1f   :  { %571 = vmatpush3.bf16.msra.mxu0 %v651_v5  ;;  %635 = vmatpush3.bf16.msra.mxu1 %v651_v5  ;;  %v173_v0 = vadd.f32 %v744_v28, %v129_v56  ;;  %v114_v5 = vmul.f32 %v738_v25, %v70_v61  ;;  %v172_v19 = vadd.f32 %v742_v27, %v128_v10  ;;  %v91_v33 = vunpack.c.h.bf16 %v59_v17 }
  0x20   :  { %v217_v13 = vpack.c.bf16 %v191_v3, %v189_v59  ;;  %v174_v24 = vadd.f32 %v742_v27, %v130_v16  ;;  %v133_v36 = vmul.f32 %v740_v26, %v89_v29  ;;  %v72_v37 = vunpack.c.l.bf16 %v50_v62 }
  0x21   :  { %v205_v8 = vmax.f32 %v173_v0, 0.0  ;;  %v158_v15 = vadd.f32 %v742_v27, %v114_v5  ;;  %v204_v30 = vmax.f32 %v172_v19, 0.0  ;;  %v135_v40 = vmul.f32 %v740_v26, %v91_v33 }
  0x22   :  { %405 = vmatmul.mubr.bf16.vlgmr.msra.gmra.mxu0 %v212_v7  ;;  %437 = vmatmul.mubr.bf16.vlgmr.msra.gmra.mxu1 %v220_v14  ;;  %v51_v7 = vld [vmem:[%s916_s0 + $0x38] sm:$0xff]  ;;  %v207_v14 = vmax.f32 %v175_v4, 0.0  ;;  %v206_v35 = vmax.f32 %v174_v24, 0.0  ;;  %v177_v43 = vadd.f32 %v744_v28, %v133_v36  ;;  %v116_v44 = vmul.f32 %v738_v25, %v72_v37 }
  0x23   :  { %412 = vmatprep.mubr.bf16.mxu0 %v215_v32  ;;  %444 = vmatprep.mubr.bf16.mxu1 %v223_v50  ;;  %v75_v20 = vunpack.c.h.bf16 %v51_v7  ;;  %v190_v23 = vmax.f32 %v158_v15, 0.0  ;;  %v161_v32 = vadd.f32 %v744_v28, %v117_v21  ;;  %v74_v41 = vunpack.c.l.bf16 %v51_v7 }
  0x24   :  { %v225_v22 = vpack.c.bf16 %v207_v14, %v205_v8  ;;  %v224_v42 = vpack.c.bf16 %v206_v35, %v204_v30  ;;  %v88_v45 = vunpack.c.l.bf16 %v58_v12  ;;  %v179_v47 = vadd.f32 %v744_v28, %v135_v40 }
  0x25   :  { %v119_v31 = vmul.f32 %v740_v26, %v75_v20  ;;  %v216_v34 = vpack.c.bf16 %v190_v23, %v188_v18  ;;  %v193_v39 = vmax.f32 %v161_v32, 0.0  ;;  %v118_v48 = vmul.f32 %v738_v25, %v74_v41 }
  0x26   :  { %v90_v49 = vunpack.c.l.bf16 %v59_v17  ;;  %v209_v50 = vmax.f32 %v177_v43, 0.0  ;;  %v160_v51 = vadd.f32 %v742_v27, %v116_v44  ;;  %v132_v26 = vmul.f32 %v738_v25, %v88_v45 }
  0x27   :  { %v163_v38 = vadd.f32 %v744_v28, %v119_v31  ;;  %v211_v53 = vmax.f32 %v179_v47, 0.0 }
  0x28   :  { %v134_v55 = vmul.f32 %v738_v25, %v90_v49  ;;  %v192_v56 = vmax.f32 %v160_v51, 0.0  ;;  %v176_v57 = vadd.f32 %v742_v27, %v132_v26 }
  0x29   :  { %v195_v46 = vmax.f32 %v163_v38, 0.0  ;;  %v227_v28 = vpack.c.bf16 %v211_v53, %v209_v50 }
  0x2a   :  { %413 = vmatmul.mubr.bf16.gmra.mxu0 %v214_v54  ;;  %445 = vmatmul.mubr.bf16.gmra.mxu1 %v222_v63  ;;  %v162_v54 = vadd.f32 %v742_v27, %v118_v48  ;;  %v178_v59 = vadd.f32 %v742_v27, %v134_v55  ;;  %v208_v60 = vmax.f32 %v176_v57, 0.0 }
  0x2b   :  { %420 = vmatprep.mubr.bf16.mxu0 %v217_v13  ;;  %452 = vmatprep.mubr.bf16.mxu1 %v225_v22  ;;  %v219_v52 = vpack.c.bf16 %v195_v46, %v193_v39 }
  0x2c   :  { %v194_v58 = vmax.f32 %v162_v54, 0.0  ;;  %v210_v62 = vmax.f32 %v178_v59, 0.0 }
  0x2e   :  { %v218_v61 = vpack.c.bf16 %v194_v58, %v192_v56  ;;  %v226_v63 = vpack.c.bf16 %v210_v62, %v208_v60 }
  0x32   :  { %421 = vmatmul.mubr.bf16.gmra.mxu0 %v216_v34  ;;  %453 = vmatmul.mubr.bf16.gmra.mxu1 %v224_v42 }
  0x33   :  { %428 = vmatprep.mubr.bf16.mxu0 %v219_v52  ;;  %460 = vmatprep.mubr.bf16.mxu1 %v227_v28 }
  0x3a   :  { %429 = vmatmul.mubr.bf16.gmra.mxu0 %v218_v61  ;;  %461 = vmatmul.mubr.bf16.gmra.mxu1 %v226_v63 }
  0xe2   :  { %v572_v0 = vpop.f32.mrf.mxu0  ;;  %v596_v1 = vpop.f32.mrf.mxu1 }
  0xe4   :  { %v573_v2 = vpop.f32.mrf.mxu0  ;;  %v597_v3 = vpop.f32.mrf.mxu1 }
  0xe5   :  { %v574_v25 = vadd.f32 %v573_v2, %v572_v0  ;;  %v598_v4 = vadd.f32 %v597_v3, %v596_v1 }
  0xe6   :  { %v575_v5 = vpop.f32.mrf.mxu0  ;;  %v599_v6 = vpop.f32.mrf.mxu1 }
  0xe7   :  { %520 = vst [vmem:[%s919_s6] sm:$0xff] %v574_v25  ;;  %528 = vst [vmem:[%s919_s6 + $0x40] sm:$0xff] %v598_v4 }
  0xe8   :  { %v576_v27 = vpop.f32.mrf.mxu0  ;;  %v600_v7 = vpop.f32.mrf.mxu1 }
  0xe9   :  { %v577_v8 = vadd.f32 %v576_v27, %v575_v5  ;;  %v601_v9 = vadd.f32 %v600_v7, %v599_v6 }
  0xea   :  { %v578_v10 = vpop.f32.mrf.mxu0  ;;  %v602_v11 = vpop.f32.mrf.mxu1 }
  0xeb   :  { %521 = vst [vmem:[%s919_s6 + $0x8] sm:$0xff] %v577_v8  ;;  %529 = vst [vmem:[%s919_s6 + $0x48] sm:$0xff] %v601_v9 }
  0xec   :  { %v579_v12 = vpop.f32.mrf.mxu0  ;;  %v603_v13 = vpop.f32.mrf.mxu1 }
  0xed   :  { %v580_v14 = vadd.f32 %v579_v12, %v578_v10  ;;  %v604_v15 = vadd.f32 %v603_v13, %v602_v11 }
  0xee   :  { %v581_v16 = vpop.f32.mrf.mxu0  ;;  %v605_v17 = vpop.f32.mrf.mxu1 }
  0xef   :  { %522 = vst [vmem:[%s919_s6 + $0x10] sm:$0xff] %v580_v14  ;;  %530 = vst [vmem:[%s919_s6 + $0x50] sm:$0xff] %v604_v15 }
  0xf0   :  { %v582_v18 = vpop.f32.mrf.mxu0  ;;  %v606_v19 = vpop.f32.mrf.mxu1 }
  0xf1   :  { %v583_v20 = vadd.f32 %v582_v18, %v581_v16  ;;  %v607_v21 = vadd.f32 %v606_v19, %v605_v17 }
  0xf2   :  { %v584_v22 = vpop.f32.mrf.mxu0  ;;  %v608_v23 = vpop.f32.mrf.mxu1 }
  0xf3   :  { %523 = vst [vmem:[%s919_s6 + $0x18] sm:$0xff] %v583_v20  ;;  %531 = vst [vmem:[%s919_s6 + $0x58] sm:$0xff] %v607_v21 }
  0xf4   :  { %v585_v24 = vpop.f32.mrf.mxu0  ;;  %v609_v29 = vpop.f32.mrf.mxu1 }
  0xf5   :  { %v586_v30 = vadd.f32 %v585_v24, %v584_v22  ;;  %v610_v31 = vadd.f32 %v609_v29, %v608_v23 }
  0xf6   :  { %v587_v32 = vpop.f32.mrf.mxu0  ;;  %v611_v33 = vpop.f32.mrf.mxu1 }
  0xf7   :  { %524 = vst [vmem:[%s919_s6 + $0x20] sm:$0xff] %v586_v30  ;;  %532 = vst [vmem:[%s919_s6 + $0x60] sm:$0xff] %v610_v31 }
  0xf8   :  { %v588_v34 = vpop.f32.mrf.mxu0  ;;  %v612_v35 = vpop.f32.mrf.mxu1 }
  0xf9   :  { %v589_v36 = vadd.f32 %v588_v34, %v587_v32  ;;  %v613_v37 = vadd.f32 %v612_v35, %v611_v33 }
  0xfa   :  { %v590_v38 = vpop.f32.mrf.mxu0  ;;  %v614_v39 = vpop.f32.mrf.mxu1 }
  0xfb   :  { %525 = vst [vmem:[%s919_s6 + $0x28] sm:$0xff] %v589_v36  ;;  %533 = vst [vmem:[%s919_s6 + $0x68] sm:$0xff] %v613_v37 }
  0xfc   :  { %v591_v40 = vpop.f32.mrf.mxu0  ;;  %v615_v42 = vpop.f32.mrf.mxu1 }
  0xfd   :  { %v592_v41 = vadd.f32 %v591_v40, %v590_v38  ;;  %v616_v43 = vadd.f32 %v615_v42, %v614_v39 }
  0xfe   :  { %v593_v44 = vpop.f32.mrf.mxu0  ;;  %v617_v45 = vpop.f32.mrf.mxu1 }
  0xff   :  { %526 = vst [vmem:[%s919_s6 + $0x30] sm:$0xff] %v592_v41  ;;  %534 = vst [vmem:[%s919_s6 + $0x70] sm:$0xff] %v616_v43 }
 0x100   :  { %v594_v46 = vpop.f32.mrf.mxu0  ;;  %v618_v48 = vpop.f32.mrf.mxu1 }
 0x101   :  { %v595_v47 = vadd.f32 %v594_v46, %v593_v44  ;;  %v619_v49 = vadd.f32 %v618_v48, %v617_v45 }
 0x103   :  { %527 = vst [vmem:[%s919_s6 + $0x38] sm:$0xff] %v595_v47  ;;  %535 = vst [vmem:[%s919_s6 + $0x78] sm:$0xff] %v619_v49 }

// kernel: densenet121_forward.141
= control target key start
LH: loop header
LB: loop body
LE: loop exit
PB: predicated region body
PF: predicated region fallthrough
CT: control target
= control target key end

     0   :  { %s247_s6 = smov 0   ;;  %s264_s0 = inlined_call_operand.vmem [shape: f32[2,16,4,128], index: 0, kind: input, shape index: {}]   ;;  %s265_s1 = inlined_call_operand.vmem [shape: f32[2,4,4,128], index: 1, kind: output, shape index: {}]  }
   0x1 LB: > { %s208_s7 = sadd.s32 4294967295, %s235_s6   ;;  %p212_p0 = scmp.ge.s32.totalorder %s235_s6, 1  ;;  %s235_s6 = sphi %s247_s6, %s11_s6  }
   0x2   : > { %p87_p1 = scmp.lt.s32.totalorder %s235_s6, 3 }
   0x4   : > { %p88_p2 = pnand %p212_p0, %p87_p1 }
   0x5   : > { %p107_p3 = scmp.lt.s32.totalorder (!%p88_p2), %s208_s7, 1 }
   0x6   : > { %91 = sbr.rel (%p88_p2) target bundleno = 28 (0x1c), region = 24 }
   0xb   : > { %s267_s7 = smov (!%p107_p3, %s208_s7), 1 }
   0xc   : > { %s219_s8 = sshll.u32 %s267_s7, 6  ;;  %s220_s12 = sshll.u32 %s267_s7, 4 }
   0xd   : > { %s111_s11 = scalar_lea.vmem %s264_s0, %s219_s8  ;;  %s116_s15 = scalar_lea.vmem %s265_s1, %s220_s12 }
   0xe   : > { %v117_v0 = vld [vmem:[%s111_s11] sm:$0xf]  ;;  %v121_v1 = vld [vmem:[%s111_s11 + $0x10] sm:$0xf]  ;;  %v118_v4 = vld [vmem:[%s111_s11 + $0x4] sm:$0xf] }
   0xf   : > { %v125_v2 = vld [vmem:[%s111_s11 + $0x20] sm:$0xf]  ;;  %v133_v3 = vadd.f32 %v121_v1, %v117_v0  ;;  %v122_v5 = vld [vmem:[%s111_s11 + $0x14] sm:$0xf]  ;;  %v129_v6 = vld [vmem:[%s111_s11 + $0x30] sm:$0xf] }
  0x10   : > { %v126_v7 = vld [vmem:[%s111_s11 + $0x24] sm:$0xf]  ;;  %v134_v8 = vadd.f32 %v122_v5, %v118_v4  ;;  %v119_v9 = vld [vmem:[%s111_s11 + $0x8] sm:$0xf]  ;;  %v130_v11 = vld [vmem:[%s111_s11 + $0x34] sm:$0xf] }
  0x11   : > { %v137_v10 = vadd.f32 %v133_v3, %v125_v2  ;;  %v123_v12 = vld [vmem:[%s111_s11 + $0x18] sm:$0xf]  ;;  %v127_v13 = vld [vmem:[%s111_s11 + $0x28] sm:$0xf]  ;;  %v120_v16 = vld [vmem:[%s111_s11 + $0xc] sm:$0xf] }
  0x12   : > { %v138_v14 = vadd.f32 %v134_v8, %v126_v7  ;;  %v135_v15 = vadd.f32 %v123_v12, %v119_v9  ;;  %v124_v17 = vld [vmem:[%s111_s11 + $0x1c] sm:$0xf]  ;;  %v128_v18 = vld [vmem:[%s111_s11 + $0x2c] sm:$0xf]  ;;  %v131_v20 = vld [vmem:[%s111_s11 + $0x38] sm:$0xf] }
  0x13   : > { %v141_v19 = vadd.f32 %v137_v10, %v129_v6  ;;  %v136_v21 = vadd.f32 %v124_v17, %v120_v16  ;;  %v132_v24 = vld [vmem:[%s111_s11 + $0x3c] sm:$0xf] }
  0x14   : > { %v142_v22 = vadd.f32 %v138_v14, %v130_v11  ;;  %v139_v23 = vadd.f32 %v135_v15, %v127_v13 }
  0x15   : > { %v145_v25 = vmul.f32 0.25, %v141_v19  ;;  %v140_v26 = vadd.f32 %v136_v21, %v128_v18 }
  0x16   : > { %v146_v27 = vmul.f32 0.25, %v142_v22  ;;  %v143_v28 = vadd.f32 %v139_v23, %v131_v20 }
  0x17   : > { %149 = vst [vmem:[%s116_s15] sm:$0xf] %v145_v25  ;;  %v144_v29 = vadd.f32 %v140_v26, %v132_v24 }
  0x18   : > { %150 = vst [vmem:[%s116_s15 + $0x4] sm:$0xf] %v146_v27  ;;  %v147_v30 = vmul.f32 0.25, %v143_v28 }
  0x19   : > { %v148_v31 = vmul.f32 0.25, %v144_v29 }
  0x1a   : > { %151 = vst [vmem:[%s116_s15 + $0x8] sm:$0xf] %v147_v30 }
  0x1b   : > { %152 = vst [vmem:[%s116_s15 + $0xc] sm:$0xf] %v148_v31 }
  0x1c PF: > { %s11_s6 = sadd.s32 1, %s235_s6  }
  0x1d   : > { %p8_p4 = scmp.ge.s32.totalorder %s11_s6, 4  }
  0x1f   :  { %10 = sbr.rel (!%p8_p4) target bundleno = 1 (0x1), region = 54 }

// kernel: densenet121_forward.142
= control target key start
LH: loop header
LB: loop body
LE: loop exit
PB: predicated region body
PF: predicated region fallthrough
CT: control target
= control target key end

     0   :  { %v93_v5 = vlaneseq  ;;  %s603_s0 = inlined_call_operand.vmem [shape: bf16[32,512], index: 0, kind: input, shape index: {}]   ;;  %s604_s1 = inlined_call_operand.vmem [shape: bf16[256,128], index: 1, kind: input, shape index: {}]   ;;  %s605_s2 = inlined_call_operand.vmem [shape: f32[1,256], index: 2, kind: input, shape index: {}]   ;;  %s606_s3 = inlined_call_operand.vmem [shape: f32[1,256], index: 3, kind: input, shape index: {}]   ;;  %s607_s4 = inlined_call_operand.vmem [shape: f32[1,128], index: 4, kind: input, shape index: {}]   ;;  %s608_s5 = inlined_call_operand.vmem [shape: f32[1,128], index: 5, kind: input, shape index: {}]   ;;  %s609_s6 = inlined_call_operand.vmem [shape: bf16[32,128], index: 6, kind: output, shape index: {}]  }
   0x1   :  { %v474_v0 = vld [vmem:[%s604_s1 + $0x78] sm:$0xff]   ;;  %v476_v2 = vld [vmem:[%s604_s1 + $0x70] sm:$0xff]   ;;  %v478_v4 = vld [vmem:[%s604_s1 + $0x68] sm:$0xff]  }
   0x2   :  { %v475_v1 = vld [vmem:[%s604_s1 + $0x38] sm:$0xff]   ;;  %430 = vmatprep.subr.bf16.mxu0 %v474_v0  ;;  %458 = vmatprep.subr.bf16.mxu1 %v474_v0  ;;  %v477_v3 = vld [vmem:[%s604_s1 + $0x30] sm:$0xff]   ;;  %v479_v6 = vld [vmem:[%s604_s1 + $0x28] sm:$0xff]   ;;  %v94_v8 = vshrl.u32 %v93_v5, 7 }
   0x3   :  { %431 = vmatpush3.bf16.msra.mxu0 %v475_v1  ;;  %466 = vmatpush3.bf16.msra.mxu1 %v475_v1  ;;  %v480_v7 = vld [vmem:[%s604_s1 + $0x60] sm:$0xff]   ;;  %v482_v10 = vld [vmem:[%s604_s1 + $0x58] sm:$0xff]   ;;  %v484_v14 = vld [vmem:[%s604_s1 + $0x50] sm:$0xff]  }
   0x4   :  { %432 = vmatprep.subr.bf16.mxu0 %v476_v2  ;;  %459 = vmatprep.subr.bf16.mxu1 %v476_v2  ;;  %v481_v9 = vld [vmem:[%s604_s1 + $0x20] sm:$0xff]   ;;  %v95_v11 = vsub.s32 0, %v94_v8  ;;  %v483_v12 = vld [vmem:[%s604_s1 + $0x18] sm:$0xff]   ;;  %v99_v13 = vsub.s32 1, %v94_v8  ;;  %v49_v16 = vld [vmem:[%s603_s0 + $0x10] sm:$0xff] }
   0x5   :  { %v47_v15 = vld [vmem:[%s603_s0] sm:$0xff]  ;;  %v85_v20 = vunpack.c.l.bf16 %v49_v16  ;;  %v86_v21 = vunpack.c.h.bf16 %v49_v16  ;;  %v53_v24 = vld [vmem:[%s603_s0 + $0x30] sm:$0xff]  ;;  %v486_v34 = vld [vmem:[%s604_s1 + $0x48] sm:$0xff]  }
   0x6   :  { %v91_v17 = vld [vmem:[%s605_s2] sm:$0x3]  ;;  %v83_v18 = vunpack.c.l.bf16 %v47_v15  ;;  %v84_v19 = vunpack.c.h.bf16 %v47_v15  ;;  %v485_v29 = vld [vmem:[%s604_s1 + $0x10] sm:$0xff]   ;;  %v89_v32 = vunpack.c.l.bf16 %v53_v24  ;;  %v90_v33 = vunpack.c.h.bf16 %v53_v24  ;;  %v487_v46 = vld [vmem:[%s604_s1 + $0x8] sm:$0xff]  }
   0x7   :  { %433 = vmatpush3.bf16.msra.mxu0 %v477_v3  ;;  %467 = vmatpush3.bf16.msra.mxu1 %v477_v3  ;;  %v111_v22 = vld [vmem:[%s606_s3] sm:$0x3]  ;;  %v96_v25 = vrot.slane %v91_v17, %v95_v11  ;;  %v100_v26 = vrot.slane %v91_v17, %v99_v13 }
   0x8   :  { %434 = vmatprep.subr.bf16.mxu0 %v478_v4  ;;  %460 = vmatprep.subr.bf16.mxu1 %v478_v4  ;;  %v51_v23 = vld [vmem:[%s603_s0 + $0x20] sm:$0xff]  ;;  %v116_v27 = vrot.slane %v111_v22, %v95_v11  ;;  %v120_v28 = vrot.slane %v111_v22, %v99_v13 }
   0x9   :  { %v87_v30 = vunpack.c.l.bf16 %v51_v23  ;;  %v88_v31 = vunpack.c.h.bf16 %v51_v23  ;;  %v104_v35 = vmul.f32 %v100_v26, %v84_v19  ;;  %v106_v36 = vmul.f32 %v100_v26, %v86_v21  ;;  %v488_v50 = vld [vmem:[%s604_s1 + $0x40] sm:$0xff]  }
   0xa   :  { %v103_v37 = vmul.f32 %v96_v25, %v83_v18  ;;  %v110_v39 = vmul.f32 %v100_v26, %v90_v33  ;;  %v105_v40 = vmul.f32 %v96_v25, %v85_v20  ;;  %v109_v45 = vmul.f32 %v96_v25, %v89_v32  ;;  %v489_v61 = vld [vmem:[%s604_s1] sm:$0xff]  }
   0xb   :  { %435 = vmatpush3.bf16.msra.mxu0 %v479_v6  ;;  %468 = vmatpush3.bf16.msra.mxu1 %v479_v6  ;;  %v108_v38 = vmul.f32 %v100_v26, %v88_v31  ;;  %v107_v41 = vmul.f32 %v96_v25, %v87_v30  ;;  %v124_v42 = vadd.f32 %v120_v28, %v104_v35  ;;  %v409_v5 = vld [vmem:[%s607_s4] ss:$0 sm:$0xff] }
   0xc   :  { %436 = vmatprep.subr.bf16.mxu0 %v480_v7  ;;  %461 = vmatprep.subr.bf16.mxu1 %v480_v7  ;;  %v126_v43 = vadd.f32 %v120_v28, %v106_v36  ;;  %v123_v44 = vadd.f32 %v116_v27, %v103_v37  ;;  %v130_v48 = vadd.f32 %v120_v28, %v110_v39  ;;  %v410_v13 = vld [vmem:[%s608_s5] ss:$0 sm:$0xff] }
   0xd   :  { %v128_v47 = vadd.f32 %v120_v28, %v108_v38  ;;  %v125_v49 = vadd.f32 %v116_v27, %v105_v40  ;;  %v132_v51 = vmax.f32 %v124_v42, 0.0  ;;  %v127_v53 = vadd.f32 %v116_v27, %v107_v41 }
   0xe   :  { %v134_v52 = vmax.f32 %v126_v43, 0.0  ;;  %v138_v55 = vmax.f32 %v130_v48, 0.0  ;;  %v129_v56 = vadd.f32 %v116_v27, %v109_v45  ;;  %v131_v58 = vmax.f32 %v123_v44, 0.0 }
   0xf   :  { %437 = vmatpush3.bf16.msra.mxu0 %v481_v9  ;;  %469 = vmatpush3.bf16.msra.mxu1 %v481_v9  ;;  %v136_v54 = vmax.f32 %v128_v47, 0.0  ;;  %v133_v59 = vmax.f32 %v125_v49, 0.0  ;;  %v135_v60 = vmax.f32 %v127_v53, 0.0 }
  0x10   :  { %438 = vmatprep.subr.bf16.mxu0 %v482_v10  ;;  %462 = vmatprep.subr.bf16.mxu1 %v482_v10  ;;  %v140_v57 = vpack.c.bf16 %v134_v52, %v132_v51  ;;  %v137_v63 = vmax.f32 %v129_v56, 0.0 }
  0x11   :  { %v142_v62 = vpack.c.bf16 %v138_v55, %v136_v54  ;;  %v139_v0 = vpack.c.bf16 %v133_v59, %v131_v58 }
  0x12   :  { %307 = vmatprep.mubr.bf16.mxu0 %v140_v57  ;;  %v141_v1 = vpack.c.bf16 %v137_v63, %v135_v60 }
  0x13   :  { %439 = vmatpush3.bf16.msra.mxu0 %v483_v12  ;;  %470 = vmatpush3.bf16.msra.mxu1 %v483_v12 }
  0x14   :  { %440 = vmatprep.subr.bf16.mxu0 %v484_v14  ;;  %463 = vmatprep.subr.bf16.mxu1 %v484_v14 }
  0x15   :  { %315 = vmatprep.mubr.bf16.mxu1 %v142_v62 }
  0x17   :  { %441 = vmatpush3.bf16.msra.mxu0 %v485_v29  ;;  %471 = vmatpush3.bf16.msra.mxu1 %v485_v29 }
  0x18   :  { %442 = vmatprep.subr.bf16.mxu0 %v486_v34  ;;  %464 = vmatprep.subr.bf16.mxu1 %v486_v34 }
  0x1b   :  { %443 = vmatpush3.bf16.msra.mxu0 %v487_v46  ;;  %472 = vmatpush3.bf16.msra.mxu1 %v487_v46 }
  0x1c   :  { %444 = vmatprep.subr.bf16.mxu0 %v488_v50  ;;  %465 = vmatprep.subr.bf16.mxu1 %v488_v50 }
  0x1f   :  { %445 = vmatpush3.bf16.msra.mxu0 %v489_v61  ;;  %473 = vmatpush3.bf16.msra.mxu1 %v489_v61 }
  0x22   :  { %308 = vmatmul.mubr.bf16.vlgmr.msra.gmra.mxu0 %v139_v0  ;;  %316 = vmatmul.mubr.bf16.vlgmr.msra.gmra.mxu1 %v141_v1 }
  0xe2   :  { %v446_v2 = vpop.f32.mrf.mxu0  ;;  %v452_v3 = vpop.f32.mrf.mxu1 }
  0xe4   :  { %v447_v4 = vpop.f32.mrf.mxu0  ;;  %v453_v6 = vpop.f32.mrf.mxu1 }
  0xe5   :  { %v448_v7 = vadd.f32 %v447_v4, %v446_v2  ;;  %v454_v8 = vadd.f32 %v453_v6, %v452_v3 }
  0xe6   :  { %v449_v9 = vpop.f32.mrf.mxu0  ;;  %v455_v10 = vpop.f32.mrf.mxu1 }
  0xe7   :  { %v346_v11 = vmul.f32 %v448_v7, %v409_v5  ;;  %v348_v12 = vmul.f32 %v454_v8, %v409_v5 }
  0xe8   :  { %v450_v14 = vpop.f32.mrf.mxu0  ;;  %v456_v15 = vpop.f32.mrf.mxu1 }
  0xe9   :  { %v451_v16 = vadd.f32 %v450_v14, %v449_v9  ;;  %v457_v17 = vadd.f32 %v456_v15, %v455_v10  ;;  %v357_v18 = vadd.f32 %v410_v13, %v346_v11  ;;  %v359_v19 = vadd.f32 %v410_v13, %v348_v12 }
  0xeb   :  { %v347_v20 = vmul.f32 %v451_v16, %v409_v5  ;;  %v349_v21 = vmul.f32 %v457_v17, %v409_v5  ;;  %v361_v24 = vmax.f32 %v357_v18, 0.0  ;;  %v363_v25 = vmax.f32 %v359_v19, 0.0 }
  0xed   :  { %v358_v22 = vadd.f32 %v410_v13, %v347_v20  ;;  %v360_v23 = vadd.f32 %v410_v13, %v349_v21 }
  0xef   :  { %v362_v26 = vmax.f32 %v358_v22, 0.0  ;;  %v364_v27 = vmax.f32 %v360_v23, 0.0 }
  0xf1   :  { %v422_v28 = vpack.c.bf16 %v362_v26, %v361_v24  ;;  %v427_v29 = vpack.c.bf16 %v364_v27, %v363_v25 }
  0xf3   :  { %423 = vst [vmem:[%s609_s6] sm:$0xff] %v422_v28   ;;  %429 = vst [vmem:[%s609_s6 + $0x8] sm:$0xff] %v427_v29  }

// kernel: densenet121_forward.143
= control target key start
LH: loop header
LB: loop body
LE: loop exit
PB: predicated region body
PF: predicated region fallthrough
CT: control target
= control target key end

     0   :  { %vm30_vm0 = vcmask 261120   ;;  %v788_v0 = vmov 0.0   ;;  %vm789_vm1 = vmmov 0   ;;  %v790_v3 = vmov 0   ;;  %s1026_s1 = inlined_call_operand.vmem [shape: bf16[128,288], index: 1, kind: input, shape index: {}]   ;;  %s1027_s2 = inlined_call_operand.vmem [shape: f32[1,128], index: 2, kind: input, shape index: {}, may-alias: {2,3}]   ;;  %s1028_s3 = inlined_call_operand.vmem [shape: f32[1,128], index: 3, kind: input, shape index: {}, may-alias: {2,3}]   ;;  %s1029_s4 = inlined_call_operand.vmem [shape: f32[1,288], index: 4, kind: input, shape index: {}, may-alias: {4,5}]   ;;  %s1030_s5 = inlined_call_operand.vmem [shape: f32[1,288], index: 5, kind: input, shape index: {}, may-alias: {4,5}]   ;;  %s1031_s0 = inlined_call_operand.vmem [shape: bf16[72,128], index: 0, kind: input, shape index: {}]   ;;  %s1032_s6 = inlined_call_operand.vmem [shape: bf16[72,288], index: 6, kind: output, shape index: {}]  }
   0x1   :  { %712 = vmatprep.subr.bf16.mxu1 %v788_v0  ;;  %v751_v1 = vld [vmem:[%s1026_s1 + $0xac] ss:$12 sps:$4 sm:$0xff]   ;;  %728 = vmatprep.mubr.msk.bf16.mxu1 %vm789_vm1, %v788_v0  ;;  %31 = vst.msk [vmem:[#allocation2 + $0x10] sm:$0xff] %vm30_vm0, %v788_v0  ;;  %34 = vst.msk [vmem:[#allocation2 + $0x28] sm:$0xff] %vm30_vm0, %v788_v0  ;;  %v753_v2 = vld [vmem:[%s1026_s1 + $0xb0] ss:$12 sps:$4 sm:$0xff]  }
   0x2   :  { %37 = vst.msk [vmem:[#allocation2 + $0x40] sm:$0xff] %vm30_vm0, %v788_v0  ;;  %40 = vst.msk [vmem:[#allocation2 + $0x58] sm:$0xff] %vm30_vm0, %v788_v0  ;;  %312 = vmatprep.mubr.bf16.mxu0 %v790_v3  ;;  %280 = vmatprep.subr.bf16.mxu0 %v751_v1  ;;  %v754_v4 = vld [vmem:[%s1026_s1 + $0xa8] ss:$12 sps:$4 sm:$0xff]   ;;  %v757_v6 = vld [vmem:[%s1026_s1 + $0x98] ss:$12 sps:$4 sm:$0xff]  }
   0x3   :  { %43 = vst.msk [vmem:[#allocation2 + $0x70] sm:$0xff] %vm30_vm0, %v788_v0  ;;  %46 = vst.msk [vmem:[#allocation2 + $0x88] sm:$0xff] %vm30_vm0, %v788_v0  ;;  %713 = vmatpush3.bf16.msra.mxu1 %v753_v2  ;;  %v755_v5 = vld [vmem:[%s1026_s1 + $0x94] ss:$12 sps:$4 sm:$0xff]   ;;  %281 = vmatpush1.bf16.msra.mxu0 %v754_v4  ;;  %v758_v7 = vld [vmem:[%s1026_s1 + $0x90] ss:$12 sps:$4 sm:$0xff]  }
   0x4   :  { %49 = vst.msk [vmem:[#allocation2 + $0xa0] sm:$0xff] %vm30_vm0, %v788_v0  ;;  %52 = vst.msk [vmem:[#allocation2 + $0xb8] sm:$0xff] %vm30_vm0, %v788_v0  ;;  %714 = vmatprep.subr.bf16.mxu1 %v788_v0  ;;  %282 = vmatprep.subr.bf16.mxu0 %v755_v5  ;;  %v759_v8 = vld [vmem:[%s1026_s1 + $0x7c] ss:$12 sps:$4 sm:$0xff]   ;;  %v761_v9 = vld [vmem:[%s1026_s1 + $0x80] ss:$12 sps:$4 sm:$0xff]  }
   0x5   :  { %55 = vst.msk [vmem:[#allocation2 + $0xd0] sm:$0xff] %vm30_vm0, %v788_v0  ;;  %v762_v10 = vld [vmem:[%s1026_s1 + $0x78] ss:$12 sps:$4 sm:$0xff]   ;;  %v765_v12 = vld [vmem:[%s1026_s1 + $0x68] ss:$12 sps:$4 sm:$0xff]   ;;  %vm612_vm2 = vcmask 257024  }
   0x6   :  { %v763_v11 = vld [vmem:[%s1026_s1 + $0x64] ss:$12 sps:$4 sm:$0xff]   ;;  %v766_v13 = vld [vmem:[%s1026_s1 + $0x60] ss:$12 sps:$4 sm:$0xff]   ;;  %v770_v16 = vld [vmem:[%s1026_s1 + $0x48] ss:$12 sps:$4 sm:$0xff]  }
   0x7   :  { %715 = vmatpush3.bf16.msra.mxu1 %v757_v6  ;;  %283 = vmatpush1.bf16.msra.mxu0 %v758_v7  ;;  %v767_v14 = vld [vmem:[%s1026_s1 + $0x4c] ss:$12 sps:$4 sm:$0xff]   ;;  %v769_v15 = vld [vmem:[%s1026_s1 + $0x50] ss:$12 sps:$4 sm:$0xff]   ;;  %v771_v17 = vld [vmem:[%s1026_s1 + $0x34] ss:$12 sps:$4 sm:$0xff]  }
   0x8   :  { %716 = vmatprep.subr.bf16.mxu1 %v788_v0  ;;  %284 = vmatprep.subr.bf16.mxu0 %v759_v8  ;;  %v773_v18 = vld [vmem:[%s1026_s1 + $0x38] ss:$12 sps:$4 sm:$0xff]   ;;  %v774_v19 = vld [vmem:[%s1026_s1 + $0x30] ss:$12 sps:$4 sm:$0xff]   ;;  %v777_v21 = vld [vmem:[%s1026_s1 + $0x20] ss:$12 sps:$4 sm:$0xff]  }
   0x9   :  { %v775_v20 = vld [vmem:[%s1026_s1 + $0x1c] ss:$12 sps:$4 sm:$0xff]   ;;  %v778_v22 = vld [vmem:[%s1026_s1 + $0x18] ss:$12 sps:$4 sm:$0xff]   ;;  %v782_v25 = vld [vmem:[%s1026_s1] ss:$12 sps:$4 sm:$0xff]  }
   0xa   :  { %v779_v23 = vld [vmem:[%s1026_s1 + $0x4] ss:$12 sps:$4 sm:$0xff]   ;;  %v781_v24 = vld [vmem:[%s1026_s1 + $0x8] ss:$12 sps:$4 sm:$0xff]   ;;  %v786_v29 = vld [vmem:[%s1031_s0 + $0x18] sm:$0xff]  }
   0xb   :  { %717 = vmatpush3.bf16.msra.mxu1 %v761_v9  ;;  %285 = vmatpush1.bf16.msra.mxu0 %v762_v10  ;;  %v783_v26 = vld [vmem:[%s1031_s0] sm:$0xff]   ;;  %v784_v27 = vld [vmem:[%s1031_s0 + $0x8] sm:$0xff]   ;;  %v785_v28 = vld [vmem:[%s1031_s0 + $0x10] sm:$0xff]  }
   0xc   :  { %718 = vmatprep.subr.bf16.mxu1 %v788_v0  ;;  %286 = vmatprep.subr.bf16.mxu0 %v763_v11  ;;  %v787_v30 = vld [vmem:[%s1031_s0 + $0x20] ss:$0 sps:$4 sm:$0xff]   ;;  %v67_v31 = vld [vmem:[#allocation2 + $0x10] sm:$0xff]  ;;  %v70_v36 = vld [vmem:[#allocation2 + $0x28] sm:$0xff] }
   0xd   :  { %v73_v43 = vld [vmem:[#allocation2 + $0x40] sm:$0xff]  ;;  %v76_v51 = vld [vmem:[#allocation2 + $0x58] sm:$0xff]  ;;  %v79_v60 = vld [vmem:[#allocation2 + $0x70] sm:$0xff] }
   0xe   :  { %v82_v5 = vld [vmem:[#allocation2 + $0x88] sm:$0xff] }
   0xf   :  { %719 = vmatpush3.bf16.msra.mxu1 %v765_v12  ;;  %287 = vmatpush1.bf16.msra.mxu0 %v766_v13 }
  0x10   :  { %720 = vmatprep.subr.bf16.mxu1 %v788_v0  ;;  %288 = vmatprep.subr.bf16.mxu0 %v767_v14  ;;  %v85_v14 = vld [vmem:[#allocation2 + $0xa0] sm:$0xff] }
  0x13   :  { %721 = vmatpush3.bf16.msra.mxu1 %v769_v15  ;;  %289 = vmatpush1.bf16.msra.mxu0 %v770_v16 }
  0x14   :  { %722 = vmatprep.subr.bf16.mxu1 %v788_v0  ;;  %290 = vmatprep.subr.bf16.mxu0 %v771_v17 }
  0x17   :  { %723 = vmatpush3.bf16.msra.mxu1 %v773_v18  ;;  %291 = vmatpush1.bf16.msra.mxu0 %v774_v19 }
  0x18   :  { %724 = vmatprep.subr.bf16.mxu1 %v788_v0  ;;  %292 = vmatprep.subr.bf16.mxu0 %v775_v20 }
  0x1b   :  { %725 = vmatpush3.bf16.msra.mxu1 %v777_v21  ;;  %293 = vmatpush1.bf16.msra.mxu0 %v778_v22 }
  0x1c   :  { %726 = vmatprep.subr.bf16.mxu1 %v788_v0  ;;  %294 = vmatprep.subr.bf16.mxu0 %v779_v23  ;;  %v88_v23 = vld [vmem:[#allocation2 + $0xb8] sm:$0xff] }
  0x1f   :  { %727 = vmatpush3.bf16.msra.mxu1 %v781_v24  ;;  %295 = vmatpush1.bf16.msra.mxu0 %v782_v25 }
  0x22   :  { %729 = vmatmul.mubr.bf16.vlgmr.msra.gmra.mxu1 %v783_v26  ;;  %313 = vmatmul.mubr.bf16.vlgmr.msra.gmra.mxu0 %v783_v26 }
  0x23   :  { %732 = vmatprep.mubr.msk.bf16.mxu1 %vm789_vm1, %v788_v0  ;;  %322 = vmatprep.mubr.bf16.mxu0 %v790_v3 }
  0x2a   :  { %733 = vmatmul.mubr.bf16.gmra.mxu1 %v784_v27  ;;  %323 = vmatmul.mubr.bf16.gmra.mxu0 %v784_v27 }
  0x2b   :  { %736 = vmatprep.mubr.msk.bf16.mxu1 %vm789_vm1, %v788_v0  ;;  %332 = vmatprep.mubr.bf16.mxu0 %v790_v3 }
  0x32   :  { %737 = vmatmul.mubr.bf16.gmra.mxu1 %v785_v28  ;;  %333 = vmatmul.mubr.bf16.gmra.mxu0 %v785_v28 }
  0x33   :  { %740 = vmatprep.mubr.msk.bf16.mxu1 %vm789_vm1, %v788_v0  ;;  %342 = vmatprep.mubr.bf16.mxu0 %v790_v3 }
  0x3a   :  { %741 = vmatmul.mubr.bf16.gmra.mxu1 %v786_v29  ;;  %343 = vmatmul.mubr.bf16.gmra.mxu0 %v786_v29 }
  0x3b   :  { %744 = vmatprep.mubr.msk.bf16.mxu1 %vm789_vm1, %v788_v0  ;;  %352 = vmatprep.mubr.bf16.mxu0 %v790_v3 }
  0x42   :  { %745 = vmatmul.mubr.bf16.gmra.mxu1 %v787_v30  ;;  %353 = vmatmul.mubr.bf16.gmra.mxu0 %v787_v30 }
  0xe2   :  { %v395_v32 = vpop.f32.mrf.mxu1  ;;  %v314_v34 = vpop.f32.mrf.mxu0 }
  0xe3   :  { %v435_v33 = vadd.f32 %v395_v32, %v67_v31  ;;  %v91_v32 = vld [vmem:[#allocation2 + $0xd0] sm:$0xff] }
  0xe4   :  { %v730_v35 = vpop.f32.mrf.mxu1  ;;  %v316_v37 = vpop.f32.mrf.mxu0 }
  0xe5   :  { %463 = vst.msk [vmem:[#allocation2 + $0x10] sm:$0xff] %vm30_vm0, %v435_v33  ;;  %v681_v41 = vpack.c.bf16 %v316_v37, %v314_v34 }
  0xe6   :  { %v398_v38 = vpop.f32.mrf.mxu1  ;;  %v318_v40 = vpop.f32.mrf.mxu0 }
  0xe7   :  { %v438_v39 = vadd.f32 %v398_v38, %v70_v36  ;;  %611 = vst [vmem:[%s1032_s6] sm:$0xff] %v681_v41 }
  0xe8   :  { %v731_v42 = vpop.f32.mrf.mxu1  ;;  %v320_v44 = vpop.f32.mrf.mxu0 }
  0xe9   :  { %466 = vst.msk [vmem:[#allocation2 + $0x28] sm:$0xff] %vm30_vm0, %v438_v39  ;;  %v683_v49 = vpack.c.bf16 %v320_v44, %v318_v40 }
  0xea   :  { %v403_v45 = vpop.f32.mrf.mxu1  ;;  %v324_v47 = vpop.f32.mrf.mxu0 }
  0xeb   :  { %v441_v46 = vadd.f32 %v403_v45, %v73_v43  ;;  %614 = vst [vmem:[%s1032_s6 + $0xc] sm:$0xff] %v683_v49 }
  0xec   :  { %v493_v48 = vld [vmem:[#allocation2 + $0x10] sm:$0xff]  ;;  %v734_v50 = vpop.f32.mrf.mxu1  ;;  %v326_v53 = vpop.f32.mrf.mxu0 }
  0xed   :  { %v682_v52 = vpack.c.bf16 %v493_v48, %v493_v48  ;;  %469 = vst.msk [vmem:[#allocation2 + $0x40] sm:$0xff] %vm30_vm0, %v441_v46  ;;  %v685_v58 = vpack.c.bf16 %v326_v53, %v324_v47 }
  0xee   :  { %v406_v54 = vpop.f32.mrf.mxu1  ;;  %v328_v56 = vpop.f32.mrf.mxu0 }
  0xef   :  { %613 = vst.msk [vmem:[%s1032_s6 + $0x8] sm:$0xf] %vm612_vm2, %v682_v52  ;;  %v444_v55 = vadd.f32 %v406_v54, %v76_v51  ;;  %616 = vst [vmem:[%s1032_s6 + $0x18] sm:$0xff] %v685_v58 }
  0xf0   :  { %v496_v57 = vld [vmem:[#allocation2 + $0x28] sm:$0xff]  ;;  %v735_v59 = vpop.f32.mrf.mxu1  ;;  %v330_v62 = vpop.f32.mrf.mxu0 }
  0xf1   :  { %v684_v61 = vpack.c.bf16 %v496_v57, %v496_v57  ;;  %472 = vst.msk [vmem:[#allocation2 + $0x58] sm:$0xff] %vm30_vm0, %v444_v55  ;;  %v687_v3 = vpack.c.bf16 %v330_v62, %v328_v56 }
  0xf2   :  { %v411_v63 = vpop.f32.mrf.mxu1  ;;  %v334_v1 = vpop.f32.mrf.mxu0 }
  0xf3   :  { %615 = vst.msk [vmem:[%s1032_s6 + $0x14] sm:$0xf] %vm612_vm2, %v684_v61  ;;  %v447_v0 = vadd.f32 %v411_v63, %v79_v60  ;;  %618 = vst [vmem:[%s1032_s6 + $0x24] sm:$0xff] %v687_v3 }
  0xf4   :  { %v499_v2 = vld [vmem:[#allocation2 + $0x40] sm:$0xff]  ;;  %v738_v4 = vpop.f32.mrf.mxu1  ;;  %v336_v7 = vpop.f32.mrf.mxu0 }
  0xf5   :  { %v686_v6 = vpack.c.bf16 %v499_v2, %v499_v2  ;;  %475 = vst.msk [vmem:[#allocation2 + $0x70] sm:$0xff] %vm30_vm0, %v447_v0  ;;  %v689_v12 = vpack.c.bf16 %v336_v7, %v334_v1 }
  0xf6   :  { %v414_v8 = vpop.f32.mrf.mxu1  ;;  %v338_v10 = vpop.f32.mrf.mxu0 }
  0xf7   :  { %617 = vst.msk [vmem:[%s1032_s6 + $0x20] sm:$0xf] %vm612_vm2, %v686_v6  ;;  %v450_v9 = vadd.f32 %v414_v8, %v82_v5  ;;  %620 = vst [vmem:[%s1032_s6 + $0x30] sm:$0xff] %v689_v12 }
  0xf8   :  { %v502_v11 = vld [vmem:[#allocation2 + $0x58] sm:$0xff]  ;;  %v739_v13 = vpop.f32.mrf.mxu1  ;;  %v340_v16 = vpop.f32.mrf.mxu0 }
  0xf9   :  { %v688_v15 = vpack.c.bf16 %v502_v11, %v502_v11  ;;  %478 = vst.msk [vmem:[#allocation2 + $0x88] sm:$0xff] %vm30_vm0, %v450_v9  ;;  %v691_v21 = vpack.c.bf16 %v340_v16, %v338_v10 }
  0xfa   :  { %v419_v17 = vpop.f32.mrf.mxu1  ;;  %v344_v19 = vpop.f32.mrf.mxu0 }
  0xfb   :  { %619 = vst.msk [vmem:[%s1032_s6 + $0x2c] sm:$0xf] %vm612_vm2, %v688_v15  ;;  %v453_v18 = vadd.f32 %v419_v17, %v85_v14  ;;  %622 = vst [vmem:[%s1032_s6 + $0x3c] sm:$0xff] %v691_v21 }
  0xfc   :  { %v505_v20 = vld [vmem:[#allocation2 + $0x70] sm:$0xff]  ;;  %v742_v22 = vpop.f32.mrf.mxu1  ;;  %v346_v25 = vpop.f32.mrf.mxu0 }
  0xfd   :  { %v690_v24 = vpack.c.bf16 %v505_v20, %v505_v20  ;;  %481 = vst.msk [vmem:[#allocation2 + $0xa0] sm:$0xff] %vm30_vm0, %v453_v18  ;;  %v693_v30 = vpack.c.bf16 %v346_v25, %v344_v19 }
  0xfe   :  { %v422_v26 = vpop.f32.mrf.mxu1  ;;  %v348_v28 = vpop.f32.mrf.mxu0 }
  0xff   :  { %621 = vst.msk [vmem:[%s1032_s6 + $0x38] sm:$0xf] %vm612_vm2, %v690_v24  ;;  %v456_v27 = vadd.f32 %v422_v26, %v88_v23  ;;  %624 = vst [vmem:[%s1032_s6 + $0x48] sm:$0xff] %v693_v30 }
 0x100   :  { %v508_v29 = vld [vmem:[#allocation2 + $0x88] sm:$0xff]  ;;  %v743_v31 = vpop.f32.mrf.mxu1  ;;  %v350_v34 = vpop.f32.mrf.mxu0 }
 0x101   :  { %v692_v33 = vpack.c.bf16 %v508_v29, %v508_v29  ;;  %484 = vst.msk [vmem:[#allocation2 + $0xb8] sm:$0xff] %vm30_vm0, %v456_v27  ;;  %v695_v39 = vpack.c.bf16 %v350_v34, %v348_v28 }
 0x102   :  { %v427_v35 = vpop.f32.mrf.mxu1  ;;  %v354_v37 = vpop.f32.mrf.mxu0 }
 0x103   :  { %623 = vst.msk [vmem:[%s1032_s6 + $0x44] sm:$0xf] %vm612_vm2, %v692_v33  ;;  %v459_v36 = vadd.f32 %v427_v35, %v91_v32  ;;  %626 = vst [vmem:[%s1032_s6 + $0x54] sm:$0xff] %v695_v39 }
 0x104   :  { %v511_v38 = vld [vmem:[#allocation2 + $0xa0] sm:$0xff]  ;;  %v746_v40 = vpop.f32.mrf.mxu1  ;;  %v356_v42 = vpop.f32.mrf.mxu0 }
 0x105   :  { %v694_v41 = vpack.c.bf16 %v511_v38, %v511_v38  ;;  %487 = vst.msk [vmem:[#allocation2 + $0xd0] sm:$0xff] %vm30_vm0, %v459_v36  ;;  %v697_v46 = vpack.c.bf16 %v356_v42, %v354_v37 }
 0x106   :  { %v430_v43 = vpop.f32.mrf.mxu1  ;;  %v358_v44 = vpop.f32.mrf.mxu0 }
 0x107   :  { %625 = vst.msk [vmem:[%s1032_s6 + $0x50] sm:$0xf] %vm612_vm2, %v694_v41  ;;  %628 = vst [vmem:[%s1032_s6 + $0x60] sm:$0xff] %v697_v46 }
 0x108   :  { %v514_v45 = vld [vmem:[#allocation2 + $0xb8] sm:$0xff]  ;;  %v747_v47 = vpop.f32.mrf.mxu1  ;;  %v359_v49 = vpop.f32.mrf.mxu0 }
 0x109   :  { %v696_v48 = vpack.c.bf16 %v514_v45, %v514_v45 }
 0x10b   :  { %627 = vst.msk [vmem:[%s1032_s6 + $0x5c] sm:$0xf] %vm612_vm2, %v696_v48 }
 0x10c   :  { %v517_v50 = vld [vmem:[#allocation2 + $0xd0] sm:$0xff] }
 0x10d   :  { %v698_v51 = vpack.c.bf16 %v517_v50, %v517_v50 }
 0x10f   :  { %629 = vst.msk [vmem:[%s1032_s6 + $0x68] sm:$0xf] %vm612_vm2, %v698_v51 }

// kernel: densenet121_forward.152
= control target key start
LH: loop header
LB: loop body
LE: loop exit
PB: predicated region body
PF: predicated region fallthrough
CT: control target
= control target key end

     0   :  { %s1030_s21 = smov 0   ;;  %s1032_s22 = smov 0   ;;  %s1154_s0 = inlined_call_operand.vmem [shape: bf16[32,512], index: 0, kind: input, shape index: {}]   ;;  %s1155_s1 = inlined_call_operand.vmem [shape: bf16[512,128], index: 1, kind: input, shape index: {}]   ;;  %s1156_s2 = inlined_call_operand.vmem [shape: f32[1,512], index: 2, kind: input, shape index: {}]   ;;  %s1157_s3 = inlined_call_operand.vmem [shape: f32[1,512], index: 3, kind: input, shape index: {}]   ;;  %s1158_s4 = inlined_call_operand.vmem [shape: f32[1,128], index: 4, kind: input, shape index: {}]   ;;  %s1159_s5 = inlined_call_operand.vmem [shape: f32[1,128], index: 5, kind: input, shape index: {}]   ;;  %s1160_s6 = inlined_call_operand.vmem [shape: bf16[32,128], index: 6, kind: output, shape index: {}]  }
   0x1   :  { %s1034_s23 = smov 0   ;;  %s1036_s24 = smov 0  }
   0x2   :  { %s1038_s25 = smov 0  }
   0x3 LB: > { %s25_s26 = sadd.s32 1, %s988_s24  ;;  %p44_p1 = scmp.ne.s32.totalorder %s980_s22, %s976_s21  ;;  %s992_s25 = sphi %s1038_s25, %s16_s25   ;;  %s988_s24 = sphi %s1036_s24, %s1164_s24   ;;  %s984_s23 = sphi %s1034_s23, %s1163_s23   ;;  %s980_s22 = sphi %s1032_s22, %s1162_s22   ;;  %s976_s21 = sphi %s1030_s21, %s1161_s21  }
   0x4   : > { %p26_p0 = scmp.ge.s32.totalorder %s25_s26, 2  ;;  %p45_p2 = scmp.eq.s32.totalorder %s992_s25, 0 }
   0x5   : > { %s37_s28 = sadd.s32 1, %s980_s22  ;;  %p799_p5 = scmp.ge.s32.totalorder %s992_s25, 2 }
   0x6   : > { %s1166_s26 = smov (%p26_p0, %s25_s26), 0  ;;  %p46_p3 = por %p45_p2, %p44_p1 }
   0x7   : > { %s33_s27 = ssub.s32 %s988_s24, %s1166_s26  ;;  %222 = sbr.rel (%p799_p5) target bundleno = 18 (0x12), region = 24 }
   0x8   : > { %p35_p4 = scmp.eq.s32.totalorder %s33_s27, 0 }
   0xa   : > { %s1065_s29 = scalar_select %p35_p4, %s980_s22, %s37_s28  }
   0xc   : > { %225 = sbr.rel (!%p46_p3) target bundleno = 18 (0x12), region = 28  ;;  %s227_s30 = sand.u32 (%p46_p3), 1, %s980_s22  }
   0xd   : > { %s837_s7 = sshll.u32 (%p46_p3), %s988_s24, 3  ;;  %s800_s8 = sshll.u32 (%p46_p3), %s227_s30, 5 }
   0xe   : > { %s235_s11 = scalar_lea.vmem (%p46_p3), %s1154_s0, %s837_s7  ;;  %s229_s12 = scalar_lea.vmem (%p46_p3), [#allocation3], %s800_s8 }
   0xf   : > { %v270_v0 = vld [vmem:[%s235_s11] sm:$0xff] (%p46_p3)  ;;  %v272_v1 = vld [vmem:[%s235_s11 + $0x10] sm:$0xff] (%p46_p3) }
  0x10   : > { %v274_v2 = vld [vmem:[%s235_s11 + $0x20] sm:$0xff] (%p46_p3)  ;;  %271 = vst [vmem:[%s229_s12] sm:$0xff] (%p46_p3), %v270_v0  ;;  %273 = vst [vmem:[%s229_s12 + $0x8] sm:$0xff] (%p46_p3), %v272_v1  ;;  %v276_v3 = vld [vmem:[%s235_s11 + $0x30] sm:$0xff] (%p46_p3) }
  0x11   : > { %275 = vst [vmem:[%s229_s12 + $0x10] sm:$0xff] %v274_v2  ;;  %277 = vst [vmem:[%s229_s12 + $0x18] sm:$0xff] %v276_v3 }
  0x12 PF: > { %p803_p6 = scmp.ge.s32.totalorder %s992_s25, 1  ;;  %p307_p7 = scmp.lt.s32.totalorder %s992_s25, 3 }
  0x14   : > { %p308_p8 = pnand %p803_p6, %p307_p7 }
  0x15   : > { %s314_s13 = sand.u32 (!%p308_p8), 1, %s976_s21   ;;  %s805_s14 = sshll.u32 (!%p308_p8), %s984_s23, 5 }
  0x16   : > { %311 = sbr.rel (%p308_p8) target bundleno = 291 (0x123), region = 78  ;;  %s804_s15 = sshll.u32 (!%p308_p8), %s314_s13, 5 }
  0x17   : > { %p359_p9 = scmp.lt.s32.totalorder (!%p308_p8), %s805_s14, 63  ;;  %s807_s16 = sshll.u32 (!%p308_p8), %s984_s23, 1 }
  0x18   : > { %p365_p10 = scmp.lt.s32.totalorder (!%p308_p8), %s807_s16, 3  ;;  %s1093_s9 = scalar_lea.vmem (!%p308_p8), [#allocation3], %s804_s15 }
  0x19   : > { %p809_p11 = scmp.ne.s32.totalorder (!%p308_p8), %s984_s23, 0 }
  0x1b   : > { %s1168_s14 = smov (!%p359_p9, %s805_s14), 63  ;;  %s1170_s16 = smov (!%p365_p10, %s807_s16), 3 }
  0x1c   : > { %s806_s17 = sshll.u32 %s1168_s14, 2  ;;  %s367_s21 = scalar_lea.vmem %s1156_s2, %s1170_s16 }
  0x1d   : > { %s1081_s20 = scalar_lea.vmem %s1155_s1, %s806_s17  ;;  %s372_s8 = scalar_lea.vmem %s1157_s3, %s1170_s16 }
  0x1e   : > { %384 = sbr.rel (%p809_p11) target bundleno = 38 (0x26), region = 86 }
  0x23   : > { %v994_v4 = vmov 0.0  }
  0x24   : > { %385 = vst [vmem:[#allocation2 + $0x10] sm:$0xff] %v994_v4  ;;  %386 = vst [vmem:[#allocation2] sm:$0xff] %v994_v4 }
  0x25   : > { %387 = vst [vmem:[#allocation2 + $0x18] sm:$0xff] %v994_v4  ;;  %388 = vst [vmem:[#allocation2 + $0x8] sm:$0xff] %v994_v4 }
  0x26 PF: > { %v938_v5 = vld [vmem:[%s1081_s20 + $0x78] sm:$0xff]   ;;  %v940_v7 = vld [vmem:[%s1081_s20 + $0x70] sm:$0xff]   ;;  %v942_v9 = vld [vmem:[%s1081_s20 + $0x68] sm:$0xff]   ;;  %v403_v10 = vlaneseq  ;;  %p826_p12 = scmp.ne.s32.totalorder %s984_s23, 1 }
  0x27   : > { %v939_v6 = vld [vmem:[%s1081_s20 + $0x38] sm:$0xff]   ;;  %853 = vmatprep.subr.bf16.mxu0 %v938_v5  ;;  %881 = vmatprep.subr.bf16.mxu1 %v938_v5  ;;  %v941_v8 = vld [vmem:[%s1081_s20 + $0x30] sm:$0xff]   ;;  %v943_v11 = vld [vmem:[%s1081_s20 + $0x28] sm:$0xff]  }
  0x28   : > { %854 = vmatpush3.bf16.msra.mxu0 %v939_v6  ;;  %889 = vmatpush3.bf16.msra.mxu1 %v939_v6  ;;  %v944_v12 = vld [vmem:[%s1081_s20 + $0x60] sm:$0xff]   ;;  %v404_v13 = vshrl.u32 %v403_v10, 7  ;;  %v946_v15 = vld [vmem:[%s1081_s20 + $0x58] sm:$0xff]   ;;  %v948_v19 = vld [vmem:[%s1081_s20 + $0x50] sm:$0xff]  }
  0x29   : > { %855 = vmatprep.subr.bf16.mxu0 %v940_v7  ;;  %882 = vmatprep.subr.bf16.mxu1 %v940_v7  ;;  %v945_v14 = vld [vmem:[%s1081_s20 + $0x20] sm:$0xff]   ;;  %v947_v17 = vld [vmem:[%s1081_s20 + $0x18] sm:$0xff]   ;;  %v390_v21 = vld [vmem:[%s1093_s9 + $0x8] sm:$0xff] }
  0x2a   : > { %v405_v16 = vsub.s32 0, %v404_v13  ;;  %v409_v18 = vsub.s32 1, %v404_v13  ;;  %v389_v20 = vld [vmem:[%s1093_s9] sm:$0xff]  ;;  %v395_v25 = vunpack.c.l.bf16 %v390_v21  ;;  %v396_v26 = vunpack.c.h.bf16 %v390_v21  ;;  %v391_v28 = vld [vmem:[%s1093_s9 + $0x10] sm:$0xff]  ;;  %v392_v29 = vld [vmem:[%s1093_s9 + $0x18] sm:$0xff] }
  0x2b   : > { %v401_v22 = vld [vmem:[%s367_s21] sm:$0x3]  ;;  %v393_v23 = vunpack.c.l.bf16 %v389_v20  ;;  %v394_v24 = vunpack.c.h.bf16 %v389_v20  ;;  %v949_v34 = vld [vmem:[%s1081_s20 + $0x10] sm:$0xff]   ;;  %v397_v35 = vunpack.c.l.bf16 %v391_v28  ;;  %v398_v36 = vunpack.c.h.bf16 %v391_v28  ;;  %v950_v39 = vld [vmem:[%s1081_s20 + $0x48] sm:$0xff]  }
  0x2c   : > { %856 = vmatpush3.bf16.msra.mxu0 %v941_v8  ;;  %890 = vmatpush3.bf16.msra.mxu1 %v941_v8  ;;  %v421_v27 = vld [vmem:[%s372_s8] sm:$0x3]  ;;  %v406_v30 = vrot.slane %v401_v22, %v405_v16  ;;  %v410_v31 = vrot.slane %v401_v22, %v409_v18  ;;  %v399_v37 = vunpack.c.l.bf16 %v392_v29  ;;  %v400_v38 = vunpack.c.h.bf16 %v392_v29  ;;  %v951_v51 = vld [vmem:[%s1081_s20 + $0x8] sm:$0xff]  }
  0x2d   : > { %857 = vmatprep.subr.bf16.mxu0 %v942_v9  ;;  %883 = vmatprep.subr.bf16.mxu1 %v942_v9  ;;  %v426_v32 = vrot.slane %v421_v27, %v405_v16  ;;  %v430_v33 = vrot.slane %v421_v27, %v409_v18  ;;  %v952_v55 = vld [vmem:[%s1081_s20 + $0x40] sm:$0xff]   ;;  %v453_v9 = vld [vmem:[#allocation2 + $0x10] sm:$0xff]  ;;  %v456_v21 = vld [vmem:[#allocation2 + $0x8] sm:$0xff] }
  0x2e   : > { %v414_v40 = vmul.f32 %v410_v31, %v394_v24  ;;  %v416_v41 = vmul.f32 %v410_v31, %v396_v26  ;;  %v413_v42 = vmul.f32 %v406_v30, %v393_v23  ;;  %v418_v43 = vmul.f32 %v410_v31, %v398_v36  ;;  %v953_v2 = vld [vmem:[%s1081_s20] sm:$0xff]  }
  0x2f   : > { %v420_v44 = vmul.f32 %v410_v31, %v400_v38  ;;  %v415_v45 = vmul.f32 %v406_v30, %v395_v25  ;;  %v417_v46 = vmul.f32 %v406_v30, %v397_v35  ;;  %v419_v50 = vmul.f32 %v406_v30, %v399_v37 }
  0x30   : > { %858 = vmatpush3.bf16.msra.mxu0 %v943_v11  ;;  %891 = vmatpush3.bf16.msra.mxu1 %v943_v11  ;;  %v434_v47 = vadd.f32 %v430_v33, %v414_v40  ;;  %v436_v48 = vadd.f32 %v430_v33, %v416_v41  ;;  %v433_v49 = vadd.f32 %v426_v32, %v413_v42  ;;  %v455_v11 = vld [vmem:[#allocation2 + $0x18] sm:$0xff] }
  0x31   : > { %859 = vmatprep.subr.bf16.mxu0 %v944_v12  ;;  %884 = vmatprep.subr.bf16.mxu1 %v944_v12  ;;  %v438_v52 = vadd.f32 %v430_v33, %v418_v43  ;;  %v440_v53 = vadd.f32 %v430_v33, %v420_v44  ;;  %v435_v54 = vadd.f32 %v426_v32, %v415_v45 }
  0x32   : > { %v442_v56 = vmax.f32 %v434_v47, 0.0  ;;  %v444_v57 = vmax.f32 %v436_v48, 0.0  ;;  %v437_v58 = vadd.f32 %v426_v32, %v417_v46  ;;  %v439_v61 = vadd.f32 %v426_v32, %v419_v50 }
  0x33   : > { %v446_v59 = vmax.f32 %v438_v52, 0.0  ;;  %v448_v60 = vmax.f32 %v440_v53, 0.0  ;;  %v441_v63 = vmax.f32 %v433_v49, 0.0  ;;  %v443_v0 = vmax.f32 %v435_v54, 0.0 }
  0x34   : > { %860 = vmatpush3.bf16.msra.mxu0 %v945_v14  ;;  %892 = vmatpush3.bf16.msra.mxu1 %v945_v14  ;;  %v450_v62 = vpack.c.bf16 %v444_v57, %v442_v56  ;;  %v445_v1 = vmax.f32 %v437_v58, 0.0  ;;  %v447_v4 = vmax.f32 %v439_v61, 0.0 }
  0x35   : > { %861 = vmatprep.subr.bf16.mxu0 %v946_v15  ;;  %885 = vmatprep.subr.bf16.mxu1 %v946_v15  ;;  %v452_v3 = vpack.c.bf16 %v448_v60, %v446_v59  ;;  %v449_v5 = vpack.c.bf16 %v443_v0, %v441_v63 }
  0x36   : > { %617 = vmatprep.mubr.bf16.mxu0 %v450_v62  ;;  %v451_v6 = vpack.c.bf16 %v447_v4, %v445_v1 }
  0x37   : > { %625 = vmatprep.mubr.bf16.mxu1 %v452_v3 }
  0x38   : > { %862 = vmatpush3.bf16.msra.mxu0 %v947_v17  ;;  %893 = vmatpush3.bf16.msra.mxu1 %v947_v17 }
  0x39   : > { %863 = vmatprep.subr.bf16.mxu0 %v948_v19  ;;  %886 = vmatprep.subr.bf16.mxu1 %v948_v19  ;;  %v454_v19 = vld [vmem:[#allocation2] sm:$0xff] }
  0x3c   : > { %864 = vmatpush3.bf16.msra.mxu0 %v949_v34  ;;  %894 = vmatpush3.bf16.msra.mxu1 %v949_v34 }
  0x3d   : > { %865 = vmatprep.subr.bf16.mxu0 %v950_v39  ;;  %887 = vmatprep.subr.bf16.mxu1 %v950_v39 }
  0x40   : > { %866 = vmatpush3.bf16.msra.mxu0 %v951_v51  ;;  %895 = vmatpush3.bf16.msra.mxu1 %v951_v51 }
  0x41   : > { %867 = vmatprep.subr.bf16.mxu0 %v952_v55  ;;  %888 = vmatprep.subr.bf16.mxu1 %v952_v55 }
  0x44   : > { %868 = vmatpush3.bf16.msra.mxu0 %v953_v2  ;;  %896 = vmatpush3.bf16.msra.mxu1 %v953_v2 }
  0x47   : > { %618 = vmatmul.mubr.bf16.vlgmr.msra.gmra.mxu0 %v449_v5  ;;  %626 = vmatmul.mubr.bf16.vlgmr.msra.gmra.mxu1 %v451_v6 }
 0x107   : > { %v869_v7 = vpop.f32.mrf.mxu0  ;;  %v875_v8 = vpop.f32.mrf.mxu1 }
 0x109   : > { %v870_v10 = vpop.f32.mrf.mxu0  ;;  %v876_v12 = vpop.f32.mrf.mxu1 }
 0x10a   : > { %v871_v13 = vadd.f32 %v870_v10, %v869_v7  ;;  %v877_v14 = vadd.f32 %v876_v12, %v875_v8 }
 0x10b   : > { %v872_v15 = vpop.f32.mrf.mxu0  ;;  %v878_v16 = vpop.f32.mrf.mxu1 }
 0x10c   : > { %v634_v17 = vadd.f32 %v871_v13, %v453_v9  ;;  %v636_v18 = vadd.f32 %v877_v14, %v455_v11 }
 0x10d   : > { %v873_v20 = vpop.f32.mrf.mxu0  ;;  %v879_v22 = vpop.f32.mrf.mxu1 }
 0x10e   : > { %638 = vst [vmem:[#allocation2 + $0x10] sm:$0xff] %v634_v17  ;;  %640 = vst [vmem:[#allocation2 + $0x18] sm:$0xff] %v636_v18  ;;  %v874_v23 = vadd.f32 %v873_v20, %v872_v15  ;;  %v880_v24 = vadd.f32 %v879_v22, %v878_v16  ;;  %645 = sbr.rel (%p826_p12) target bundleno = 291 (0x123), region = 90 }
 0x110   : > { %v635_v25 = vadd.f32 %v874_v23, %v454_v19  ;;  %v637_v26 = vadd.f32 %v880_v24, %v456_v21 }
 0x112   : > { %639 = vst [vmem:[#allocation2] sm:$0xff] %v635_v25  ;;  %641 = vst [vmem:[#allocation2 + $0x8] sm:$0xff] %v637_v26 }
 0x113   : > { %v827_v29 = vld [vmem:[%s1158_s4] ss:$0 sm:$0xff] }
 0x114   : > { %v828_v32 = vld [vmem:[%s1159_s5] ss:$0 sm:$0xff] }
 0x115   : > { %v646_v27 = vld [vmem:[#allocation2 + $0x10] sm:$0xff]  ;;  %v648_v33 = vld [vmem:[#allocation2 + $0x18] sm:$0xff] }
 0x116   : > { %v657_v30 = vmul.f32 %v827_v29, %v646_v27  ;;  %v659_v35 = vmul.f32 %v827_v29, %v648_v33 }
 0x118   : > { %v668_v37 = vadd.f32 %v828_v32, %v657_v30  ;;  %v670_v39 = vadd.f32 %v828_v32, %v659_v35 }
 0x119   : > { %v647_v28 = vld [vmem:[#allocation2] sm:$0xff]  ;;  %v649_v34 = vld [vmem:[#allocation2 + $0x8] sm:$0xff] }
 0x11a   : > { %v658_v31 = vmul.f32 %v827_v29, %v647_v28  ;;  %v660_v36 = vmul.f32 %v827_v29, %v649_v34  ;;  %v672_v41 = vmax.f32 %v668_v37, 0.0  ;;  %v674_v43 = vmax.f32 %v670_v39, 0.0 }
 0x11c   : > { %v669_v38 = vadd.f32 %v828_v32, %v658_v31  ;;  %v671_v40 = vadd.f32 %v828_v32, %v660_v36 }
 0x11e   : > { %v673_v42 = vmax.f32 %v669_v38, 0.0  ;;  %v675_v44 = vmax.f32 %v671_v40, 0.0 }
 0x120   : > { %v845_v45 = vpack.c.bf16 %v673_v42, %v672_v41  ;;  %v850_v46 = vpack.c.bf16 %v675_v44, %v674_v43 }
 0x122   : > { %846 = vst [vmem:[%s1160_s6] sm:$0xff] %v845_v45   ;;  %852 = vst [vmem:[%s1160_s6 + $0x8] sm:$0xff] %v850_v46  }
 0x123 PF: > { %s16_s25 = sadd.s32 1, %s992_s25   ;;  %s1161_s21 = smov %s980_s22 }
 0x124   : > { %p13_p13 = scmp.ge.s32.totalorder %s16_s25, 4   ;;  %s1162_s22 = smov %s1065_s29 }
 0x125   : > { %s1163_s23 = smov %s988_s24  ;;  %s1164_s24 = smov %s1166_s26 }
 0x126   :  { %15 = sbr.rel (!%p13_p13) target bundleno = 3 (0x3), region = 134 }

// kernel: densenet121_forward.166
= control target key start
LH: loop header
LB: loop body
LE: loop exit
PB: predicated region body
PF: predicated region fallthrough
CT: control target
= control target key end

     0   :  { %s1103_s21 = smov 0   ;;  %s1105_s22 = smov 0   ;;  %s1283_s0 = inlined_call_operand.vmem [shape: bf16[32,512], index: 0, kind: input, shape index: {}]   ;;  %s1284_s1 = inlined_call_operand.vmem [shape: bf16[512,256], index: 1, kind: input, shape index: {}]   ;;  %s1285_s2 = inlined_call_operand.vmem [shape: f32[1,512], index: 2, kind: input, shape index: {}]   ;;  %s1286_s3 = inlined_call_operand.vmem [shape: f32[1,512], index: 3, kind: input, shape index: {}]   ;;  %s1287_s4 = inlined_call_operand.vmem [shape: f32[1,256], index: 4, kind: input, shape index: {}, may-alias: {4,5}]   ;;  %s1288_s5 = inlined_call_operand.vmem [shape: f32[1,256], index: 5, kind: input, shape index: {}, may-alias: {4,5}]   ;;  %s1289_s6 = inlined_call_operand.vmem [shape: f32[32,256], index: 6, kind: output, shape index: {}]  }
   0x1   :  { %s1107_s23 = smov 0   ;;  %s1109_s24 = smov 0  }
   0x2   :  { %s1111_s25 = smov 0  }
   0x3 LB: > { %s25_s4 = sadd.s32 1, %s1061_s24  ;;  %p44_p1 = scmp.ne.s32.totalorder %s1053_s22, %s1049_s21  ;;  %s1065_s25 = sphi %s1111_s25, %s16_s25   ;;  %s1061_s24 = sphi %s1109_s24, %s1293_s24   ;;  %s1057_s23 = sphi %s1107_s23, %s1292_s23   ;;  %s1053_s22 = sphi %s1105_s22, %s1291_s22   ;;  %s1049_s21 = sphi %s1103_s21, %s1290_s21  }
   0x4   : > { %p26_p0 = scmp.ge.s32.totalorder %s25_s4, 2  ;;  %p45_p2 = scmp.eq.s32.totalorder %s1065_s25, 0 }
   0x5   : > { %s37_s26 = sadd.s32 1, %s1053_s22  ;;  %p855_p5 = scmp.ge.s32.totalorder %s1065_s25, 2 }
   0x6   : > { %s1295_s4 = smov (%p26_p0, %s25_s4), 0  ;;  %p46_p3 = por %p45_p2, %p44_p1 }
   0x7   : > { %s33_s5 = ssub.s32 %s1061_s24, %s1295_s4  ;;  %222 = sbr.rel (%p855_p5) target bundleno = 18 (0x12), region = 24 }
   0x8   : > { %p35_p4 = scmp.eq.s32.totalorder %s33_s5, 0 }
   0xa   : > { %s1138_s27 = scalar_select %p35_p4, %s1053_s22, %s37_s26  }
   0xc   : > { %225 = sbr.rel (!%p46_p3) target bundleno = 18 (0x12), region = 28  ;;  %s227_s28 = sand.u32 (%p46_p3), 1, %s1053_s22  }
   0xd   : > { %s904_s29 = sshll.u32 (%p46_p3), %s1061_s24, 3  ;;  %s856_s30 = sshll.u32 (%p46_p3), %s227_s28, 5 }
   0xe   : > { %s235_s9 = scalar_lea.vmem (%p46_p3), %s1283_s0, %s904_s29  ;;  %s229_s10 = scalar_lea.vmem (%p46_p3), [#allocation3], %s856_s30 }
   0xf   : > { %v270_v0 = vld [vmem:[%s235_s9] sm:$0xff] (%p46_p3)  ;;  %v272_v1 = vld [vmem:[%s235_s9 + $0x10] sm:$0xff] (%p46_p3) }
  0x10   : > { %v274_v2 = vld [vmem:[%s235_s9 + $0x20] sm:$0xff] (%p46_p3)  ;;  %271 = vst [vmem:[%s229_s10] sm:$0xff] (%p46_p3), %v270_v0  ;;  %273 = vst [vmem:[%s229_s10 + $0x8] sm:$0xff] (%p46_p3), %v272_v1  ;;  %v276_v3 = vld [vmem:[%s235_s9 + $0x30] sm:$0xff] (%p46_p3) }
  0x11   : > { %275 = vst [vmem:[%s229_s10 + $0x10] sm:$0xff] %v274_v2  ;;  %277 = vst [vmem:[%s229_s10 + $0x18] sm:$0xff] %v276_v3 }
  0x12 PF: > { %p859_p6 = scmp.ge.s32.totalorder %s1065_s25, 1  ;;  %p308_p7 = scmp.lt.s32.totalorder %s1065_s25, 3 }
  0x14   : > { %p309_p8 = pnand %p859_p6, %p308_p7 }
  0x15   : > { %s315_s11 = sand.u32 (!%p309_p8), 1, %s1049_s21   ;;  %s861_s12 = sshll.u32 (!%p309_p8), %s1057_s23, 5 }
  0x16   : > { %312 = sbr.rel (%p309_p8) target bundleno = 315 (0x13b), region = 78  ;;  %s860_s13 = sshll.u32 (!%p309_p8), %s315_s11, 5 }
  0x17   : > { %p362_p9 = scmp.lt.s32.totalorder (!%p309_p8), %s861_s12, 63  ;;  %s864_s14 = sshll.u32 (!%p309_p8), %s1057_s23, 1 }
  0x18   : > { %p369_p10 = scmp.lt.s32.totalorder (!%p309_p8), %s864_s14, 3  ;;  %s1166_s29 = scalar_lea.vmem (!%p309_p8), [#allocation3], %s860_s13 }
  0x19   : > { %p866_p11 = scmp.ne.s32.totalorder (!%p309_p8), %s1057_s23, 0 }
  0x1b   : > { %s1297_s12 = smov (!%p362_p9, %s861_s12), 63  ;;  %s1299_s14 = smov (!%p369_p10, %s864_s14), 3 }
  0x1c   : > { %s905_s15 = sshll.u32 %s1297_s12, 3  ;;  %s371_s21 = scalar_lea.vmem %s1285_s2, %s1299_s14 }
  0x1d   : > { %s1154_s18 = scalar_lea.vmem %s1284_s1, %s905_s15  ;;  %s376_s28 = scalar_lea.vmem %s1286_s3, %s1299_s14 }
  0x1e   : > { %388 = sbr.rel (%p866_p11) target bundleno = 40 (0x28), region = 86 }
  0x23   : > { %v1067_v4 = vmov 0.0  }
  0x24   : > { %389 = vst [vmem:[#allocation2 + $0x30] sm:$0xff] %v1067_v4  ;;  %390 = vst [vmem:[#allocation2] sm:$0xff] %v1067_v4 }
  0x25   : > { %391 = vst [vmem:[#allocation2 + $0x18] sm:$0xff] %v1067_v4  ;;  %392 = vst [vmem:[#allocation2 + $0x10] sm:$0xff] %v1067_v4 }
  0x26   : > { %393 = vst [vmem:[#allocation2 + $0x8] sm:$0xff] %v1067_v4  ;;  %394 = vst [vmem:[#allocation2 + $0x20] sm:$0xff] %v1067_v4 }
  0x27   : > { %395 = vst [vmem:[#allocation2 + $0x28] sm:$0xff] %v1067_v4  ;;  %396 = vst [vmem:[#allocation2 + $0x38] sm:$0xff] %v1067_v4 }
  0x28 PF: > { %v979_v5 = vld [vmem:[%s1154_s18 + $0x74] ss:$8 sps:$4 sm:$0xff]   ;;  %v981_v6 = vld [vmem:[%s1154_s18 + $0x70] ss:$8 sps:$4 sm:$0xff]   ;;  %v982_v7 = vld [vmem:[%s1154_s18 + $0x64] ss:$8 sps:$4 sm:$0xff]   ;;  %v411_v13 = vlaneseq }
  0x29   : > { %661 = vmatprep.subr.bf16.mxu0 %v979_v5  ;;  %906 = vmatprep.subr.bf16.mxu1 %v979_v5  ;;  %v984_v8 = vld [vmem:[%s1154_s18 + $0x60] ss:$8 sps:$4 sm:$0xff]   ;;  %v985_v9 = vld [vmem:[%s1154_s18 + $0x54] ss:$8 sps:$4 sm:$0xff]   ;;  %v987_v10 = vld [vmem:[%s1154_s18 + $0x50] ss:$8 sps:$4 sm:$0xff]  }
  0x2a   : > { %662 = vmatpush1.bf16.msra.mxu0 %v981_v6  ;;  %922 = vmatpush1.bf16.msra.mxu1 %v981_v6  ;;  %v988_v11 = vld [vmem:[%s1154_s18 + $0x44] ss:$8 sps:$4 sm:$0xff]   ;;  %v990_v12 = vld [vmem:[%s1154_s18 + $0x40] ss:$8 sps:$4 sm:$0xff]   ;;  %v991_v14 = vld [vmem:[%s1154_s18 + $0x34] ss:$8 sps:$4 sm:$0xff]  }
  0x2b   : > { %663 = vmatprep.subr.bf16.mxu0 %v982_v7  ;;  %907 = vmatprep.subr.bf16.mxu1 %v982_v7  ;;  %v993_v15 = vld [vmem:[%s1154_s18 + $0x30] ss:$8 sps:$4 sm:$0xff]   ;;  %v1179_v16 = vshrl.u32 %v411_v13, 7  ;;  %v994_v17 = vld [vmem:[%s1154_s18 + $0x24] ss:$8 sps:$4 sm:$0xff]   ;;  %p899_p12 = scmp.ne.s32.totalorder %s1057_s23, 1 }
  0x2c   : > { %v996_v18 = vld [vmem:[%s1154_s18 + $0x20] ss:$8 sps:$4 sm:$0xff]   ;;  %v997_v20 = vld [vmem:[%s1154_s18 + $0x14] ss:$8 sps:$4 sm:$0xff]   ;;  %v999_v28 = vld [vmem:[%s1154_s18 + $0x10] ss:$8 sps:$4 sm:$0xff]  }
  0x2d   : > { %v417_v19 = vsub.s32 1, %v1179_v16  ;;  %v1186_v21 = vld [vmem:[%s1166_s29] sm:$0xff]  ;;  %v1189_v22 = vld [vmem:[%s1166_s29 + $0x8] sm:$0xff]  ;;  %v1208_v27 = vld [vmem:[%s1166_s29 + $0x10] sm:$0xff]  ;;  %v413_v57 = vsub.s32 0, %v1179_v16 }
  0x2e   : > { %664 = vmatpush1.bf16.msra.mxu0 %v984_v8  ;;  %923 = vmatpush1.bf16.msra.mxu1 %v984_v8  ;;  %v402_v23 = vunpack.c.h.bf16 %v1186_v21  ;;  %v404_v24 = vunpack.c.h.bf16 %v1189_v22  ;;  %v1198_v25 = vld [vmem:[%s371_s21] sm:$0x3]  ;;  %v1213_v30 = vld [vmem:[%s1166_s29 + $0x18] sm:$0xff]  ;;  %v1000_v31 = vld [vmem:[%s1154_s18 + $0x4] ss:$8 sps:$4 sm:$0xff]   ;;  %v406_v33 = vunpack.c.h.bf16 %v1208_v27  ;;  %v401_v60 = vunpack.c.l.bf16 %v1186_v21 }
  0x2f   : > { %665 = vmatprep.subr.bf16.mxu0 %v985_v9  ;;  %908 = vmatprep.subr.bf16.mxu1 %v985_v9  ;;  %v1205_v26 = vld [vmem:[%s376_s28] sm:$0x3]  ;;  %v418_v29 = vrot.slane %v1198_v25, %v417_v19  ;;  %v408_v34 = vunpack.c.h.bf16 %v1213_v30  ;;  %v1003_v42 = vld [vmem:[%s1154_s18 + $0xf4] ss:$8 sps:$4 sm:$0xff]   ;;  %v1005_v49 = vld [vmem:[%s1154_s18 + $0xf0] ss:$8 sps:$4 sm:$0xff]   ;;  %v403_v61 = vunpack.c.l.bf16 %v1189_v22  ;;  %v414_v62 = vrot.slane %v1198_v25, %v413_v57 }
  0x30   : > { %v438_v32 = vrot.slane %v1205_v26, %v417_v19  ;;  %v1002_v39 = vld [vmem:[%s1154_s18] ss:$8 sps:$4 sm:$0xff]   ;;  %v1006_v51 = vld [vmem:[%s1154_s18 + $0xe4] ss:$8 sps:$4 sm:$0xff]   ;;  %v1009_v54 = vld [vmem:[%s1154_s18 + $0xd4] ss:$8 sps:$4 sm:$0xff]   ;;  %v405_v63 = vunpack.c.l.bf16 %v1208_v27  ;;  %v407_v0 = vunpack.c.l.bf16 %v1213_v30  ;;  %v434_v3 = vrot.slane %v1205_v26, %v413_v57 }
  0x31   : > { %v422_v35 = vmul.f32 %v418_v29, %v402_v23  ;;  %v424_v36 = vmul.f32 %v418_v29, %v404_v24  ;;  %v426_v37 = vmul.f32 %v418_v29, %v406_v33  ;;  %v428_v38 = vmul.f32 %v418_v29, %v408_v34  ;;  %v1008_v53 = vld [vmem:[%s1154_s18 + $0xe0] ss:$8 sps:$4 sm:$0xff]   ;;  %v1011_v55 = vld [vmem:[%s1154_s18 + $0xd0] ss:$8 sps:$4 sm:$0xff]   ;;  %v1012_v56 = vld [vmem:[%s1154_s18 + $0xc4] ss:$8 sps:$4 sm:$0xff]  }
  0x32   : > { %666 = vmatpush1.bf16.msra.mxu0 %v987_v10  ;;  %924 = vmatpush1.bf16.msra.mxu1 %v987_v10  ;;  %v1014_v58 = vld [vmem:[%s1154_s18 + $0xc0] ss:$8 sps:$4 sm:$0xff]   ;;  %v1015_v59 = vld [vmem:[%s1154_s18 + $0xb4] ss:$8 sps:$4 sm:$0xff]   ;;  %v1017_v1 = vld [vmem:[%s1154_s18 + $0xb0] ss:$8 sps:$4 sm:$0xff]   ;;  %v421_v4 = vmul.f32 %v414_v62, %v401_v60  ;;  %v423_v5 = vmul.f32 %v414_v62, %v403_v61  ;;  %v425_v6 = vmul.f32 %v414_v62, %v405_v63 }
  0x33   : > { %667 = vmatprep.subr.bf16.mxu0 %v988_v11  ;;  %909 = vmatprep.subr.bf16.mxu1 %v988_v11  ;;  %v442_v40 = vadd.f32 %v438_v32, %v422_v35  ;;  %v444_v41 = vadd.f32 %v438_v32, %v424_v36  ;;  %v446_v43 = vadd.f32 %v438_v32, %v426_v37  ;;  %v1018_v2 = vld [vmem:[%s1154_s18 + $0xa4] ss:$8 sps:$4 sm:$0xff]   ;;  %v1020_v8 = vld [vmem:[%s1154_s18 + $0xa0] ss:$8 sps:$4 sm:$0xff]   ;;  %v1021_v9 = vld [vmem:[%s1154_s18 + $0x94] ss:$8 sps:$4 sm:$0xff]  }
  0x34   : > { %v448_v44 = vadd.f32 %v438_v32, %v428_v38  ;;  %v427_v7 = vmul.f32 %v414_v62, %v407_v0  ;;  %v441_v10 = vadd.f32 %v434_v3, %v421_v4  ;;  %v443_v11 = vadd.f32 %v434_v3, %v423_v5  ;;  %v461_v23 = vld [vmem:[#allocation2 + $0x30] sm:$0xff]  ;;  %v465_v24 = vld [vmem:[#allocation2 + $0x8] sm:$0xff]  ;;  %v462_v27 = vld [vmem:[#allocation2] sm:$0xff] }
  0x35   : > { %v450_v45 = vmax.f32 %v442_v40, 0.0  ;;  %v452_v46 = vmax.f32 %v444_v41, 0.0  ;;  %v454_v47 = vmax.f32 %v446_v43, 0.0  ;;  %v463_v33 = vld [vmem:[#allocation2 + $0x18] sm:$0xff]  ;;  %v467_v34 = vld [vmem:[#allocation2 + $0x28] sm:$0xff] }
  0x36   : > { %668 = vmatpush1.bf16.msra.mxu0 %v990_v12  ;;  %925 = vmatpush1.bf16.msra.mxu1 %v990_v12  ;;  %v456_v48 = vmax.f32 %v448_v44, 0.0  ;;  %v445_v12 = vadd.f32 %v434_v3, %v425_v6  ;;  %v447_v13 = vadd.f32 %v434_v3, %v427_v7  ;;  %v449_v16 = vmax.f32 %v441_v10, 0.0  ;;  %v468_v40 = vld [vmem:[#allocation2 + $0x38] sm:$0xff] }
  0x37   : > { %669 = vmatprep.subr.bf16.mxu0 %v991_v14  ;;  %910 = vmatprep.subr.bf16.mxu1 %v991_v14  ;;  %v458_v50 = vpack.c.bf16 %v452_v46, %v450_v45  ;;  %v1023_v14 = vld [vmem:[%s1154_s18 + $0x90] ss:$8 sps:$4 sm:$0xff]  }
  0x38   : > { %v460_v52 = vpack.c.bf16 %v456_v48, %v454_v47  ;;  %v455_v19 = vmax.f32 %v447_v13, 0.0 }
  0x39   : > { %693 = vmatprep.mubr.bf16.mxu0 %v458_v50 }
  0x3a   : > { %670 = vmatpush1.bf16.msra.mxu0 %v993_v15  ;;  %926 = vmatpush1.bf16.msra.mxu1 %v993_v15  ;;  %v1024_v15 = vld [vmem:[%s1154_s18 + $0x84] ss:$8 sps:$4 sm:$0xff]  }
  0x3b   : > { %671 = vmatprep.subr.bf16.mxu0 %v994_v17  ;;  %911 = vmatprep.subr.bf16.mxu1 %v994_v17  ;;  %v451_v17 = vmax.f32 %v443_v11, 0.0 }
  0x3c   : > { %703 = vmatprep.mubr.bf16.mxu1 %v460_v52 }
  0x3d   : > { %v457_v21 = vpack.c.bf16 %v451_v17, %v449_v16 }
  0x3e   : > { %672 = vmatpush1.bf16.msra.mxu0 %v996_v18  ;;  %927 = vmatpush1.bf16.msra.mxu1 %v996_v18  ;;  %v453_v18 = vmax.f32 %v445_v12, 0.0 }
  0x3f   : > { %673 = vmatprep.subr.bf16.mxu0 %v997_v20  ;;  %912 = vmatprep.subr.bf16.mxu1 %v997_v20  ;;  %v1026_v20 = vld [vmem:[%s1154_s18 + $0x80] ss:$8 sps:$4 sm:$0xff]  }
  0x40   : > { %v459_v22 = vpack.c.bf16 %v455_v19, %v453_v18 }
  0x42   : > { %674 = vmatpush1.bf16.msra.mxu0 %v999_v28  ;;  %928 = vmatpush1.bf16.msra.mxu1 %v999_v28  ;;  %v466_v28 = vld [vmem:[#allocation2 + $0x20] sm:$0xff] }
  0x43   : > { %675 = vmatprep.subr.bf16.mxu0 %v1000_v31  ;;  %913 = vmatprep.subr.bf16.mxu1 %v1000_v31 }
  0x46   : > { %676 = vmatpush1.bf16.msra.mxu0 %v1002_v39  ;;  %929 = vmatpush1.bf16.msra.mxu1 %v1002_v39  ;;  %v464_v39 = vld [vmem:[#allocation2 + $0x10] sm:$0xff] }
  0x47   : > { %677 = vmatprep.subr.bf16.mxu0 %v1003_v42  ;;  %914 = vmatprep.subr.bf16.mxu1 %v1003_v42 }
  0x4a   : > { %678 = vmatpush2.bf16.msra.mxu0 %v1005_v49  ;;  %930 = vmatpush2.bf16.msra.mxu1 %v1005_v49 }
  0x4b   : > { %679 = vmatprep.subr.bf16.mxu0 %v1006_v51  ;;  %915 = vmatprep.subr.bf16.mxu1 %v1006_v51 }
  0x4e   : > { %680 = vmatpush2.bf16.msra.mxu0 %v1008_v53  ;;  %931 = vmatpush2.bf16.msra.mxu1 %v1008_v53 }
  0x4f   : > { %681 = vmatprep.subr.bf16.mxu0 %v1009_v54  ;;  %916 = vmatprep.subr.bf16.mxu1 %v1009_v54 }
  0x52   : > { %682 = vmatpush2.bf16.msra.mxu0 %v1011_v55  ;;  %932 = vmatpush2.bf16.msra.mxu1 %v1011_v55 }
  0x53   : > { %683 = vmatprep.subr.bf16.mxu0 %v1012_v56  ;;  %917 = vmatprep.subr.bf16.mxu1 %v1012_v56 }
  0x56   : > { %684 = vmatpush2.bf16.msra.mxu0 %v1014_v58  ;;  %933 = vmatpush2.bf16.msra.mxu1 %v1014_v58 }
  0x57   : > { %685 = vmatprep.subr.bf16.mxu0 %v1015_v59  ;;  %918 = vmatprep.subr.bf16.mxu1 %v1015_v59 }
  0x5a   : > { %686 = vmatpush2.bf16.msra.mxu0 %v1017_v1  ;;  %934 = vmatpush2.bf16.msra.mxu1 %v1017_v1 }
  0x5b   : > { %687 = vmatprep.subr.bf16.mxu0 %v1018_v2  ;;  %919 = vmatprep.subr.bf16.mxu1 %v1018_v2 }
  0x5e   : > { %688 = vmatpush2.bf16.msra.mxu0 %v1020_v8  ;;  %935 = vmatpush2.bf16.msra.mxu1 %v1020_v8 }
  0x5f   : > { %689 = vmatprep.subr.bf16.mxu0 %v1021_v9  ;;  %920 = vmatprep.subr.bf16.mxu1 %v1021_v9 }
  0x62   : > { %690 = vmatpush2.bf16.msra.mxu0 %v1023_v14  ;;  %936 = vmatpush2.bf16.msra.mxu1 %v1023_v14 }
  0x63   : > { %691 = vmatprep.subr.bf16.mxu0 %v1024_v15  ;;  %921 = vmatprep.subr.bf16.mxu1 %v1024_v15 }
  0x66   : > { %692 = vmatpush2.bf16.msra.mxu0 %v1026_v20  ;;  %937 = vmatpush2.bf16.msra.mxu1 %v1026_v20 }
  0x69   : > { %694 = vmatmul.mubr.bf16.vlgmr.msra.gmra.mxu0 %v457_v21  ;;  %704 = vmatmul.mubr.bf16.vlgmr.msra.gmra.mxu1 %v459_v22 }
 0x129   : > { %v695_v25 = vpop.f32.mrf.mxu0  ;;  %v705_v26 = vpop.f32.mrf.mxu1 }
 0x12a   : > { %v714_v29 = vadd.f32 %v695_v25, %v461_v23  ;;  %v718_v30 = vadd.f32 %v705_v26, %v465_v24 }
 0x12b   : > { %v697_v31 = vpop.f32.mrf.mxu0  ;;  %v707_v32 = vpop.f32.mrf.mxu1 }
 0x12c   : > { %722 = vst [vmem:[#allocation2 + $0x30] sm:$0xff] %v714_v29  ;;  %726 = vst [vmem:[#allocation2 + $0x8] sm:$0xff] %v718_v30  ;;  %v715_v35 = vadd.f32 %v697_v31, %v462_v27  ;;  %v719_v36 = vadd.f32 %v707_v32, %v466_v28 }
 0x12d   : > { %v699_v37 = vpop.f32.mrf.mxu0  ;;  %v709_v38 = vpop.f32.mrf.mxu1 }
 0x12e   : > { %723 = vst [vmem:[#allocation2] sm:$0xff] %v715_v35  ;;  %727 = vst [vmem:[#allocation2 + $0x20] sm:$0xff] %v719_v36  ;;  %v716_v41 = vadd.f32 %v699_v37, %v463_v33  ;;  %v720_v42 = vadd.f32 %v709_v38, %v467_v34  ;;  %733 = sbr.rel (%p899_p12) target bundleno = 315 (0x13b), region = 90 }
 0x12f   : > { %v701_v43 = vpop.f32.mrf.mxu0  ;;  %v711_v44 = vpop.f32.mrf.mxu1 }
 0x130   : > { %724 = vst [vmem:[#allocation2 + $0x18] sm:$0xff] %v716_v41  ;;  %728 = vst [vmem:[#allocation2 + $0x28] sm:$0xff] %v720_v42  ;;  %v717_v45 = vadd.f32 %v701_v43, %v464_v39  ;;  %v721_v46 = vadd.f32 %v711_v44, %v468_v40 }
 0x132   : > { %725 = vst [vmem:[#allocation2 + $0x10] sm:$0xff] %v717_v45  ;;  %729 = vst [vmem:[#allocation2 + $0x38] sm:$0xff] %v721_v46 }
 0x133   : > { %v734_v47 = vld [vmem:[#allocation2 + $0x30] sm:$0xff]  ;;  %v738_v51 = vld [vmem:[#allocation2 + $0x8] sm:$0xff] }
 0x134   : > { %742 = vst [vmem:[%s1289_s6] sm:$0xff] %v734_v47  ;;  %746 = vst [vmem:[%s1289_s6 + $0x20] sm:$0xff] %v738_v51 }
 0x135   : > { %v735_v48 = vld [vmem:[#allocation2] sm:$0xff] }
 0x136   : > { %743 = vst [vmem:[%s1289_s6 + $0x8] sm:$0xff] %v735_v48  ;;  %v739_v52 = vld [vmem:[#allocation2 + $0x20] sm:$0xff] }
 0x137   : > { %v736_v49 = vld [vmem:[#allocation2 + $0x18] sm:$0xff]  ;;  %747 = vst [vmem:[%s1289_s6 + $0x28] sm:$0xff] %v739_v52  ;;  %v740_v53 = vld [vmem:[#allocation2 + $0x28] sm:$0xff] }
 0x138   : > { %744 = vst [vmem:[%s1289_s6 + $0x10] sm:$0xff] %v736_v49  ;;  %748 = vst [vmem:[%s1289_s6 + $0x30] sm:$0xff] %v740_v53 }
 0x139   : > { %v737_v50 = vld [vmem:[#allocation2 + $0x10] sm:$0xff]  ;;  %v741_v54 = vld [vmem:[#allocation2 + $0x38] sm:$0xff] }
 0x13a   : > { %745 = vst [vmem:[%s1289_s6 + $0x18] sm:$0xff] %v737_v50  ;;  %749 = vst [vmem:[%s1289_s6 + $0x38] sm:$0xff] %v741_v54 }
 0x13b PF: > { %s16_s25 = sadd.s32 1, %s1065_s25   ;;  %s1290_s21 = smov %s1053_s22 }
 0x13c   : > { %p13_p13 = scmp.ge.s32.totalorder %s16_s25, 4   ;;  %s1291_s22 = smov %s1138_s27 }
 0x13d   : > { %s1292_s23 = smov %s1061_s24  ;;  %s1293_s24 = smov %s1295_s4 }
 0x13e   :  { %15 = sbr.rel (!%p13_p13) target bundleno = 3 (0x3), region = 134 }

// kernel: densenet121_forward.167
= control target key start
LH: loop header
LB: loop body
LE: loop exit
PB: predicated region body
PF: predicated region fallthrough
CT: control target
= control target key end

     0   :  { %s229_s6 = smov 0   ;;  %s246_s0 = inlined_call_operand.vmem [shape: f32[2,8,2,256], index: 0, kind: input, shape index: {}]   ;;  %s247_s1 = inlined_call_operand.vmem [shape: f32[2,2,2,256], index: 1, kind: output, shape index: {}]  }
   0x1 LB: > { %s190_s7 = sadd.s32 4294967295, %s217_s6   ;;  %p194_p0 = scmp.ge.s32.totalorder %s217_s6, 1  ;;  %s217_s6 = sphi %s229_s6, %s11_s6  }
   0x2   : > { %p87_p1 = scmp.lt.s32.totalorder %s217_s6, 3 }
   0x4   : > { %p88_p2 = pnand %p194_p0, %p87_p1 }
   0x5   : > { %p107_p3 = scmp.lt.s32.totalorder (!%p88_p2), %s190_s7, 1 }
   0x6   : > { %91 = sbr.rel (%p88_p2) target bundleno = 25 (0x19), region = 24 }
   0xb   : > { %s249_s7 = smov (!%p107_p3, %s190_s7), 1 }
   0xc   : > { %s201_s8 = sshll.u32 %s249_s7, 5  ;;  %s202_s12 = sshll.u32 %s249_s7, 3 }
   0xd   : > { %s111_s11 = scalar_lea.vmem %s246_s0, %s201_s8  ;;  %s116_s15 = scalar_lea.vmem %s247_s1, %s202_s12 }
   0xe   : > { %v117_v0 = vld [vmem:[%s111_s11] sm:$0xf]  ;;  %v119_v1 = vld [vmem:[%s111_s11 + $0x8] sm:$0xf]  ;;  %v121_v2 = vld [vmem:[%s111_s11 + $0x10] sm:$0xf] }
   0xf   : > { %v125_v3 = vadd.f32 %v119_v1, %v117_v0  ;;  %v118_v4 = vld [vmem:[%s111_s11 + $0x4] sm:$0xf]  ;;  %v120_v5 = vld [vmem:[%s111_s11 + $0xc] sm:$0xf]  ;;  %v123_v6 = vld [vmem:[%s111_s11 + $0x18] sm:$0xf] }
  0x10   : > { %v122_v7 = vld [vmem:[%s111_s11 + $0x14] sm:$0xf]  ;;  %v126_v8 = vadd.f32 %v120_v5, %v118_v4  ;;  %v124_v10 = vld [vmem:[%s111_s11 + $0x1c] sm:$0xf] }
  0x11   : > { %v127_v9 = vadd.f32 %v125_v3, %v121_v2 }
  0x12   : > { %v128_v11 = vadd.f32 %v126_v8, %v122_v7 }
  0x13   : > { %v129_v12 = vadd.f32 %v127_v9, %v123_v6 }
  0x14   : > { %v130_v13 = vadd.f32 %v128_v11, %v124_v10 }
  0x15   : > { %v131_v14 = vmul.f32 0.25, %v129_v12 }
  0x16   : > { %v132_v15 = vmul.f32 0.25, %v130_v13 }
  0x17   : > { %133 = vst [vmem:[%s116_s15] sm:$0xf] %v131_v14 }
  0x18   : > { %134 = vst [vmem:[%s116_s15 + $0x4] sm:$0xf] %v132_v15 }
  0x19 PF: > { %s11_s6 = sadd.s32 1, %s217_s6  }
  0x1a   : > { %p8_p4 = scmp.ge.s32.totalorder %s11_s6, 4  }
  0x1c   :  { %10 = sbr.rel (!%p8_p4) target bundleno = 1 (0x1), region = 54 }

// kernel: densenet121_forward.168
= control target key start
LH: loop header
LB: loop body
LE: loop exit
PB: predicated region body
PF: predicated region fallthrough
CT: control target
= control target key end

     0   :  { %v34_v5 = vlaneseq  ;;  %s419_s1 = inlined_call_operand.vmem [shape: bf16[256,128], index: 1, kind: input, shape index: {}]   ;;  %s420_s0 = inlined_call_operand.vmem [shape: bf16[8,1024], index: 0, kind: input, shape index: {}]   ;;  %s421_s2 = inlined_call_operand.vmem [shape: f32[1,256], index: 2, kind: input, shape index: {}]   ;;  %s422_s3 = inlined_call_operand.vmem [shape: f32[1,256], index: 3, kind: input, shape index: {}]   ;;  %s423_s4 = inlined_call_operand.vmem [shape: f32[1,128], index: 4, kind: input, shape index: {}]   ;;  %s424_s5 = inlined_call_operand.vmem [shape: f32[1,128], index: 5, kind: input, shape index: {}]   ;;  %s425_s6 = inlined_call_operand.vmem [shape: bf16[8,128], index: 6, kind: output, shape index: {}]  }
   0x1   :  { %v302_v0 = vld [vmem:[%s419_s1 + $0x78] sm:$0xff]   ;;  %v304_v2 = vld [vmem:[%s419_s1 + $0x70] sm:$0xff]   ;;  %v306_v4 = vld [vmem:[%s419_s1 + $0x68] sm:$0xff]  }
   0x2   :  { %v303_v1 = vld [vmem:[%s419_s1 + $0x38] sm:$0xff]   ;;  %280 = vmatprep.subr.bf16.mxu0 %v302_v0  ;;  %v305_v3 = vld [vmem:[%s419_s1 + $0x30] sm:$0xff]   ;;  %v307_v6 = vld [vmem:[%s419_s1 + $0x28] sm:$0xff]   ;;  %v35_v8 = vshrl.u32 %v34_v5, 7 }
   0x3   :  { %281 = vmatpush3.bf16.msra.mxu0 %v303_v1  ;;  %v308_v7 = vld [vmem:[%s419_s1 + $0x60] sm:$0xff]   ;;  %v310_v10 = vld [vmem:[%s419_s1 + $0x58] sm:$0xff]   ;;  %v312_v14 = vld [vmem:[%s419_s1 + $0x50] sm:$0xff]  }
   0x4   :  { %282 = vmatprep.subr.bf16.mxu0 %v304_v2  ;;  %v309_v9 = vld [vmem:[%s419_s1 + $0x20] sm:$0xff]   ;;  %v36_v11 = vsub.s32 0, %v35_v8  ;;  %v40_v12 = vsub.s32 1, %v35_v8  ;;  %v311_v13 = vld [vmem:[%s419_s1 + $0x18] sm:$0xff]   ;;  %v313_v24 = vld [vmem:[%s419_s1 + $0x10] sm:$0xff]  }
   0x5   :  { %v29_v15 = vld [vmem:[%s420_s0] sm:$0xff]  ;;  %v314_v27 = vld [vmem:[%s419_s1 + $0x48] sm:$0xff]  }
   0x6   :  { %v32_v16 = vld [vmem:[%s421_s2] sm:$0x3]  ;;  %v30_v18 = vunpack.c.l.bf16 %v29_v15  ;;  %v31_v19 = vunpack.c.h.bf16 %v29_v15  ;;  %v315_v30 = vld [vmem:[%s419_s1 + $0x8] sm:$0xff]  }
   0x7   :  { %283 = vmatpush3.bf16.msra.mxu0 %v305_v3  ;;  %v46_v17 = vld [vmem:[%s422_s3] sm:$0x3]  ;;  %v37_v20 = vrot.slane %v32_v16, %v36_v11  ;;  %v41_v21 = vrot.slane %v32_v16, %v40_v12 }
   0x8   :  { %284 = vmatprep.subr.bf16.mxu0 %v306_v4  ;;  %v51_v22 = vrot.slane %v46_v17, %v36_v11  ;;  %v55_v23 = vrot.slane %v46_v17, %v40_v12  ;;  %v316_v32 = vld [vmem:[%s419_s1 + $0x40] sm:$0xff]  }
   0x9   :  { %v45_v25 = vmul.f32 %v41_v21, %v31_v19  ;;  %v44_v26 = vmul.f32 %v37_v20, %v30_v18  ;;  %v317_v35 = vld [vmem:[%s419_s1] sm:$0xff]  }
   0xa   :  { %v278_v39 = vld [vmem:[%s423_s4] ss:$0 sm:$0xff] }
   0xb   :  { %285 = vmatpush3.bf16.msra.mxu0 %v307_v6  ;;  %v59_v28 = vadd.f32 %v55_v23, %v45_v25  ;;  %v58_v29 = vadd.f32 %v51_v22, %v44_v26  ;;  %v279_v41 = vld [vmem:[%s424_s5] ss:$0 sm:$0xff] }
   0xc   :  { %286 = vmatprep.subr.bf16.mxu0 %v308_v7 }
   0xd   :  { %v61_v31 = vmax.f32 %v59_v28, 0.0  ;;  %v60_v34 = vmax.f32 %v58_v29, 0.0 }
   0xf   :  { %287 = vmatpush3.bf16.msra.mxu0 %v309_v9  ;;  %v63_v33 = vpack.c.bf16 %v61_v31, %v61_v31  ;;  %v62_v36 = vpack.c.bf16 %v60_v34, %v60_v34 }
  0x10   :  { %288 = vmatprep.subr.bf16.mxu0 %v310_v10 }
  0x11   :  { %225 = vmatprep.mubr.bf16.mxu0 %v63_v33 }
  0x13   :  { %289 = vmatpush3.bf16.msra.mxu0 %v311_v13 }
  0x14   :  { %290 = vmatprep.subr.bf16.mxu0 %v312_v14 }
  0x17   :  { %291 = vmatpush3.bf16.msra.mxu0 %v313_v24 }
  0x18   :  { %292 = vmatprep.subr.bf16.mxu0 %v314_v27 }
  0x1b   :  { %293 = vmatpush3.bf16.msra.mxu0 %v315_v30 }
  0x1c   :  { %294 = vmatprep.subr.bf16.mxu0 %v316_v32 }
  0x1f   :  { %295 = vmatpush3.bf16.msra.mxu0 %v317_v35 }
  0x22   :  { %226 = vmatmul.mubr.bf16.vlgmr.msra.gmra.mxu0 %v62_v36 }
  0xe2   :  { %v296_v37 = vpop.f32.mrf.mxu0 }
  0xe4   :  { %v297_v38 = vpop.f32.mrf.mxu0 }
  0xe5   :  { %v298_v40 = vadd.f32 %v297_v38, %v296_v37 }
  0xe6   :  { %v299_v42 = vpop.f32.mrf.mxu0 }
  0xe7   :  { %v246_v43 = vmul.f32 %v298_v40, %v278_v39 }
  0xe8   :  { %v300_v44 = vpop.f32.mrf.mxu0 }
  0xe9   :  { %v254_v45 = vadd.f32 %v279_v41, %v246_v43 }
  0xeb   :  { %v255_v46 = vmax.f32 %v254_v45, 0.0 }
  0xed   :  { %v256_v47 = vpack.c.bf16 %v255_v46, %v255_v46 }
  0xef   :  { %257 = vst [vmem:[%s425_s6] sm:$0xf] %v256_v47 }

// kernel: densenet121_forward.169
= control target key start
LH: loop header
LB: loop body
LE: loop exit
PB: predicated region body
PF: predicated region fallthrough
CT: control target
= control target key end

     0   :  { %v532_v1 = vmov 0   ;;  %vm30_vm0 = vcmask 261120   ;;  %v533_v27 = vmov 0.0   ;;  %vm412_vm1 = vcmask 257024   ;;  %s683_s1 = inlined_call_operand.vmem [shape: bf16[128,288], index: 1, kind: input, shape index: {}]   ;;  %s684_s2 = inlined_call_operand.vmem [shape: f32[1,128], index: 2, kind: input, shape index: {}, may-alias: {2,3}]   ;;  %s685_s3 = inlined_call_operand.vmem [shape: f32[1,128], index: 3, kind: input, shape index: {}, may-alias: {2,3}]   ;;  %s686_s4 = inlined_call_operand.vmem [shape: f32[1,288], index: 4, kind: input, shape index: {}, may-alias: {4,5}]   ;;  %s687_s5 = inlined_call_operand.vmem [shape: f32[1,288], index: 5, kind: input, shape index: {}, may-alias: {4,5}]   ;;  %s688_s0 = inlined_call_operand.vmem [shape: bf16[32,128], index: 0, kind: input, shape index: {}]   ;;  %s689_s6 = inlined_call_operand.vmem [shape: bf16[32,288], index: 6, kind: output, shape index: {}]  }
   0x1   :  { %v498_v0 = vld [vmem:[%s683_s1 + $0xac] ss:$12 sps:$4 sm:$0xff]   ;;  %261 = vmatprep.mubr.bf16.mxu0 %v532_v1  ;;  %v500_v2 = vld [vmem:[%s683_s1 + $0xa8] ss:$12 sps:$4 sm:$0xff]   ;;  %v501_v3 = vld [vmem:[%s683_s1 + $0xb0] ss:$12 sps:$4 sm:$0xff]  }
   0x2   :  { %229 = vmatprep.subr.bf16.mxu0 %v498_v0  ;;  %v502_v4 = vld [vmem:[%s683_s1 + $0x94] ss:$12 sps:$4 sm:$0xff]   ;;  %v504_v5 = vld [vmem:[%s683_s1 + $0x90] ss:$12 sps:$4 sm:$0xff]   ;;  %476 = vmatprep.subr.bf16.mxu1 %v501_v3  ;;  %v505_v6 = vld [vmem:[%s683_s1 + $0x98] ss:$12 sps:$4 sm:$0xff]  }
   0x3   :  { %230 = vmatpush1.bf16.msra.mxu0 %v500_v2  ;;  %477 = vmatpush3.bf16.msra.mxu1 %v501_v3  ;;  %v506_v7 = vld [vmem:[%s683_s1 + $0x7c] ss:$12 sps:$4 sm:$0xff]   ;;  %v509_v8 = vld [vmem:[%s683_s1 + $0x80] ss:$12 sps:$4 sm:$0xff]   ;;  %v508_v9 = vld [vmem:[%s683_s1 + $0x78] ss:$12 sps:$4 sm:$0xff]  }
   0x4   :  { %231 = vmatprep.subr.bf16.mxu0 %v502_v4  ;;  %478 = vmatprep.subr.bf16.mxu1 %v505_v6  ;;  %v510_v10 = vld [vmem:[%s683_s1 + $0x64] ss:$12 sps:$4 sm:$0xff]   ;;  %v513_v11 = vld [vmem:[%s683_s1 + $0x68] ss:$12 sps:$4 sm:$0xff]   ;;  %v512_v12 = vld [vmem:[%s683_s1 + $0x60] ss:$12 sps:$4 sm:$0xff]  }
   0x5   :  { %v514_v13 = vld [vmem:[%s683_s1 + $0x4c] ss:$12 sps:$4 sm:$0xff]   ;;  %v517_v14 = vld [vmem:[%s683_s1 + $0x50] ss:$12 sps:$4 sm:$0xff]   ;;  %v516_v15 = vld [vmem:[%s683_s1 + $0x48] ss:$12 sps:$4 sm:$0xff]  }
   0x6   :  { %v518_v16 = vld [vmem:[%s683_s1 + $0x34] ss:$12 sps:$4 sm:$0xff]   ;;  %v520_v17 = vld [vmem:[%s683_s1 + $0x30] ss:$12 sps:$4 sm:$0xff]   ;;  %v521_v18 = vld [vmem:[%s683_s1 + $0x38] ss:$12 sps:$4 sm:$0xff]  }
   0x7   :  { %232 = vmatpush1.bf16.msra.mxu0 %v504_v5  ;;  %479 = vmatpush3.bf16.msra.mxu1 %v505_v6  ;;  %v530_v19 = vld [vmem:[%s688_s0] sm:$0xff]   ;;  %v522_v20 = vld [vmem:[%s683_s1 + $0x1c] ss:$12 sps:$4 sm:$0xff]   ;;  %37 = vst.msk [vmem:[#allocation2 + $0x40] sm:$0xff] %vm30_vm0, %v533_v27  ;;  %31 = vst.msk [vmem:[#allocation2 + $0x10] sm:$0xff] %vm30_vm0, %v533_v27 }
   0x8   :  { %233 = vmatprep.subr.bf16.mxu0 %v506_v7  ;;  %480 = vmatprep.subr.bf16.mxu1 %v509_v8  ;;  %v525_v21 = vld [vmem:[%s683_s1 + $0x20] ss:$12 sps:$4 sm:$0xff]   ;;  %v524_v22 = vld [vmem:[%s683_s1 + $0x18] ss:$12 sps:$4 sm:$0xff]   ;;  %v529_v24 = vld [vmem:[%s683_s1 + $0x8] ss:$12 sps:$4 sm:$0xff]  }
   0x9   :  { %492 = vmatprep.mubr.bf16.mxu1 %v530_v19  ;;  %v526_v23 = vld [vmem:[%s683_s1 + $0x4] ss:$12 sps:$4 sm:$0xff]   ;;  %v528_v25 = vld [vmem:[%s683_s1] ss:$12 sps:$4 sm:$0xff]   ;;  %34 = vst.msk [vmem:[#allocation2 + $0x28] sm:$0xff] %vm30_vm0, %v533_v27  ;;  %40 = vst.msk [vmem:[#allocation2 + $0x58] sm:$0xff] %vm30_vm0, %v533_v27 }
   0xa   :  { %v531_v26 = vld [vmem:[%s688_s0 + $0x8] sm:$0xff]  }
   0xb   :  { %234 = vmatpush1.bf16.msra.mxu0 %v508_v9  ;;  %481 = vmatpush3.bf16.msra.mxu1 %v509_v8 }
   0xc   :  { %235 = vmatprep.subr.bf16.mxu0 %v510_v10  ;;  %482 = vmatprep.subr.bf16.mxu1 %v513_v11 }
   0xe   :  { %v53_v29 = vld [vmem:[#allocation2 + $0x40] sm:$0xff]  ;;  %v47_v32 = vld [vmem:[#allocation2 + $0x10] sm:$0xff] }
   0xf   :  { %236 = vmatpush1.bf16.msra.mxu0 %v512_v12  ;;  %483 = vmatpush3.bf16.msra.mxu1 %v513_v11 }
  0x10   :  { %237 = vmatprep.subr.bf16.mxu0 %v514_v13  ;;  %484 = vmatprep.subr.bf16.mxu1 %v517_v14  ;;  %v56_v36 = vld [vmem:[#allocation2 + $0x58] sm:$0xff]  ;;  %v50_v41 = vld [vmem:[#allocation2 + $0x28] sm:$0xff] }
  0x13   :  { %238 = vmatpush1.bf16.msra.mxu0 %v516_v15  ;;  %485 = vmatpush3.bf16.msra.mxu1 %v517_v14 }
  0x14   :  { %239 = vmatprep.subr.bf16.mxu0 %v518_v16  ;;  %486 = vmatprep.subr.bf16.mxu1 %v521_v18 }
  0x17   :  { %240 = vmatpush1.bf16.msra.mxu0 %v520_v17  ;;  %487 = vmatpush3.bf16.msra.mxu1 %v521_v18 }
  0x18   :  { %241 = vmatprep.subr.bf16.mxu0 %v522_v20  ;;  %488 = vmatprep.subr.bf16.mxu1 %v525_v21 }
  0x1b   :  { %242 = vmatpush1.bf16.msra.mxu0 %v524_v22  ;;  %489 = vmatpush3.bf16.msra.mxu1 %v525_v21 }
  0x1c   :  { %243 = vmatprep.subr.bf16.mxu0 %v526_v23  ;;  %490 = vmatprep.subr.bf16.mxu1 %v529_v24 }
  0x1f   :  { %244 = vmatpush1.bf16.msra.mxu0 %v528_v25  ;;  %491 = vmatpush3.bf16.msra.mxu1 %v529_v24 }
  0x22   :  { %262 = vmatmul.mubr.bf16.vlgmr.msra.gmra.mxu0 %v530_v19  ;;  %493 = vmatmul.mubr.bf16.vlgmr.msra.gmra.mxu1 %v531_v26 }
  0x23   :  { %271 = vmatprep.mubr.bf16.mxu0 %v532_v1 }
  0x2a   :  { %272 = vmatmul.mubr.bf16.gmra.mxu0 %v531_v26 }
  0xe2   :  { %v263_v28 = vpop.f32.mrf.mxu0  ;;  %v494_v31 = vpop.f32.mrf.mxu1 }
  0xe3   :  { %v339_v33 = vadd.f32 %v494_v31, %v53_v29 }
  0xe4   :  { %v265_v30 = vpop.f32.mrf.mxu0  ;;  %v316_v35 = vpop.f32.mrf.mxu1 }
  0xe5   :  { %v458_v37 = vpack.c.bf16 %v265_v30, %v263_v28  ;;  %352 = vst.msk [vmem:[#allocation2 + $0x40] sm:$0xff] %vm30_vm0, %v339_v33  ;;  %v333_v38 = vadd.f32 %v316_v35, %v47_v32 }
  0xe6   :  { %v267_v34 = vpop.f32.mrf.mxu0  ;;  %v495_v40 = vpop.f32.mrf.mxu1 }
  0xe7   :  { %411 = vst [vmem:[%s689_s6] sm:$0xff] %v458_v37  ;;  %346 = vst.msk [vmem:[#allocation2 + $0x10] sm:$0xff] %vm30_vm0, %v333_v38  ;;  %v342_v42 = vadd.f32 %v495_v40, %v56_v36 }
  0xe8   :  { %v269_v39 = vpop.f32.mrf.mxu0  ;;  %v319_v44 = vpop.f32.mrf.mxu1 }
  0xe9   :  { %v460_v45 = vpack.c.bf16 %v269_v39, %v267_v34  ;;  %355 = vst.msk [vmem:[#allocation2 + $0x58] sm:$0xff] %vm30_vm0, %v342_v42  ;;  %v336_v46 = vadd.f32 %v319_v44, %v50_v41 }
  0xea   :  { %v273_v43 = vpop.f32.mrf.mxu0 }
  0xeb   :  { %414 = vst [vmem:[%s689_s6 + $0xc] sm:$0xff] %v460_v45  ;;  %349 = vst.msk [vmem:[#allocation2 + $0x28] sm:$0xff] %vm30_vm0, %v336_v46 }
  0xec   :  { %v275_v47 = vpop.f32.mrf.mxu0  ;;  %v367_v48 = vld [vmem:[#allocation2 + $0x40] sm:$0xff] }
  0xed   :  { %v463_v50 = vpack.c.bf16 %v367_v48, %v367_v48  ;;  %v462_v51 = vpack.c.bf16 %v275_v47, %v273_v43 }
  0xee   :  { %v277_v49 = vpop.f32.mrf.mxu0  ;;  %v361_v52 = vld [vmem:[#allocation2 + $0x10] sm:$0xff] }
  0xef   :  { %417 = vst.msk [vmem:[%s689_s6 + $0x20] sm:$0xf] %vm412_vm1, %v463_v50  ;;  %v459_v54 = vpack.c.bf16 %v361_v52, %v361_v52  ;;  %416 = vst [vmem:[%s689_s6 + $0x18] sm:$0xff] %v462_v51 }
  0xf0   :  { %v279_v53 = vpop.f32.mrf.mxu0  ;;  %v370_v55 = vld [vmem:[#allocation2 + $0x58] sm:$0xff] }
  0xf1   :  { %413 = vst.msk [vmem:[%s689_s6 + $0x8] sm:$0xf] %vm412_vm1, %v459_v54  ;;  %v465_v56 = vpack.c.bf16 %v370_v55, %v370_v55  ;;  %v464_v57 = vpack.c.bf16 %v279_v53, %v277_v49 }
  0xf2   :  { %v364_v58 = vld [vmem:[#allocation2 + $0x28] sm:$0xff] }
  0xf3   :  { %419 = vst.msk [vmem:[%s689_s6 + $0x2c] sm:$0xf] %vm412_vm1, %v465_v56  ;;  %v461_v59 = vpack.c.bf16 %v364_v58, %v364_v58  ;;  %418 = vst [vmem:[%s689_s6 + $0x24] sm:$0xff] %v464_v57 }
  0xf5   :  { %415 = vst.msk [vmem:[%s689_s6 + $0x14] sm:$0xf] %vm412_vm1, %v461_v59 }

// kernel: densenet121_forward.170
= control target key start
LH: loop header
LB: loop body
LE: loop exit
PB: predicated region body
PF: predicated region fallthrough
CT: control target
= control target key end

     0   :  { %s825_s21 = smov 0   ;;  %s827_s22 = smov 0   ;;  %s914_s0 = inlined_call_operand.vmem [shape: bf16[8,1024], index: 0, kind: input, shape index: {}]   ;;  %s915_s1 = inlined_call_operand.vmem [shape: bf16[512,128], index: 1, kind: input, shape index: {}]   ;;  %s916_s2 = inlined_call_operand.vmem [shape: f32[1,512], index: 2, kind: input, shape index: {}]   ;;  %s917_s3 = inlined_call_operand.vmem [shape: f32[1,512], index: 3, kind: input, shape index: {}]   ;;  %s918_s4 = inlined_call_operand.vmem [shape: f32[1,128], index: 4, kind: input, shape index: {}]   ;;  %s919_s5 = inlined_call_operand.vmem [shape: f32[1,128], index: 5, kind: input, shape index: {}]   ;;  %s920_s6 = inlined_call_operand.vmem [shape: bf16[8,128], index: 6, kind: output, shape index: {}]  }
   0x1   :  { %s829_s23 = smov 0  }
   0x2 LB: > { %s25_s24 = sadd.s32 1, %s783_s22  ;;  %p672_p0 = scmp.ge.s32.totalorder %s787_s23, 1  ;;  %s787_s23 = sphi %s829_s23, %s16_s23   ;;  %s783_s22 = sphi %s827_s22, %s922_s22   ;;  %s779_s21 = sphi %s825_s21, %s921_s21  }
   0x3   : > { %p26_p1 = scmp.ge.s32.totalorder %s25_s24, 2  ;;  %p262_p2 = scmp.lt.s32.totalorder %s787_s23, 3 }
   0x5   : > { %s924_s24 = smov (%p26_p1, %s25_s24), 0  ;;  %p263_p3 = pnand %p672_p0, %p262_p2 }
   0x6   : > { %s673_s25 = sshll.u32 (!%p263_p3), %s779_s21, 1  ;;  %s675_s26 = sshll.u32 (!%p263_p3), %s779_s21, 5 }
   0x7   : > { %266 = sbr.rel (%p263_p3) target bundleno = 273 (0x111), region = 44  ;;  %p311_p4 = scmp.lt.s32.totalorder (!%p263_p3), %s673_s25, 7 }
   0x8   : > { %p319_p5 = scmp.lt.s32.totalorder (!%p263_p3), %s675_s26, 63  ;;  %p325_p6 = scmp.lt.s32.totalorder (!%p263_p3), %s673_s25, 3 }
   0x9   : > { %p679_p7 = scmp.ne.s32.totalorder (!%p263_p3), %s779_s21, 0 }
   0xc   : > { %s312_s27 = scalar_select %p311_p4, %s673_s25, 7 }
   0xd   : > { %s926_s26 = smov (!%p319_p5, %s675_s26), 63  ;;  %s928_s25 = smov (!%p325_p6, %s673_s25), 3 }
   0xe   : > { %s674_s28 = sshll.u32 %s312_s27, 2  ;;  %s676_s8 = sshll.u32 %s926_s26, 2 }
   0xf   : > { %s850_s7 = scalar_lea.vmem %s914_s0, %s674_s28  ;;  %s855_s11 = scalar_lea.vmem %s915_s1, %s676_s8 }
  0x10   : > { %s327_s14 = scalar_lea.vmem %s916_s2, %s928_s25  ;;  %s332_s17 = scalar_lea.vmem %s917_s3, %s928_s25 }
  0x11   : > { %342 = sbr.rel (%p679_p7) target bundleno = 24 (0x18), region = 48 }
  0x16   : > { %v789_v0 = vmov 0.0  }
  0x17   : > { %343 = vst [vmem:[#allocation2] sm:$0xff] %v789_v0 }
  0x18 PF: > { %v749_v1 = vld [vmem:[%s855_s11 + $0x78] sm:$0xff]   ;;  %v751_v3 = vld [vmem:[%s855_s11 + $0x70] sm:$0xff]   ;;  %v753_v5 = vld [vmem:[%s855_s11 + $0x68] sm:$0xff]   ;;  %v349_v6 = vlaneseq  ;;  %p696_p8 = scmp.ne.s32.totalorder %s779_s21, 1 }
  0x19   : > { %v750_v2 = vld [vmem:[%s855_s11 + $0x38] sm:$0xff]   ;;  %702 = vmatprep.subr.bf16.mxu0 %v749_v1  ;;  %v752_v4 = vld [vmem:[%s855_s11 + $0x30] sm:$0xff]   ;;  %v754_v7 = vld [vmem:[%s855_s11 + $0x28] sm:$0xff]  }
  0x1a   : > { %703 = vmatpush3.bf16.msra.mxu0 %v750_v2  ;;  %v755_v8 = vld [vmem:[%s855_s11 + $0x60] sm:$0xff]   ;;  %v350_v9 = vshrl.u32 %v349_v6, 7  ;;  %v757_v11 = vld [vmem:[%s855_s11 + $0x58] sm:$0xff]   ;;  %v759_v15 = vld [vmem:[%s855_s11 + $0x50] sm:$0xff]  }
  0x1b   : > { %704 = vmatprep.subr.bf16.mxu0 %v751_v3  ;;  %v756_v10 = vld [vmem:[%s855_s11 + $0x20] sm:$0xff]   ;;  %v758_v14 = vld [vmem:[%s855_s11 + $0x18] sm:$0xff]   ;;  %v760_v25 = vld [vmem:[%s855_s11 + $0x10] sm:$0xff]  }
  0x1c   : > { %v351_v12 = vsub.s32 0, %v350_v9  ;;  %v355_v13 = vsub.s32 1, %v350_v9  ;;  %v344_v16 = vld [vmem:[%s850_s7] sm:$0xff]  ;;  %v761_v28 = vld [vmem:[%s855_s11 + $0x48] sm:$0xff]  }
  0x1d   : > { %v347_v17 = vld [vmem:[%s327_s14] sm:$0x3]  ;;  %v345_v19 = vunpack.c.l.bf16 %v344_v16  ;;  %v346_v20 = vunpack.c.h.bf16 %v344_v16  ;;  %v762_v31 = vld [vmem:[%s855_s11 + $0x8] sm:$0xff]  }
  0x1e   : > { %705 = vmatpush3.bf16.msra.mxu0 %v752_v4  ;;  %v361_v18 = vld [vmem:[%s332_s17] sm:$0x3]  ;;  %v352_v21 = vrot.slane %v347_v17, %v351_v12  ;;  %v356_v22 = vrot.slane %v347_v17, %v355_v13 }
  0x1f   : > { %706 = vmatprep.subr.bf16.mxu0 %v753_v5  ;;  %v366_v23 = vrot.slane %v361_v18, %v351_v12  ;;  %v370_v24 = vrot.slane %v361_v18, %v355_v13  ;;  %v763_v33 = vld [vmem:[%s855_s11 + $0x40] sm:$0xff]  }
  0x20   : > { %v360_v26 = vmul.f32 %v356_v22, %v346_v20  ;;  %v359_v27 = vmul.f32 %v352_v21, %v345_v19  ;;  %v764_v36 = vld [vmem:[%s855_s11] sm:$0xff]  }
  0x21   : > { %v379_v39 = vld [vmem:[#allocation2] sm:$0xff] }
  0x22   : > { %707 = vmatpush3.bf16.msra.mxu0 %v754_v7  ;;  %v374_v29 = vadd.f32 %v370_v24, %v360_v26  ;;  %v373_v30 = vadd.f32 %v366_v23, %v359_v27 }
  0x23   : > { %708 = vmatprep.subr.bf16.mxu0 %v755_v8 }
  0x24   : > { %v376_v32 = vmax.f32 %v374_v29, 0.0  ;;  %v375_v35 = vmax.f32 %v373_v30, 0.0 }
  0x26   : > { %709 = vmatpush3.bf16.msra.mxu0 %v756_v10  ;;  %v378_v34 = vpack.c.bf16 %v376_v32, %v376_v32  ;;  %v377_v37 = vpack.c.bf16 %v375_v35, %v375_v35 }
  0x27   : > { %710 = vmatprep.subr.bf16.mxu0 %v757_v11 }
  0x28   : > { %540 = vmatprep.mubr.bf16.mxu0 %v378_v34 }
  0x2a   : > { %711 = vmatpush3.bf16.msra.mxu0 %v758_v14 }
  0x2b   : > { %712 = vmatprep.subr.bf16.mxu0 %v759_v15 }
  0x2e   : > { %713 = vmatpush3.bf16.msra.mxu0 %v760_v25 }
  0x2f   : > { %714 = vmatprep.subr.bf16.mxu0 %v761_v28 }
  0x32   : > { %715 = vmatpush3.bf16.msra.mxu0 %v762_v31 }
  0x33   : > { %716 = vmatprep.subr.bf16.mxu0 %v763_v33 }
  0x36   : > { %717 = vmatpush3.bf16.msra.mxu0 %v764_v36 }
  0x39   : > { %541 = vmatmul.mubr.bf16.vlgmr.msra.gmra.mxu0 %v377_v37 }
  0xf9   : > { %v718_v38 = vpop.f32.mrf.mxu0 }
  0xfb   : > { %v719_v40 = vpop.f32.mrf.mxu0 }
  0xfc   : > { %v720_v41 = vadd.f32 %v719_v40, %v718_v38  ;;  %553 = sbr.rel (%p696_p8) target bundleno = 273 (0x111), region = 52 }
  0xfd   : > { %v721_v42 = vpop.f32.mrf.mxu0 }
  0xfe   : > { %v548_v43 = vadd.f32 %v720_v41, %v379_v39 }
  0xff   : > { %v722_v44 = vpop.f32.mrf.mxu0 }
 0x100   : > { %549 = vst [vmem:[#allocation2] sm:$0xff] %v548_v43 }
 0x101   : > { %v697_v46 = vld [vmem:[%s918_s4] ss:$0 sm:$0xff] }
 0x102   : > { %v698_v47 = vld [vmem:[%s919_s5] ss:$0 sm:$0xff] }
 0x107   : > { %v554_v45 = vld [vmem:[#allocation2] sm:$0xff] }
 0x108   : > { %v562_v48 = vmul.f32 %v697_v46, %v554_v45 }
 0x10a   : > { %v570_v49 = vadd.f32 %v698_v47, %v562_v48 }
 0x10c   : > { %v571_v50 = vmax.f32 %v570_v49, 0.0 }
 0x10e   : > { %v572_v51 = vpack.c.bf16 %v571_v50, %v571_v50 }
 0x110   : > { %573 = vst [vmem:[%s920_s6] sm:$0xf] %v572_v51 }
 0x111 PF: > { %s16_s23 = sadd.s32 1, %s787_s23   ;;  %s921_s21 = smov %s783_s22 }
 0x112   : > { %p13_p9 = scmp.ge.s32.totalorder %s16_s23, 4   ;;  %s922_s22 = smov %s924_s24 }
 0x114   :  { %15 = sbr.rel (!%p13_p9) target bundleno = 2 (0x2), region = 91 }

// kernel: densenet121_forward.186
= control target key start
LH: loop header
LB: loop body
LE: loop exit
PB: predicated region body
PF: predicated region fallthrough
CT: control target
= control target key end

     0   :  { %s825_s21 = smov 0   ;;  %s827_s22 = smov 0   ;;  %s914_s0 = inlined_call_operand.vmem [shape: bf16[8,1024], index: 0, kind: input, shape index: {}]   ;;  %s915_s1 = inlined_call_operand.vmem [shape: bf16[768,128], index: 1, kind: input, shape index: {}]   ;;  %s916_s2 = inlined_call_operand.vmem [shape: f32[1,768], index: 2, kind: input, shape index: {}]   ;;  %s917_s3 = inlined_call_operand.vmem [shape: f32[1,768], index: 3, kind: input, shape index: {}]   ;;  %s918_s4 = inlined_call_operand.vmem [shape: f32[1,128], index: 4, kind: input, shape index: {}]   ;;  %s919_s5 = inlined_call_operand.vmem [shape: f32[1,128], index: 5, kind: input, shape index: {}]   ;;  %s920_s6 = inlined_call_operand.vmem [shape: bf16[8,128], index: 6, kind: output, shape index: {}]  }
   0x1   :  { %s829_s23 = smov 0  }
   0x2 LB: > { %s25_s24 = sadd.s32 1, %s783_s22  ;;  %p672_p0 = scmp.ge.s32.totalorder %s787_s23, 1  ;;  %s787_s23 = sphi %s829_s23, %s16_s23   ;;  %s783_s22 = sphi %s827_s22, %s922_s22   ;;  %s779_s21 = sphi %s825_s21, %s921_s21  }
   0x3   : > { %p26_p1 = scmp.ge.s32.totalorder %s25_s24, 3  ;;  %p262_p2 = scmp.lt.s32.totalorder %s787_s23, 4 }
   0x5   : > { %s924_s24 = smov (%p26_p1, %s25_s24), 0  ;;  %p263_p3 = pnand %p672_p0, %p262_p2 }
   0x6   : > { %s673_s25 = sshll.u32 (!%p263_p3), %s779_s21, 1  ;;  %s675_s26 = sshll.u32 (!%p263_p3), %s779_s21, 5 }
   0x7   : > { %266 = sbr.rel (%p263_p3) target bundleno = 273 (0x111), region = 44  ;;  %p311_p4 = scmp.lt.s32.totalorder (!%p263_p3), %s673_s25, 7 }
   0x8   : > { %p319_p5 = scmp.lt.s32.totalorder (!%p263_p3), %s675_s26, 95  ;;  %p325_p6 = scmp.lt.s32.totalorder (!%p263_p3), %s673_s25, 5 }
   0x9   : > { %p679_p7 = scmp.ne.s32.totalorder (!%p263_p3), %s779_s21, 0 }
   0xc   : > { %s312_s27 = scalar_select %p311_p4, %s673_s25, 7 }
   0xd   : > { %s926_s26 = smov (!%p319_p5, %s675_s26), 95  ;;  %s928_s25 = smov (!%p325_p6, %s673_s25), 5 }
   0xe   : > { %s674_s28 = sshll.u32 %s312_s27, 2  ;;  %s676_s8 = sshll.u32 %s926_s26, 2 }
   0xf   : > { %s850_s7 = scalar_lea.vmem %s914_s0, %s674_s28  ;;  %s855_s11 = scalar_lea.vmem %s915_s1, %s676_s8 }
  0x10   : > { %s327_s14 = scalar_lea.vmem %s916_s2, %s928_s25  ;;  %s332_s17 = scalar_lea.vmem %s917_s3, %s928_s25 }
  0x11   : > { %342 = sbr.rel (%p679_p7) target bundleno = 24 (0x18), region = 48 }
  0x16   : > { %v789_v0 = vmov 0.0  }
  0x17   : > { %343 = vst [vmem:[#allocation2] sm:$0xff] %v789_v0 }
  0x18 PF: > { %v749_v1 = vld [vmem:[%s855_s11 + $0x78] sm:$0xff]   ;;  %v751_v3 = vld [vmem:[%s855_s11 + $0x70] sm:$0xff]   ;;  %v753_v5 = vld [vmem:[%s855_s11 + $0x68] sm:$0xff]   ;;  %v349_v6 = vlaneseq  ;;  %p696_p8 = scmp.ne.s32.totalorder %s779_s21, 2 }
  0x19   : > { %v750_v2 = vld [vmem:[%s855_s11 + $0x38] sm:$0xff]   ;;  %702 = vmatprep.subr.bf16.mxu0 %v749_v1  ;;  %v752_v4 = vld [vmem:[%s855_s11 + $0x30] sm:$0xff]   ;;  %v754_v7 = vld [vmem:[%s855_s11 + $0x28] sm:$0xff]  }
  0x1a   : > { %703 = vmatpush3.bf16.msra.mxu0 %v750_v2  ;;  %v755_v8 = vld [vmem:[%s855_s11 + $0x60] sm:$0xff]   ;;  %v350_v9 = vshrl.u32 %v349_v6, 7  ;;  %v757_v11 = vld [vmem:[%s855_s11 + $0x58] sm:$0xff]   ;;  %v759_v15 = vld [vmem:[%s855_s11 + $0x50] sm:$0xff]  }
  0x1b   : > { %704 = vmatprep.subr.bf16.mxu0 %v751_v3  ;;  %v756_v10 = vld [vmem:[%s855_s11 + $0x20] sm:$0xff]   ;;  %v758_v14 = vld [vmem:[%s855_s11 + $0x18] sm:$0xff]   ;;  %v760_v25 = vld [vmem:[%s855_s11 + $0x10] sm:$0xff]  }
  0x1c   : > { %v351_v12 = vsub.s32 0, %v350_v9  ;;  %v355_v13 = vsub.s32 1, %v350_v9  ;;  %v344_v16 = vld [vmem:[%s850_s7] sm:$0xff]  ;;  %v761_v28 = vld [vmem:[%s855_s11 + $0x48] sm:$0xff]  }
  0x1d   : > { %v347_v17 = vld [vmem:[%s327_s14] sm:$0x3]  ;;  %v345_v19 = vunpack.c.l.bf16 %v344_v16  ;;  %v346_v20 = vunpack.c.h.bf16 %v344_v16  ;;  %v762_v31 = vld [vmem:[%s855_s11 + $0x8] sm:$0xff]  }
  0x1e   : > { %705 = vmatpush3.bf16.msra.mxu0 %v752_v4  ;;  %v361_v18 = vld [vmem:[%s332_s17] sm:$0x3]  ;;  %v352_v21 = vrot.slane %v347_v17, %v351_v12  ;;  %v356_v22 = vrot.slane %v347_v17, %v355_v13 }
  0x1f   : > { %706 = vmatprep.subr.bf16.mxu0 %v753_v5  ;;  %v366_v23 = vrot.slane %v361_v18, %v351_v12  ;;  %v370_v24 = vrot.slane %v361_v18, %v355_v13  ;;  %v763_v33 = vld [vmem:[%s855_s11 + $0x40] sm:$0xff]  }
  0x20   : > { %v360_v26 = vmul.f32 %v356_v22, %v346_v20  ;;  %v359_v27 = vmul.f32 %v352_v21, %v345_v19  ;;  %v764_v36 = vld [vmem:[%s855_s11] sm:$0xff]  }
  0x21   : > { %v379_v39 = vld [vmem:[#allocation2] sm:$0xff] }
  0x22   : > { %707 = vmatpush3.bf16.msra.mxu0 %v754_v7  ;;  %v374_v29 = vadd.f32 %v370_v24, %v360_v26  ;;  %v373_v30 = vadd.f32 %v366_v23, %v359_v27 }
  0x23   : > { %708 = vmatprep.subr.bf16.mxu0 %v755_v8 }
  0x24   : > { %v376_v32 = vmax.f32 %v374_v29, 0.0  ;;  %v375_v35 = vmax.f32 %v373_v30, 0.0 }
  0x26   : > { %709 = vmatpush3.bf16.msra.mxu0 %v756_v10  ;;  %v378_v34 = vpack.c.bf16 %v376_v32, %v376_v32  ;;  %v377_v37 = vpack.c.bf16 %v375_v35, %v375_v35 }
  0x27   : > { %710 = vmatprep.subr.bf16.mxu0 %v757_v11 }
  0x28   : > { %540 = vmatprep.mubr.bf16.mxu0 %v378_v34 }
  0x2a   : > { %711 = vmatpush3.bf16.msra.mxu0 %v758_v14 }
  0x2b   : > { %712 = vmatprep.subr.bf16.mxu0 %v759_v15 }
  0x2e   : > { %713 = vmatpush3.bf16.msra.mxu0 %v760_v25 }
  0x2f   : > { %714 = vmatprep.subr.bf16.mxu0 %v761_v28 }
  0x32   : > { %715 = vmatpush3.bf16.msra.mxu0 %v762_v31 }
  0x33   : > { %716 = vmatprep.subr.bf16.mxu0 %v763_v33 }
  0x36   : > { %717 = vmatpush3.bf16.msra.mxu0 %v764_v36 }
  0x39   : > { %541 = vmatmul.mubr.bf16.vlgmr.msra.gmra.mxu0 %v377_v37 }
  0xf9   : > { %v718_v38 = vpop.f32.mrf.mxu0 }
  0xfb   : > { %v719_v40 = vpop.f32.mrf.mxu0 }
  0xfc   : > { %v720_v41 = vadd.f32 %v719_v40, %v718_v38  ;;  %553 = sbr.rel (%p696_p8) target bundleno = 273 (0x111), region = 52 }
  0xfd   : > { %v721_v42 = vpop.f32.mrf.mxu0 }
  0xfe   : > { %v548_v43 = vadd.f32 %v720_v41, %v379_v39 }
  0xff   : > { %v722_v44 = vpop.f32.mrf.mxu0 }
 0x100   : > { %549 = vst [vmem:[#allocation2] sm:$0xff] %v548_v43 }
 0x101   : > { %v697_v46 = vld [vmem:[%s918_s4] ss:$0 sm:$0xff] }
 0x102   : > { %v698_v47 = vld [vmem:[%s919_s5] ss:$0 sm:$0xff] }
 0x107   : > { %v554_v45 = vld [vmem:[#allocation2] sm:$0xff] }
 0x108   : > { %v562_v48 = vmul.f32 %v697_v46, %v554_v45 }
 0x10a   : > { %v570_v49 = vadd.f32 %v698_v47, %v562_v48 }
 0x10c   : > { %v571_v50 = vmax.f32 %v570_v49, 0.0 }
 0x10e   : > { %v572_v51 = vpack.c.bf16 %v571_v50, %v571_v50 }
 0x110   : > { %573 = vst [vmem:[%s920_s6] sm:$0xf] %v572_v51 }
 0x111 PF: > { %s16_s23 = sadd.s32 1, %s787_s23   ;;  %s921_s21 = smov %s783_s22 }
 0x112   : > { %p13_p9 = scmp.ge.s32.totalorder %s16_s23, 5   ;;  %s922_s22 = smov %s924_s24 }
 0x114   :  { %15 = sbr.rel (!%p13_p9) target bundleno = 2 (0x2), region = 91 }

// kernel: densenet121_forward.202
= control target key start
LH: loop header
LB: loop body
LE: loop exit
PB: predicated region body
PF: predicated region fallthrough
CT: control target
= control target key end

     0   :  { %s825_s21 = smov 0   ;;  %s827_s22 = smov 0   ;;  %s915_s0 = inlined_call_operand.vmem [shape: bf16[8,1024], index: 0, kind: input, shape index: {}]   ;;  %s916_s1 = inlined_call_operand.vmem [shape: bf16[1024,128], index: 1, kind: input, shape index: {}]   ;;  %s917_s2 = inlined_call_operand.vmem [shape: f32[1,1024], index: 2, kind: input, shape index: {}]   ;;  %s918_s3 = inlined_call_operand.vmem [shape: f32[1,1024], index: 3, kind: input, shape index: {}]   ;;  %s919_s4 = inlined_call_operand.vmem [shape: f32[1,128], index: 4, kind: input, shape index: {}]   ;;  %s920_s5 = inlined_call_operand.vmem [shape: f32[1,128], index: 5, kind: input, shape index: {}]   ;;  %s921_s6 = inlined_call_operand.vmem [shape: bf16[8,128], index: 6, kind: output, shape index: {}]  }
   0x1   :  { %s829_s23 = smov 0  }
   0x2 LB: > { %s25_s24 = sadd.s32 1, %s783_s22  ;;  %p672_p0 = scmp.ge.s32.totalorder %s787_s23, 1  ;;  %s787_s23 = sphi %s829_s23, %s16_s23   ;;  %s783_s22 = sphi %s827_s22, %s923_s22   ;;  %s779_s21 = sphi %s825_s21, %s922_s21  }
   0x3   : > { %p26_p1 = scmp.ge.s32.totalorder %s25_s24, 4  ;;  %p262_p2 = scmp.lt.s32.totalorder %s787_s23, 5 }
   0x5   : > { %s925_s24 = smov (%p26_p1, %s25_s24), 0  ;;  %p263_p3 = pnand %p672_p0, %p262_p2 }
   0x6   : > { %s673_s25 = sshll.u32 (!%p263_p3), %s779_s21, 1  ;;  %s675_s26 = sshll.u32 (!%p263_p3), %s779_s21, 5 }
   0x7   : > { %266 = sbr.rel (%p263_p3) target bundleno = 272 (0x110), region = 44  ;;  %p311_p4 = scmp.lt.s32.totalorder (!%p263_p3), %s673_s25, 7 }
   0x8   : > { %p319_p5 = scmp.lt.s32.totalorder (!%p263_p3), %s675_s26, 127  ;;  %p679_p6 = scmp.ne.s32.totalorder (!%p263_p3), %s779_s21, 0 }
   0xc   : > { %s927_s25 = smov (!%p311_p4, %s673_s25), 7  ;;  %s929_s26 = smov (!%p319_p5, %s675_s26), 127 }
   0xd   : > { %s674_s27 = sshll.u32 %s927_s25, 2  ;;  %s327_s30 = scalar_lea.vmem %s917_s2, %s927_s25 }
   0xe   : > { %s857_s9 = scalar_lea.vmem %s915_s0, %s674_s27  ;;  %s676_s10 = sshll.u32 %s929_s26, 2 }
   0xf   : > { %s862_s13 = scalar_lea.vmem %s916_s1, %s676_s10  ;;  %s332_s16 = scalar_lea.vmem %s918_s3, %s927_s25 }
  0x10   : > { %342 = sbr.rel (%p679_p6) target bundleno = 23 (0x17), region = 48 }
  0x15   : > { %v789_v0 = vmov 0.0  }
  0x16   : > { %343 = vst [vmem:[#allocation2] sm:$0xff] %v789_v0 }
  0x17 PF: > { %v749_v1 = vld [vmem:[%s862_s13 + $0x78] sm:$0xff]   ;;  %v751_v3 = vld [vmem:[%s862_s13 + $0x70] sm:$0xff]   ;;  %v753_v5 = vld [vmem:[%s862_s13 + $0x68] sm:$0xff]   ;;  %v349_v6 = vlaneseq  ;;  %p696_p7 = scmp.ne.s32.totalorder %s779_s21, 3 }
  0x18   : > { %v750_v2 = vld [vmem:[%s862_s13 + $0x38] sm:$0xff]   ;;  %702 = vmatprep.subr.bf16.mxu0 %v749_v1  ;;  %v752_v4 = vld [vmem:[%s862_s13 + $0x30] sm:$0xff]   ;;  %v754_v7 = vld [vmem:[%s862_s13 + $0x28] sm:$0xff]  }
  0x19   : > { %703 = vmatpush3.bf16.msra.mxu0 %v750_v2  ;;  %v755_v8 = vld [vmem:[%s862_s13 + $0x60] sm:$0xff]   ;;  %v350_v9 = vshrl.u32 %v349_v6, 7  ;;  %v757_v11 = vld [vmem:[%s862_s13 + $0x58] sm:$0xff]   ;;  %v759_v15 = vld [vmem:[%s862_s13 + $0x50] sm:$0xff]  }
  0x1a   : > { %704 = vmatprep.subr.bf16.mxu0 %v751_v3  ;;  %v756_v10 = vld [vmem:[%s862_s13 + $0x20] sm:$0xff]   ;;  %v758_v14 = vld [vmem:[%s862_s13 + $0x18] sm:$0xff]   ;;  %v760_v25 = vld [vmem:[%s862_s13 + $0x10] sm:$0xff]  }
  0x1b   : > { %v351_v12 = vsub.s32 0, %v350_v9  ;;  %v355_v13 = vsub.s32 1, %v350_v9  ;;  %v344_v16 = vld [vmem:[%s857_s9] sm:$0xff]  ;;  %v761_v28 = vld [vmem:[%s862_s13 + $0x48] sm:$0xff]  }
  0x1c   : > { %v347_v17 = vld [vmem:[%s327_s30] sm:$0x3]  ;;  %v345_v19 = vunpack.c.l.bf16 %v344_v16  ;;  %v346_v20 = vunpack.c.h.bf16 %v344_v16  ;;  %v762_v31 = vld [vmem:[%s862_s13 + $0x8] sm:$0xff]  }
  0x1d   : > { %705 = vmatpush3.bf16.msra.mxu0 %v752_v4  ;;  %v361_v18 = vld [vmem:[%s332_s16] sm:$0x3]  ;;  %v352_v21 = vrot.slane %v347_v17, %v351_v12  ;;  %v356_v22 = vrot.slane %v347_v17, %v355_v13 }
  0x1e   : > { %706 = vmatprep.subr.bf16.mxu0 %v753_v5  ;;  %v366_v23 = vrot.slane %v361_v18, %v351_v12  ;;  %v370_v24 = vrot.slane %v361_v18, %v355_v13  ;;  %v763_v33 = vld [vmem:[%s862_s13 + $0x40] sm:$0xff]  }
  0x1f   : > { %v360_v26 = vmul.f32 %v356_v22, %v346_v20  ;;  %v359_v27 = vmul.f32 %v352_v21, %v345_v19  ;;  %v764_v36 = vld [vmem:[%s862_s13] sm:$0xff]  }
  0x20   : > { %v379_v39 = vld [vmem:[#allocation2] sm:$0xff] }
  0x21   : > { %707 = vmatpush3.bf16.msra.mxu0 %v754_v7  ;;  %v374_v29 = vadd.f32 %v370_v24, %v360_v26  ;;  %v373_v30 = vadd.f32 %v366_v23, %v359_v27 }
  0x22   : > { %708 = vmatprep.subr.bf16.mxu0 %v755_v8 }
  0x23   : > { %v376_v32 = vmax.f32 %v374_v29, 0.0  ;;  %v375_v35 = vmax.f32 %v373_v30, 0.0 }
  0x25   : > { %709 = vmatpush3.bf16.msra.mxu0 %v756_v10  ;;  %v378_v34 = vpack.c.bf16 %v376_v32, %v376_v32  ;;  %v377_v37 = vpack.c.bf16 %v375_v35, %v375_v35 }
  0x26   : > { %710 = vmatprep.subr.bf16.mxu0 %v757_v11 }
  0x27   : > { %540 = vmatprep.mubr.bf16.mxu0 %v378_v34 }
  0x29   : > { %711 = vmatpush3.bf16.msra.mxu0 %v758_v14 }
  0x2a   : > { %712 = vmatprep.subr.bf16.mxu0 %v759_v15 }
  0x2d   : > { %713 = vmatpush3.bf16.msra.mxu0 %v760_v25 }
  0x2e   : > { %714 = vmatprep.subr.bf16.mxu0 %v761_v28 }
  0x31   : > { %715 = vmatpush3.bf16.msra.mxu0 %v762_v31 }
  0x32   : > { %716 = vmatprep.subr.bf16.mxu0 %v763_v33 }
  0x35   : > { %717 = vmatpush3.bf16.msra.mxu0 %v764_v36 }
  0x38   : > { %541 = vmatmul.mubr.bf16.vlgmr.msra.gmra.mxu0 %v377_v37 }
  0xf8   : > { %v718_v38 = vpop.f32.mrf.mxu0 }
  0xfa   : > { %v719_v40 = vpop.f32.mrf.mxu0 }
  0xfb   : > { %v720_v41 = vadd.f32 %v719_v40, %v718_v38  ;;  %553 = sbr.rel (%p696_p7) target bundleno = 272 (0x110), region = 52 }
  0xfc   : > { %v721_v42 = vpop.f32.mrf.mxu0 }
  0xfd   : > { %v548_v43 = vadd.f32 %v720_v41, %v379_v39 }
  0xfe   : > { %v722_v44 = vpop.f32.mrf.mxu0 }
  0xff   : > { %549 = vst [vmem:[#allocation2] sm:$0xff] %v548_v43 }
 0x100   : > { %v697_v46 = vld [vmem:[%s919_s4] ss:$0 sm:$0xff] }
 0x101   : > { %v698_v47 = vld [vmem:[%s920_s5] ss:$0 sm:$0xff] }
 0x106   : > { %v554_v45 = vld [vmem:[#allocation2] sm:$0xff] }
 0x107   : > { %v562_v48 = vmul.f32 %v697_v46, %v554_v45 }
 0x109   : > { %v570_v49 = vadd.f32 %v698_v47, %v562_v48 }
 0x10b   : > { %v571_v50 = vmax.f32 %v570_v49, 0.0 }
 0x10d   : > { %v572_v51 = vpack.c.bf16 %v571_v50, %v571_v50 }
 0x10f   : > { %573 = vst [vmem:[%s921_s6] sm:$0xf] %v572_v51 }
 0x110 PF: > { %s16_s23 = sadd.s32 1, %s787_s23   ;;  %s922_s21 = smov %s783_s22 }
 0x111   : > { %p13_p8 = scmp.ge.s32.totalorder %s16_s23, 6   ;;  %s923_s22 = smov %s925_s24 }
 0x113   :  { %15 = sbr.rel (!%p13_p8) target bundleno = 2 (0x2), region = 91 }

// kernel: densenet121_forward.217
= control target key start
LH: loop header
LB: loop body
LE: loop exit
PB: predicated region body
PF: predicated region fallthrough
CT: control target
= control target key end

     0   :  { %s213_s6 = smov 0   ;;  %s224_s0 = inlined_call_operand.vmem [shape: f32[2,4,1,512], index: 0, kind: input, shape index: {}]   ;;  %s225_s1 = inlined_call_operand.vmem [shape: f32[2,1,1,512], index: 1, kind: output, shape index: {}]  }
   0x1 LB: > { %s178_s7 = sadd.s32 4294967295, %s201_s6   ;;  %p182_p0 = scmp.ge.s32.totalorder %s201_s6, 1  ;;  %s201_s6 = sphi %s213_s6, %s11_s6  }
   0x2   : > { %p86_p1 = scmp.lt.s32.totalorder %s201_s6, 3 }
   0x4   : > { %p87_p2 = pnand %p182_p0, %p86_p1 }
   0x5   : > { %p104_p3 = scmp.lt.s32.totalorder (!%p87_p2), %s178_s7, 1 }
   0x6   : > { %90 = sbr.rel (%p87_p2) target bundleno = 24 (0x18), region = 24 }
   0xb   : > { %s227_s7 = smov (!%p104_p3, %s178_s7), 1  ;;  %v120_v5 = vlaneseq }
   0xc   : > { %s183_s8 = sshll.u32 %s227_s7, 4  ;;  %s184_s12 = sshll.u32 %s227_s7, 2 }
   0xd   : > { %s107_s11 = scalar_lea.vmem %s224_s0, %s183_s8  ;;  %s111_s15 = scalar_lea.vmem %s225_s1, %s184_s12  ;;  %vm122_vm0 = vcmp.lt.s32.totalorder %v120_v5, 512 }
   0xe   : > { %v112_v0 = vld [vmem:[%s107_s11] sm:$0xf]  ;;  %v113_v1 = vld [vmem:[%s107_s11 + $0x4] sm:$0xf]  ;;  %v114_v2 = vld [vmem:[%s107_s11 + $0x8] sm:$0xf] }
   0xf   : > { %v116_v3 = vadd.f32 %v113_v1, %v112_v0  ;;  %v115_v4 = vld [vmem:[%s107_s11 + $0xc] sm:$0xf] }
  0x11   : > { %v117_v6 = vadd.f32 %v116_v3, %v114_v2 }
  0x13   : > { %v118_v7 = vadd.f32 %v117_v6, %v115_v4 }
  0x15   : > { %v119_v8 = vmul.f32 0.25, %v118_v7 }
  0x17   : > { %124 = vst.msk [vmem:[%s111_s15] sm:$0xf] %vm122_vm0, %v119_v8 }
  0x18 PF: > { %s11_s6 = sadd.s32 1, %s201_s6  }
  0x19   : > { %p8_p4 = scmp.ge.s32.totalorder %s11_s6, 4  }
  0x1b   :  { %10 = sbr.rel (!%p8_p4) target bundleno = 1 (0x1), region = 54 }

// kernel: densenet121_forward.216
= control target key start
LH: loop header
LB: loop body
LE: loop exit
PB: predicated region body
PF: predicated region fallthrough
CT: control target
= control target key end

     0   :  { %s1235_s21 = smov 0   ;;  %s1237_s22 = smov 0   ;;  %s1376_s0 = inlined_call_operand.vmem [shape: bf16[8,1024], index: 0, kind: input, shape index: {}]   ;;  %s1377_s1 = inlined_call_operand.vmem [shape: bf16[1024,512], index: 1, kind: input, shape index: {}]   ;;  %s1378_s2 = inlined_call_operand.vmem [shape: f32[1,1024], index: 2, kind: input, shape index: {}]   ;;  %s1379_s3 = inlined_call_operand.vmem [shape: f32[1,1024], index: 3, kind: input, shape index: {}]   ;;  %s1380_s4 = inlined_call_operand.vmem [shape: f32[1,512], index: 4, kind: input, shape index: {}, may-alias: {4,5}]   ;;  %s1381_s5 = inlined_call_operand.vmem [shape: f32[1,512], index: 5, kind: input, shape index: {}, may-alias: {4,5}]   ;;  %s1382_s6 = inlined_call_operand.vmem [shape: f32[8,512], index: 6, kind: output, shape index: {}]  }
   0x1   :  { %s1239_s23 = smov 0  }
   0x2 LB: > { %s25_s4 = sadd.s32 1, %s1193_s22  ;;  %p976_p0 = scmp.ge.s32.totalorder %s1197_s23, 1  ;;  %s1197_s23 = sphi %s1239_s23, %s16_s23   ;;  %s1193_s22 = sphi %s1237_s22, %s1384_s22   ;;  %s1189_s21 = sphi %s1235_s21, %s1383_s21  }
   0x3   : > { %p26_p1 = scmp.ge.s32.totalorder %s25_s4, 4  ;;  %p263_p2 = scmp.lt.s32.totalorder %s1197_s23, 5 }
   0x5   : > { %s1386_s4 = smov (%p26_p1, %s25_s4), 0  ;;  %p264_p3 = pnand %p976_p0, %p263_p2 }
   0x6   : > { %s977_s5 = sshll.u32 (!%p264_p3), %s1189_s21, 1  ;;  %s979_s24 = sshll.u32 (!%p264_p3), %s1189_s21, 5 }
   0x7   : > { %267 = sbr.rel (%p264_p3) target bundleno = 295 (0x127), region = 44  ;;  %p314_p4 = scmp.lt.s32.totalorder (!%p264_p3), %s977_s5, 7 }
   0x8   : > { %p322_p5 = scmp.lt.s32.totalorder (!%p264_p3), %s979_s24, 127  ;;  %p984_p6 = scmp.ne.s32.totalorder (!%p264_p3), %s1189_s21, 0 }
   0xc   : > { %s1388_s5 = smov (!%p314_p4, %s977_s5), 7  ;;  %s1390_s24 = smov (!%p322_p5, %s979_s24), 127 }
   0xd   : > { %s978_s25 = sshll.u32 %s1388_s5, 2  ;;  %s331_s28 = scalar_lea.vmem %s1378_s2, %s1388_s5 }
   0xe   : > { %s1267_s7 = scalar_lea.vmem %s1376_s0, %s978_s25  ;;  %s1053_s8 = sshll.u32 %s1390_s24, 4 }
   0xf   : > { %s1272_s11 = scalar_lea.vmem %s1377_s1, %s1053_s8  ;;  %s336_s14 = scalar_lea.vmem %s1379_s3, %s1388_s5 }
  0x10   : > { %346 = sbr.rel (%p984_p6) target bundleno = 24 (0x18), region = 48 }
  0x15   : > { %v1199_v0 = vmov 0.0  }
  0x16   : > { %347 = vst [vmem:[#allocation2 + $0x10] sm:$0xff] %v1199_v0  ;;  %348 = vst [vmem:[#allocation2] sm:$0xff] %v1199_v0 }
  0x17   : > { %349 = vst [vmem:[#allocation2 + $0x18] sm:$0xff] %v1199_v0  ;;  %350 = vst [vmem:[#allocation2 + $0x8] sm:$0xff] %v1199_v0 }
  0x18 PF: > { %v1079_v1 = vld [vmem:[%s1272_s11 + $0xe4] ss:$16 sps:$4 sm:$0xff]   ;;  %v1081_v2 = vld [vmem:[%s1272_s11 + $0xec] ss:$16 sps:$4 sm:$0xff]   ;;  %v1083_v3 = vld [vmem:[%s1272_s11 + $0xe0] ss:$16 sps:$4 sm:$0xff]   ;;  %v356_v38 = vlaneseq }
  0x19   : > { %774 = vmatprep.subr.bf16.mxu0 %v1079_v1  ;;  %v1084_v4 = vld [vmem:[%s1272_s11 + $0xe8] ss:$16 sps:$4 sm:$0xff]   ;;  %815 = vmatprep.subr.bf16.mxu1 %v1081_v2  ;;  %v1085_v5 = vld [vmem:[%s1272_s11 + $0xc4] ss:$16 sps:$4 sm:$0xff]   ;;  %v1087_v6 = vld [vmem:[%s1272_s11 + $0xcc] ss:$16 sps:$4 sm:$0xff]  }
  0x1a   : > { %775 = vmatpush1.bf16.msra.mxu0 %v1083_v3  ;;  %816 = vmatpush1.bf16.msra.mxu1 %v1084_v4  ;;  %v1089_v7 = vld [vmem:[%s1272_s11 + $0xc0] ss:$16 sps:$4 sm:$0xff]   ;;  %v1090_v8 = vld [vmem:[%s1272_s11 + $0xc8] ss:$16 sps:$4 sm:$0xff]   ;;  %v1091_v9 = vld [vmem:[%s1272_s11 + $0xa4] ss:$16 sps:$4 sm:$0xff]  }
  0x1b   : > { %776 = vmatprep.subr.bf16.mxu0 %v1085_v5  ;;  %817 = vmatprep.subr.bf16.mxu1 %v1087_v6  ;;  %v1093_v10 = vld [vmem:[%s1272_s11 + $0xac] ss:$16 sps:$4 sm:$0xff]   ;;  %v1095_v11 = vld [vmem:[%s1272_s11 + $0xa0] ss:$16 sps:$4 sm:$0xff]   ;;  %v1096_v12 = vld [vmem:[%s1272_s11 + $0xa8] ss:$16 sps:$4 sm:$0xff]  }
  0x1c   : > { %v1097_v13 = vld [vmem:[%s1272_s11 + $0x84] ss:$16 sps:$4 sm:$0xff]   ;;  %v1099_v14 = vld [vmem:[%s1272_s11 + $0x8c] ss:$16 sps:$4 sm:$0xff]   ;;  %v1101_v15 = vld [vmem:[%s1272_s11 + $0x80] ss:$16 sps:$4 sm:$0xff]  }
  0x1d   : > { %v1102_v16 = vld [vmem:[%s1272_s11 + $0x88] ss:$16 sps:$4 sm:$0xff]   ;;  %v1103_v17 = vld [vmem:[%s1272_s11 + $0x64] ss:$16 sps:$4 sm:$0xff]   ;;  %v1105_v18 = vld [vmem:[%s1272_s11 + $0x6c] ss:$16 sps:$4 sm:$0xff]  }
  0x1e   : > { %777 = vmatpush1.bf16.msra.mxu0 %v1089_v7  ;;  %818 = vmatpush1.bf16.msra.mxu1 %v1090_v8  ;;  %v1107_v19 = vld [vmem:[%s1272_s11 + $0x60] ss:$16 sps:$4 sm:$0xff]   ;;  %v1108_v20 = vld [vmem:[%s1272_s11 + $0x68] ss:$16 sps:$4 sm:$0xff]   ;;  %v1109_v21 = vld [vmem:[%s1272_s11 + $0x44] ss:$16 sps:$4 sm:$0xff]  }
  0x1f   : > { %778 = vmatprep.subr.bf16.mxu0 %v1091_v9  ;;  %819 = vmatprep.subr.bf16.mxu1 %v1093_v10  ;;  %v1111_v22 = vld [vmem:[%s1272_s11 + $0x4c] ss:$16 sps:$4 sm:$0xff]   ;;  %v1113_v23 = vld [vmem:[%s1272_s11 + $0x40] ss:$16 sps:$4 sm:$0xff]   ;;  %v1114_v24 = vld [vmem:[%s1272_s11 + $0x48] ss:$16 sps:$4 sm:$0xff]  }
  0x20   : > { %v1115_v25 = vld [vmem:[%s1272_s11 + $0x24] ss:$16 sps:$4 sm:$0xff]   ;;  %v1117_v26 = vld [vmem:[%s1272_s11 + $0x2c] ss:$16 sps:$4 sm:$0xff]   ;;  %v1119_v27 = vld [vmem:[%s1272_s11 + $0x20] ss:$16 sps:$4 sm:$0xff]  }
  0x21   : > { %v1120_v28 = vld [vmem:[%s1272_s11 + $0x28] ss:$16 sps:$4 sm:$0xff]   ;;  %v1121_v29 = vld [vmem:[%s1272_s11 + $0x4] ss:$16 sps:$4 sm:$0xff]   ;;  %v1123_v30 = vld [vmem:[%s1272_s11 + $0xc] ss:$16 sps:$4 sm:$0xff]  }
  0x22   : > { %779 = vmatpush1.bf16.msra.mxu0 %v1095_v11  ;;  %820 = vmatpush1.bf16.msra.mxu1 %v1096_v12  ;;  %v1125_v31 = vld [vmem:[%s1272_s11] ss:$16 sps:$4 sm:$0xff]   ;;  %v1126_v32 = vld [vmem:[%s1272_s11 + $0x8] ss:$16 sps:$4 sm:$0xff]   ;;  %v1127_v33 = vld [vmem:[%s1272_s11 + $0x1e4] ss:$16 sps:$4 sm:$0xff]  }
  0x23   : > { %780 = vmatprep.subr.bf16.mxu0 %v1097_v13  ;;  %821 = vmatprep.subr.bf16.mxu1 %v1099_v14  ;;  %v1129_v34 = vld [vmem:[%s1272_s11 + $0x1ec] ss:$16 sps:$4 sm:$0xff]   ;;  %v1131_v35 = vld [vmem:[%s1272_s11 + $0x1e0] ss:$16 sps:$4 sm:$0xff]   ;;  %v1132_v36 = vld [vmem:[%s1272_s11 + $0x1e8] ss:$16 sps:$4 sm:$0xff]  }
  0x24   : > { %v1133_v37 = vld [vmem:[%s1272_s11 + $0x1c4] ss:$16 sps:$4 sm:$0xff]   ;;  %v1135_v39 = vld [vmem:[%s1272_s11 + $0x1cc] ss:$16 sps:$4 sm:$0xff]   ;;  %v1137_v40 = vld [vmem:[%s1272_s11 + $0x1c0] ss:$16 sps:$4 sm:$0xff]  }
  0x25   : > { %v1138_v41 = vld [vmem:[%s1272_s11 + $0x1c8] ss:$16 sps:$4 sm:$0xff]   ;;  %v1139_v42 = vld [vmem:[%s1272_s11 + $0x1a4] ss:$16 sps:$4 sm:$0xff]   ;;  %v357_v43 = vshrl.u32 %v356_v38, 7  ;;  %p1049_p7 = scmp.ne.s32.totalorder %s1189_s21, 3 }
  0x26   : > { %781 = vmatpush1.bf16.msra.mxu0 %v1101_v15  ;;  %822 = vmatpush1.bf16.msra.mxu1 %v1102_v16  ;;  %v1141_v44 = vld [vmem:[%s1272_s11 + $0x1ac] ss:$16 sps:$4 sm:$0xff]   ;;  %v1143_v45 = vld [vmem:[%s1272_s11 + $0x1a0] ss:$16 sps:$4 sm:$0xff]   ;;  %v1144_v46 = vld [vmem:[%s1272_s11 + $0x1a8] ss:$16 sps:$4 sm:$0xff]  }
  0x27   : > { %782 = vmatprep.subr.bf16.mxu0 %v1103_v17  ;;  %823 = vmatprep.subr.bf16.mxu1 %v1105_v18  ;;  %v1145_v47 = vld [vmem:[%s1272_s11 + $0x184] ss:$16 sps:$4 sm:$0xff]   ;;  %v362_v48 = vsub.s32 1, %v357_v43  ;;  %v1147_v49 = vld [vmem:[%s1272_s11 + $0x18c] ss:$16 sps:$4 sm:$0xff]   ;;  %v358_v53 = vsub.s32 0, %v357_v43 }
  0x28   : > { %v351_v50 = vld [vmem:[%s1267_s7] sm:$0xff]  ;;  %v1150_v56 = vld [vmem:[%s1272_s11 + $0x188] ss:$16 sps:$4 sm:$0xff]   ;;  %v1153_v59 = vld [vmem:[%s1272_s11 + $0x16c] ss:$16 sps:$4 sm:$0xff]  }
  0x29   : > { %v353_v51 = vunpack.c.h.bf16 %v351_v50  ;;  %v354_v52 = vld [vmem:[%s331_s28] sm:$0x3]  ;;  %v1151_v58 = vld [vmem:[%s1272_s11 + $0x164] ss:$16 sps:$4 sm:$0xff]   ;;  %v352_v62 = vunpack.c.l.bf16 %v351_v50  ;;  %v1156_v1 = vld [vmem:[%s1272_s11 + $0x168] ss:$16 sps:$4 sm:$0xff]  }
  0x2a   : > { %783 = vmatpush1.bf16.msra.mxu0 %v1107_v19  ;;  %824 = vmatpush1.bf16.msra.mxu1 %v1108_v20  ;;  %v368_v54 = vld [vmem:[%s336_s14] sm:$0x3]  ;;  %v363_v57 = vrot.slane %v354_v52, %v362_v48  ;;  %v359_v63 = vrot.slane %v354_v52, %v358_v53  ;;  %v1157_v3 = vld [vmem:[%s1272_s11 + $0x144] ss:$16 sps:$4 sm:$0xff]   ;;  %v1159_v4 = vld [vmem:[%s1272_s11 + $0x14c] ss:$16 sps:$4 sm:$0xff]  }
  0x2b   : > { %784 = vmatprep.subr.bf16.mxu0 %v1109_v21  ;;  %825 = vmatprep.subr.bf16.mxu1 %v1111_v22  ;;  %v1149_v55 = vld [vmem:[%s1272_s11 + $0x180] ss:$16 sps:$4 sm:$0xff]   ;;  %v377_v60 = vrot.slane %v368_v54, %v362_v48  ;;  %v373_v6 = vrot.slane %v368_v54, %v358_v53  ;;  %v1162_v9 = vld [vmem:[%s1272_s11 + $0x148] ss:$16 sps:$4 sm:$0xff]   ;;  %v1163_v11 = vld [vmem:[%s1272_s11 + $0x124] ss:$16 sps:$4 sm:$0xff]  }
  0x2c   : > { %v367_v61 = vmul.f32 %v363_v57, %v353_v51  ;;  %v1155_v0 = vld [vmem:[%s1272_s11 + $0x160] ss:$16 sps:$4 sm:$0xff]   ;;  %v366_v7 = vmul.f32 %v359_v63, %v352_v62  ;;  %v1165_v12 = vld [vmem:[%s1272_s11 + $0x12c] ss:$16 sps:$4 sm:$0xff]   ;;  %v1168_v15 = vld [vmem:[%s1272_s11 + $0x128] ss:$16 sps:$4 sm:$0xff]  }
  0x2d   : > { %v1161_v8 = vld [vmem:[%s1272_s11 + $0x140] ss:$16 sps:$4 sm:$0xff]   ;;  %v1169_v16 = vld [vmem:[%s1272_s11 + $0x104] ss:$16 sps:$4 sm:$0xff]   ;;  %v1171_v17 = vld [vmem:[%s1272_s11 + $0x10c] ss:$16 sps:$4 sm:$0xff]  }
  0x2e   : > { %785 = vmatpush1.bf16.msra.mxu0 %v1113_v23  ;;  %826 = vmatpush1.bf16.msra.mxu1 %v1114_v24  ;;  %v381_v2 = vadd.f32 %v377_v60, %v367_v61  ;;  %v380_v13 = vadd.f32 %v373_v6, %v366_v7  ;;  %v1167_v14 = vld [vmem:[%s1272_s11 + $0x120] ss:$16 sps:$4 sm:$0xff]   ;;  %v1174_v20 = vld [vmem:[%s1272_s11 + $0x108] ss:$16 sps:$4 sm:$0xff]  }
  0x2f   : > { %786 = vmatprep.subr.bf16.mxu0 %v1115_v25  ;;  %827 = vmatprep.subr.bf16.mxu1 %v1117_v26  ;;  %v1173_v19 = vld [vmem:[%s1272_s11 + $0x100] ss:$16 sps:$4 sm:$0xff]   ;;  %v388_v23 = vld [vmem:[#allocation2 + $0x18] sm:$0xff] }
  0x30   : > { %v383_v5 = vmax.f32 %v381_v2, 0.0  ;;  %v382_v18 = vmax.f32 %v380_v13, 0.0  ;;  %v386_v22 = vld [vmem:[#allocation2 + $0x10] sm:$0xff]  ;;  %v387_v26 = vld [vmem:[#allocation2] sm:$0xff] }
  0x32   : > { %787 = vmatpush1.bf16.msra.mxu0 %v1119_v27  ;;  %828 = vmatpush1.bf16.msra.mxu1 %v1120_v28  ;;  %v385_v10 = vpack.c.bf16 %v383_v5, %v383_v5  ;;  %v384_v21 = vpack.c.bf16 %v382_v18, %v382_v18  ;;  %v389_v27 = vld [vmem:[#allocation2 + $0x8] sm:$0xff] }
  0x33   : > { %788 = vmatprep.subr.bf16.mxu0 %v1121_v29  ;;  %829 = vmatprep.subr.bf16.mxu1 %v1123_v30 }
  0x34   : > { %806 = vmatprep.mubr.bf16.mxu0 %v385_v10  ;;  %847 = vmatprep.mubr.bf16.mxu1 %v385_v10 }
  0x36   : > { %789 = vmatpush1.bf16.msra.mxu0 %v1125_v31  ;;  %830 = vmatpush1.bf16.msra.mxu1 %v1126_v32 }
  0x37   : > { %790 = vmatprep.subr.bf16.mxu0 %v1127_v33  ;;  %831 = vmatprep.subr.bf16.mxu1 %v1129_v34 }
  0x3a   : > { %791 = vmatpush2.bf16.msra.mxu0 %v1131_v35  ;;  %832 = vmatpush2.bf16.msra.mxu1 %v1132_v36 }
  0x3b   : > { %792 = vmatprep.subr.bf16.mxu0 %v1133_v37  ;;  %833 = vmatprep.subr.bf16.mxu1 %v1135_v39 }
  0x3e   : > { %793 = vmatpush2.bf16.msra.mxu0 %v1137_v40  ;;  %834 = vmatpush2.bf16.msra.mxu1 %v1138_v41 }
  0x3f   : > { %794 = vmatprep.subr.bf16.mxu0 %v1139_v42  ;;  %835 = vmatprep.subr.bf16.mxu1 %v1141_v44 }
  0x42   : > { %795 = vmatpush2.bf16.msra.mxu0 %v1143_v45  ;;  %836 = vmatpush2.bf16.msra.mxu1 %v1144_v46 }
  0x43   : > { %796 = vmatprep.subr.bf16.mxu0 %v1145_v47  ;;  %837 = vmatprep.subr.bf16.mxu1 %v1147_v49 }
  0x46   : > { %797 = vmatpush2.bf16.msra.mxu0 %v1149_v55  ;;  %838 = vmatpush2.bf16.msra.mxu1 %v1150_v56 }
  0x47   : > { %798 = vmatprep.subr.bf16.mxu0 %v1151_v58  ;;  %839 = vmatprep.subr.bf16.mxu1 %v1153_v59 }
  0x4a   : > { %799 = vmatpush2.bf16.msra.mxu0 %v1155_v0  ;;  %840 = vmatpush2.bf16.msra.mxu1 %v1156_v1 }
  0x4b   : > { %800 = vmatprep.subr.bf16.mxu0 %v1157_v3  ;;  %841 = vmatprep.subr.bf16.mxu1 %v1159_v4 }
  0x4e   : > { %801 = vmatpush2.bf16.msra.mxu0 %v1161_v8  ;;  %842 = vmatpush2.bf16.msra.mxu1 %v1162_v9 }
  0x4f   : > { %802 = vmatprep.subr.bf16.mxu0 %v1163_v11  ;;  %843 = vmatprep.subr.bf16.mxu1 %v1165_v12 }
  0x52   : > { %803 = vmatpush2.bf16.msra.mxu0 %v1167_v14  ;;  %844 = vmatpush2.bf16.msra.mxu1 %v1168_v15 }
  0x53   : > { %804 = vmatprep.subr.bf16.mxu0 %v1169_v16  ;;  %845 = vmatprep.subr.bf16.mxu1 %v1171_v17 }
  0x56   : > { %805 = vmatpush2.bf16.msra.mxu0 %v1173_v19  ;;  %846 = vmatpush2.bf16.msra.mxu1 %v1174_v20 }
  0x59   : > { %807 = vmatmul.mubr.bf16.vlgmr.msra.gmra.mxu0 %v384_v21  ;;  %848 = vmatmul.mubr.bf16.vlgmr.msra.gmra.mxu1 %v384_v21 }
 0x119   : > { %v808_v24 = vpop.f32.mrf.mxu0  ;;  %v849_v25 = vpop.f32.mrf.mxu1 }
 0x11a   : > { %v856_v28 = vadd.f32 %v808_v24, %v386_v22  ;;  %v858_v29 = vadd.f32 %v849_v25, %v388_v23 }
 0x11b   : > { %v810_v30 = vpop.f32.mrf.mxu0  ;;  %v851_v31 = vpop.f32.mrf.mxu1  ;;  %867 = sbr.rel (%p1049_p7) target bundleno = 295 (0x127), region = 52 }
 0x11c   : > { %860 = vst [vmem:[#allocation2 + $0x10] sm:$0xff] %v856_v28  ;;  %862 = vst [vmem:[#allocation2 + $0x18] sm:$0xff] %v858_v29  ;;  %v857_v32 = vadd.f32 %v810_v30, %v387_v26  ;;  %v859_v33 = vadd.f32 %v851_v31, %v389_v27 }
 0x11d   : > { %v812_v34 = vpop.f32.mrf.mxu0  ;;  %v853_v35 = vpop.f32.mrf.mxu1 }
 0x11e   : > { %861 = vst [vmem:[#allocation2] sm:$0xff] %v857_v32  ;;  %863 = vst [vmem:[#allocation2 + $0x8] sm:$0xff] %v859_v33 }
 0x11f   : > { %v813_v36 = vpop.f32.mrf.mxu0  ;;  %v854_v37 = vpop.f32.mrf.mxu1 }
 0x123   : > { %v868_v38 = vld [vmem:[#allocation2 + $0x10] sm:$0xff]  ;;  %v870_v40 = vld [vmem:[#allocation2 + $0x18] sm:$0xff] }
 0x124   : > { %872 = vst [vmem:[%s1382_s6] sm:$0xff] %v868_v38  ;;  %874 = vst [vmem:[%s1382_s6 + $0x10] sm:$0xff] %v870_v40 }
 0x125   : > { %v869_v39 = vld [vmem:[#allocation2] sm:$0xff]  ;;  %v871_v41 = vld [vmem:[#allocation2 + $0x8] sm:$0xff] }
 0x126   : > { %873 = vst [vmem:[%s1382_s6 + $0x8] sm:$0xff] %v869_v39  ;;  %875 = vst [vmem:[%s1382_s6 + $0x18] sm:$0xff] %v871_v41 }
 0x127 PF: > { %s16_s23 = sadd.s32 1, %s1197_s23   ;;  %s1383_s21 = smov %s1193_s22 }
 0x128   : > { %p13_p8 = scmp.ge.s32.totalorder %s16_s23, 6   ;;  %s1384_s22 = smov %s1386_s4 }
 0x12a   :  { %15 = sbr.rel (!%p13_p8) target bundleno = 2 (0x2), region = 91 }

// kernel: densenet121_forward.219
= control target key start
LH: loop header
LB: loop body
LE: loop exit
PB: predicated region body
PF: predicated region fallthrough
CT: control target
= control target key end

     0   :  { %v498_v1 = vmov 0   ;;  %vm30_vm0 = vcmask 261120   ;;  %v499_v27 = vmov 0.0   ;;  %vm384_vm1 = vcmask 257024   ;;  %s637_s1 = inlined_call_operand.vmem [shape: bf16[128,288], index: 1, kind: input, shape index: {}]   ;;  %s638_s2 = inlined_call_operand.vmem [shape: f32[1,128], index: 2, kind: input, shape index: {}, may-alias: {2,3}]   ;;  %s639_s3 = inlined_call_operand.vmem [shape: f32[1,128], index: 3, kind: input, shape index: {}, may-alias: {2,3}]   ;;  %s640_s4 = inlined_call_operand.vmem [shape: f32[1,288], index: 4, kind: input, shape index: {}, may-alias: {4,5}]   ;;  %s641_s5 = inlined_call_operand.vmem [shape: f32[1,288], index: 5, kind: input, shape index: {}, may-alias: {4,5}]   ;;  %s642_s0 = inlined_call_operand.vmem [shape: bf16[24,128], index: 0, kind: input, shape index: {}]   ;;  %s643_s6 = inlined_call_operand.vmem [shape: bf16[24,288], index: 6, kind: output, shape index: {}]  }
   0x1   :  { %v464_v0 = vld [vmem:[%s637_s1 + $0xac] ss:$12 sps:$4 sm:$0xff]   ;;  %252 = vmatprep.mubr.bf16.mxu0 %v498_v1  ;;  %v466_v2 = vld [vmem:[%s637_s1 + $0xb0] ss:$12 sps:$4 sm:$0xff]   ;;  %v467_v3 = vld [vmem:[%s637_s1 + $0xa8] ss:$12 sps:$4 sm:$0xff]  }
   0x2   :  { %220 = vmatprep.subr.bf16.mxu0 %v464_v0  ;;  %442 = vmatprep.subr.bf16.mxu1 %v466_v2  ;;  %v468_v4 = vld [vmem:[%s637_s1 + $0x94] ss:$12 sps:$4 sm:$0xff]   ;;  %v470_v5 = vld [vmem:[%s637_s1 + $0x98] ss:$12 sps:$4 sm:$0xff]   ;;  %v471_v6 = vld [vmem:[%s637_s1 + $0x90] ss:$12 sps:$4 sm:$0xff]  }
   0x3   :  { %221 = vmatpush1.bf16.msra.mxu0 %v467_v3  ;;  %443 = vmatpush3.bf16.msra.mxu1 %v466_v2  ;;  %v472_v7 = vld [vmem:[%s637_s1 + $0x7c] ss:$12 sps:$4 sm:$0xff]   ;;  %v474_v8 = vld [vmem:[%s637_s1 + $0x80] ss:$12 sps:$4 sm:$0xff]   ;;  %v475_v9 = vld [vmem:[%s637_s1 + $0x78] ss:$12 sps:$4 sm:$0xff]  }
   0x4   :  { %222 = vmatprep.subr.bf16.mxu0 %v468_v4  ;;  %444 = vmatprep.subr.bf16.mxu1 %v470_v5  ;;  %v476_v10 = vld [vmem:[%s637_s1 + $0x64] ss:$12 sps:$4 sm:$0xff]   ;;  %v478_v11 = vld [vmem:[%s637_s1 + $0x68] ss:$12 sps:$4 sm:$0xff]   ;;  %v479_v12 = vld [vmem:[%s637_s1 + $0x60] ss:$12 sps:$4 sm:$0xff]  }
   0x5   :  { %v480_v13 = vld [vmem:[%s637_s1 + $0x4c] ss:$12 sps:$4 sm:$0xff]   ;;  %v482_v14 = vld [vmem:[%s637_s1 + $0x50] ss:$12 sps:$4 sm:$0xff]   ;;  %v483_v15 = vld [vmem:[%s637_s1 + $0x48] ss:$12 sps:$4 sm:$0xff]  }
   0x6   :  { %v484_v16 = vld [vmem:[%s637_s1 + $0x34] ss:$12 sps:$4 sm:$0xff]   ;;  %v486_v17 = vld [vmem:[%s637_s1 + $0x38] ss:$12 sps:$4 sm:$0xff]   ;;  %v487_v19 = vld [vmem:[%s637_s1 + $0x30] ss:$12 sps:$4 sm:$0xff]  }
   0x7   :  { %223 = vmatpush1.bf16.msra.mxu0 %v471_v6  ;;  %445 = vmatpush3.bf16.msra.mxu1 %v470_v5  ;;  %v496_v18 = vld [vmem:[%s642_s0] sm:$0xff]   ;;  %v488_v20 = vld [vmem:[%s637_s1 + $0x1c] ss:$12 sps:$4 sm:$0xff]   ;;  %37 = vst.msk [vmem:[#allocation2 + $0x40] sm:$0xff] %vm30_vm0, %v499_v27  ;;  %31 = vst.msk [vmem:[#allocation2 + $0x10] sm:$0xff] %vm30_vm0, %v499_v27 }
   0x8   :  { %224 = vmatprep.subr.bf16.mxu0 %v472_v7  ;;  %446 = vmatprep.subr.bf16.mxu1 %v474_v8  ;;  %v490_v21 = vld [vmem:[%s637_s1 + $0x20] ss:$12 sps:$4 sm:$0xff]   ;;  %v491_v22 = vld [vmem:[%s637_s1 + $0x18] ss:$12 sps:$4 sm:$0xff]   ;;  %v494_v24 = vld [vmem:[%s637_s1 + $0x8] ss:$12 sps:$4 sm:$0xff]  }
   0x9   :  { %458 = vmatprep.mubr.bf16.mxu1 %v496_v18  ;;  %v492_v23 = vld [vmem:[%s637_s1 + $0x4] ss:$12 sps:$4 sm:$0xff]   ;;  %v495_v25 = vld [vmem:[%s637_s1] ss:$12 sps:$4 sm:$0xff]   ;;  %v497_v26 = vld [vmem:[%s642_s0 + $0x8] ss:$0 sps:$4 sm:$0xff]  }
   0xa   :  { %34 = vst.msk [vmem:[#allocation2 + $0x28] sm:$0xff] %vm30_vm0, %v499_v27 }
   0xb   :  { %225 = vmatpush1.bf16.msra.mxu0 %v475_v9  ;;  %447 = vmatpush3.bf16.msra.mxu1 %v474_v8 }
   0xc   :  { %226 = vmatprep.subr.bf16.mxu0 %v476_v10  ;;  %448 = vmatprep.subr.bf16.mxu1 %v478_v11 }
   0xe   :  { %v49_v28 = vld [vmem:[#allocation2 + $0x40] sm:$0xff]  ;;  %v43_v31 = vld [vmem:[#allocation2 + $0x10] sm:$0xff] }
   0xf   :  { %227 = vmatpush1.bf16.msra.mxu0 %v479_v12  ;;  %449 = vmatpush3.bf16.msra.mxu1 %v478_v11 }
  0x10   :  { %228 = vmatprep.subr.bf16.mxu0 %v480_v13  ;;  %450 = vmatprep.subr.bf16.mxu1 %v482_v14 }
  0x11   :  { %v46_v38 = vld [vmem:[#allocation2 + $0x28] sm:$0xff] }
  0x13   :  { %229 = vmatpush1.bf16.msra.mxu0 %v483_v15  ;;  %451 = vmatpush3.bf16.msra.mxu1 %v482_v14 }
  0x14   :  { %230 = vmatprep.subr.bf16.mxu0 %v484_v16  ;;  %452 = vmatprep.subr.bf16.mxu1 %v486_v17 }
  0x17   :  { %231 = vmatpush1.bf16.msra.mxu0 %v487_v19  ;;  %453 = vmatpush3.bf16.msra.mxu1 %v486_v17 }
  0x18   :  { %232 = vmatprep.subr.bf16.mxu0 %v488_v20  ;;  %454 = vmatprep.subr.bf16.mxu1 %v490_v21 }
  0x1b   :  { %233 = vmatpush1.bf16.msra.mxu0 %v491_v22  ;;  %455 = vmatpush3.bf16.msra.mxu1 %v490_v21 }
  0x1c   :  { %234 = vmatprep.subr.bf16.mxu0 %v492_v23  ;;  %456 = vmatprep.subr.bf16.mxu1 %v494_v24 }
  0x1f   :  { %235 = vmatpush1.bf16.msra.mxu0 %v495_v25  ;;  %457 = vmatpush3.bf16.msra.mxu1 %v494_v24 }
  0x22   :  { %253 = vmatmul.mubr.bf16.vlgmr.msra.gmra.mxu0 %v496_v18  ;;  %459 = vmatmul.mubr.bf16.vlgmr.msra.gmra.mxu1 %v497_v26 }
  0x23   :  { %262 = vmatprep.mubr.bf16.mxu0 %v498_v1 }
  0x2a   :  { %263 = vmatmul.mubr.bf16.gmra.mxu0 %v497_v26 }
  0xe2   :  { %v254_v29 = vpop.f32.mrf.mxu0  ;;  %v460_v30 = vpop.f32.mrf.mxu1 }
  0xe3   :  { %v327_v32 = vadd.f32 %v460_v30, %v49_v28 }
  0xe4   :  { %v256_v33 = vpop.f32.mrf.mxu0  ;;  %v305_v34 = vpop.f32.mrf.mxu1 }
  0xe5   :  { %337 = vst.msk [vmem:[#allocation2 + $0x40] sm:$0xff] %vm30_vm0, %v327_v32  ;;  %v321_v35 = vadd.f32 %v305_v34, %v43_v31  ;;  %v426_v39 = vpack.c.bf16 %v256_v33, %v254_v29 }
  0xe6   :  { %v258_v36 = vpop.f32.mrf.mxu0  ;;  %v461_v37 = vpop.f32.mrf.mxu1 }
  0xe7   :  { %331 = vst.msk [vmem:[#allocation2 + $0x10] sm:$0xff] %vm30_vm0, %v321_v35  ;;  %383 = vst [vmem:[%s643_s6] sm:$0xff] %v426_v39 }
  0xe8   :  { %v260_v40 = vpop.f32.mrf.mxu0  ;;  %v308_v41 = vpop.f32.mrf.mxu1 }
  0xe9   :  { %v324_v42 = vadd.f32 %v308_v41, %v46_v38  ;;  %v428_v44 = vpack.c.bf16 %v260_v40, %v258_v36 }
  0xea   :  { %v264_v43 = vpop.f32.mrf.mxu0 }
  0xeb   :  { %334 = vst.msk [vmem:[#allocation2 + $0x28] sm:$0xff] %vm30_vm0, %v324_v42  ;;  %386 = vst [vmem:[%s643_s6 + $0xc] sm:$0xff] %v428_v44 }
  0xec   :  { %v349_v45 = vld [vmem:[#allocation2 + $0x40] sm:$0xff]  ;;  %v266_v46 = vpop.f32.mrf.mxu0 }
  0xed   :  { %v431_v47 = vpack.c.bf16 %v349_v45, %v349_v45  ;;  %v430_v51 = vpack.c.bf16 %v266_v46, %v264_v43 }
  0xee   :  { %v343_v48 = vld [vmem:[#allocation2 + $0x10] sm:$0xff]  ;;  %v268_v49 = vpop.f32.mrf.mxu0 }
  0xef   :  { %389 = vst.msk [vmem:[%s643_s6 + $0x20] sm:$0xf] %vm384_vm1, %v431_v47  ;;  %v427_v50 = vpack.c.bf16 %v343_v48, %v343_v48  ;;  %388 = vst [vmem:[%s643_s6 + $0x18] sm:$0xff] %v430_v51 }
  0xf0   :  { %v269_v52 = vpop.f32.mrf.mxu0 }
  0xf1   :  { %385 = vst.msk [vmem:[%s643_s6 + $0x8] sm:$0xf] %vm384_vm1, %v427_v50 }
  0xf2   :  { %v346_v53 = vld [vmem:[#allocation2 + $0x28] sm:$0xff] }
  0xf3   :  { %v429_v54 = vpack.c.bf16 %v346_v53, %v346_v53 }
  0xf5   :  { %387 = vst.msk [vmem:[%s643_s6 + $0x14] sm:$0xf] %vm384_vm1, %v429_v54 }

// kernel: densenet121_forward.250
= control target key start
LH: loop header
LB: loop body
LE: loop exit
PB: predicated region body
PF: predicated region fallthrough
CT: control target
= control target key end

     0   :  { %s336_s12 = smov 0   ;;  %s362_s0 = inlined_call_operand.vmem [shape: bf16[2,1,1024], index: 0, kind: input, shape index: {}]   ;;  %s363_s1 = inlined_call_operand.vmem [shape: f32[1,1024], index: 1, kind: input, shape index: {}]   ;;  %s364_s2 = inlined_call_operand.vmem [shape: f32[1,1024], index: 2, kind: input, shape index: {}]   ;;  %s365_s3 = inlined_call_operand.vmem [shape: f32[2,1,1024], index: 3, kind: output, shape index: {}]  }
   0x1 LB: > { %s285_s13 = sadd.s32 4294967295, %s311_s12   ;;  %p289_p0 = scmp.ge.s32.totalorder %s311_s12, 1  ;;  %s311_s12 = sphi %s336_s12, %s13_s12  }
   0x2   : > { %p136_p1 = scmp.lt.s32.totalorder %s311_s12, 3 }
   0x4   : > { %p137_p2 = pnand %p289_p0, %p136_p1 }
   0x5   : > { %p158_p3 = scmp.lt.s32.totalorder (!%p137_p2), %s285_s13, 1 }
   0x6   : > { %140 = sbr.rel (%p137_p2) target bundleno = 31 (0x1f), region = 32 }
   0xb   : > { %v174_v0 = vlaneseq  ;;  %v313_v1 = vmov 857870592   ;;  %v314_v3 = vmov 2003195204   ;;  %s367_s13 = smov (!%p158_p3, %s285_s13), 1  ;;  %v169_v10 = vld [vmem:[%s363_s1] sm:$0xff] }
   0xc   : > { %v172_v2 = vunpack.c.l.s4 %v313_v1  ;;  %v179_v4 = vunpack.c.l.s4 %v314_v3  ;;  %v315_v6 = vmov 1966171168   ;;  %s290_s14 = sshll.u32 %s367_s13, 3  ;;  %v189_v13 = vld [vmem:[%s364_s2] sm:$0xff] }
   0xd   : > { %v175_v5 = vshrl.u32 %v174_v0, 7  ;;  %v216_v7 = vunpack.c.l.s4 %v315_v6  ;;  %s161_s19 = scalar_lea.vmem %s362_s0, %s290_s14  ;;  %s165_s24 = scalar_lea.vmem %s365_s3, %s290_s14 }
   0xe   : > { %v173_v8 = vunpack.c.0.s8 %v172_v2  ;;  %v180_v9 = vunpack.c.0.s8 %v179_v4  ;;  %v166_v14 = vld [vmem:[%s161_s19] sm:$0xff] }
   0xf   : > { %v217_v15 = vunpack.c.0.s8 %v216_v7  ;;  %v167_v16 = vunpack.c.l.bf16 %v166_v14  ;;  %v168_v17 = vunpack.c.h.bf16 %v166_v14 }
  0x10   : > { %v176_v11 = vsub.s32 %v173_v8, %v175_v5  ;;  %v183_v12 = vsub.s32 %v180_v9, %v175_v5 }
  0x11   : > { %v220_v26 = vsub.s32 %v217_v15, %v175_v5 }
  0x12   : > { %v177_v18 = vrot.slane %v169_v10, %v176_v11  ;;  %v184_v19 = vrot.slane %v169_v10, %v183_v12  ;;  %v197_v20 = vrot.slane %v189_v13, %v176_v11  ;;  %v204_v21 = vrot.slane %v189_v13, %v183_v12 }
  0x14   : > { %v187_v22 = vmul.f32 %v177_v18, %v167_v16  ;;  %v188_v23 = vmul.f32 %v184_v19, %v168_v17 }
  0x16   : > { %v207_v24 = vadd.f32 %v197_v20, %v187_v22  ;;  %v208_v25 = vadd.f32 %v204_v21, %v188_v23 }
  0x18   : > { %v209_v27 = vmax.f32 %v207_v24, 0.0  ;;  %v210_v28 = vmax.f32 %v208_v25, 0.0 }
  0x1a   : > { %v221_v29 = vrot.slane %v209_v27, %v220_v26  ;;  %v228_v30 = vrot.slane %v210_v28, %v220_v26 }
  0x1c   : > { %v229_v31 = vcombine.low %v221_v29, %v228_v30 }
  0x1e   : > { %231 = vst [vmem:[%s165_s24] sm:$0xff] %v229_v31 }
  0x1f PF: > { %s13_s12 = sadd.s32 1, %s311_s12  }
  0x20   : > { %p10_p4 = scmp.ge.s32.totalorder %s13_s12, 4  }
  0x22   :  { %12 = sbr.rel (!%p10_p4) target bundleno = 1 (0x1), region = 62 }

// kernel: densenet121_forward.251
= control target key start
LH: loop header
LB: loop body
LE: loop exit
PB: predicated region body
PF: predicated region fallthrough
CT: control target
= control target key end

     0   :  { %vm443_vm0 = vcmask 113664   ;;  %s1029_s1 = inlined_call_operand.vmem [shape: f32[1024,14], index: 1, kind: input, shape index: {}]   ;;  %s1030_s0 = inlined_call_operand.vmem [shape: f32[8,1024], index: 0, kind: input, shape index: {}]   ;;  %s1031_s2 = inlined_call_operand.vmem [shape: f32[1,14], index: 2, kind: input, shape index: {}]   ;;  %s1032_s3 = inlined_call_operand.vmem [shape: f32[8,14], index: 3, kind: output, shape index: {}]  }
   0x1   :  { %v53_v0 = vld [vmem:[%s1029_s1 + $0xf8] sm:$0xff]  ;;  %v52_v4 = vld [vmem:[%s1029_s1 + $0xf0] sm:$0xff]  ;;  %v51_v8 = vld [vmem:[%s1029_s1 + $0xe8] sm:$0xff] }
   0x2   :  { %v85_v1 = vld [vmem:[%s1029_s1 + $0x1f8] sm:$0xff]  ;;  %451 = vmatprep.subr.mxu0 %v53_v0  ;;  %v84_v5 = vld [vmem:[%s1029_s1 + $0x1f0] sm:$0xff]  ;;  %v83_v9 = vld [vmem:[%s1029_s1 + $0x1e8] sm:$0xff] }
   0x3   :  { %v37_v2 = vld [vmem:[%s1029_s1 + $0x78] sm:$0xff]  ;;  %486 = vmatprep.subr.mxu1 %v85_v1  ;;  %v36_v6 = vld [vmem:[%s1029_s1 + $0x70] sm:$0xff]  ;;  %v35_v10 = vld [vmem:[%s1029_s1 + $0x68] sm:$0xff] }
   0x4   :  { %v69_v3 = vld [vmem:[%s1029_s1 + $0x178] sm:$0xff]  ;;  %452 = vmatpush3.msra.mxu0 %v37_v2  ;;  %v68_v7 = vld [vmem:[%s1029_s1 + $0x170] sm:$0xff]  ;;  %v67_v11 = vld [vmem:[%s1029_s1 + $0x168] sm:$0xff] }
   0x5   :  { %487 = vmatpush3.msra.mxu1 %v69_v3  ;;  %453 = vmatprep.subr.mxu0 %v52_v4  ;;  %v50_v12 = vld [vmem:[%s1029_s1 + $0xe0] sm:$0xff]  ;;  %v49_v16 = vld [vmem:[%s1029_s1 + $0xd8] sm:$0xff]  ;;  %v48_v20 = vld [vmem:[%s1029_s1 + $0xd0] sm:$0xff] }
   0x6   :  { %488 = vmatprep.subr.mxu1 %v84_v5  ;;  %454 = vmatpush3.msra.mxu0 %v36_v6  ;;  %v82_v13 = vld [vmem:[%s1029_s1 + $0x1e0] sm:$0xff]  ;;  %v81_v17 = vld [vmem:[%s1029_s1 + $0x1d8] sm:$0xff]  ;;  %v80_v21 = vld [vmem:[%s1029_s1 + $0x1d0] sm:$0xff] }
   0x7   :  { %489 = vmatpush3.msra.mxu1 %v68_v7  ;;  %455 = vmatprep.subr.mxu0 %v51_v8  ;;  %v34_v14 = vld [vmem:[%s1029_s1 + $0x60] sm:$0xff]  ;;  %v33_v18 = vld [vmem:[%s1029_s1 + $0x58] sm:$0xff]  ;;  %v32_v22 = vld [vmem:[%s1029_s1 + $0x50] sm:$0xff] }
   0x8   :  { %490 = vmatprep.subr.mxu1 %v83_v9  ;;  %v66_v15 = vld [vmem:[%s1029_s1 + $0x160] sm:$0xff]  ;;  %456 = vmatpush3.msra.mxu0 %v35_v10  ;;  %v65_v19 = vld [vmem:[%s1029_s1 + $0x158] sm:$0xff]  ;;  %v64_v23 = vld [vmem:[%s1029_s1 + $0x150] sm:$0xff] }
   0x9   :  { %491 = vmatpush3.msra.mxu1 %v67_v11  ;;  %457 = vmatprep.subr.mxu0 %v50_v12  ;;  %v47_v24 = vld [vmem:[%s1029_s1 + $0xc8] sm:$0xff]  ;;  %v46_v28 = vld [vmem:[%s1029_s1 + $0xc0] sm:$0xff]  ;;  %v45_v32 = vld [vmem:[%s1029_s1 + $0xb8] sm:$0xff] }
   0xa   :  { %492 = vmatprep.subr.mxu1 %v82_v13  ;;  %458 = vmatpush3.msra.mxu0 %v34_v14  ;;  %v79_v25 = vld [vmem:[%s1029_s1 + $0x1c8] sm:$0xff]  ;;  %v78_v29 = vld [vmem:[%s1029_s1 + $0x1c0] sm:$0xff]  ;;  %v77_v33 = vld [vmem:[%s1029_s1 + $0x1b8] sm:$0xff] }
   0xb   :  { %493 = vmatpush3.msra.mxu1 %v66_v15  ;;  %459 = vmatprep.subr.mxu0 %v49_v16  ;;  %v31_v26 = vld [vmem:[%s1029_s1 + $0x48] sm:$0xff]  ;;  %v30_v30 = vld [vmem:[%s1029_s1 + $0x40] sm:$0xff]  ;;  %v29_v34 = vld [vmem:[%s1029_s1 + $0x38] sm:$0xff] }
   0xc   :  { %494 = vmatprep.subr.mxu1 %v81_v17  ;;  %460 = vmatpush3.msra.mxu0 %v33_v18  ;;  %v63_v27 = vld [vmem:[%s1029_s1 + $0x148] sm:$0xff]  ;;  %v62_v31 = vld [vmem:[%s1029_s1 + $0x140] sm:$0xff]  ;;  %v61_v35 = vld [vmem:[%s1029_s1 + $0x138] sm:$0xff] }
   0xd   :  { %495 = vmatpush3.msra.mxu1 %v65_v19  ;;  %461 = vmatprep.subr.mxu0 %v48_v20  ;;  %v44_v36 = vld [vmem:[%s1029_s1 + $0xb0] sm:$0xff]  ;;  %v43_v40 = vld [vmem:[%s1029_s1 + $0xa8] sm:$0xff]  ;;  %v42_v44 = vld [vmem:[%s1029_s1 + $0xa0] sm:$0xff] }
   0xe   :  { %496 = vmatprep.subr.mxu1 %v80_v21  ;;  %462 = vmatpush3.msra.mxu0 %v32_v22  ;;  %v76_v37 = vld [vmem:[%s1029_s1 + $0x1b0] sm:$0xff]  ;;  %v75_v41 = vld [vmem:[%s1029_s1 + $0x1a8] sm:$0xff]  ;;  %v74_v45 = vld [vmem:[%s1029_s1 + $0x1a0] sm:$0xff] }
   0xf   :  { %497 = vmatpush3.msra.mxu1 %v64_v23  ;;  %463 = vmatprep.subr.mxu0 %v47_v24  ;;  %v28_v38 = vld [vmem:[%s1029_s1 + $0x30] sm:$0xff]  ;;  %v27_v42 = vld [vmem:[%s1029_s1 + $0x28] sm:$0xff]  ;;  %v26_v46 = vld [vmem:[%s1029_s1 + $0x20] sm:$0xff] }
  0x10   :  { %498 = vmatprep.subr.mxu1 %v79_v25  ;;  %464 = vmatpush3.msra.mxu0 %v31_v26  ;;  %v60_v39 = vld [vmem:[%s1029_s1 + $0x130] sm:$0xff]  ;;  %v59_v43 = vld [vmem:[%s1029_s1 + $0x128] sm:$0xff]  ;;  %v58_v47 = vld [vmem:[%s1029_s1 + $0x120] sm:$0xff] }
  0x11   :  { %499 = vmatpush3.msra.mxu1 %v63_v27  ;;  %465 = vmatprep.subr.mxu0 %v46_v28  ;;  %v41_v48 = vld [vmem:[%s1029_s1 + $0x98] sm:$0xff]  ;;  %v40_v52 = vld [vmem:[%s1029_s1 + $0x90] sm:$0xff]  ;;  %v39_v56 = vld [vmem:[%s1029_s1 + $0x88] sm:$0xff] }
  0x12   :  { %500 = vmatprep.subr.mxu1 %v78_v29  ;;  %466 = vmatpush3.msra.mxu0 %v30_v30  ;;  %v73_v49 = vld [vmem:[%s1029_s1 + $0x198] sm:$0xff]  ;;  %v72_v53 = vld [vmem:[%s1029_s1 + $0x190] sm:$0xff]  ;;  %v71_v57 = vld [vmem:[%s1029_s1 + $0x188] sm:$0xff] }
  0x13   :  { %501 = vmatpush3.msra.mxu1 %v62_v31  ;;  %467 = vmatprep.subr.mxu0 %v45_v32  ;;  %v25_v50 = vld [vmem:[%s1029_s1 + $0x18] sm:$0xff]  ;;  %v24_v54 = vld [vmem:[%s1029_s1 + $0x10] sm:$0xff]  ;;  %v23_v58 = vld [vmem:[%s1029_s1 + $0x8] sm:$0xff] }
  0x14   :  { %502 = vmatprep.subr.mxu1 %v77_v33  ;;  %468 = vmatpush3.msra.mxu0 %v29_v34  ;;  %v57_v51 = vld [vmem:[%s1029_s1 + $0x118] sm:$0xff]  ;;  %v56_v55 = vld [vmem:[%s1029_s1 + $0x110] sm:$0xff]  ;;  %v55_v59 = vld [vmem:[%s1029_s1 + $0x108] sm:$0xff] }
  0x15   :  { %503 = vmatpush3.msra.mxu1 %v61_v35  ;;  %469 = vmatprep.subr.mxu0 %v44_v36  ;;  %v38_v60 = vld [vmem:[%s1029_s1 + $0x80] sm:$0xff]  ;;  %v15_v63 = vld [vmem:[%s1030_s0 + $0x8] sm:$0xff]  ;;  %v17_v2 = vld [vmem:[%s1030_s0 + $0x18] sm:$0xff] }
  0x16   :  { %504 = vmatprep.subr.mxu1 %v76_v37  ;;  %470 = vmatpush3.msra.mxu0 %v28_v38  ;;  %v70_v61 = vld [vmem:[%s1029_s1 + $0x180] sm:$0xff]  ;;  %v117_v3 = vld [vmem:[%s1029_s1 + $0x2f8] sm:$0xff]  ;;  %v16_v5 = vld [vmem:[%s1030_s0 + $0x10] sm:$0xff] }
  0x17   :  { %505 = vmatpush3.msra.mxu1 %v60_v39  ;;  %471 = vmatprep.subr.mxu0 %v43_v40  ;;  %v22_v62 = vld [vmem:[%s1029_s1] sm:$0xff]  ;;  %v149_v4 = vld [vmem:[%s1029_s1 + $0x3f8] sm:$0xff]  ;;  %v116_v8 = vld [vmem:[%s1029_s1 + $0x2f0] sm:$0xff] }
  0x18   :  { %506 = vmatprep.subr.mxu1 %v75_v41  ;;  %472 = vmatpush3.msra.mxu0 %v27_v42  ;;  %v54_v0 = vld [vmem:[%s1029_s1 + $0x100] sm:$0xff]  ;;  %v101_v6 = vld [vmem:[%s1029_s1 + $0x278] sm:$0xff]  ;;  %v148_v9 = vld [vmem:[%s1029_s1 + $0x3f0] sm:$0xff] }
  0x19   :  { %507 = vmatpush3.msra.mxu1 %v59_v43  ;;  %473 = vmatprep.subr.mxu0 %v42_v44  ;;  %v14_v1 = vld [vmem:[%s1030_s0] sm:$0xff]  ;;  %v133_v7 = vld [vmem:[%s1029_s1 + $0x378] sm:$0xff]  ;;  %v100_v10 = vld [vmem:[%s1029_s1 + $0x270] sm:$0xff] }
  0x1a   :  { %508 = vmatprep.subr.mxu1 %v74_v45  ;;  %474 = vmatpush3.msra.mxu0 %v26_v46  ;;  %v132_v11 = vld [vmem:[%s1029_s1 + $0x370] sm:$0xff]  ;;  %v115_v12 = vld [vmem:[%s1029_s1 + $0x2e8] sm:$0xff]  ;;  %v114_v16 = vld [vmem:[%s1029_s1 + $0x2e0] sm:$0xff] }
  0x1b   :  { %509 = vmatpush3.msra.mxu1 %v58_v47  ;;  %475 = vmatprep.subr.mxu0 %v41_v48  ;;  %v147_v13 = vld [vmem:[%s1029_s1 + $0x3e8] sm:$0xff]  ;;  %v146_v17 = vld [vmem:[%s1029_s1 + $0x3e0] sm:$0xff]  ;;  %v113_v20 = vld [vmem:[%s1029_s1 + $0x2d8] sm:$0xff] }
  0x1c   :  { %510 = vmatprep.subr.mxu1 %v73_v49  ;;  %476 = vmatpush3.msra.mxu0 %v25_v50  ;;  %v99_v14 = vld [vmem:[%s1029_s1 + $0x268] sm:$0xff]  ;;  %v98_v18 = vld [vmem:[%s1029_s1 + $0x260] sm:$0xff]  ;;  %v145_v21 = vld [vmem:[%s1029_s1 + $0x3d8] sm:$0xff] }
  0x1d   :  { %511 = vmatpush3.msra.mxu1 %v57_v51  ;;  %477 = vmatprep.subr.mxu0 %v40_v52  ;;  %v131_v15 = vld [vmem:[%s1029_s1 + $0x368] sm:$0xff]  ;;  %v130_v19 = vld [vmem:[%s1029_s1 + $0x360] sm:$0xff]  ;;  %v97_v22 = vld [vmem:[%s1029_s1 + $0x258] sm:$0xff] }
  0x1e   :  { %512 = vmatprep.subr.mxu1 %v72_v53  ;;  %478 = vmatpush3.msra.mxu0 %v24_v54  ;;  %v129_v23 = vld [vmem:[%s1029_s1 + $0x358] sm:$0xff]  ;;  %v112_v24 = vld [vmem:[%s1029_s1 + $0x2d0] sm:$0xff]  ;;  %v111_v28 = vld [vmem:[%s1029_s1 + $0x2c8] sm:$0xff] }
  0x1f   :  { %513 = vmatpush3.msra.mxu1 %v56_v55  ;;  %479 = vmatprep.subr.mxu0 %v39_v56  ;;  %v144_v25 = vld [vmem:[%s1029_s1 + $0x3d0] sm:$0xff]  ;;  %v143_v29 = vld [vmem:[%s1029_s1 + $0x3c8] sm:$0xff]  ;;  %v110_v32 = vld [vmem:[%s1029_s1 + $0x2c0] sm:$0xff] }
  0x20   :  { %514 = vmatprep.subr.mxu1 %v71_v57  ;;  %480 = vmatpush3.msra.mxu0 %v23_v58  ;;  %v96_v26 = vld [vmem:[%s1029_s1 + $0x250] sm:$0xff]  ;;  %v95_v30 = vld [vmem:[%s1029_s1 + $0x248] sm:$0xff]  ;;  %v142_v33 = vld [vmem:[%s1029_s1 + $0x3c0] sm:$0xff] }
  0x21   :  { %515 = vmatpush3.msra.mxu1 %v55_v59  ;;  %481 = vmatprep.subr.mxu0 %v38_v60  ;;  %v128_v27 = vld [vmem:[%s1029_s1 + $0x350] sm:$0xff]  ;;  %v127_v31 = vld [vmem:[%s1029_s1 + $0x348] sm:$0xff]  ;;  %v94_v34 = vld [vmem:[%s1029_s1 + $0x240] sm:$0xff] }
  0x22   :  { %516 = vmatprep.subr.mxu1 %v70_v61  ;;  %482 = vmatpush3.msra.mxu0 %v22_v62  ;;  %v126_v35 = vld [vmem:[%s1029_s1 + $0x340] sm:$0xff]  ;;  %v109_v36 = vld [vmem:[%s1029_s1 + $0x2b8] sm:$0xff]  ;;  %v108_v40 = vld [vmem:[%s1029_s1 + $0x2b0] sm:$0xff] }
  0x23   :  { %221 = vmatprep.mubr.f32.mxu0 %v15_v63  ;;  %517 = vmatpush3.msra.mxu1 %v54_v0  ;;  %v141_v37 = vld [vmem:[%s1029_s1 + $0x3b8] sm:$0xff]  ;;  %v140_v41 = vld [vmem:[%s1029_s1 + $0x3b0] sm:$0xff]  ;;  %v107_v44 = vld [vmem:[%s1029_s1 + $0x2a8] sm:$0xff] }
  0x24   :  { %222 = vmatmul.mubr.f32.vlgmr.msra.gmra.mxu0 %v14_v1  ;;  %291 = vmatprep.mubr.f32.mxu1 %v17_v2  ;;  %v93_v38 = vld [vmem:[%s1029_s1 + $0x238] sm:$0xff]  ;;  %v92_v42 = vld [vmem:[%s1029_s1 + $0x230] sm:$0xff]  ;;  %v139_v45 = vld [vmem:[%s1029_s1 + $0x3a8] sm:$0xff] }
  0x25   :  { %521 = vmatprep.subr.mxu0 %v117_v3  ;;  %556 = vmatprep.subr.mxu1 %v149_v4  ;;  %v125_v39 = vld [vmem:[%s1029_s1 + $0x338] sm:$0xff]  ;;  %v124_v43 = vld [vmem:[%s1029_s1 + $0x330] sm:$0xff]  ;;  %v91_v46 = vld [vmem:[%s1029_s1 + $0x228] sm:$0xff] }
  0x26   :  { %292 = vmatmul.mubr.f32.vlgmr.msra.gmra.mxu1 %v16_v5  ;;  %522 = vmatpush3.msra.mxu0 %v101_v6  ;;  %v123_v47 = vld [vmem:[%s1029_s1 + $0x328] sm:$0xff]  ;;  %v106_v48 = vld [vmem:[%s1029_s1 + $0x2a0] sm:$0xff]  ;;  %v105_v52 = vld [vmem:[%s1029_s1 + $0x298] sm:$0xff] }
  0x27   :  { %557 = vmatpush3.msra.mxu1 %v133_v7  ;;  %523 = vmatprep.subr.mxu0 %v116_v8  ;;  %v138_v49 = vld [vmem:[%s1029_s1 + $0x3a0] sm:$0xff]  ;;  %v137_v53 = vld [vmem:[%s1029_s1 + $0x398] sm:$0xff]  ;;  %v104_v56 = vld [vmem:[%s1029_s1 + $0x290] sm:$0xff] }
  0x28   :  { %558 = vmatprep.subr.mxu1 %v148_v9  ;;  %524 = vmatpush3.msra.mxu0 %v100_v10  ;;  %v90_v50 = vld [vmem:[%s1029_s1 + $0x220] sm:$0xff]  ;;  %v89_v54 = vld [vmem:[%s1029_s1 + $0x218] sm:$0xff]  ;;  %v136_v57 = vld [vmem:[%s1029_s1 + $0x390] sm:$0xff] }
  0x29   :  { %559 = vmatpush3.msra.mxu1 %v132_v11  ;;  %525 = vmatprep.subr.mxu0 %v115_v12  ;;  %v122_v51 = vld [vmem:[%s1029_s1 + $0x320] sm:$0xff]  ;;  %v121_v55 = vld [vmem:[%s1029_s1 + $0x318] sm:$0xff]  ;;  %v88_v58 = vld [vmem:[%s1029_s1 + $0x210] sm:$0xff] }
  0x2a   :  { %560 = vmatprep.subr.mxu1 %v147_v13  ;;  %526 = vmatpush3.msra.mxu0 %v99_v14  ;;  %v120_v59 = vld [vmem:[%s1029_s1 + $0x310] sm:$0xff]  ;;  %v103_v60 = vld [vmem:[%s1029_s1 + $0x288] sm:$0xff]  ;;  %v102_v0 = vld [vmem:[%s1029_s1 + $0x280] sm:$0xff] }
  0x2b   :  { %561 = vmatpush3.msra.mxu1 %v131_v15  ;;  %527 = vmatprep.subr.mxu0 %v114_v16  ;;  %v135_v61 = vld [vmem:[%s1029_s1 + $0x388] sm:$0xff]  ;;  %v134_v1 = vld [vmem:[%s1029_s1 + $0x380] sm:$0xff]  ;;  %v21_v5 = vld [vmem:[%s1030_s0 + $0x38] sm:$0xff] }
  0x2c   :  { %562 = vmatprep.subr.mxu1 %v146_v17  ;;  %528 = vmatpush3.msra.mxu0 %v98_v18  ;;  %v87_v62 = vld [vmem:[%s1029_s1 + $0x208] sm:$0xff]  ;;  %v86_v2 = vld [vmem:[%s1029_s1 + $0x200] sm:$0xff]  ;;  %v20_v7 = vld [vmem:[%s1030_s0 + $0x30] sm:$0xff] }
  0x2d   :  { %563 = vmatpush3.msra.mxu1 %v130_v19  ;;  %529 = vmatprep.subr.mxu0 %v113_v20  ;;  %v119_v63 = vld [vmem:[%s1029_s1 + $0x308] sm:$0xff]  ;;  %v118_v4 = vld [vmem:[%s1029_s1 + $0x300] sm:$0xff] }
  0x2e   :  { %564 = vmatprep.subr.mxu1 %v145_v21  ;;  %530 = vmatpush3.msra.mxu0 %v97_v22  ;;  %v19_v3 = vld [vmem:[%s1030_s0 + $0x28] sm:$0xff]  ;;  %v18_v6 = vld [vmem:[%s1030_s0 + $0x20] sm:$0xff] }
  0x2f   :  { %565 = vmatpush3.msra.mxu1 %v129_v23  ;;  %531 = vmatprep.subr.mxu0 %v112_v24  ;;  %v449_v12 = vld [vmem:[%s1031_s2] ss:$0 sm:$0xff] }
  0x30   :  { %566 = vmatprep.subr.mxu1 %v144_v25  ;;  %532 = vmatpush3.msra.mxu0 %v96_v26 }
  0x31   :  { %567 = vmatpush3.msra.mxu1 %v128_v27  ;;  %533 = vmatprep.subr.mxu0 %v111_v28 }
  0x32   :  { %568 = vmatprep.subr.mxu1 %v143_v29  ;;  %534 = vmatpush3.msra.mxu0 %v95_v30 }
  0x33   :  { %569 = vmatpush3.msra.mxu1 %v127_v31  ;;  %535 = vmatprep.subr.mxu0 %v110_v32 }
  0x34   :  { %570 = vmatprep.subr.mxu1 %v142_v33  ;;  %536 = vmatpush3.msra.mxu0 %v94_v34 }
  0x35   :  { %571 = vmatpush3.msra.mxu1 %v126_v35  ;;  %537 = vmatprep.subr.mxu0 %v109_v36 }
  0x36   :  { %572 = vmatprep.subr.mxu1 %v141_v37  ;;  %538 = vmatpush3.msra.mxu0 %v93_v38 }
  0x37   :  { %573 = vmatpush3.msra.mxu1 %v125_v39  ;;  %539 = vmatprep.subr.mxu0 %v108_v40 }
  0x38   :  { %574 = vmatprep.subr.mxu1 %v140_v41  ;;  %540 = vmatpush3.msra.mxu0 %v92_v42 }
  0x39   :  { %575 = vmatpush3.msra.mxu1 %v124_v43  ;;  %541 = vmatprep.subr.mxu0 %v107_v44 }
  0x3a   :  { %576 = vmatprep.subr.mxu1 %v139_v45  ;;  %542 = vmatpush3.msra.mxu0 %v91_v46 }
  0x3b   :  { %577 = vmatpush3.msra.mxu1 %v123_v47  ;;  %543 = vmatprep.subr.mxu0 %v106_v48 }
  0x3c   :  { %578 = vmatprep.subr.mxu1 %v138_v49  ;;  %544 = vmatpush3.msra.mxu0 %v90_v50 }
  0x3d   :  { %579 = vmatpush3.msra.mxu1 %v122_v51  ;;  %545 = vmatprep.subr.mxu0 %v105_v52 }
  0x3e   :  { %580 = vmatprep.subr.mxu1 %v137_v53  ;;  %546 = vmatpush3.msra.mxu0 %v89_v54 }
  0x3f   :  { %581 = vmatpush3.msra.mxu1 %v121_v55  ;;  %547 = vmatprep.subr.mxu0 %v104_v56 }
  0x40   :  { %582 = vmatprep.subr.mxu1 %v136_v57  ;;  %548 = vmatpush3.msra.mxu0 %v88_v58 }
  0x41   :  { %583 = vmatpush3.msra.mxu1 %v120_v59  ;;  %549 = vmatprep.subr.mxu0 %v103_v60 }
  0x42   :  { %584 = vmatprep.subr.mxu1 %v135_v61  ;;  %550 = vmatpush3.msra.mxu0 %v87_v62 }
  0x43   :  { %585 = vmatpush3.msra.mxu1 %v119_v63  ;;  %551 = vmatprep.subr.mxu0 %v102_v0 }
  0x44   :  { %586 = vmatprep.subr.mxu1 %v134_v1  ;;  %552 = vmatpush3.msra.mxu0 %v86_v2 }
  0x45   :  { %361 = vmatprep.mubr.f32.mxu0 %v19_v3  ;;  %587 = vmatpush3.msra.mxu1 %v118_v4 }
  0x46   :  { %431 = vmatprep.mubr.f32.mxu1 %v21_v5  ;;  %362 = vmatmul.mubr.f32.vlgmr.msra.gmra.mxu0 %v18_v6 }
  0x47   :  { %432 = vmatmul.mubr.f32.vlgmr.msra.gmra.mxu1 %v20_v7 }
  0xe4   :  { %v483_v8 = vpop.f32.mrf.mxu0 }
  0xe6   :  { %v518_v9 = vpop.f32.mrf.mxu1  ;;  %v484_v10 = vpop.f32.mrf.mxu0 }
  0xe7   :  { %v485_v11 = vadd.f32 %v484_v10, %v483_v8 }
  0xe8   :  { %v519_v13 = vpop.f32.mrf.mxu1 }
  0xe9   :  { %v224_v14 = vadd.f32 %v485_v11, %v449_v12  ;;  %v520_v15 = vadd.f32 %v519_v13, %v518_v9 }
  0xeb   :  { %v294_v20 = vadd.f32 %v520_v15, %v224_v14 }
 0x106   :  { %v553_v16 = vpop.f32.mrf.mxu0 }
 0x107   :  { %v588_v17 = vpop.f32.mrf.mxu1 }
 0x108   :  { %v554_v18 = vpop.f32.mrf.mxu0 }
 0x109   :  { %v589_v19 = vpop.f32.mrf.mxu1  ;;  %v555_v21 = vadd.f32 %v554_v18, %v553_v16 }
 0x10a   :  { %v590_v23 = vadd.f32 %v589_v19, %v588_v17 }
 0x10b   :  { %v364_v22 = vadd.f32 %v555_v21, %v294_v20 }
 0x10d   :  { %v434_v24 = vadd.f32 %v590_v23, %v364_v22 }
 0x10f   :  { %v450_v25 = vmul.f32 -1.442695, %v434_v24 }
 0x111   :  { %591 = vpow2.f32 %v450_v25 }
 0x11e   :  { %v592_v26 = vpop.eup %591 }
 0x11f   :  { %v440_v27 = vadd.f32 1.0, %v592_v26 }
 0x121   :  { %593 = vrcp.f32 %v440_v27 }
 0x12e   :  { %v594_v28 = vpop.eup %593 }
 0x12f   :  { %444 = vst.msk [vmem:[%s1032_s3] sm:$0xff] %vm443_vm0, %v594_v28 }

</bundles_post_ra>
